<compile_context>
chip_gen: v7x
topology: tpu7x:2x2x1
jax: 0.10.0
libtpu: 0.0.40
codegen_flags: <defaults>
</compile_context>

<pallas_src>
import jax
import jax.numpy as jnp
from jax import lax
from jax.experimental import pallas as pl
from jax.experimental.pallas import tpu as pltpu

BN_EPS = 1e-5
CPAD = 128  # all channel axes are zero-padded to one full vreg lane width


def _net00_fused_kernel(x_ref,
                        w1_ref, g1_ref, b1_ref,
                        w2_ref, g2_ref, b2_ref,
                        w3_ref, g3_ref, b3_ref,
                        o_ref,
                        pad_a, pad_b):
    """Fused (conv3x3 + BN(batch stats) + ReLU) x 3, channels padded to 128.

    x_ref:    (N, H, W, 128)       layer-1 input, NHWC, channel-padded
    w*_ref:   (9*128, 128) bf16    im2col-packed weights, row = (kh*3+kw)*128 + cin
    g*_ref:   (1, 128) f32         BN gamma (zero in padded channels)
    b*_ref:   (1, 128) f32         BN beta  (zero in padded channels)
    o_ref:    (N, H, W, 128) f32   layer-3 output (padded channels are exactly zero)
    pad_a/b:  (N, H+2, W+2, 128)   ping-pong padded activation scratch in VMEM
    """
    N, H, W, C = x_ref.shape

    # Pre-zero both padded buffers: gives the spatial zero padding (padding=1) and keeps
    # the padded channel columns exactly zero through every layer.
    pad_a[...] = jnp.zeros_like(pad_a)
    pad_b[...] = jnp.zeros_like(pad_b)
    pad_a[:, 1:H + 1, 1:W + 1, :] = x_ref[...]

    inv_n = 1.0 / float(N * H * W)

    def conv_bn_relu(src_ref, w_ref, g_ref, b_ref):
        xp = src_ref[...]
        # im2col: 9 shifted views concatenated along the (lane) channel axis.
        cols = [xp[:, kh:kh + H, kw:kw + W, :]
                for kh in range(3) for kw in range(3)]
        patch = jnp.concatenate(cols, axis=-1).reshape(N * H * W, 9 * C)
        # Single MXU matmul per layer: bf16 inputs, f32 accumulation.
        acc = jnp.dot(patch.astype(jnp.bfloat16), w_ref[...],
                      preferred_element_type=jnp.float32)
        # Conv bias omitted: BatchNorm's batch-mean subtraction cancels it exactly.
        # One-pass biased batch statistics over (N, H, W) per channel, matching
        # BatchNorm2d in training mode.
        s = jnp.sum(acc, axis=0, keepdims=True)
        ss = jnp.sum(acc * acc, axis=0, keepdims=True)
        mean = s * inv_n
        var = jnp.maximum(ss * inv_n - mean * mean, 0.0)
        scale = g_ref[...] * lax.rsqrt(var + BN_EPS)
        shift = b_ref[...] - mean * scale
        y = jnp.maximum(acc * scale + shift, 0.0)        # ReLU
        return y.reshape(N, H, W, C)

    y1 = conv_bn_relu(pad_a, w1_ref, g1_ref, b1_ref)
    pad_b[:, 1:H + 1, 1:W + 1, :] = y1
    y2 = conv_bn_relu(pad_b, w2_ref, g2_ref, b2_ref)
    pad_a[:, 1:H + 1, 1:W + 1, :] = y2
    o_ref[...] = conv_bn_relu(pad_a, w3_ref, g3_ref, b3_ref)


def _pack_layer(w, gamma, beta):
    """w: (3,3,Cin,Cout) HWIO. Returns (9*128,128) bf16 weights, (1,128) gamma, (1,128) beta."""
    cin, cout = w.shape[2], w.shape[3]
    wp = jnp.zeros((3, 3, CPAD, CPAD), jnp.float32).at[:, :, :cin, :cout].set(w)
    wp = wp.reshape(9 * CPAD, CPAD).astype(jnp.bfloat16)
    gp = jnp.zeros((1, CPAD), jnp.float32).at[0, :cout].set(gamma)
    bp = jnp.zeros((1, CPAD), jnp.float32).at[0, :cout].set(beta)
    return wp, gp, bp


@jax.jit
def net00_forward(x_nchw, params):
    """Input/output in NCHW to match the PyTorch module. params: 3 x (w, bias, gamma, beta)."""
    N, Cin, H, W = x_nchw.shape
    cout_last = params[-1][0].shape[-1]

    x = jnp.transpose(x_nchw, (0, 2, 3, 1))                      # NCHW -> NHWC
    x = jnp.pad(x, ((0, 0), (0, 0), (0, 0), (0, CPAD - Cin)))    # lane-dense layer-1 input

    packed = []
    for (w, _bias, gamma, beta) in params:
        # conv bias is not passed: it is cancelled exactly by BN's mean subtraction.
        packed.extend(_pack_layer(w, gamma, beta))

    vmem = pl.BlockSpec(memory_space=pltpu.MemorySpace.VMEM)
    out = pl.pallas_call(
        _net00_fused_kernel,
        out_shape=jax.ShapeDtypeStruct((N, H, W, CPAD), jnp.float32),
        in_specs=[vmem] * (1 + len(packed)),
        out_specs=vmem,
        scratch_shapes=[
            pltpu.VMEM((N, H + 2, W + 2, CPAD), jnp.float32),
            pltpu.VMEM((N, H + 2, W + 2, CPAD), jnp.float32),
        ],
        compiler_params=pltpu.CompilerParams(vmem_limit_bytes=32 * 1024 * 1024),
    )(x, *packed)

    out = out[:, :, :, :cout_last]                               # drop channel padding
    return jnp.transpose(out, (0, 3, 1, 2))                      # NHWC -> NCHW


def init_params(key):
    """Synthetic parameters matching Net00's shapes. Conv weights stored HWIO = (3,3,Cin,Cout)."""
    dims = [(3, 16), (16, 64), (64, 10)]
    params = []
    for i, (cin, cout) in enumerate(dims):
        kw_key, kb_key = jax.random.split(jax.random.fold_in(key, i))
        w = 0.1 * jax.random.normal(kw_key, (3, 3, cin, cout), jnp.float32)
        b = 0.1 * jax.random.normal(kb_key, (cout,), jnp.float32)
        gamma = jnp.ones((cout,), jnp.float32)    # BatchNorm2d default init
        beta = jnp.zeros((cout,), jnp.float32)
        params.append((w, b, gamma, beta))
    return params


def net00_reference(x_nchw, params):
    """Pure-JAX f32 reference identical to the PyTorch forward (training-mode BN)."""
    x = x_nchw
    for (w, b, gamma, beta) in params:
        y = lax.conv_general_dilated(
            x, w, window_strides=(1, 1), padding=((1, 1), (1, 1)),
            dimension_numbers=("NCHW", "HWIO", "NCHW"))
        y = y + b[None, :, None, None]
        mean = jnp.mean(y, axis=(0, 2, 3), keepdims=True)
        var = jnp.mean((y - mean) ** 2, axis=(0, 2, 3), keepdims=True)
        y = (y - mean) * lax.rsqrt(var + BN_EPS)
        y = y * gamma[None, :, None, None] + beta[None, :, None, None]
        x = jnp.maximum(y, 0.0)
    return x


if __name__ == "__main__":
    key = jax.random.PRNGKey(0)
    x_key, p_key = jax.random.split(key)

    # Small NCHW input consistent with Conv2d(3, ...): batch=2, channels=3, spatial=16x16.
    x = jax.random.normal(x_key, (2, 3, 16, 16), jnp.float32)
    params = init_params(p_key)

    out = net00_forward(x, params)
    jax.block_until_ready(out)
    assert out.shape == (2, 10, 16, 16), out.shape

    # Validate against the f32 pure-JAX reference (loosened tolerance: bf16 MXU inputs).
    ref = net00_reference(x, params)
    max_err = float(jnp.max(jnp.abs(out - ref)))
    assert max_err < 1e-1, f"max abs err vs reference: {max_err}"

    print("KERNEL_OK")
</pallas_src>

<mosaic_0001>
module attributes {stable_mosaic.version = 11 : i64} {
  func.func @_net00_fused_kernel(%arg0: memref<2x16x16x128xf32, #tpu.memory_space<vmem>>, %arg1: memref<1152x128xbf16, #tpu.memory_space<vmem>>, %arg2: memref<1x128xf32, #tpu.memory_space<vmem>>, %arg3: memref<1x128xf32, #tpu.memory_space<vmem>>, %arg4: memref<1152x128xbf16, #tpu.memory_space<vmem>>, %arg5: memref<1x128xf32, #tpu.memory_space<vmem>>, %arg6: memref<1x128xf32, #tpu.memory_space<vmem>>, %arg7: memref<1152x128xbf16, #tpu.memory_space<vmem>>, %arg8: memref<1x128xf32, #tpu.memory_space<vmem>>, %arg9: memref<1x128xf32, #tpu.memory_space<vmem>>, %arg10: memref<2x16x16x128xf32, #tpu.memory_space<vmem>>, %arg11: memref<2x18x18x128xf32, #tpu.memory_space<vmem>>, %arg12: memref<2x18x18x128xf32, #tpu.memory_space<vmem>>) attributes {dimension_semantics = [], scalar_prefetch = 0 : i64, scratch_operands = 2 : i64, tpu.core_type = #tpu.core_type<tc>} {
    %cst = arith.constant 0.000000e+00 : f32
    %0 = vector.broadcast %cst : f32 to vector<2x18x18x128xf32>
    %c0 = arith.constant 0 : index
    %c0_0 = arith.constant 0 : index
    %c0_1 = arith.constant 0 : index
    %c0_2 = arith.constant 0 : index
    %1 = vector.load %arg11[%c0, %c0_0, %c0_1, %c0_2] : memref<2x18x18x128xf32, #tpu.memory_space<vmem>>, vector<2x18x18x128xf32>
    tpu.vector_store %arg11[%c0, %c0_0, %c0_1, %c0_2], %0 {strides = array<i32>} : memref<2x18x18x128xf32, #tpu.memory_space<vmem>>, vector<2x18x18x128xf32>,
    %cst_3 = arith.constant 0.000000e+00 : f32
    %2 = vector.broadcast %cst_3 : f32 to vector<2x18x18x128xf32>
    %c0_4 = arith.constant 0 : index
    %c0_5 = arith.constant 0 : index
    %c0_6 = arith.constant 0 : index
    %c0_7 = arith.constant 0 : index
    %3 = vector.load %arg12[%c0_4, %c0_5, %c0_6, %c0_7] : memref<2x18x18x128xf32, #tpu.memory_space<vmem>>, vector<2x18x18x128xf32>
    tpu.vector_store %arg12[%c0_4, %c0_5, %c0_6, %c0_7], %2 {strides = array<i32>} : memref<2x18x18x128xf32, #tpu.memory_space<vmem>>, vector<2x18x18x128xf32>,
    %c0_8 = arith.constant 0 : index
    %c0_9 = arith.constant 0 : index
    %c0_10 = arith.constant 0 : index
    %c0_11 = arith.constant 0 : index
    %4 = vector.load %arg0[%c0_8, %c0_9, %c0_10, %c0_11] : memref<2x16x16x128xf32, #tpu.memory_space<vmem>>, vector<2x16x16x128xf32>
    %c0_12 = arith.constant 0 : index
    %c1 = arith.constant 1 : index
    %c1_13 = arith.constant 1 : index
    %c0_14 = arith.constant 0 : index
    %5 = vector.load %arg11[%c0_12, %c1, %c1_13, %c0_14] : memref<2x18x18x128xf32, #tpu.memory_space<vmem>>, vector<2x16x16x128xf32>
    tpu.vector_store %arg11[%c0_12, %c1, %c1_13, %c0_14], %4 {strides = array<i32>} : memref<2x18x18x128xf32, #tpu.memory_space<vmem>>, vector<2x16x16x128xf32>,
    %c0_15 = arith.constant 0 : index
    %c0_16 = arith.constant 0 : index
    %c0_17 = arith.constant 0 : index
    %c0_18 = arith.constant 0 : index
    %6 = vector.load %arg11[%c0_15, %c0_16, %c0_17, %c0_18] : memref<2x18x18x128xf32, #tpu.memory_space<vmem>>, vector<2x18x18x128xf32>
    %7 = vector.extract_strided_slice %6 {offsets = [0, 0, 0, 0], sizes = [2, 16, 16, 128], strides = [1, 1, 1, 1]} : vector<2x18x18x128xf32> to vector<2x16x16x128xf32>
    %8 = vector.extract_strided_slice %6 {offsets = [0, 0, 1, 0], sizes = [2, 16, 16, 128], strides = [1, 1, 1, 1]} : vector<2x18x18x128xf32> to vector<2x16x16x128xf32>
    %9 = vector.extract_strided_slice %6 {offsets = [0, 0, 2, 0], sizes = [2, 16, 16, 128], strides = [1, 1, 1, 1]} : vector<2x18x18x128xf32> to vector<2x16x16x128xf32>
    %10 = vector.extract_strided_slice %6 {offsets = [0, 1, 0, 0], sizes = [2, 16, 16, 128], strides = [1, 1, 1, 1]} : vector<2x18x18x128xf32> to vector<2x16x16x128xf32>
    %11 = vector.extract_strided_slice %6 {offsets = [0, 1, 1, 0], sizes = [2, 16, 16, 128], strides = [1, 1, 1, 1]} : vector<2x18x18x128xf32> to vector<2x16x16x128xf32>
    %12 = vector.extract_strided_slice %6 {offsets = [0, 1, 2, 0], sizes = [2, 16, 16, 128], strides = [1, 1, 1, 1]} : vector<2x18x18x128xf32> to vector<2x16x16x128xf32>
    %13 = vector.extract_strided_slice %6 {offsets = [0, 2, 0, 0], sizes = [2, 16, 16, 128], strides = [1, 1, 1, 1]} : vector<2x18x18x128xf32> to vector<2x16x16x128xf32>
    %14 = vector.extract_strided_slice %6 {offsets = [0, 2, 1, 0], sizes = [2, 16, 16, 128], strides = [1, 1, 1, 1]} : vector<2x18x18x128xf32> to vector<2x16x16x128xf32>
    %15 = vector.extract_strided_slice %6 {offsets = [0, 2, 2, 0], sizes = [2, 16, 16, 128], strides = [1, 1, 1, 1]} : vector<2x18x18x128xf32> to vector<2x16x16x128xf32>
    %16 = tpu.concatenate %7, %8, %9, %10, %11, %12, %13, %14, %15 in 3 : vector<2x16x16x128xf32>, vector<2x16x16x128xf32>, vector<2x16x16x128xf32>, vector<2x16x16x128xf32>, vector<2x16x16x128xf32>, vector<2x16x16x128xf32>, vector<2x16x16x128xf32>, vector<2x16x16x128xf32>, vector<2x16x16x128xf32> -> vector<2x16x16x1152xf32>
    %17 = vector.shape_cast %16 : vector<2x16x16x1152xf32> to vector<512x1152xf32>
    %18 = arith.truncf %17 : vector<512x1152xf32> to vector<512x1152xbf16>
    %c0_19 = arith.constant 0 : index
    %c0_20 = arith.constant 0 : index
    %19 = vector.load %arg1[%c0_19, %c0_20] : memref<1152x128xbf16, #tpu.memory_space<vmem>>, vector<1152x128xbf16>
    %cst_21 = arith.constant dense<0.000000e+00> : vector<512x128xf32>
    %20 = tpu.matmul %18, %19, %cst_21 {dimension_numbers = #tpu.dot_dimension_numbers<[1], [0], [0], [1], [0, 0, 1, 1], [], []>} : vector<512x1152xbf16>, vector<1152x128xbf16>, vector<512x128xf32> -> vector<512x128xf32>
    %cst_22 = arith.constant dense<0.000000e+00> : vector<128xf32>
    %21 = vector.multi_reduction <add>, %20, %cst_22 [0] : vector<512x128xf32> to vector<128xf32>
    %22 = vector.shape_cast %21 : vector<128xf32> to vector<1x128xf32>
    %23 = arith.mulf %20, %20 : vector<512x128xf32>
    %cst_23 = arith.constant dense<0.000000e+00> : vector<128xf32>
    %24 = vector.multi_reduction <add>, %23, %cst_23 [0] : vector<512x128xf32> to vector<128xf32>
    %25 = vector.shape_cast %24 : vector<128xf32> to vector<1x128xf32>
    %cst_24 = arith.constant 0.001953125 : f32
    %26 = vector.broadcast %cst_24 : f32 to vector<1x128xf32>
    %27 = arith.mulf %22, %26 : vector<1x128xf32>
    %cst_25 = arith.constant 0.001953125 : f32
    %28 = vector.broadcast %cst_25 : f32 to vector<1x128xf32>
    %29 = arith.mulf %25, %28 : vector<1x128xf32>
    %30 = arith.mulf %27, %27 : vector<1x128xf32>
    %31 = arith.subf %29, %30 : vector<1x128xf32>
    %cst_26 = arith.constant 0.000000e+00 : f32
    %32 = vector.broadcast %cst_26 : f32 to vector<1x128xf32>
    %33 = arith.maximumf %31, %32 : vector<1x128xf32>
    %c0_27 = arith.constant 0 : index
    %c0_28 = arith.constant 0 : index
    %34 = vector.load %arg2[%c0_27, %c0_28] : memref<1x128xf32, #tpu.memory_space<vmem>>, vector<1x128xf32>
    %cst_29 = arith.constant 9.99999974E-6 : f32
    %35 = vector.broadcast %cst_29 : f32 to vector<1x128xf32>
    %36 = arith.addf %33, %35 : vector<1x128xf32>
    %37 = math.rsqrt %36 : vector<1x128xf32>
    %38 = arith.mulf %34, %37 : vector<1x128xf32>
    %c0_30 = arith.constant 0 : index
    %c0_31 = arith.constant 0 : index
    %39 = vector.load %arg3[%c0_30, %c0_31] : memref<1x128xf32, #tpu.memory_space<vmem>>, vector<1x128xf32>
    %40 = arith.mulf %27, %38 : vector<1x128xf32>
    %41 = arith.subf %39, %40 : vector<1x128xf32>
    %42 = vector.broadcast %38 : vector<1x128xf32> to vector<512x128xf32>
    %43 = arith.mulf %20, %42 : vector<512x128xf32>
    %44 = vector.broadcast %41 : vector<1x128xf32> to vector<512x128xf32>
    %45 = arith.addf %43, %44 : vector<512x128xf32>
    %cst_32 = arith.constant 0.000000e+00 : f32
    %46 = vector.broadcast %cst_32 : f32 to vector<512x128xf32>
    %47 = arith.maximumf %45, %46 : vector<512x128xf32>
    %48 = vector.shape_cast %47 : vector<512x128xf32> to vector<2x16x16x128xf32>
    %c0_33 = arith.constant 0 : index
    %c1_34 = arith.constant 1 : index
    %c1_35 = arith.constant 1 : index
    %c0_36 = arith.constant 0 : index
    %49 = vector.load %arg12[%c0_33, %c1_34, %c1_35, %c0_36] : memref<2x18x18x128xf32, #tpu.memory_space<vmem>>, vector<2x16x16x128xf32>
    tpu.vector_store %arg12[%c0_33, %c1_34, %c1_35, %c0_36], %48 {strides = array<i32>} : memref<2x18x18x128xf32, #tpu.memory_space<vmem>>, vector<2x16x16x128xf32>,
    %c0_37 = arith.constant 0 : index
    %c0_38 = arith.constant 0 : index
    %c0_39 = arith.constant 0 : index
    %c0_40 = arith.constant 0 : index
    %50 = vector.load %arg12[%c0_37, %c0_38, %c0_39, %c0_40] : memref<2x18x18x128xf32, #tpu.memory_space<vmem>>, vector<2x18x18x128xf32>
    %51 = vector.extract_strided_slice %50 {offsets = [0, 0, 0, 0], sizes = [2, 16, 16, 128], strides = [1, 1, 1, 1]} : vector<2x18x18x128xf32> to vector<2x16x16x128xf32>
    %52 = vector.extract_strided_slice %50 {offsets = [0, 0, 1, 0], sizes = [2, 16, 16, 128], strides = [1, 1, 1, 1]} : vector<2x18x18x128xf32> to vector<2x16x16x128xf32>
    %53 = vector.extract_strided_slice %50 {offsets = [0, 0, 2, 0], sizes = [2, 16, 16, 128], strides = [1, 1, 1, 1]} : vector<2x18x18x128xf32> to vector<2x16x16x128xf32>
    %54 = vector.extract_strided_slice %50 {offsets = [0, 1, 0, 0], sizes = [2, 16, 16, 128], strides = [1, 1, 1, 1]} : vector<2x18x18x128xf32> to vector<2x16x16x128xf32>
    %55 = vector.extract_strided_slice %50 {offsets = [0, 1, 1, 0], sizes = [2, 16, 16, 128], strides = [1, 1, 1, 1]} : vector<2x18x18x128xf32> to vector<2x16x16x128xf32>
    %56 = vector.extract_strided_slice %50 {offsets = [0, 1, 2, 0], sizes = [2, 16, 16, 128], strides = [1, 1, 1, 1]} : vector<2x18x18x128xf32> to vector<2x16x16x128xf32>
    %57 = vector.extract_strided_slice %50 {offsets = [0, 2, 0, 0], sizes = [2, 16, 16, 128], strides = [1, 1, 1, 1]} : vector<2x18x18x128xf32> to vector<2x16x16x128xf32>
    %58 = vector.extract_strided_slice %50 {offsets = [0, 2, 1, 0], sizes = [2, 16, 16, 128], strides = [1, 1, 1, 1]} : vector<2x18x18x128xf32> to vector<2x16x16x128xf32>
    %59 = vector.extract_strided_slice %50 {offsets = [0, 2, 2, 0], sizes = [2, 16, 16, 128], strides = [1, 1, 1, 1]} : vector<2x18x18x128xf32> to vector<2x16x16x128xf32>
    %60 = tpu.concatenate %51, %52, %53, %54, %55, %56, %57, %58, %59 in 3 : vector<2x16x16x128xf32>, vector<2x16x16x128xf32>, vector<2x16x16x128xf32>, vector<2x16x16x128xf32>, vector<2x16x16x128xf32>, vector<2x16x16x128xf32>, vector<2x16x16x128xf32>, vector<2x16x16x128xf32>, vector<2x16x16x128xf32> -> vector<2x16x16x1152xf32>
    %61 = vector.shape_cast %60 : vector<2x16x16x1152xf32> to vector<512x1152xf32>
    %62 = arith.truncf %61 : vector<512x1152xf32> to vector<512x1152xbf16>
    %c0_41 = arith.constant 0 : index
    %c0_42 = arith.constant 0 : index
    %63 = vector.load %arg4[%c0_41, %c0_42] : memref<1152x128xbf16, #tpu.memory_space<vmem>>, vector<1152x128xbf16>
    %cst_43 = arith.constant dense<0.000000e+00> : vector<512x128xf32>
    %64 = tpu.matmul %62, %63, %cst_43 {dimension_numbers = #tpu.dot_dimension_numbers<[1], [0], [0], [1], [0, 0, 1, 1], [], []>} : vector<512x1152xbf16>, vector<1152x128xbf16>, vector<512x128xf32> -> vector<512x128xf32>
    %cst_44 = arith.constant dense<0.000000e+00> : vector<128xf32>
    %65 = vector.multi_reduction <add>, %64, %cst_44 [0] : vector<512x128xf32> to vector<128xf32>
    %66 = vector.shape_cast %65 : vector<128xf32> to vector<1x128xf32>
    %67 = arith.mulf %64, %64 : vector<512x128xf32>
    %cst_45 = arith.constant dense<0.000000e+00> : vector<128xf32>
    %68 = vector.multi_reduction <add>, %67, %cst_45 [0] : vector<512x128xf32> to vector<128xf32>
    %69 = vector.shape_cast %68 : vector<128xf32> to vector<1x128xf32>
    %cst_46 = arith.constant 0.001953125 : f32
    %70 = vector.broadcast %cst_46 : f32 to vector<1x128xf32>
    %71 = arith.mulf %66, %70 : vector<1x128xf32>
    %cst_47 = arith.constant 0.001953125 : f32
    %72 = vector.broadcast %cst_47 : f32 to vector<1x128xf32>
    %73 = arith.mulf %69, %72 : vector<1x128xf32>
    %74 = arith.mulf %71, %71 : vector<1x128xf32>
    %75 = arith.subf %73, %74 : vector<1x128xf32>
    %cst_48 = arith.constant 0.000000e+00 : f32
    %76 = vector.broadcast %cst_48 : f32 to vector<1x128xf32>
    %77 = arith.maximumf %75, %76 : vector<1x128xf32>
    %c0_49 = arith.constant 0 : index
    %c0_50 = arith.constant 0 : index
    %78 = vector.load %arg5[%c0_49, %c0_50] : memref<1x128xf32, #tpu.memory_space<vmem>>, vector<1x128xf32>
    %cst_51 = arith.constant 9.99999974E-6 : f32
    %79 = vector.broadcast %cst_51 : f32 to vector<1x128xf32>
    %80 = arith.addf %77, %79 : vector<1x128xf32>
    %81 = math.rsqrt %80 : vector<1x128xf32>
    %82 = arith.mulf %78, %81 : vector<1x128xf32>
    %c0_52 = arith.constant 0 : index
    %c0_53 = arith.constant 0 : index
    %83 = vector.load %arg6[%c0_52, %c0_53] : memref<1x128xf32, #tpu.memory_space<vmem>>, vector<1x128xf32>
    %84 = arith.mulf %71, %82 : vector<1x128xf32>
    %85 = arith.subf %83, %84 : vector<1x128xf32>
    %86 = vector.broadcast %82 : vector<1x128xf32> to vector<512x128xf32>
    %87 = arith.mulf %64, %86 : vector<512x128xf32>
    %88 = vector.broadcast %85 : vector<1x128xf32> to vector<512x128xf32>
    %89 = arith.addf %87, %88 : vector<512x128xf32>
    %cst_54 = arith.constant 0.000000e+00 : f32
    %90 = vector.broadcast %cst_54 : f32 to vector<512x128xf32>
    %91 = arith.maximumf %89, %90 : vector<512x128xf32>
    %92 = vector.shape_cast %91 : vector<512x128xf32> to vector<2x16x16x128xf32>
    %c0_55 = arith.constant 0 : index
    %c1_56 = arith.constant 1 : index
    %c1_57 = arith.constant 1 : index
    %c0_58 = arith.constant 0 : index
    %93 = vector.load %arg11[%c0_55, %c1_56, %c1_57, %c0_58] : memref<2x18x18x128xf32, #tpu.memory_space<vmem>>, vector<2x16x16x128xf32>
    tpu.vector_store %arg11[%c0_55, %c1_56, %c1_57, %c0_58], %92 {strides = array<i32>} : memref<2x18x18x128xf32, #tpu.memory_space<vmem>>, vector<2x16x16x128xf32>,
    %c0_59 = arith.constant 0 : index
    %c0_60 = arith.constant 0 : index
    %c0_61 = arith.constant 0 : index
    %c0_62 = arith.constant 0 : index
    %94 = vector.load %arg11[%c0_59, %c0_60, %c0_61, %c0_62] : memref<2x18x18x128xf32, #tpu.memory_space<vmem>>, vector<2x18x18x128xf32>
    %95 = vector.extract_strided_slice %94 {offsets = [0, 0, 0, 0], sizes = [2, 16, 16, 128], strides = [1, 1, 1, 1]} : vector<2x18x18x128xf32> to vector<2x16x16x128xf32>
    %96 = vector.extract_strided_slice %94 {offsets = [0, 0, 1, 0], sizes = [2, 16, 16, 128], strides = [1, 1, 1, 1]} : vector<2x18x18x128xf32> to vector<2x16x16x128xf32>
    %97 = vector.extract_strided_slice %94 {offsets = [0, 0, 2, 0], sizes = [2, 16, 16, 128], strides = [1, 1, 1, 1]} : vector<2x18x18x128xf32> to vector<2x16x16x128xf32>
    %98 = vector.extract_strided_slice %94 {offsets = [0, 1, 0, 0], sizes = [2, 16, 16, 128], strides = [1, 1, 1, 1]} : vector<2x18x18x128xf32> to vector<2x16x16x128xf32>
    %99 = vector.extract_strided_slice %94 {offsets = [0, 1, 1, 0], sizes = [2, 16, 16, 128], strides = [1, 1, 1, 1]} : vector<2x18x18x128xf32> to vector<2x16x16x128xf32>
    %100 = vector.extract_strided_slice %94 {offsets = [0, 1, 2, 0], sizes = [2, 16, 16, 128], strides = [1, 1, 1, 1]} : vector<2x18x18x128xf32> to vector<2x16x16x128xf32>
    %101 = vector.extract_strided_slice %94 {offsets = [0, 2, 0, 0], sizes = [2, 16, 16, 128], strides = [1, 1, 1, 1]} : vector<2x18x18x128xf32> to vector<2x16x16x128xf32>
    %102 = vector.extract_strided_slice %94 {offsets = [0, 2, 1, 0], sizes = [2, 16, 16, 128], strides = [1, 1, 1, 1]} : vector<2x18x18x128xf32> to vector<2x16x16x128xf32>
    %103 = vector.extract_strided_slice %94 {offsets = [0, 2, 2, 0], sizes = [2, 16, 16, 128], strides = [1, 1, 1, 1]} : vector<2x18x18x128xf32> to vector<2x16x16x128xf32>
    %104 = tpu.concatenate %95, %96, %97, %98, %99, %100, %101, %102, %103 in 3 : vector<2x16x16x128xf32>, vector<2x16x16x128xf32>, vector<2x16x16x128xf32>, vector<2x16x16x128xf32>, vector<2x16x16x128xf32>, vector<2x16x16x128xf32>, vector<2x16x16x128xf32>, vector<2x16x16x128xf32>, vector<2x16x16x128xf32> -> vector<2x16x16x1152xf32>
    %105 = vector.shape_cast %104 : vector<2x16x16x1152xf32> to vector<512x1152xf32>
    %106 = arith.truncf %105 : vector<512x1152xf32> to vector<512x1152xbf16>
    %c0_63 = arith.constant 0 : index
    %c0_64 = arith.constant 0 : index
    %107 = vector.load %arg7[%c0_63, %c0_64] : memref<1152x128xbf16, #tpu.memory_space<vmem>>, vector<1152x128xbf16>
    %cst_65 = arith.constant dense<0.000000e+00> : vector<512x128xf32>
    %108 = tpu.matmul %106, %107, %cst_65 {dimension_numbers = #tpu.dot_dimension_numbers<[1], [0], [0], [1], [0, 0, 1, 1], [], []>} : vector<512x1152xbf16>, vector<1152x128xbf16>, vector<512x128xf32> -> vector<512x128xf32>
    %cst_66 = arith.constant dense<0.000000e+00> : vector<128xf32>
    %109 = vector.multi_reduction <add>, %108, %cst_66 [0] : vector<512x128xf32> to vector<128xf32>
    %110 = vector.shape_cast %109 : vector<128xf32> to vector<1x128xf32>
    %111 = arith.mulf %108, %108 : vector<512x128xf32>
    %cst_67 = arith.constant dense<0.000000e+00> : vector<128xf32>
    %112 = vector.multi_reduction <add>, %111, %cst_67 [0] : vector<512x128xf32> to vector<128xf32>
    %113 = vector.shape_cast %112 : vector<128xf32> to vector<1x128xf32>
    %cst_68 = arith.constant 0.001953125 : f32
    %114 = vector.broadcast %cst_68 : f32 to vector<1x128xf32>
    %115 = arith.mulf %110, %114 : vector<1x128xf32>
    %cst_69 = arith.constant 0.001953125 : f32
    %116 = vector.broadcast %cst_69 : f32 to vector<1x128xf32>
    %117 = arith.mulf %113, %116 : vector<1x128xf32>
    %118 = arith.mulf %115, %115 : vector<1x128xf32>
    %119 = arith.subf %117, %118 : vector<1x128xf32>
    %cst_70 = arith.constant 0.000000e+00 : f32
    %120 = vector.broadcast %cst_70 : f32 to vector<1x128xf32>
    %121 = arith.maximumf %119, %120 : vector<1x128xf32>
    %c0_71 = arith.constant 0 : index
    %c0_72 = arith.constant 0 : index
    %122 = vector.load %arg8[%c0_71, %c0_72] : memref<1x128xf32, #tpu.memory_space<vmem>>, vector<1x128xf32>
    %cst_73 = arith.constant 9.99999974E-6 : f32
    %123 = vector.broadcast %cst_73 : f32 to vector<1x128xf32>
    %124 = arith.addf %121, %123 : vector<1x128xf32>
    %125 = math.rsqrt %124 : vector<1x128xf32>
    %126 = arith.mulf %122, %125 : vector<1x128xf32>
    %c0_74 = arith.constant 0 : index
    %c0_75 = arith.constant 0 : index
    %127 = vector.load %arg9[%c0_74, %c0_75] : memref<1x128xf32, #tpu.memory_space<vmem>>, vector<1x128xf32>
    %128 = arith.mulf %115, %126 : vector<1x128xf32>
    %129 = arith.subf %127, %128 : vector<1x128xf32>
    %130 = vector.broadcast %126 : vector<1x128xf32> to vector<512x128xf32>
    %131 = arith.mulf %108, %130 : vector<512x128xf32>
    %132 = vector.broadcast %129 : vector<1x128xf32> to vector<512x128xf32>
    %133 = arith.addf %131, %132 : vector<512x128xf32>
    %cst_76 = arith.constant 0.000000e+00 : f32
    %134 = vector.broadcast %cst_76 : f32 to vector<512x128xf32>
    %135 = arith.maximumf %133, %134 : vector<512x128xf32>
    %136 = vector.shape_cast %135 : vector<512x128xf32> to vector<2x16x16x128xf32>
    %c0_77 = arith.constant 0 : index
    %c0_78 = arith.constant 0 : index
    %c0_79 = arith.constant 0 : index
    %c0_80 = arith.constant 0 : index
    %137 = vector.load %arg10[%c0_77, %c0_78, %c0_79, %c0_80] : memref<2x16x16x128xf32, #tpu.memory_space<vmem>>, vector<2x16x16x128xf32>
    tpu.vector_store %arg10[%c0_77, %c0_78, %c0_79, %c0_80], %136 {strides = array<i32>} : memref<2x16x16x128xf32, #tpu.memory_space<vmem>>, vector<2x16x16x128xf32>,
    return
  }
}

</mosaic_0001>

<bundles_post_ra>
// kernel: net00_forward.1
= control target key start
LH: loop header
LB: loop body
LE: loop exit
PB: predicated region body
PF: predicated region fallthrough
CT: control target
= control target key end

     0   :  { %v20597_v0 = vmov 0   ;;  %v12332_v2 = vmov 0.0   ;;  %vm585_vm0 = vcmask 1046528   ;;  %vm810_vm1 = vcmask 1045504   ;;  %s20585_s1 = inlined_call_operand.vmem [shape: bf16[1152,128], index: 1, kind: input, shape index: {}]   ;;  %s20586_s0 = inlined_call_operand.vmem [shape: f32[2,16,16,128], index: 0, kind: input, shape index: {}]   ;;  %s20587_s4 = inlined_call_operand.vmem [shape: bf16[1152,128], index: 4, kind: input, shape index: {}]   ;;  %s20588_s2 = inlined_call_operand.vmem [shape: f32[1,128], index: 2, kind: input, shape index: {}]   ;;  %s20589_s3 = inlined_call_operand.vmem [shape: f32[1,128], index: 3, kind: input, shape index: {}]   ;;  %s20590_s7 = inlined_call_operand.vmem [shape: bf16[1152,128], index: 7, kind: input, shape index: {}]   ;;  %s20591_s5 = inlined_call_operand.vmem [shape: f32[1,128], index: 5, kind: input, shape index: {}]   ;;  %s20592_s6 = inlined_call_operand.vmem [shape: f32[1,128], index: 6, kind: input, shape index: {}]   ;;  %s20593_s8 = inlined_call_operand.vmem [shape: f32[1,128], index: 8, kind: input, shape index: {}]   ;;  %s20594_s9 = inlined_call_operand.vmem [shape: f32[1,128], index: 9, kind: input, shape index: {}]   ;;  %s20595_s10 = inlined_call_operand.vmem [shape: f32[2,16,16,128], index: 10, kind: output, shape index: {}]  }
   0x1   :  { %1787 = vmatprep.subr.bf16.mxu0 %v20597_v0  ;;  %v12393_v1 = vld [vmem:[%s20585_s1] sm:$0xff]   ;;  %36 = vst [vmem:[#allocation2] sm:$0xff] %v12332_v2  ;;  %38 = vst [vmem:[#allocation2 + $0x10] sm:$0x3] %v12332_v2  ;;  %v12080_v3 = vld [vmem:[%s20585_s1 + $0x8] sm:$0xff]   ;;  %v12610_v6 = vrot.slane %v12332_v2, 1 }
   0x2   :  { %39 = vst [vmem:[#allocation2 + $0x18] sm:$0xff] %v12332_v2  ;;  %40 = vst [vmem:[#allocation2 + $0x20] sm:$0xff] %v12332_v2  ;;  %1788 = vmatpush1.bf16.msra.mxu0 %v12393_v1  ;;  %v12081_v4 = vld [vmem:[%s20585_s1 + $0x10] sm:$0xff]   ;;  %v12082_v5 = vld [vmem:[%s20585_s1 + $0x18] sm:$0xff]  }
   0x3   :  { %41 = vst [vmem:[#allocation2 + $0x28] sm:$0x3] %v12332_v2  ;;  %42 = vst [vmem:[#allocation2 + $0x30] sm:$0xff] %v12332_v2  ;;  %1789 = vmatprep.subr.bf16.mxu0 %v20597_v0  ;;  %v12083_v7 = vld [vmem:[%s20585_s1 + $0x20] sm:$0xff]   ;;  %v12084_v9 = vld [vmem:[%s20585_s1 + $0x28] sm:$0xff]  }
   0x4   :  { %43 = vst [vmem:[#allocation2 + $0x38] sm:$0xff] %v12332_v2  ;;  %44 = vst [vmem:[#allocation2 + $0x40] sm:$0x3] %v12332_v2  ;;  %v252_v11 = vld [vmem:[%s20586_s0] sm:$0xff]  ;;  %v253_v12 = vld [vmem:[%s20586_s0 + $0x8] sm:$0xff] }
   0x5   :  { %45 = vst [vmem:[#allocation2 + $0x48] sm:$0xff] %v12332_v2  ;;  %46 = vst [vmem:[#allocation2 + $0x50] sm:$0xff] %v12332_v2  ;;  %v254_v13 = vld [vmem:[%s20586_s0 + $0x10] sm:$0xff]  ;;  %v255_v14 = vld [vmem:[%s20586_s0 + $0x18] sm:$0xff] }
   0x6   :  { %47 = vst [vmem:[#allocation2 + $0x58] sm:$0x3] %v12332_v2  ;;  %48 = vst [vmem:[#allocation2 + $0x60] sm:$0xff] %v12332_v2  ;;  %1790 = vmatpush1.bf16.msra.mxu0 %v12080_v3  ;;  %v256_v16 = vld [vmem:[%s20586_s0 + $0x20] sm:$0xff]  ;;  %v257_v18 = vld [vmem:[%s20586_s0 + $0x28] sm:$0xff] }
   0x7   :  { %49 = vst [vmem:[#allocation2 + $0x68] sm:$0xff] %v12332_v2  ;;  %50 = vst [vmem:[#allocation2 + $0x70] sm:$0x3] %v12332_v2  ;;  %1791 = vmatprep.subr.bf16.mxu0 %v20597_v0  ;;  %v258_v19 = vld [vmem:[%s20586_s0 + $0x30] sm:$0xff]  ;;  %v259_v20 = vld [vmem:[%s20586_s0 + $0x38] sm:$0xff] }
   0x8   :  { %51 = vst [vmem:[#allocation2 + $0x78] sm:$0xff] %v12332_v2  ;;  %52 = vst [vmem:[#allocation2 + $0x80] sm:$0xff] %v12332_v2  ;;  %v383_v8 = vld [vmem:[#allocation2 + $0x10] sm:$0x3]  ;;  %v260_v22 = vld [vmem:[%s20586_s0 + $0x40] sm:$0xff] }
   0x9   :  { %53 = vst [vmem:[#allocation2 + $0x88] sm:$0x3] %v12332_v2  ;;  %54 = vst [vmem:[#allocation2 + $0x90] sm:$0xff] %v12332_v2  ;;  %v589_v10 = vrot.slane %v383_v8, 1  ;;  %v12085_v21 = vld [vmem:[%s20585_s1 + $0x30] sm:$0xff]   ;;  %v261_v23 = vld [vmem:[%s20586_s0 + $0x48] sm:$0xff] }
   0xa   :  { %55 = vst [vmem:[#allocation2 + $0x98] sm:$0xff] %v12332_v2  ;;  %56 = vst [vmem:[#allocation2 + $0xa0] sm:$0x3] %v12332_v2  ;;  %1792 = vmatpush1.bf16.msra.mxu0 %v12081_v4  ;;  %v262_v24 = vld [vmem:[%s20586_s0 + $0x50] sm:$0xff]  ;;  %v263_v25 = vld [vmem:[%s20586_s0 + $0x58] sm:$0xff] }
   0xb   :  { %57 = vst [vmem:[#allocation2 + $0xa8] sm:$0xff] %v12332_v2  ;;  %58 = vst [vmem:[#allocation2 + $0xb0] sm:$0xff] %v12332_v2  ;;  %1793 = vmatprep.subr.bf16.mxu0 %v20597_v0  ;;  %v590_v15 = vsel %vm585_vm0, %v12610_v6, %v589_v10  ;;  %v264_v26 = vld [vmem:[%s20586_s0 + $0x60] sm:$0xff]  ;;  %v265_v27 = vld [vmem:[%s20586_s0 + $0x68] sm:$0xff] }
   0xc   :  { %59 = vst [vmem:[#allocation2 + $0xb8] sm:$0x3] %v12332_v2  ;;  %60 = vst [vmem:[#allocation2 + $0xc0] sm:$0xff] %v12332_v2  ;;  %v1104_v17 = vpack.c.bf16 %v590_v15, %v12610_v6  ;;  %v12086_v28 = vld [vmem:[%s20585_s1 + $0x38] sm:$0xff]   ;;  %v266_v29 = vld [vmem:[%s20586_s0 + $0x70] sm:$0xff] }
   0xd   :  { %61 = vst [vmem:[#allocation2 + $0xc8] sm:$0xff] %v12332_v2  ;;  %62 = vst [vmem:[#allocation2 + $0xd0] sm:$0x3] %v12332_v2  ;;  %v267_v30 = vld [vmem:[%s20586_s0 + $0x78] sm:$0xff]  ;;  %v12087_v31 = vld [vmem:[%s20585_s1 + $0x40] sm:$0xff]  }
   0xe   :  { %63 = vst [vmem:[#allocation2 + $0xd8] sm:$0xff] %v12332_v2  ;;  %64 = vst [vmem:[#allocation2 + $0xe0] sm:$0xff] %v12332_v2  ;;  %1794 = vmatpush1.bf16.msra.mxu0 %v12082_v5  ;;  %1819 = vmatprep.mubr.bf16.mxu0 %v1104_v17  ;;  %v12088_v32 = vld [vmem:[%s20585_s1 + $0x48] sm:$0xff]   ;;  %v268_v33 = vld [vmem:[%s20586_s0 + $0x80] sm:$0xff] }
   0xf   :  { %65 = vst [vmem:[#allocation2 + $0xe8] sm:$0x3] %v12332_v2  ;;  %66 = vst [vmem:[#allocation2 + $0xf0] sm:$0xff] %v12332_v2  ;;  %1795 = vmatprep.subr.bf16.mxu0 %v20597_v0  ;;  %v269_v34 = vld [vmem:[%s20586_s0 + $0x88] sm:$0xff]  ;;  %v270_v35 = vld [vmem:[%s20586_s0 + $0x90] sm:$0xff] }
  0x10   :  { %67 = vst [vmem:[#allocation2 + $0xf8] sm:$0xff] %v12332_v2  ;;  %68 = vst [vmem:[#allocation2 + $0x100] sm:$0x3] %v12332_v2  ;;  %v271_v36 = vld [vmem:[%s20586_s0 + $0x98] sm:$0xff]  ;;  %v12089_v37 = vld [vmem:[%s20585_s1 + $0x50] sm:$0xff]  }
  0x11   :  { %69 = vst [vmem:[#allocation2 + $0x108] sm:$0xff] %v12332_v2  ;;  %70 = vst [vmem:[#allocation2 + $0x110] sm:$0xff] %v12332_v2  ;;  %v272_v38 = vld [vmem:[%s20586_s0 + $0xa0] sm:$0xff]  ;;  %v273_v39 = vld [vmem:[%s20586_s0 + $0xa8] sm:$0xff] }
  0x12   :  { %71 = vst [vmem:[#allocation2 + $0x118] sm:$0x3] %v12332_v2  ;;  %72 = vst [vmem:[#allocation2 + $0x120] sm:$0xff] %v12332_v2  ;;  %1796 = vmatpush1.bf16.msra.mxu0 %v12083_v7  ;;  %v274_v40 = vld [vmem:[%s20586_s0 + $0xb0] sm:$0xff]  ;;  %v275_v41 = vld [vmem:[%s20586_s0 + $0xb8] sm:$0xff] }
  0x13   :  { %73 = vst [vmem:[#allocation2 + $0x128] sm:$0xff] %v12332_v2  ;;  %74 = vst [vmem:[#allocation2 + $0x130] sm:$0x3] %v12332_v2  ;;  %1797 = vmatprep.subr.bf16.mxu0 %v20597_v0  ;;  %v276_v42 = vld [vmem:[%s20586_s0 + $0xc0] sm:$0xff]  ;;  %v277_v43 = vld [vmem:[%s20586_s0 + $0xc8] sm:$0xff] }
  0x14   :  { %75 = vst [vmem:[#allocation2 + $0x138] sm:$0xff] %v12332_v2  ;;  %76 = vst [vmem:[#allocation2 + $0x140] sm:$0xff] %v12332_v2  ;;  %v278_v44 = vld [vmem:[%s20586_s0 + $0xd0] sm:$0xff]  ;;  %v279_v45 = vld [vmem:[%s20586_s0 + $0xd8] sm:$0xff] }
  0x15   :  { %77 = vst [vmem:[#allocation2 + $0x148] sm:$0x3] %v12332_v2  ;;  %78 = vst [vmem:[#allocation2 + $0x150] sm:$0xff] %v12332_v2  ;;  %v12090_v46 = vld [vmem:[%s20585_s1 + $0x58] sm:$0xff]   ;;  %v280_v47 = vld [vmem:[%s20586_s0 + $0xe0] sm:$0xff] }
  0x16   :  { %79 = vst [vmem:[#allocation2 + $0x158] sm:$0xff] %v12332_v2  ;;  %80 = vst [vmem:[#allocation2 + $0x160] sm:$0x3] %v12332_v2  ;;  %1798 = vmatpush1.bf16.msra.mxu0 %v12084_v9  ;;  %v281_v48 = vld [vmem:[%s20586_s0 + $0xe8] sm:$0xff]  ;;  %v12091_v49 = vld [vmem:[%s20585_s1 + $0x60] sm:$0xff]  }
  0x17   :  { %81 = vst [vmem:[#allocation2 + $0x168] sm:$0xff] %v12332_v2  ;;  %82 = vst [vmem:[#allocation2 + $0x170] sm:$0xff] %v12332_v2  ;;  %1799 = vmatprep.subr.bf16.mxu0 %v20597_v0  ;;  %v12092_v53 = vld [vmem:[%s20585_s1 + $0x68] sm:$0xff]   ;;  %v12093_v57 = vld [vmem:[%s20585_s1 + $0x70] sm:$0xff]  }
  0x18   :  { %83 = vst [vmem:[#allocation2 + $0x178] sm:$0x3] %v12332_v2  ;;  %84 = vst [vmem:[#allocation2 + $0x180] sm:$0xff] %v12332_v2  ;;  %v12094_v63 = vld [vmem:[%s20585_s1 + $0x78] sm:$0xff]   ;;  %v284_v4 = vld [vmem:[%s20586_s0 + $0x100] sm:$0xff] }
  0x19   :  { %85 = vst [vmem:[#allocation2 + $0x188] sm:$0xff] %v12332_v2  ;;  %86 = vst [vmem:[#allocation2 + $0x190] sm:$0x3] %v12332_v2  ;;  %v285_v5 = vld [vmem:[%s20586_s0 + $0x108] sm:$0xff]  ;;  %v12095_v9 = vld [vmem:[%s20585_s1 + $0x80] sm:$0xff]  }
  0x1a   :  { %89 = vst [vmem:[#allocation2 + $0x1a8] sm:$0x3] %v12332_v2  ;;  %92 = vst [vmem:[#allocation2 + $0x1c0] sm:$0x3] %v12332_v2  ;;  %1800 = vmatpush1.bf16.msra.mxu0 %v12085_v21  ;;  %v12096_v17 = vld [vmem:[%s20585_s1 + $0x88] sm:$0xff]  }
  0x1b   :  { %93 = vst [vmem:[#allocation2 + $0x1c8] sm:$0xff] %v12332_v2  ;;  %94 = vst [vmem:[#allocation2 + $0x1d0] sm:$0xff] %v12332_v2  ;;  %1801 = vmatprep.subr.bf16.mxu0 %v20597_v0 }
  0x1c   :  { %95 = vst [vmem:[#allocation2 + $0x1d8] sm:$0x3] %v12332_v2  ;;  %96 = vst [vmem:[#allocation2 + $0x1e0] sm:$0xff] %v12332_v2 }
  0x1d   :  { %97 = vst [vmem:[#allocation2 + $0x1e8] sm:$0xff] %v12332_v2  ;;  %98 = vst [vmem:[#allocation2 + $0x1f0] sm:$0x3] %v12332_v2 }
  0x1e   :  { %99 = vst [vmem:[#allocation2 + $0x1f8] sm:$0xff] %v12332_v2  ;;  %100 = vst [vmem:[#allocation2 + $0x200] sm:$0xff] %v12332_v2  ;;  %1802 = vmatpush1.bf16.msra.mxu0 %v12086_v28 }
  0x1f   :  { %101 = vst [vmem:[#allocation2 + $0x208] sm:$0x3] %v12332_v2  ;;  %102 = vst [vmem:[#allocation2 + $0x210] sm:$0xff] %v12332_v2  ;;  %1803 = vmatprep.subr.bf16.mxu0 %v20597_v0 }
  0x20   :  { %103 = vst [vmem:[#allocation2 + $0x218] sm:$0xff] %v12332_v2  ;;  %104 = vst [vmem:[#allocation2 + $0x220] sm:$0x3] %v12332_v2 }
  0x21   :  { %105 = vst [vmem:[#allocation2 + $0x228] sm:$0xff] %v12332_v2  ;;  %106 = vst [vmem:[#allocation2 + $0x230] sm:$0xff] %v12332_v2  ;;  %v437_v1 = vld [vmem:[#allocation2 + $0x1c0] sm:$0x3] }
  0x22   :  { %107 = vst [vmem:[#allocation2 + $0x238] sm:$0x3] %v12332_v2  ;;  %108 = vst [vmem:[#allocation2 + $0x240] sm:$0xff] %v12332_v2  ;;  %1804 = vmatpush1.bf16.msra.mxu0 %v12087_v31  ;;  %v669_v3 = vrot.slane %v437_v1, 1  ;;  %v12098_v31 = vld [vmem:[%s20585_s1 + $0x98] sm:$0xff]  }
  0x23   :  { %109 = vst [vmem:[#allocation2 + $0x248] sm:$0xff] %v12332_v2  ;;  %110 = vst [vmem:[#allocation2 + $0x250] sm:$0x3] %v12332_v2  ;;  %1805 = vmatprep.subr.bf16.mxu0 %v20597_v0 }
  0x24   :  { %111 = vst [vmem:[#allocation2 + $0x258] sm:$0xff] %v12332_v2  ;;  %112 = vst [vmem:[#allocation2 + $0x260] sm:$0xff] %v12332_v2  ;;  %v12775_v10 = vsel %vm585_vm0, %v12610_v6, %v669_v3 }
  0x25   :  { %113 = vst [vmem:[#allocation2 + $0x268] sm:$0x3] %v12332_v2  ;;  %114 = vst [vmem:[#allocation2 + $0x270] sm:$0xff] %v12332_v2 }
  0x26   :  { %115 = vst [vmem:[#allocation2 + $0x278] sm:$0xff] %v12332_v2  ;;  %116 = vst [vmem:[#allocation2 + $0x280] sm:$0x3] %v12332_v2  ;;  %1806 = vmatpush1.bf16.msra.mxu0 %v12088_v32  ;;  %v288_v32 = vld [vmem:[%s20586_s0 + $0x120] sm:$0xff] }
  0x27   :  { %117 = vst [vmem:[#allocation2 + $0x288] sm:$0xff] %v12332_v2  ;;  %118 = vst [vmem:[#allocation2 + $0x290] sm:$0xff] %v12332_v2  ;;  %1807 = vmatprep.subr.bf16.mxu0 %v20597_v0 }
  0x28   :  { %119 = vst [vmem:[#allocation2 + $0x298] sm:$0x3] %v12332_v2  ;;  %120 = vst [vmem:[#allocation2 + $0x2a0] sm:$0xff] %v12332_v2 }
  0x29   :  { %121 = vst [vmem:[#allocation2 + $0x2a8] sm:$0xff] %v12332_v2  ;;  %122 = vst [vmem:[#allocation2 + $0x2b0] sm:$0x3] %v12332_v2 }
  0x2a   :  { %123 = vst [vmem:[#allocation2 + $0x2b8] sm:$0xff] %v12332_v2  ;;  %124 = vst [vmem:[#allocation2 + $0x2c0] sm:$0xff] %v12332_v2  ;;  %1808 = vmatpush1.bf16.msra.mxu0 %v12089_v37 }
  0x2b   :  { %125 = vst [vmem:[#allocation2 + $0x2c8] sm:$0x3] %v12332_v2  ;;  %126 = vst [vmem:[#allocation2 + $0x2d0] sm:$0xff] %v12332_v2  ;;  %1809 = vmatprep.subr.bf16.mxu0 %v20597_v0 }
  0x2c   :  { %127 = vst [vmem:[#allocation2 + $0x2d8] sm:$0xff] %v12332_v2  ;;  %128 = vst [vmem:[#allocation2 + $0x2e0] sm:$0x3] %v12332_v2 }
  0x2d   :  { %129 = vst [vmem:[#allocation2 + $0x2e8] sm:$0xff] %v12332_v2  ;;  %130 = vst [vmem:[#allocation2 + $0x2f0] sm:$0xff] %v12332_v2 }
  0x2e   :  { %131 = vst [vmem:[#allocation2 + $0x2f8] sm:$0x3] %v12332_v2  ;;  %132 = vst [vmem:[#allocation2 + $0x300] sm:$0xff] %v12332_v2  ;;  %1810 = vmatpush1.bf16.msra.mxu0 %v12090_v46  ;;  %v12100_v46 = vld [vmem:[%s20585_s1 + $0xa8] sm:$0xff]  }
  0x2f   :  { %133 = vst [vmem:[#allocation2 + $0x308] sm:$0xff] %v12332_v2  ;;  %134 = vst [vmem:[#allocation2 + $0x310] sm:$0x3] %v12332_v2  ;;  %1811 = vmatprep.subr.bf16.mxu0 %v20597_v0 }
  0x30   :  { %135 = vst [vmem:[#allocation2 + $0x318] sm:$0xff] %v12332_v2  ;;  %136 = vst [vmem:[#allocation2 + $0x320] sm:$0xff] %v12332_v2 }
  0x31   :  { %137 = vst [vmem:[#allocation2 + $0x328] sm:$0x3] %v12332_v2  ;;  %138 = vst [vmem:[#allocation2 + $0x330] sm:$0xff] %v12332_v2 }
  0x32   :  { %139 = vst [vmem:[#allocation2 + $0x338] sm:$0xff] %v12332_v2  ;;  %140 = vst [vmem:[#allocation2 + $0x340] sm:$0x3] %v12332_v2  ;;  %1812 = vmatpush1.bf16.msra.mxu0 %v12091_v49 }
  0x33   :  { %143 = vst [vmem:[#allocation2 + $0x358] sm:$0x3] %v12332_v2  ;;  %146 = vst [vmem:[#allocation3 + $0x10] sm:$0x3] %v12332_v2  ;;  %1813 = vmatprep.subr.bf16.mxu0 %v20597_v0 }
  0x34   :  { %147 = vst [vmem:[#allocation3 + $0x18] sm:$0xff] %v12332_v2  ;;  %148 = vst [vmem:[#allocation3 + $0x20] sm:$0xff] %v12332_v2 }
  0x35   :  { %149 = vst [vmem:[#allocation3 + $0x28] sm:$0x3] %v12332_v2  ;;  %150 = vst [vmem:[#allocation3 + $0x30] sm:$0xff] %v12332_v2 }
  0x36   :  { %151 = vst [vmem:[#allocation3 + $0x38] sm:$0xff] %v12332_v2  ;;  %152 = vst [vmem:[#allocation3 + $0x40] sm:$0x3] %v12332_v2  ;;  %1814 = vmatpush1.bf16.msra.mxu0 %v12092_v53  ;;  %v12101_v53 = vld [vmem:[%s20585_s1 + $0xb0] sm:$0xff]  }
  0x37   :  { %153 = vst [vmem:[#allocation3 + $0x48] sm:$0xff] %v12332_v2  ;;  %154 = vst [vmem:[#allocation3 + $0x50] sm:$0xff] %v12332_v2  ;;  %1815 = vmatprep.subr.bf16.mxu0 %v20597_v0 }
  0x38   :  { %155 = vst [vmem:[#allocation3 + $0x58] sm:$0x3] %v12332_v2  ;;  %156 = vst [vmem:[#allocation3 + $0x60] sm:$0xff] %v12332_v2 }
  0x39   :  { %157 = vst [vmem:[#allocation3 + $0x68] sm:$0xff] %v12332_v2  ;;  %158 = vst [vmem:[#allocation3 + $0x70] sm:$0x3] %v12332_v2 }
  0x3a   :  { %159 = vst [vmem:[#allocation3 + $0x78] sm:$0xff] %v12332_v2  ;;  %160 = vst [vmem:[#allocation3 + $0x80] sm:$0xff] %v12332_v2  ;;  %1816 = vmatpush1.bf16.msra.mxu0 %v12093_v57 }
  0x3b   :  { %161 = vst [vmem:[#allocation3 + $0x88] sm:$0x3] %v12332_v2  ;;  %162 = vst [vmem:[#allocation3 + $0x90] sm:$0xff] %v12332_v2  ;;  %1817 = vmatprep.subr.bf16.mxu0 %v20597_v0 }
  0x3c   :  { %163 = vst [vmem:[#allocation3 + $0x98] sm:$0xff] %v12332_v2  ;;  %164 = vst [vmem:[#allocation3 + $0xa0] sm:$0x3] %v12332_v2 }
  0x3d   :  { %165 = vst [vmem:[#allocation3 + $0xa8] sm:$0xff] %v12332_v2  ;;  %166 = vst [vmem:[#allocation3 + $0xb0] sm:$0xff] %v12332_v2 }
  0x3e   :  { %167 = vst [vmem:[#allocation3 + $0xb8] sm:$0x3] %v12332_v2  ;;  %168 = vst [vmem:[#allocation3 + $0xc0] sm:$0xff] %v12332_v2  ;;  %1818 = vmatpush1.bf16.msra.mxu0 %v12094_v63 }
  0x3f   :  { %169 = vst [vmem:[#allocation3 + $0xc8] sm:$0xff] %v12332_v2  ;;  %170 = vst [vmem:[#allocation3 + $0xd0] sm:$0x3] %v12332_v2  ;;  %2076 = vmatprep.subr.bf16.mxu0 %v20597_v0 }
  0x40   :  { %171 = vst [vmem:[#allocation3 + $0xd8] sm:$0xff] %v12332_v2  ;;  %172 = vst [vmem:[#allocation3 + $0xe0] sm:$0xff] %v12332_v2 }
  0x41   :  { %173 = vst [vmem:[#allocation3 + $0xe8] sm:$0x3] %v12332_v2  ;;  %174 = vst [vmem:[#allocation3 + $0xf0] sm:$0xff] %v12332_v2 }
  0x42   :  { %175 = vst [vmem:[#allocation3 + $0xf8] sm:$0xff] %v12332_v2  ;;  %176 = vst [vmem:[#allocation3 + $0x100] sm:$0x3] %v12332_v2 }
  0x43   :  { %177 = vst [vmem:[#allocation3 + $0x108] sm:$0xff] %v12332_v2  ;;  %178 = vst [vmem:[#allocation3 + $0x110] sm:$0xff] %v12332_v2 }
  0x44   :  { %179 = vst [vmem:[#allocation3 + $0x118] sm:$0x3] %v12332_v2  ;;  %180 = vst [vmem:[#allocation3 + $0x120] sm:$0xff] %v12332_v2 }
  0x45   :  { %181 = vst [vmem:[#allocation3 + $0x128] sm:$0xff] %v12332_v2  ;;  %182 = vst [vmem:[#allocation3 + $0x130] sm:$0x3] %v12332_v2 }
  0x46   :  { %183 = vst [vmem:[#allocation3 + $0x138] sm:$0xff] %v12332_v2  ;;  %184 = vst [vmem:[#allocation3 + $0x140] sm:$0xff] %v12332_v2 }
  0x47   :  { %185 = vst [vmem:[#allocation3 + $0x148] sm:$0x3] %v12332_v2  ;;  %186 = vst [vmem:[#allocation3 + $0x150] sm:$0xff] %v12332_v2 }
  0x48   :  { %187 = vst [vmem:[#allocation3 + $0x158] sm:$0xff] %v12332_v2  ;;  %188 = vst [vmem:[#allocation3 + $0x160] sm:$0x3] %v12332_v2 }
  0x49   :  { %189 = vst [vmem:[#allocation3 + $0x168] sm:$0xff] %v12332_v2  ;;  %190 = vst [vmem:[#allocation3 + $0x170] sm:$0xff] %v12332_v2 }
  0x4a   :  { %191 = vst [vmem:[#allocation3 + $0x178] sm:$0x3] %v12332_v2  ;;  %192 = vst [vmem:[#allocation3 + $0x180] sm:$0xff] %v12332_v2 }
  0x4b   :  { %193 = vst [vmem:[#allocation3 + $0x188] sm:$0xff] %v12332_v2  ;;  %194 = vst [vmem:[#allocation3 + $0x190] sm:$0x3] %v12332_v2 }
  0x4c   :  { %197 = vst [vmem:[#allocation3 + $0x1a8] sm:$0x3] %v12332_v2  ;;  %200 = vst [vmem:[#allocation3 + $0x1c0] sm:$0x3] %v12332_v2 }
  0x4d   :  { %201 = vst [vmem:[#allocation3 + $0x1c8] sm:$0xff] %v12332_v2  ;;  %202 = vst [vmem:[#allocation3 + $0x1d0] sm:$0xff] %v12332_v2 }
  0x4e   :  { %203 = vst [vmem:[#allocation3 + $0x1d8] sm:$0x3] %v12332_v2  ;;  %204 = vst [vmem:[#allocation3 + $0x1e0] sm:$0xff] %v12332_v2 }
  0x4f   :  { %205 = vst [vmem:[#allocation3 + $0x1e8] sm:$0xff] %v12332_v2  ;;  %206 = vst [vmem:[#allocation3 + $0x1f0] sm:$0x3] %v12332_v2 }
  0x50   :  { %207 = vst [vmem:[#allocation3 + $0x1f8] sm:$0xff] %v12332_v2  ;;  %208 = vst [vmem:[#allocation3 + $0x200] sm:$0xff] %v12332_v2 }
  0x51   :  { %209 = vst [vmem:[#allocation3 + $0x208] sm:$0x3] %v12332_v2  ;;  %210 = vst [vmem:[#allocation3 + $0x210] sm:$0xff] %v12332_v2 }
  0x52   :  { %211 = vst [vmem:[#allocation3 + $0x218] sm:$0xff] %v12332_v2  ;;  %212 = vst [vmem:[#allocation3 + $0x220] sm:$0x3] %v12332_v2 }
  0x53   :  { %213 = vst [vmem:[#allocation3 + $0x228] sm:$0xff] %v12332_v2  ;;  %214 = vst [vmem:[#allocation3 + $0x230] sm:$0xff] %v12332_v2 }
  0x54   :  { %215 = vst [vmem:[#allocation3 + $0x238] sm:$0x3] %v12332_v2  ;;  %216 = vst [vmem:[#allocation3 + $0x240] sm:$0xff] %v12332_v2 }
  0x55   :  { %217 = vst [vmem:[#allocation3 + $0x248] sm:$0xff] %v12332_v2  ;;  %218 = vst [vmem:[#allocation3 + $0x250] sm:$0x3] %v12332_v2 }
  0x56   :  { %219 = vst [vmem:[#allocation3 + $0x258] sm:$0xff] %v12332_v2  ;;  %220 = vst [vmem:[#allocation3 + $0x260] sm:$0xff] %v12332_v2 }
  0x57   :  { %221 = vst [vmem:[#allocation3 + $0x268] sm:$0x3] %v12332_v2  ;;  %222 = vst [vmem:[#allocation3 + $0x270] sm:$0xff] %v12332_v2 }
  0x58   :  { %223 = vst [vmem:[#allocation3 + $0x278] sm:$0xff] %v12332_v2  ;;  %224 = vst [vmem:[#allocation3 + $0x280] sm:$0x3] %v12332_v2 }
  0x59   :  { %225 = vst [vmem:[#allocation3 + $0x288] sm:$0xff] %v12332_v2  ;;  %226 = vst [vmem:[#allocation3 + $0x290] sm:$0xff] %v12332_v2 }
  0x5a   :  { %227 = vst [vmem:[#allocation3 + $0x298] sm:$0x3] %v12332_v2  ;;  %228 = vst [vmem:[#allocation3 + $0x2a0] sm:$0xff] %v12332_v2 }
  0x5b   :  { %229 = vst [vmem:[#allocation3 + $0x2a8] sm:$0xff] %v12332_v2  ;;  %230 = vst [vmem:[#allocation3 + $0x2b0] sm:$0x3] %v12332_v2 }
  0x5c   :  { %231 = vst [vmem:[#allocation3 + $0x2b8] sm:$0xff] %v12332_v2  ;;  %232 = vst [vmem:[#allocation3 + $0x2c0] sm:$0xff] %v12332_v2 }
  0x5d   :  { %233 = vst [vmem:[#allocation3 + $0x2c8] sm:$0x3] %v12332_v2  ;;  %234 = vst [vmem:[#allocation3 + $0x2d0] sm:$0xff] %v12332_v2 }
  0x5e   :  { %235 = vst [vmem:[#allocation3 + $0x2d8] sm:$0xff] %v12332_v2  ;;  %236 = vst [vmem:[#allocation3 + $0x2e0] sm:$0x3] %v12332_v2 }
  0x5f   :  { %237 = vst [vmem:[#allocation3 + $0x2e8] sm:$0xff] %v12332_v2  ;;  %238 = vst [vmem:[#allocation3 + $0x2f0] sm:$0xff] %v12332_v2 }
  0x60   :  { %239 = vst [vmem:[#allocation3 + $0x2f8] sm:$0x3] %v12332_v2  ;;  %240 = vst [vmem:[#allocation3 + $0x300] sm:$0xff] %v12332_v2 }
  0x61   :  { %241 = vst [vmem:[#allocation3 + $0x308] sm:$0xff] %v12332_v2  ;;  %242 = vst [vmem:[#allocation3 + $0x310] sm:$0x3] %v12332_v2 }
  0x62   :  { %243 = vst [vmem:[#allocation3 + $0x318] sm:$0xff] %v12332_v2  ;;  %244 = vst [vmem:[#allocation3 + $0x320] sm:$0xff] %v12332_v2 }
  0x63   :  { %245 = vst [vmem:[#allocation3 + $0x328] sm:$0x3] %v12332_v2  ;;  %246 = vst [vmem:[#allocation3 + $0x330] sm:$0xff] %v12332_v2 }
  0x64   :  { %247 = vst [vmem:[#allocation3 + $0x338] sm:$0xff] %v12332_v2  ;;  %248 = vst [vmem:[#allocation3 + $0x340] sm:$0x3] %v12332_v2 }
  0x65   :  { %251 = vst [vmem:[#allocation3 + $0x358] sm:$0x3] %v12332_v2  ;;  %317 = vst [vmem:[#allocation2 + $0x19] sm:$0xff] %v252_v11 }
  0x66   :  { %318 = vst [vmem:[#allocation2 + $0x21] sm:$0xff] %v253_v12  ;;  %319 = vst [vmem:[#allocation2 + $0x31] sm:$0xff] %v254_v13 }
  0x67   :  { %320 = vst [vmem:[#allocation2 + $0x39] sm:$0xff] %v255_v14  ;;  %321 = vst [vmem:[#allocation2 + $0x49] sm:$0xff] %v256_v16  ;;  %v20596_v16 = vmov 0.0|0.0  }
  0x68   :  { %322 = vst [vmem:[#allocation2 + $0x51] sm:$0xff] %v257_v18  ;;  %323 = vst [vmem:[#allocation2 + $0x61] sm:$0xff] %v258_v19  ;;  %1820 = vmatmul.mubr.bf16.vlgmr.msra.gmra.mrb[0].mxu0 %v20596_v16 }
  0x69   :  { %324 = vst [vmem:[#allocation2 + $0x69] sm:$0xff] %v259_v20  ;;  %325 = vst [vmem:[#allocation2 + $0x79] sm:$0xff] %v260_v22  ;;  %2077 = vmatpush1.bf16.msra.mxu0 %v12095_v9 }
  0x6a   :  { %326 = vst [vmem:[#allocation2 + $0x81] sm:$0xff] %v261_v23  ;;  %327 = vst [vmem:[#allocation2 + $0x91] sm:$0xff] %v262_v24  ;;  %2078 = vmatprep.subr.bf16.mxu0 %v20597_v0  ;;  %v286_v23 = vld [vmem:[%s20586_s0 + $0x110] sm:$0xff]  ;;  %v287_v24 = vld [vmem:[%s20586_s0 + $0x118] sm:$0xff] }
  0x6b   :  { %328 = vst [vmem:[#allocation2 + $0x99] sm:$0xff] %v263_v25  ;;  %329 = vst [vmem:[#allocation2 + $0xa9] sm:$0xff] %v264_v26  ;;  %v12097_v25 = vld [vmem:[%s20585_s1 + $0x90] sm:$0xff]  }
  0x6c   :  { %330 = vst [vmem:[#allocation2 + $0xb1] sm:$0xff] %v265_v27  ;;  %331 = vst [vmem:[#allocation2 + $0xc1] sm:$0xff] %v266_v29  ;;  %v384_v50 = vld [vmem:[#allocation2 + $0x18] sm:$0xff] }
  0x6d   :  { %332 = vst [vmem:[#allocation2 + $0xc9] sm:$0xff] %v267_v30  ;;  %333 = vst [vmem:[#allocation2 + $0xd9] sm:$0xff] %v268_v33  ;;  %v385_v51 = vld [vmem:[#allocation2 + $0x20] sm:$0xff]  ;;  %v386_v52 = vld [vmem:[#allocation2 + $0x28] sm:$0x3]  ;;  %v591_v54 = vrot.slane %v384_v50, 1  ;;  %2079 = vmatpush1.bf16.msra.mxu0 %v12096_v17 }
  0x6e   :  { %334 = vst [vmem:[#allocation2 + $0xe1] sm:$0xff] %v269_v34  ;;  %335 = vst [vmem:[#allocation2 + $0xf1] sm:$0xff] %v270_v35  ;;  %v12745_v55 = vld [vmem:[#allocation2 + $0x30] sm:$0xff]  ;;  %v12747_v56 = vld [vmem:[#allocation2 + $0x38] sm:$0xff]  ;;  %v592_v58 = vrot.slane %v385_v51, 1  ;;  %v594_v59 = vrot.slane %v386_v52, 1  ;;  %v12805_v26 = vpack.c.bf16 %v385_v51, %v384_v50  ;;  %2080 = vmatprep.subr.bf16.mxu0 %v20597_v0 }
  0x6f   :  { %336 = vst [vmem:[#allocation2 + $0xf9] sm:$0xff] %v271_v36  ;;  %337 = vst [vmem:[#allocation2 + $0x109] sm:$0xff] %v272_v38  ;;  %v12752_v60 = vld [vmem:[#allocation2 + $0x40] sm:$0x3]  ;;  %v596_v61 = vrot.slane %v12745_v55, 1  ;;  %v597_v62 = vrot.slane %v12747_v56, 1 }
  0x70   :  { %338 = vst [vmem:[#allocation2 + $0x111] sm:$0xff] %v273_v39  ;;  %339 = vst [vmem:[#allocation2 + $0x121] sm:$0xff] %v274_v40  ;;  %v599_v2 = vrot.slane %v12752_v60, 1  ;;  %v593_v7 = vsel %vm585_vm0, %v591_v54, %v592_v58  ;;  %v595_v8 = vsel %vm585_vm0, %v592_v58, %v594_v59  ;;  %v12777_v11 = vld [vmem:[#allocation2 + $0x48] sm:$0xff]  ;;  %v12783_v14 = vld [vmem:[#allocation2 + $0x50] sm:$0xff]  ;;  %v12829_v40 = vpack.c.bf16 %v12747_v56, %v12745_v55 }
  0x71   :  { %340 = vst [vmem:[#allocation2 + $0x129] sm:$0xff] %v275_v41  ;;  %341 = vst [vmem:[#allocation2 + $0x139] sm:$0xff] %v276_v42  ;;  %v12781_v13 = vpack.c.bf16 %v595_v8, %v593_v7  ;;  %v392_v15 = vld [vmem:[#allocation2 + $0x58] sm:$0x3]  ;;  %v601_v18 = vrot.slane %v12777_v11, 1  ;;  %v598_v19 = vsel %vm585_vm0, %v596_v61, %v597_v62  ;;  %v602_v21 = vrot.slane %v12783_v14, 1  ;;  %2081 = vmatpush1.bf16.msra.mxu0 %v12097_v25 }
  0x72   :  { %342 = vst [vmem:[#allocation2 + $0x141] sm:$0xff] %v277_v43  ;;  %343 = vst [vmem:[#allocation2 + $0x151] sm:$0xff] %v278_v44  ;;  %v600_v20 = vsel %vm585_vm0, %v597_v62, %v599_v2  ;;  %v604_v22 = vrot.slane %v392_v15, 1  ;;  %v393_v28 = vld [vmem:[#allocation2 + $0x60] sm:$0xff]  ;;  %v394_v29 = vld [vmem:[#allocation2 + $0x68] sm:$0xff]  ;;  %2082 = vmatprep.subr.bf16.mxu0 %v20597_v0  ;;  %v12862_v54 = vpack.c.bf16 %v12783_v14, %v12777_v11 }
  0x73   :  { %344 = vst [vmem:[#allocation2 + $0x159] sm:$0xff] %v279_v45  ;;  %345 = vst [vmem:[#allocation2 + $0x169] sm:$0xff] %v280_v47  ;;  %1827 = vmatprep.mubr.bf16.mxu0 %v12781_v13  ;;  %v12807_v27 = vpack.c.bf16 %v600_v20, %v598_v19  ;;  %v395_v30 = vld [vmem:[#allocation2 + $0x70] sm:$0x3]  ;;  %v289_v33 = vld [vmem:[%s20586_s0 + $0x128] sm:$0xff]  ;;  %v603_v34 = vsel %vm585_vm0, %v601_v18, %v602_v21  ;;  %v606_v36 = vrot.slane %v393_v28, 1 }
  0x74   :  { %346 = vst [vmem:[#allocation2 + $0x171] sm:$0xff] %v281_v48  ;;  %349 = vst [vmem:[#allocation2 + $0x1c9] sm:$0xff] %v284_v4  ;;  %1828 = vmatmul.mubr.bf16.gmra.mrb[4].mxu0 %v12805_v26  ;;  %v605_v35 = vsel %vm585_vm0, %v602_v21, %v604_v22  ;;  %v607_v37 = vrot.slane %v394_v29, 1  ;;  %v609_v38 = vrot.slane %v395_v30, 1  ;;  %v12099_v39 = vld [vmem:[%s20585_s1 + $0xa0] sm:$0xff]   ;;  %v12833_v42 = vld [vmem:[#allocation2 + $0x78] sm:$0xff]  ;;  %v12887_v4 = vpack.c.bf16 %v394_v29, %v393_v28 }
  0x75   :  { %350 = vst [vmem:[#allocation2 + $0x1d1] sm:$0xff] %v285_v5  ;;  %21084 = vst [vmem:[#allocation4_spill] sm:$0xff] %v12781_v13  ;;  %1835 = vmatprep.mubr.bf16.mxu0 %v12807_v27  ;;  %v12831_v41 = vpack.c.bf16 %v605_v35, %v603_v34  ;;  %v12835_v43 = vld [vmem:[#allocation2 + $0x80] sm:$0xff]  ;;  %v12837_v44 = vld [vmem:[#allocation2 + $0x88] sm:$0x3]  ;;  %2083 = vmatpush1.bf16.msra.mxu0 %v12098_v31  ;;  %v611_v48 = vrot.slane %v12833_v42, 1 }
  0x76   :  { %351 = vst [vmem:[#allocation2 + $0x1e1] sm:$0xff] %v286_v23  ;;  %352 = vst [vmem:[#allocation2 + $0x1e9] sm:$0xff] %v287_v24  ;;  %2084 = vmatprep.subr.bf16.mxu0 %v20597_v0  ;;  %v608_v45 = vsel %vm585_vm0, %v606_v36, %v607_v37  ;;  %v610_v47 = vsel %vm585_vm0, %v607_v37, %v609_v38  ;;  %v612_v49 = vrot.slane %v12835_v43, 1  ;;  %v614_v50 = vrot.slane %v12837_v44, 1  ;;  %v290_v51 = vld [vmem:[%s20586_s0 + $0x130] sm:$0xff]  ;;  %v291_v52 = vld [vmem:[%s20586_s0 + $0x138] sm:$0xff] }
  0x77   :  { %21085 = vst [vmem:[#allocation5_spill] sm:$0xff] %v12807_v27  ;;  %353 = vst [vmem:[#allocation2 + $0x1f9] sm:$0xff] %v288_v32  ;;  %v12864_v57 = vpack.c.bf16 %v610_v47, %v608_v45  ;;  %v12102_v58 = vld [vmem:[%s20585_s1 + $0xb8] sm:$0xff]   ;;  %v292_v59 = vld [vmem:[%s20586_s0 + $0x140] sm:$0xff]  ;;  %v12920_v23 = vpack.c.bf16 %v12835_v43, %v12833_v42 }
  0x78   :  { %354 = vst [vmem:[#allocation2 + $0x201] sm:$0xff] %v289_v33  ;;  %21086 = vst [vmem:[#allocation6_spill] sm:$0xff] %v12829_v40  ;;  %v293_v61 = vld [vmem:[%s20586_s0 + $0x148] sm:$0xff]  ;;  %v613_v62 = vsel %vm585_vm0, %v611_v48, %v612_v49  ;;  %v615_v63 = vsel %vm585_vm0, %v612_v49, %v614_v50  ;;  %v12880_v1 = vld [vmem:[#allocation2 + $0x90] sm:$0xff] }
  0x79   :  { %21087 = vst [vmem:[#allocation7_spill] sm:$0xff] %v12831_v41  ;;  %2085 = vmatpush1.bf16.msra.mxu0 %v12099_v39  ;;  %355 = vst [vmem:[#allocation2 + $0x211] sm:$0xff] %v290_v51  ;;  %v12883_v2 = vld [vmem:[#allocation2 + $0x98] sm:$0xff]  ;;  %v12885_v3 = vld [vmem:[#allocation2 + $0xa0] sm:$0x3]  ;;  %v12889_v5 = vpack.c.bf16 %v615_v63, %v613_v62  ;;  %v616_v8 = vrot.slane %v12880_v1, 1 }
  0x7a   :  { %2086 = vmatprep.subr.bf16.mxu0 %v20597_v0  ;;  %356 = vst [vmem:[#allocation2 + $0x219] sm:$0xff] %v291_v52  ;;  %21088 = vst [vmem:[#allocation8_spill] sm:$0xff] %v12862_v54  ;;  %v12103_v7 = vld [vmem:[%s20585_s1 + $0xc0] sm:$0xff]   ;;  %v617_v9 = vrot.slane %v12883_v2, 1  ;;  %v619_v11 = vrot.slane %v12885_v3, 1  ;;  %v12104_v14 = vld [vmem:[%s20585_s1 + $0xc8] sm:$0xff]   ;;  %v12950_v38 = vpack.c.bf16 %v12883_v2, %v12880_v1 }
  0x7b   :  { %21089 = vst [vmem:[#allocation9_spill] sm:$0xff] %v12864_v57  ;;  %357 = vst [vmem:[#allocation2 + $0x229] sm:$0xff] %v292_v59  ;;  %v294_v18 = vld [vmem:[%s20586_s0 + $0x150] sm:$0xff]  ;;  %v295_v19 = vld [vmem:[%s20586_s0 + $0x158] sm:$0xff] }
  0x7c   :  { %1836 = vmatmul.mubr.bf16.gmra.mrb[8].mxu0 %v12829_v40  ;;  %358 = vst [vmem:[#allocation2 + $0x231] sm:$0xff] %v293_v61  ;;  %21090 = vst [vmem:[#allocation10_spill] sm:$0xff] %v12889_v5  ;;  %v618_v15 = vsel %vm585_vm0, %v616_v8, %v617_v9  ;;  %v620_v17 = vsel %vm585_vm0, %v617_v9, %v619_v11  ;;  %v12912_v20 = vld [vmem:[#allocation2 + $0xa8] sm:$0xff]  ;;  %v12914_v21 = vld [vmem:[#allocation2 + $0xb0] sm:$0xff] }
  0x7d   :  { %1843 = vmatprep.mubr.bf16.mxu0 %v12831_v41  ;;  %2087 = vmatpush1.bf16.msra.mxu0 %v12100_v46  ;;  %v12916_v22 = vld [vmem:[#allocation2 + $0xb8] sm:$0x3]  ;;  %359 = vst [vmem:[#allocation2 + $0x241] sm:$0xff] %v294_v18  ;;  %360 = vst [vmem:[#allocation2 + $0x249] sm:$0xff] %v295_v19  ;;  %v12922_v24 = vpack.c.bf16 %v620_v17, %v618_v15  ;;  %v12105_v25 = vld [vmem:[%s20585_s1 + $0xd0] sm:$0xff]   ;;  %v621_v28 = vrot.slane %v12912_v20, 1  ;;  %v12979_v61 = vpack.c.bf16 %v12914_v21, %v12912_v20 }
  0x7e   :  { %2088 = vmatprep.subr.bf16.mxu0 %v20597_v0  ;;  %v622_v29 = vrot.slane %v12914_v21, 1  ;;  %v624_v30 = vrot.slane %v12916_v22, 1  ;;  %v296_v31 = vld [vmem:[%s20586_s0 + $0x160] sm:$0xff]  ;;  %v297_v32 = vld [vmem:[%s20586_s0 + $0x168] sm:$0xff]  ;;  %v12946_v37 = vld [vmem:[#allocation2 + $0xd0] sm:$0x3] }
  0x7f   :  { %21091 = vst [vmem:[#allocation11_spill] sm:$0xff] %v12922_v24  ;;  %361 = vst [vmem:[#allocation2 + $0x259] sm:$0xff] %v296_v31  ;;  %v12942_v35 = vld [vmem:[#allocation2 + $0xc0] sm:$0xff]  ;;  %v12944_v36 = vld [vmem:[#allocation2 + $0xc8] sm:$0xff]  ;;  %v629_v47 = vrot.slane %v12946_v37, 1 }
  0x80   :  { %v623_v33 = vsel %vm585_vm0, %v621_v28, %v622_v29  ;;  %v625_v34 = vsel %vm585_vm0, %v622_v29, %v624_v30  ;;  %362 = vst [vmem:[#allocation2 + $0x261] sm:$0xff] %v297_v32  ;;  %v626_v45 = vrot.slane %v12942_v35, 1  ;;  %v627_v46 = vrot.slane %v12944_v36, 1  ;;  %v12106_v48 = vld [vmem:[%s20585_s1 + $0xd8] sm:$0xff]   ;;  %v298_v51 = vld [vmem:[%s20586_s0 + $0x170] sm:$0xff]  ;;  %v300_v9 = vld [vmem:[%s20586_s0 + $0x180] sm:$0xff] }
  0x81   :  { %2089 = vmatpush1.bf16.msra.mxu0 %v12101_v53  ;;  %v12952_v39 = vpack.c.bf16 %v625_v34, %v623_v33  ;;  %v299_v52 = vld [vmem:[%s20586_s0 + $0x178] sm:$0xff]  ;;  %v12974_v59 = vld [vmem:[#allocation2 + $0xe8] sm:$0x3]  ;;  %363 = vst [vmem:[#allocation2 + $0x271] sm:$0xff] %v298_v51  ;;  %365 = vst [vmem:[#allocation2 + $0x289] sm:$0xff] %v300_v9 }
  0x82   :  { %2090 = vmatprep.subr.bf16.mxu0 %v20597_v0  ;;  %v628_v49 = vsel %vm585_vm0, %v626_v45, %v627_v46  ;;  %v630_v50 = vsel %vm585_vm0, %v627_v46, %v629_v47  ;;  %v12970_v53 = vld [vmem:[#allocation2 + $0xd8] sm:$0xff]  ;;  %364 = vst [vmem:[#allocation2 + $0x279] sm:$0xff] %v299_v52  ;;  %v634_v8 = vrot.slane %v12974_v59, 1  ;;  %v301_v11 = vld [vmem:[%s20586_s0 + $0x188] sm:$0xff]  ;;  %v12996_v17 = vld [vmem:[#allocation2 + $0xf0] sm:$0xff] }
  0x83   :  { %21092 = vst [vmem:[#allocation12_spill] sm:$0xff] %v12952_v39  ;;  %v12981_v62 = vpack.c.bf16 %v630_v50, %v628_v49  ;;  %v631_v63 = vrot.slane %v12970_v53, 1  ;;  %366 = vst [vmem:[#allocation2 + $0x291] sm:$0xff] %v301_v11  ;;  %v12998_v18 = vld [vmem:[#allocation2 + $0xf8] sm:$0xff]  ;;  %v13000_v19 = vld [vmem:[#allocation2 + $0x100] sm:$0x3] }
  0x84   :  { %1844 = vmatmul.mubr.bf16.gmra.mrb[12].mxu0 %v12862_v54  ;;  %v636_v29 = vrot.slane %v12996_v17, 1  ;;  %v637_v30 = vrot.slane %v12998_v18, 1  ;;  %v639_v31 = vrot.slane %v13000_v19, 1  ;;  %v12107_v32 = vld [vmem:[%s20585_s1 + $0xe0] sm:$0xff]   ;;  %v302_v45 = vld [vmem:[%s20586_s0 + $0x190] sm:$0xff]  ;;  %v303_v46 = vld [vmem:[%s20586_s0 + $0x198] sm:$0xff] }
  0x85   :  { %1851 = vmatprep.mubr.bf16.mxu0 %v12864_v57  ;;  %2091 = vmatpush1.bf16.msra.mxu0 %v12102_v58  ;;  %v12972_v58 = vld [vmem:[#allocation2 + $0xe0] sm:$0xff]  ;;  %21093 = vst [vmem:[#allocation13_spill] sm:$0xff] %v12981_v62  ;;  %v13024_v47 = vld [vmem:[#allocation2 + $0x108] sm:$0xff]  ;;  %v13028_v49 = vld [vmem:[#allocation2 + $0x118] sm:$0x3] }
  0x86   :  { %2092 = vmatprep.subr.bf16.mxu0 %v20597_v0  ;;  %v638_v33 = vsel %vm585_vm0, %v636_v29, %v637_v30  ;;  %v640_v34 = vsel %vm585_vm0, %v637_v30, %v639_v31  ;;  %367 = vst [vmem:[#allocation2 + $0x2a1] sm:$0xff] %v302_v45  ;;  %368 = vst [vmem:[#allocation2 + $0x2a9] sm:$0xff] %v303_v46  ;;  %v13033_v50 = vpack.c.bf16 %v12972_v58, %v12970_v53  ;;  %v305_v9 = vld [vmem:[%s20586_s0 + $0x1a8] sm:$0xff]  ;;  %v13054_v30 = vld [vmem:[#allocation2 + $0x130] sm:$0x3] }
  0x87   :  { %v13035_v51 = vpack.c.bf16 %v640_v34, %v638_v33  ;;  %v641_v52 = vrot.slane %v13024_v47, 1  ;;  %370 = vst [vmem:[#allocation2 + $0x2c1] sm:$0xff] %v305_v9  ;;  %v13052_v29 = vld [vmem:[#allocation2 + $0x128] sm:$0xff]  ;;  %v13058_v31 = vpack.c.bf16 %v12998_v18, %v12996_v17  ;;  %v649_v45 = vrot.slane %v13054_v30, 1  ;;  %v13078_v9 = vld [vmem:[#allocation2 + $0x138] sm:$0xff]  ;;  %v13104_v12 = vld [vmem:[#allocation2 + $0x150] sm:$0xff] }
  0x88   :  { %v647_v34 = vrot.slane %v13052_v29, 1  ;;  %v12108_v46 = vld [vmem:[%s20585_s1 + $0xe8] sm:$0xff]   ;;  %v13189_v13 = vld [vmem:[#allocation2 + $0x1e0] sm:$0xff] }
  0x89   :  { %2093 = vmatpush1.bf16.msra.mxu0 %v12103_v7  ;;  %v632_v7 = vrot.slane %v12972_v58, 1  ;;  %21095 = vst [vmem:[#allocation15_spill] sm:$0xff] %v13035_v51 }
  0x8a   :  { %2094 = vmatprep.subr.bf16.mxu0 %v20597_v0 }
  0x8b   :  { %v635_v15 = vsel %vm585_vm0, %v632_v7, %v634_v8  ;;  %v304_v8 = vld [vmem:[%s20586_s0 + $0x1a0] sm:$0xff] }
  0x8c   :  { %1852 = vmatmul.mubr.bf16.gmra.mrb[16].mxu0 %v12887_v4  ;;  %369 = vst [vmem:[#allocation2 + $0x2b9] sm:$0xff] %v304_v8  ;;  %v307_v8 = vld [vmem:[%s20586_s0 + $0x1b8] sm:$0xff] }
  0x8d   :  { %1859 = vmatprep.mubr.bf16.mxu0 %v12889_v5  ;;  %2095 = vmatpush1.bf16.msra.mxu0 %v12104_v14  ;;  %v633_v14 = vsel %vm585_vm0, %v631_v63, %v632_v7  ;;  %v644_v7 = vrot.slane %v13028_v49, 1  ;;  %372 = vst [vmem:[#allocation2 + $0x2d9] sm:$0xff] %v307_v8  ;;  %v309_v8 = vld [vmem:[%s20586_s0 + $0x1c8] sm:$0xff] }
  0x8e   :  { %2096 = vmatprep.subr.bf16.mxu0 %v20597_v0  ;;  %v13006_v28 = vpack.c.bf16 %v635_v15, %v633_v14  ;;  %v13050_v15 = vld [vmem:[#allocation2 + $0x120] sm:$0xff]  ;;  %374 = vst [vmem:[#allocation2 + $0x2f1] sm:$0xff] %v309_v8 }
  0x8f   :  { %v646_v33 = vrot.slane %v13050_v15, 1 }
  0x90   :  { %21094 = vst [vmem:[#allocation14_spill] sm:$0xff] %v13006_v28 }
  0x91   :  { %2097 = vmatpush1.bf16.msra.mxu0 %v12105_v25  ;;  %v13004_v25 = vpack.c.bf16 %v12944_v36, %v12942_v35 }
  0x92   :  { %2098 = vmatprep.subr.bf16.mxu0 %v20597_v0 }
  0x94   :  { %1860 = vmatmul.mubr.bf16.gmra.mrb[20].mxu0 %v12920_v23 }
  0x95   :  { %1867 = vmatprep.mubr.bf16.mxu0 %v12922_v24  ;;  %2099 = vmatpush1.bf16.msra.mxu0 %v12106_v48  ;;  %v13026_v48 = vld [vmem:[#allocation2 + $0x110] sm:$0xff]  ;;  %v13136_v24 = vld [vmem:[#allocation2 + $0x178] sm:$0x3] }
  0x96   :  { %2100 = vmatprep.subr.bf16.mxu0 %v20597_v0  ;;  %v642_v63 = vrot.slane %v13026_v48, 1  ;;  %21104 = vst [vmem:[#allocation24_spill] sm:$0xff] %v13136_v24  ;;  %v664_v5 = vrot.slane %v13136_v24, 1  ;;  %v13191_v24 = vld [vmem:[#allocation2 + $0x1e8] sm:$0xff] }
  0x97   :  { %21115 = vst [vmem:[#allocation33_spill] sm:$0xff] %v13191_v24 }
  0x98   :  { %v643_v11 = vsel %vm585_vm0, %v641_v52, %v642_v63  ;;  %v645_v14 = vsel %vm585_vm0, %v642_v63, %v644_v7  ;;  %v648_v52 = vsel %vm585_vm0, %v646_v33, %v647_v34  ;;  %v650_v63 = vsel %vm585_vm0, %v647_v34, %v649_v45  ;;  %v306_v7 = vld [vmem:[%s20586_s0 + $0x1b0] sm:$0xff] }
  0x99   :  { %2101 = vmatpush1.bf16.msra.mxu0 %v12107_v32  ;;  %v13060_v32 = vpack.c.bf16 %v645_v14, %v643_v11  ;;  %v13080_v11 = vld [vmem:[#allocation2 + $0x140] sm:$0xff]  ;;  %v13082_v14 = vld [vmem:[#allocation2 + $0x148] sm:$0x3]  ;;  %371 = vst [vmem:[#allocation2 + $0x2d1] sm:$0xff] %v306_v7  ;;  %v13087_v33 = vpack.c.bf16 %v13026_v48, %v13024_v47  ;;  %v13089_v34 = vpack.c.bf16 %v650_v63, %v648_v52  ;;  %v651_v45 = vrot.slane %v13078_v9, 1 }
  0x9a   :  { %2102 = vmatprep.subr.bf16.mxu0 %v20597_v0  ;;  %v654_v16 = vrot.slane %v13082_v14, 1  ;;  %v308_v7 = vld [vmem:[%s20586_s0 + $0x1c0] sm:$0xff] }
  0x9b   :  { %21096 = vst [vmem:[#allocation16_spill] sm:$0xff] %v13060_v32  ;;  %21097 = vst [vmem:[#allocation17_spill] sm:$0xff] %v13087_v33 }
  0x9c   :  { %1868 = vmatmul.mubr.bf16.gmra.mrb[24].mxu0 %v12950_v38  ;;  %21098 = vst [vmem:[#allocation18_spill] sm:$0xff] %v13089_v34  ;;  %373 = vst [vmem:[#allocation2 + $0x2e9] sm:$0xff] %v308_v7 }
  0x9d   :  { %1875 = vmatprep.mubr.bf16.mxu0 %v12952_v39  ;;  %2103 = vmatpush1.bf16.msra.mxu0 %v12108_v46  ;;  %v652_v46 = vrot.slane %v13080_v11, 1  ;;  %v13134_v39 = vld [vmem:[#allocation2 + $0x170] sm:$0xff] }
  0x9e   :  { %2104 = vmatprep.subr.bf16.mxu0 %v20597_v0  ;;  %v13106_v0 = vld [vmem:[#allocation2 + $0x158] sm:$0xff]  ;;  %21103 = vst [vmem:[#allocation23_spill] sm:$0xff] %v13134_v39 }
  0x9f   :  { %v653_v52 = vsel %vm585_vm0, %v651_v45, %v652_v46  ;;  %v655_v63 = vsel %vm585_vm0, %v652_v46, %v654_v16  ;;  %v657_v45 = vrot.slane %v13106_v0, 1  ;;  %v12109_v46 = vld [vmem:[%s20585_s1 + $0xf0] sm:$0xff]   ;;  %v13160_v57 = vpack.c.bf16 %v13106_v0, %v13104_v12 }
  0xa1   :  { %2105 = vmatpush1.bf16.msra.mxu0 %v12109_v46  ;;  %21108 = vst [vmem:[#allocation27_spill] sm:$0xff] %v13160_v57 }
  0xa4   :  { %1876 = vmatmul.mubr.bf16.gmra.mrb[28].mxu0 %v12979_v61 }
  0xa5   :  { %1883 = vmatprep.mubr.bf16.mxu0 %v12981_v62  ;;  %v13132_v62 = vld [vmem:[#allocation2 + $0x168] sm:$0xff] }
  0xa6   :  { %21102 = vst [vmem:[#allocation22_spill] sm:$0xff] %v13132_v62  ;;  %v661_v46 = vrot.slane %v13132_v62, 1 }
  0xac   :  { %1884 = vmatmul.mubr.bf16.gmra.mrb[32].mxu0 %v13004_v25 }
  0xad   :  { %1891 = vmatprep.mubr.bf16.mxu0 %v13006_v28  ;;  %v656_v28 = vrot.slane %v13104_v12, 1 }
  0xaf   :  { %v658_v7 = vsel %vm585_vm0, %v656_v28, %v657_v45  ;;  %v21105_v28 = vmov 0  }
  0xb0   :  { %2106 = vmatprep.subr.bf16.mxu0 %v21105_v28 }
  0xb4   :  { %1892 = vmatmul.mubr.bf16.gmra.mrb[36].mxu0 %v13033_v50 }
  0xb5   :  { %1899 = vmatprep.mubr.bf16.mxu0 %v13035_v51  ;;  %v13114_v51 = vpack.c.bf16 %v655_v63, %v653_v52  ;;  %v310_v52 = vld [vmem:[%s20586_s0 + $0x1d0] sm:$0xff]  ;;  %v311_v63 = vld [vmem:[%s20586_s0 + $0x1d8] sm:$0xff] }
  0xb6   :  { %375 = vst [vmem:[#allocation2 + $0x301] sm:$0xff] %v310_v52  ;;  %376 = vst [vmem:[#allocation2 + $0x309] sm:$0xff] %v311_v63  ;;  %v312_v52 = vld [vmem:[%s20586_s0 + $0x1e0] sm:$0xff]  ;;  %v313_v63 = vld [vmem:[%s20586_s0 + $0x1e8] sm:$0xff] }
  0xb7   :  { %21101 = vst [vmem:[#allocation21_spill] sm:$0xff] %v13114_v51  ;;  %377 = vst [vmem:[#allocation2 + $0x319] sm:$0xff] %v312_v52  ;;  %v13178_v52 = vpack.c.bf16 %v13134_v39, %v13132_v62 }
  0xb8   :  { %378 = vst [vmem:[#allocation2 + $0x321] sm:$0xff] %v313_v63 }
  0xb9   :  { %21113 = vst [vmem:[#allocation32_spill] sm:$0xff] %v13178_v52 }
  0xbc   :  { %1900 = vmatmul.mubr.bf16.gmra.mrb[40].mxu0 %v13058_v31 }
  0xbd   :  { %1907 = vmatprep.mubr.bf16.mxu0 %v13060_v32  ;;  %v13108_v32 = vld [vmem:[#allocation2 + $0x160] sm:$0x3] }
  0xbe   :  { %21099 = vst [vmem:[#allocation19_spill] sm:$0xff] %v13108_v32  ;;  %v659_v16 = vrot.slane %v13108_v32, 1 }
  0xc0   :  { %v660_v8 = vsel %vm585_vm0, %v657_v45, %v659_v16  ;;  %v13141_v45 = vpack.c.bf16 %v13080_v11, %v13078_v9 }
  0xc1   :  { %v13143_v16 = vpack.c.bf16 %v660_v8, %v658_v7 }
  0xc2   :  { %21106 = vst [vmem:[#allocation25_spill] sm:$0xff] %v13141_v45 }
  0xc3   :  { %21107 = vst [vmem:[#allocation26_spill] sm:$0xff] %v13143_v16 }
  0xc4   :  { %1908 = vmatmul.mubr.bf16.gmra.mrb[44].mxu0 %v13087_v33 }
  0xc5   :  { %1915 = vmatprep.mubr.bf16.mxu0 %v13089_v34  ;;  %v13112_v34 = vpack.c.bf16 %v13052_v29, %v13050_v15 }
  0xc7   :  { %21100 = vst [vmem:[#allocation20_spill] sm:$0xff] %v13112_v34 }
  0xcc   :  { %1916 = vmatmul.mubr.bf16.gmra.mrb[48].mxu0 %v13112_v34 }
  0xcd   :  { %1923 = vmatprep.mubr.bf16.mxu0 %v13114_v51  ;;  %v662_v51 = vrot.slane %v13134_v39, 1  ;;  %v13193_v39 = vld [vmem:[#allocation2 + $0x1f0] sm:$0x3] }
  0xce   :  { %21116 = vst [vmem:[#allocation34_spill] sm:$0xff] %v13193_v39  ;;  %v679_v32 = vrot.slane %v13193_v39, 1  ;;  %v824_v39 = vrot.slane %v12752_v60, 2 }
  0xcf   :  { %v663_v7 = vsel %vm585_vm0, %v661_v46, %v662_v51  ;;  %v665_v8 = vsel %vm585_vm0, %v662_v51, %v664_v5  ;;  %v13169_v46 = vld [vmem:[#allocation2 + $0x1c8] sm:$0xff]  ;;  %v13171_v5 = vld [vmem:[#allocation2 + $0x1d0] sm:$0xff]  ;;  %v13173_v51 = vld [vmem:[#allocation2 + $0x1d8] sm:$0x3] }
  0xd0   :  { %v13162_v41 = vpack.c.bf16 %v665_v8, %v663_v7  ;;  %21110 = vst [vmem:[#allocation29_spill] sm:$0xff] %v13169_v46  ;;  %21111 = vst [vmem:[#allocation30_spill] sm:$0xff] %v13171_v5  ;;  %v671_v63 = vrot.slane %v13169_v46, 1  ;;  %v672_v7 = vrot.slane %v13171_v5, 1  ;;  %v674_v8 = vrot.slane %v13173_v51, 1 }
  0xd1   :  { %21112 = vst [vmem:[#allocation31_spill] sm:$0xff] %v13173_v51  ;;  %v676_v51 = vrot.slane %v13189_v13, 1 }
  0xd2   :  { %21109 = vst [vmem:[#allocation28_spill] sm:$0xff] %v13162_v41  ;;  %v675_v27 = vsel %vm585_vm0, %v672_v7, %v674_v8  ;;  %v13206_v8 = vld [vmem:[#allocation2 + $0x200] sm:$0xff] }
  0xd3   :  { %21120 = vst [vmem:[#allocation37_spill] sm:$0xff] %v13206_v8 }
  0xd4   :  { %1924 = vmatmul.mubr.bf16.gmra.mrb[52].mxu0 %v13141_v45 }
  0xd5   :  { %1931 = vmatprep.mubr.bf16.mxu0 %v13143_v16  ;;  %v12110_v16 = vld [vmem:[%s20585_s1 + $0xf8] sm:$0xff]  }
  0xd6   :  { %2107 = vmatpush1.bf16.msra.mxu0 %v12110_v16  ;;  %v21114_v16 = vpack.c.bf16 %v12775_v10, %v12610_v6  ;;  %v21118_v6 = vmov 0.0|0.0  }
  0xd7   :  { %2365 = vmatprep.subr.bf16.mxu0 %v21105_v28 }
  0xdc   :  { %1932 = vmatmul.mubr.bf16.gmra.mrb[56].mxu0 %v13160_v57 }
  0xdd   :  { %1939 = vmatprep.mubr.bf16.mxu0 %v13162_v41  ;;  %v673_v41 = vsel %vm585_vm0, %v671_v63, %v672_v7  ;;  %v13204_v7 = vld [vmem:[#allocation2 + $0x1f8] sm:$0xff] }
  0xde   :  { %v13195_v62 = vpack.c.bf16 %v675_v27, %v673_v41  ;;  %21119 = vst [vmem:[#allocation36_spill] sm:$0xff] %v13204_v7  ;;  %v13208_v27 = vld [vmem:[#allocation2 + $0x208] sm:$0x3]  ;;  %v13212_v41 = vpack.c.bf16 %v13171_v5, %v13169_v46  ;;  %v13226_v5 = vld [vmem:[#allocation2 + $0x210] sm:$0xff]  ;;  %v13228_v46 = vld [vmem:[#allocation2 + $0x218] sm:$0xff] }
  0xdf   :  { %21121 = vst [vmem:[#allocation38_spill] sm:$0xff] %v13208_v27  ;;  %21124 = vst [vmem:[#allocation41_spill] sm:$0xff] %v13226_v5 }
  0xe0   :  { %21117 = vst [vmem:[#allocation35_spill] sm:$0xff] %v13195_v62  ;;  %21122 = vst [vmem:[#allocation39_spill] sm:$0xff] %v13212_v41 }
  0xe1   :  { %21125 = vst [vmem:[#allocation42_spill] sm:$0xff] %v13228_v46 }
  0xe4   :  { %1940 = vmatmul.mubr.bf16.gmra.mrb[60].mxu0 %v13178_v52  ;;  %v677_v52 = vrot.slane %v13191_v24, 1 }
  0xe5   :  { %1947 = vmatprep.mubr.bf16.mxu0 %v21114_v16 }
  0xe6   :  { %v678_v10 = vsel %vm585_vm0, %v676_v51, %v677_v52  ;;  %v680_v63 = vsel %vm585_vm0, %v677_v52, %v679_v32  ;;  %v684_v51 = vrot.slane %v13208_v27, 1  ;;  %v821_v32 = vrot.slane %v12745_v55, 2  ;;  %v13230_v27 = vld [vmem:[#allocation2 + $0x220] sm:$0x3] }
  0xe7   :  { %v13214_v16 = vpack.c.bf16 %v680_v63, %v678_v10  ;;  %v822_v52 = vrot.slane %v12747_v56, 2  ;;  %21126 = vst [vmem:[#allocation43_spill] sm:$0xff] %v13230_v27  ;;  %v13236_v55 = vpack.c.bf16 %v13191_v24, %v13189_v13  ;;  %v13269_v24 = vld [vmem:[#allocation2 + $0x240] sm:$0xff] }
  0xe8   :  { %21135 = vst [vmem:[#allocation52_spill] sm:$0xff] %v13269_v24 }
  0xe9   :  { %21123 = vst [vmem:[#allocation40_spill] sm:$0xff] %v13214_v16  ;;  %21127 = vst [vmem:[#allocation44_spill] sm:$0xff] %v13236_v55 }
  0xec   :  { %1948 = vmatmul.mubr.bf16.gmra.mrb[64].mxu0 %v21118_v6  ;;  %v681_v6 = vrot.slane %v13204_v7, 1 }
  0xed   :  { %1955 = vmatprep.mubr.bf16.mxu0 %v13195_v62  ;;  %v682_v62 = vrot.slane %v13206_v8, 1 }
  0xef   :  { %v683_v10 = vsel %vm585_vm0, %v681_v6, %v682_v62  ;;  %v685_v63 = vsel %vm585_vm0, %v682_v62, %v684_v51  ;;  %v686_v62 = vrot.slane %v13226_v5, 1  ;;  %v687_v6 = vrot.slane %v13228_v46, 1 }
  0xf0   :  { %v13240_v60 = vpack.c.bf16 %v685_v63, %v683_v10  ;;  %v689_v51 = vrot.slane %v13230_v27, 1  ;;  %v13258_v10 = vpack.c.bf16 %v13206_v8, %v13204_v7  ;;  %v13271_v8 = vld [vmem:[#allocation2 + $0x248] sm:$0xff] }
  0xf1   :  { %21136 = vst [vmem:[#allocation53_spill] sm:$0xff] %v13271_v8 }
  0xf2   :  { %21129 = vst [vmem:[#allocation46_spill] sm:$0xff] %v13240_v60  ;;  %21133 = vst [vmem:[#allocation50_spill] sm:$0xff] %v13258_v10 }
  0xf4   :  { %1956 = vmatmul.mubr.bf16.gmra.mrb[68].mxu0 %v13212_v41  ;;  %v823_v41 = vsel %vm810_vm1, %v821_v32, %v822_v52  ;;  %v690_v32 = vsel %vm585_vm0, %v687_v6, %v689_v51 }
  0xf5   :  { %1963 = vmatprep.mubr.bf16.mxu0 %v13214_v16  ;;  %v825_v16 = vsel %vm810_vm1, %v822_v52, %v824_v39  ;;  %v688_v39 = vsel %vm585_vm0, %v686_v62, %v687_v6  ;;  %v13254_v52 = vld [vmem:[#allocation2 + $0x238] sm:$0x3] }
  0xf6   :  { %v13238_v56 = vpack.c.bf16 %v825_v16, %v823_v41  ;;  %v13250_v41 = vld [vmem:[#allocation2 + $0x228] sm:$0xff]  ;;  %v13252_v16 = vld [vmem:[#allocation2 + $0x230] sm:$0xff]  ;;  %21132 = vst [vmem:[#allocation49_spill] sm:$0xff] %v13254_v52  ;;  %v13260_v63 = vpack.c.bf16 %v690_v32, %v688_v39  ;;  %v694_v62 = vrot.slane %v13254_v52, 1  ;;  %v13277_v32 = vpack.c.bf16 %v13228_v46, %v13226_v5  ;;  %v13290_v46 = vld [vmem:[#allocation2 + $0x260] sm:$0xff] }
  0xf7   :  { %21130 = vst [vmem:[#allocation47_spill] sm:$0xff] %v13250_v41  ;;  %21131 = vst [vmem:[#allocation48_spill] sm:$0xff] %v13252_v16  ;;  %v691_v27 = vrot.slane %v13250_v41, 1  ;;  %v13273_v39 = vld [vmem:[#allocation2 + $0x250] sm:$0x3]  ;;  %v696_v52 = vrot.slane %v13269_v24, 1 }
  0xf8   :  { %21128 = vst [vmem:[#allocation45_spill] sm:$0xff] %v13238_v56  ;;  %10733 = vmatprep.mubr.bf16.mxu1 %v13238_v56  ;;  %21134 = vst [vmem:[#allocation51_spill] sm:$0xff] %v13260_v63 }
  0xf9   :  { %21137 = vst [vmem:[#allocation54_spill] sm:$0xff] %v13273_v39  ;;  %21138 = vst [vmem:[#allocation55_spill] sm:$0xff] %v13277_v32 }
  0xfa   :  { %21141 = vst [vmem:[#allocation58_spill] sm:$0xff] %v13290_v46 }
  0xfc   :  { %1964 = vmatmul.mubr.bf16.gmra.mrb[72].mxu0 %v13236_v55 }
  0xfd   :  { %1971 = vmatprep.mubr.bf16.mxu0 %v13240_v60  ;;  %v692_v60 = vrot.slane %v13252_v16, 1 }
  0xff   :  { %v693_v6 = vsel %vm585_vm0, %v691_v27, %v692_v60  ;;  %v695_v51 = vsel %vm585_vm0, %v692_v60, %v694_v62  ;;  %v699_v27 = vrot.slane %v13273_v39, 1 }
 0x100   :  { %v13279_v7 = vpack.c.bf16 %v695_v51, %v693_v6  ;;  %v13292_v6 = vld [vmem:[#allocation2 + $0x268] sm:$0x3]  ;;  %v13296_v51 = vpack.c.bf16 %v13252_v16, %v13250_v41  ;;  %v13309_v16 = vld [vmem:[#allocation2 + $0x278] sm:$0xff] }
 0x101   :  { %21142 = vst [vmem:[#allocation59_spill] sm:$0xff] %v13292_v6  ;;  %21146 = vst [vmem:[#allocation63_spill] sm:$0xff] %v13309_v16 }
 0x102   :  { %21139 = vst [vmem:[#allocation56_spill] sm:$0xff] %v13279_v7  ;;  %21143 = vst [vmem:[#allocation60_spill] sm:$0xff] %v13296_v51 }
 0x104   :  { %1972 = vmatmul.mubr.bf16.gmra.mrb[76].mxu0 %v13258_v10  ;;  %v13288_v10 = vld [vmem:[#allocation2 + $0x258] sm:$0xff] }
 0x105   :  { %1979 = vmatprep.mubr.bf16.mxu0 %v13260_v63  ;;  %v697_v63 = vrot.slane %v13271_v8, 1  ;;  %21140 = vst [vmem:[#allocation57_spill] sm:$0xff] %v13288_v10  ;;  %v701_v39 = vrot.slane %v13288_v10, 1 }
 0x107   :  { %v698_v60 = vsel %vm585_vm0, %v696_v52, %v697_v63  ;;  %v700_v62 = vsel %vm585_vm0, %v697_v63, %v699_v27  ;;  %v704_v52 = vrot.slane %v13292_v6, 1 }
 0x108   :  { %v13298_v5 = vpack.c.bf16 %v700_v62, %v698_v60  ;;  %v13311_v60 = vld [vmem:[#allocation2 + $0x280] sm:$0x3]  ;;  %v13315_v62 = vpack.c.bf16 %v13271_v8, %v13269_v24  ;;  %v13328_v8 = vld [vmem:[#allocation2 + $0x290] sm:$0xff] }
 0x109   :  { %21147 = vst [vmem:[#allocation64_spill] sm:$0xff] %v13311_v60  ;;  %21151 = vst [vmem:[#allocation68_spill] sm:$0xff] %v13328_v8 }
 0x10a   :  { %21144 = vst [vmem:[#allocation61_spill] sm:$0xff] %v13298_v5  ;;  %21148 = vst [vmem:[#allocation65_spill] sm:$0xff] %v13315_v62 }
 0x10c   :  { %1980 = vmatmul.mubr.bf16.gmra.mrb[80].mxu0 %v13277_v32  ;;  %v13307_v32 = vld [vmem:[#allocation2 + $0x270] sm:$0xff] }
 0x10d   :  { %1987 = vmatprep.mubr.bf16.mxu0 %v13279_v7  ;;  %v702_v7 = vrot.slane %v13290_v46, 1  ;;  %21145 = vst [vmem:[#allocation62_spill] sm:$0xff] %v13307_v32  ;;  %v706_v6 = vrot.slane %v13307_v32, 1 }
 0x10f   :  { %v703_v63 = vsel %vm585_vm0, %v701_v39, %v702_v7  ;;  %v705_v27 = vsel %vm585_vm0, %v702_v7, %v704_v52  ;;  %v709_v39 = vrot.slane %v13311_v60, 1 }
 0x110   :  { %v13317_v41 = vpack.c.bf16 %v705_v27, %v703_v63  ;;  %v13330_v63 = vld [vmem:[#allocation2 + $0x298] sm:$0x3]  ;;  %v13334_v27 = vpack.c.bf16 %v13290_v46, %v13288_v10  ;;  %v13347_v46 = vld [vmem:[#allocation2 + $0x2a8] sm:$0xff] }
 0x111   :  { %21152 = vst [vmem:[#allocation69_spill] sm:$0xff] %v13330_v63  ;;  %21156 = vst [vmem:[#allocation73_spill] sm:$0xff] %v13347_v46 }
 0x112   :  { %21149 = vst [vmem:[#allocation66_spill] sm:$0xff] %v13317_v41  ;;  %21153 = vst [vmem:[#allocation70_spill] sm:$0xff] %v13334_v27 }
 0x114   :  { %1988 = vmatmul.mubr.bf16.gmra.mrb[84].mxu0 %v13296_v51  ;;  %v13326_v51 = vld [vmem:[#allocation2 + $0x288] sm:$0xff] }
 0x115   :  { %1995 = vmatprep.mubr.bf16.mxu0 %v13298_v5  ;;  %v707_v5 = vrot.slane %v13309_v16, 1  ;;  %21150 = vst [vmem:[#allocation67_spill] sm:$0xff] %v13326_v51  ;;  %v711_v60 = vrot.slane %v13326_v51, 1 }
 0x117   :  { %v708_v7 = vsel %vm585_vm0, %v706_v6, %v707_v5  ;;  %v710_v52 = vsel %vm585_vm0, %v707_v5, %v709_v39  ;;  %v714_v6 = vrot.slane %v13330_v63, 1 }
 0x118   :  { %v13336_v24 = vpack.c.bf16 %v710_v52, %v708_v7  ;;  %v13349_v7 = vld [vmem:[#allocation2 + $0x2b0] sm:$0x3]  ;;  %v13353_v52 = vpack.c.bf16 %v13309_v16, %v13307_v32  ;;  %v13366_v16 = vld [vmem:[#allocation2 + $0x2c0] sm:$0xff] }
 0x119   :  { %21157 = vst [vmem:[#allocation74_spill] sm:$0xff] %v13349_v7  ;;  %21161 = vst [vmem:[#allocation78_spill] sm:$0xff] %v13366_v16 }
 0x11a   :  { %21154 = vst [vmem:[#allocation71_spill] sm:$0xff] %v13336_v24  ;;  %21158 = vst [vmem:[#allocation75_spill] sm:$0xff] %v13353_v52 }
 0x11c   :  { %1996 = vmatmul.mubr.bf16.gmra.mrb[88].mxu0 %v13315_v62  ;;  %v13345_v62 = vld [vmem:[#allocation2 + $0x2a0] sm:$0xff] }
 0x11d   :  { %2003 = vmatprep.mubr.bf16.mxu0 %v13317_v41  ;;  %v712_v41 = vrot.slane %v13328_v8, 1  ;;  %21155 = vst [vmem:[#allocation72_spill] sm:$0xff] %v13345_v62  ;;  %v716_v63 = vrot.slane %v13345_v62, 1 }
 0x11f   :  { %v713_v5 = vsel %vm585_vm0, %v711_v60, %v712_v41  ;;  %v715_v39 = vsel %vm585_vm0, %v712_v41, %v714_v6  ;;  %v719_v60 = vrot.slane %v13349_v7, 1 }
 0x120   :  { %v13355_v10 = vpack.c.bf16 %v715_v39, %v713_v5  ;;  %v13368_v5 = vld [vmem:[#allocation2 + $0x2c8] sm:$0x3]  ;;  %v13372_v39 = vpack.c.bf16 %v13328_v8, %v13326_v51  ;;  %v13385_v8 = vld [vmem:[#allocation2 + $0x2d8] sm:$0xff] }
 0x121   :  { %21162 = vst [vmem:[#allocation79_spill] sm:$0xff] %v13368_v5  ;;  %21166 = vst [vmem:[#allocation83_spill] sm:$0xff] %v13385_v8 }
 0x122   :  { %21159 = vst [vmem:[#allocation76_spill] sm:$0xff] %v13355_v10  ;;  %21163 = vst [vmem:[#allocation80_spill] sm:$0xff] %v13372_v39 }
 0x124   :  { %2004 = vmatmul.mubr.bf16.gmra.mrb[92].mxu0 %v13334_v27  ;;  %v13364_v27 = vld [vmem:[#allocation2 + $0x2b8] sm:$0xff] }
 0x125   :  { %2011 = vmatprep.mubr.bf16.mxu0 %v13336_v24  ;;  %v717_v24 = vrot.slane %v13347_v46, 1  ;;  %21160 = vst [vmem:[#allocation77_spill] sm:$0xff] %v13364_v27  ;;  %v721_v7 = vrot.slane %v13364_v27, 1 }
 0x127   :  { %v718_v41 = vsel %vm585_vm0, %v716_v63, %v717_v24  ;;  %v720_v6 = vsel %vm585_vm0, %v717_v24, %v719_v60  ;;  %v724_v63 = vrot.slane %v13368_v5, 1 }
 0x128   :  { %v13374_v32 = vpack.c.bf16 %v720_v6, %v718_v41  ;;  %v13387_v41 = vld [vmem:[#allocation2 + $0x2e0] sm:$0x3]  ;;  %v13391_v6 = vpack.c.bf16 %v13347_v46, %v13345_v62  ;;  %v13404_v46 = vld [vmem:[#allocation2 + $0x2f0] sm:$0xff] }
 0x129   :  { %21167 = vst [vmem:[#allocation84_spill] sm:$0xff] %v13387_v41  ;;  %21170 = vst [vmem:[#allocation87_spill] sm:$0xff] %v13404_v46 }
 0x12a   :  { %21164 = vst [vmem:[#allocation81_spill] sm:$0xff] %v13374_v32  ;;  %21168 = vst [vmem:[#allocation85_spill] sm:$0xff] %v13391_v6 }
 0x12c   :  { %2012 = vmatmul.mubr.bf16.gmra.mrb[96].mxu0 %v13353_v52  ;;  %v13383_v52 = vld [vmem:[#allocation2 + $0x2d0] sm:$0xff] }
 0x12d   :  { %2019 = vmatprep.mubr.bf16.mxu0 %v13355_v10  ;;  %v722_v10 = vrot.slane %v13366_v16, 1  ;;  %21165 = vst [vmem:[#allocation82_spill] sm:$0xff] %v13383_v52  ;;  %v726_v5 = vrot.slane %v13383_v52, 1 }
 0x12f   :  { %v723_v24 = vsel %vm585_vm0, %v721_v7, %v722_v10  ;;  %v725_v60 = vsel %vm585_vm0, %v722_v10, %v724_v63  ;;  %v729_v7 = vrot.slane %v13387_v41, 1 }
 0x130   :  { %v13393_v51 = vpack.c.bf16 %v725_v60, %v723_v24  ;;  %v13406_v24 = vld [vmem:[#allocation2 + $0x2f8] sm:$0x3]  ;;  %v13410_v60 = vpack.c.bf16 %v13366_v16, %v13364_v27  ;;  %v13423_v16 = vld [vmem:[#allocation2 + $0x308] sm:$0xff] }
 0x131   :  { %21171 = vst [vmem:[#allocation88_spill] sm:$0xff] %v13406_v24  ;;  %21175 = vst [vmem:[#allocation92_spill] sm:$0xff] %v13423_v16 }
 0x132   :  { %21169 = vst [vmem:[#allocation86_spill] sm:$0xff] %v13393_v51  ;;  %21172 = vst [vmem:[#allocation89_spill] sm:$0xff] %v13410_v60 }
 0x134   :  { %2020 = vmatmul.mubr.bf16.gmra.mrb[100].mxu0 %v13372_v39  ;;  %v13402_v39 = vld [vmem:[#allocation2 + $0x2e8] sm:$0xff] }
 0x135   :  { %2027 = vmatprep.mubr.bf16.mxu0 %v13374_v32  ;;  %v727_v32 = vrot.slane %v13385_v8, 1  ;;  %v731_v41 = vrot.slane %v13402_v39, 1 }
 0x137   :  { %v728_v10 = vsel %vm585_vm0, %v726_v5, %v727_v32  ;;  %v730_v63 = vsel %vm585_vm0, %v727_v32, %v729_v7  ;;  %v734_v5 = vrot.slane %v13406_v24, 1 }
 0x138   :  { %v13412_v62 = vpack.c.bf16 %v730_v63, %v728_v10  ;;  %v13425_v10 = vld [vmem:[#allocation2 + $0x310] sm:$0x3]  ;;  %v13429_v63 = vpack.c.bf16 %v13385_v8, %v13383_v52  ;;  %v13442_v8 = vld [vmem:[#allocation2 + $0x320] sm:$0xff] }
 0x139   :  { %21176 = vst [vmem:[#allocation93_spill] sm:$0xff] %v13425_v10  ;;  %21180 = vst [vmem:[#allocation97_spill] sm:$0xff] %v13442_v8 }
 0x13a   :  { %21173 = vst [vmem:[#allocation90_spill] sm:$0xff] %v13412_v62  ;;  %21177 = vst [vmem:[#allocation94_spill] sm:$0xff] %v13429_v63 }
 0x13c   :  { %2028 = vmatmul.mubr.bf16.gmra.mrb[104].mxu0 %v13391_v6  ;;  %v13421_v6 = vld [vmem:[#allocation2 + $0x300] sm:$0xff] }
 0x13d   :  { %2035 = vmatprep.mubr.bf16.mxu0 %v13393_v51  ;;  %v732_v51 = vrot.slane %v13404_v46, 1  ;;  %21174 = vst [vmem:[#allocation91_spill] sm:$0xff] %v13421_v6  ;;  %v736_v24 = vrot.slane %v13421_v6, 1 }
 0x13f   :  { %v733_v32 = vsel %vm585_vm0, %v731_v41, %v732_v51  ;;  %v735_v7 = vsel %vm585_vm0, %v732_v51, %v734_v5  ;;  %v739_v41 = vrot.slane %v13425_v10, 1 }
 0x140   :  { %v13431_v27 = vpack.c.bf16 %v735_v7, %v733_v32  ;;  %v13444_v32 = vld [vmem:[#allocation2 + $0x328] sm:$0x3]  ;;  %v13448_v7 = vpack.c.bf16 %v13404_v46, %v13402_v39  ;;  %v13461_v46 = vpack.c.bf16 %v13423_v16, %v13421_v6 }
 0x141   :  { %21181 = vst [vmem:[#allocation98_spill] sm:$0xff] %v13444_v32 }
 0x142   :  { %21178 = vst [vmem:[#allocation95_spill] sm:$0xff] %v13431_v27  ;;  %21182 = vst [vmem:[#allocation99_spill] sm:$0xff] %v13448_v7 }
 0x143   :  { %21184 = vst [vmem:[#allocation101_spill] sm:$0xff] %v13461_v46 }
 0x144   :  { %2036 = vmatmul.mubr.bf16.gmra.mrb[108].mxu0 %v13410_v60  ;;  %v13440_v60 = vld [vmem:[#allocation2 + $0x318] sm:$0xff] }
 0x145   :  { %2043 = vmatprep.mubr.bf16.mxu0 %v13412_v62  ;;  %v737_v62 = vrot.slane %v13423_v16, 1  ;;  %21179 = vst [vmem:[#allocation96_spill] sm:$0xff] %v13440_v60  ;;  %v741_v10 = vrot.slane %v13440_v60, 1 }
 0x147   :  { %v738_v51 = vsel %vm585_vm0, %v736_v24, %v737_v62  ;;  %v740_v5 = vsel %vm585_vm0, %v737_v62, %v739_v41  ;;  %v744_v24 = vrot.slane %v13444_v32, 1 }
 0x148   :  { %v13450_v52 = vpack.c.bf16 %v740_v5, %v738_v51  ;;  %v282_v51 = vld [vmem:[%s20586_s0 + $0xf0] sm:$0xff]  ;;  %v283_v5 = vld [vmem:[%s20586_s0 + $0xf8] sm:$0xff] }
 0x149   :  { %347 = vst [vmem:[#allocation2 + $0x181] sm:$0xff] %v282_v51  ;;  %348 = vst [vmem:[#allocation2 + $0x189] sm:$0xff] %v283_v5  ;;  %v12111_v51 = vld [vmem:[%s20585_s1 + $0x100] sm:$0xff]   ;;  %v12303_v5 = vld [vmem:[#allocation2 + $0x18] sm:$0xff] }
 0x14a   :  { %21183 = vst [vmem:[#allocation100_spill] sm:$0xff] %v13450_v52 }
 0x14c   :  { %2044 = vmatmul.mubr.bf16.gmra.mrb[112].mxu0 %v13429_v63 }
 0x14d   :  { %2051 = vmatprep.mubr.bf16.mxu0 %v13431_v27  ;;  %v742_v27 = vrot.slane %v13442_v8, 1 }
 0x14f   :  { %v743_v62 = vsel %vm585_vm0, %v741_v10, %v742_v27  ;;  %v745_v41 = vsel %vm585_vm0, %v742_v27, %v744_v24  ;;  %v13475_v27 = vpack.c.bf16 %v13442_v8, %v13440_v60  ;;  %v12301_v10 = vld [vmem:[#allocation2] sm:$0xff]  ;;  %v12305_v60 = vld [vmem:[#allocation2 + $0x28] sm:$0x3] }
 0x150   :  { %v13469_v32 = vpack.c.bf16 %v745_v41, %v743_v62  ;;  %v13477_v24 = vrot.slane %v12301_v10, 2  ;;  %v12304_v8 = vld [vmem:[#allocation2 + $0x20] sm:$0xff]  ;;  %v819_v6 = vrot.slane %v12305_v60, 2  ;;  %v12306_v60 = vld [vmem:[#allocation2 + $0x48] sm:$0xff] }
 0x151   :  { %21186 = vst [vmem:[#allocation103_spill] sm:$0xff] %v13475_v27  ;;  %v817_v10 = vrot.slane %v12304_v8, 2  ;;  %v12113_v8 = vld [vmem:[%s20585_s1 + $0x110] sm:$0xff]  }
 0x152   :  { %21185 = vst [vmem:[#allocation102_spill] sm:$0xff] %v13469_v32 }
 0x154   :  { %2052 = vmatmul.mubr.bf16.gmra.mrb[116].mxu0 %v13448_v7 }
 0x155   :  { %2059 = vmatprep.mubr.bf16.mxu0 %v13450_v52  ;;  %v12302_v52 = vld [vmem:[#allocation2 + $0x10] sm:$0x3] }
 0x156   :  { %v814_v16 = vrot.slane %v12302_v52, 2  ;;  %v12112_v52 = vld [vmem:[%s20585_s1 + $0x108] sm:$0xff]  }
 0x158   :  { %v815_v62 = vsel %vm810_vm1, %v13477_v24, %v814_v16 }
 0x159   :  { %v1105_v41 = vpack.c.bf16 %v815_v62, %v13477_v24 }
 0x15c   :  { %2060 = vmatmul.mubr.bf16.gmra.mrb[120].mxu0 %v13461_v46 }
 0x15d   :  { %2067 = vmatprep.mubr.bf16.mxu0 %v13469_v32  ;;  %v816_v32 = vrot.slane %v12303_v5, 2  ;;  %v12308_v5 = vld [vmem:[#allocation2 + $0x58] sm:$0x3] }
 0x15f   :  { %v818_v16 = vsel %vm810_vm1, %v816_v32, %v817_v10  ;;  %v826_v32 = vrot.slane %v12306_v60, 2  ;;  %v12309_v60 = vld [vmem:[#allocation2 + $0x60] sm:$0xff] }
 0x164   :  { %2068 = vmatmul.mubr.bf16.gmra.mrb[124].mxu0 %v13475_v27 }
 0x165   :  { %2108 = vmatprep.mubr.bf16.mxu0 %v12805_v26  ;;  %v820_v26 = vsel %vm810_vm1, %v817_v10, %v819_v6  ;;  %v12114_v6 = vld [vmem:[%s20585_s1 + $0x118] sm:$0xff]   ;;  %v829_v10 = vrot.slane %v12308_v5, 2  ;;  %v12310_v5 = vld [vmem:[#allocation2 + $0x68] sm:$0xff] }
 0x166   :  { %v13494_v62 = vpack.c.bf16 %v820_v26, %v818_v16  ;;  %v12115_v16 = vld [vmem:[%s20585_s1 + $0x120] sm:$0xff]  }
 0x16c   :  { %2109 = vmatmul.mubr.bf16.vlgmr.msra.gmra.mrb[0].mxu0 %v1105_v41  ;;  %v12307_v41 = vld [vmem:[#allocation2 + $0x50] sm:$0xff] }
 0x16d   :  { %2366 = vmatpush1.bf16.msra.mxu0 %v12111_v51  ;;  %2116 = vmatprep.mubr.bf16.mxu0 %v12829_v40  ;;  %v827_v51 = vrot.slane %v12307_v41, 2  ;;  %v831_v41 = vrot.slane %v12309_v60, 2  ;;  %v12311_v40 = vld [vmem:[#allocation2 + $0x70] sm:$0x3] }
 0x16e   :  { %2367 = vmatprep.subr.bf16.mxu0 %v21105_v28 }
 0x16f   :  { %v828_v26 = vsel %vm810_vm1, %v826_v32, %v827_v51  ;;  %v12117_v32 = vld [vmem:[%s20585_s1 + $0x130] sm:$0xff]  }
 0x171   :  { %2368 = vmatpush1.bf16.msra.mxu0 %v12112_v52  ;;  %v830_v52 = vsel %vm810_vm1, %v827_v51, %v829_v10 }
 0x172   :  { %2369 = vmatprep.subr.bf16.mxu0 %v21105_v28 }
 0x174   :  { %2117 = vmatmul.mubr.bf16.gmra.mrb[4].mxu0 %v13494_v62 }
 0x175   :  { %2124 = vmatprep.mubr.bf16.mxu0 %v12862_v54  ;;  %2370 = vmatpush1.bf16.msra.mxu0 %v12113_v8  ;;  %v12116_v8 = vld [vmem:[%s20585_s1 + $0x128] sm:$0xff]   ;;  %v832_v54 = vrot.slane %v12310_v5, 2  ;;  %v844_v5 = vrot.slane %v12885_v3, 2  ;;  %v847_v3 = vrot.slane %v12914_v21, 2  ;;  %v851_v21 = vrot.slane %v12942_v35, 2 }
 0x176   :  { %2371 = vmatprep.subr.bf16.mxu0 %v21105_v28  ;;  %v859_v35 = vrot.slane %v12974_v59, 2  ;;  %v862_v59 = vrot.slane %v12998_v18, 2  ;;  %v12124_v18 = vld [vmem:[%s20585_s1 + $0x168] sm:$0xff]  }
 0x177   :  { %v833_v51 = vsel %vm810_vm1, %v831_v41, %v832_v54  ;;  %v842_v41 = vrot.slane %v12883_v2, 2  ;;  %v846_v2 = vrot.slane %v12912_v20, 2 }
 0x179   :  { %2372 = vmatpush1.bf16.msra.mxu0 %v12114_v6  ;;  %v13518_v6 = vpack.c.bf16 %v830_v52, %v828_v26  ;;  %v836_v26 = vrot.slane %v12833_v42, 2  ;;  %v837_v52 = vrot.slane %v12835_v43, 2  ;;  %v12120_v42 = vld [vmem:[%s20585_s1 + $0x148] sm:$0xff]  }
 0x17a   :  { %2373 = vmatprep.subr.bf16.mxu0 %v21105_v28 }
 0x17c   :  { %2125 = vmatmul.mubr.bf16.gmra.mrb[8].mxu0 %v13238_v56  ;;  %v834_v56 = vrot.slane %v12311_v40, 2  ;;  %v12118_v40 = vld [vmem:[%s20585_s1 + $0x138] sm:$0xff]  }
 0x17d   :  { %2132 = vmatprep.mubr.bf16.mxu0 %v12887_v4  ;;  %2374 = vmatpush1.bf16.msra.mxu0 %v12115_v16 }
 0x17e   :  { %2375 = vmatprep.subr.bf16.mxu0 %v21105_v28  ;;  %v835_v10 = vsel %vm810_vm1, %v832_v54, %v834_v56  ;;  %v12119_v54 = vld [vmem:[%s20585_s1 + $0x140] sm:$0xff]   ;;  %v838_v56 = vsel %vm810_vm1, %v836_v26, %v837_v52  ;;  %v12122_v26 = vld [vmem:[%s20585_s1 + $0x158] sm:$0xff]  }
 0x17f   :  { %v13532_v16 = vpack.c.bf16 %v835_v10, %v833_v51  ;;  %v845_v10 = vsel %vm810_vm1, %v842_v41, %v844_v5 }
 0x181   :  { %2376 = vmatpush1.bf16.msra.mxu0 %v12116_v8  ;;  %v839_v8 = vrot.slane %v12837_v44, 2  ;;  %v841_v44 = vrot.slane %v12880_v1, 2 }
 0x182   :  { %2377 = vmatprep.subr.bf16.mxu0 %v21105_v28 }
 0x183   :  { %v840_v60 = vsel %vm810_vm1, %v837_v52, %v839_v8  ;;  %v843_v51 = vsel %vm810_vm1, %v841_v44, %v842_v41  ;;  %v848_v52 = vsel %vm810_vm1, %v846_v2, %v847_v3  ;;  %v856_v44 = vrot.slane %v12970_v53, 2 }
 0x184   :  { %2133 = vmatmul.mubr.bf16.gmra.mrb[12].mxu0 %v13518_v6  ;;  %v13549_v43 = vpack.c.bf16 %v840_v60, %v838_v56  ;;  %v13563_v1 = vpack.c.bf16 %v845_v10, %v843_v51  ;;  %v857_v41 = vrot.slane %v12972_v58, 2  ;;  %v861_v58 = vrot.slane %v12996_v17, 2 }
 0x185   :  { %2140 = vmatprep.mubr.bf16.mxu0 %v12920_v23  ;;  %2378 = vmatpush1.bf16.msra.mxu0 %v12117_v32  ;;  %v12121_v32 = vld [vmem:[%s20585_s1 + $0x150] sm:$0xff]   ;;  %v869_v17 = vrot.slane %v13028_v49, 2  ;;  %v872_v49 = vrot.slane %v13052_v29, 2 }
 0x186   :  { %2379 = vmatprep.subr.bf16.mxu0 %v21105_v28  ;;  %v860_v5 = vsel %vm810_vm1, %v857_v41, %v859_v35  ;;  %v863_v51 = vsel %vm810_vm1, %v861_v58, %v862_v59  ;;  %v12125_v29 = vld [vmem:[%s20585_s1 + $0x170] sm:$0xff]   ;;  %v21188_v35 = vld [vmem:[#allocation32_spill] sm:$0xff]  ;;  %v13653_v58 = vld [vmem:[#allocation2 + $0x188] sm:$0xff] }
 0x189   :  { %2380 = vmatpush1.bf16.msra.mxu0 %v12118_v40  ;;  %v849_v40 = vrot.slane %v12916_v22, 2  ;;  %v852_v22 = vrot.slane %v12944_v36, 2  ;;  %v12123_v36 = vld [vmem:[%s20585_s1 + $0x160] sm:$0xff]  }
 0x18a   :  { %2381 = vmatprep.subr.bf16.mxu0 %v21105_v28 }
 0x18b   :  { %v850_v8 = vsel %vm810_vm1, %v847_v3, %v849_v40  ;;  %v853_v56 = vsel %vm810_vm1, %v851_v21, %v852_v22  ;;  %v866_v3 = vrot.slane %v13024_v47, 2  ;;  %v867_v40 = vrot.slane %v13026_v48, 2 }
 0x18c   :  { %2141 = vmatmul.mubr.bf16.gmra.mrb[16].mxu0 %v13532_v16  ;;  %v13576_v20 = vpack.c.bf16 %v850_v8, %v848_v52  ;;  %v871_v48 = vrot.slane %v13050_v15, 2  ;;  %v874_v52 = vrot.slane %v13054_v30, 2  ;;  %v879_v15 = vrot.slane %v13082_v14, 2 }
 0x18d   :  { %2148 = vmatprep.mubr.bf16.mxu0 %v12950_v38  ;;  %2382 = vmatpush1.bf16.msra.mxu0 %v12119_v54  ;;  %v854_v54 = vrot.slane %v12946_v37, 2  ;;  %v858_v37 = vsel %vm810_vm1, %v856_v44, %v857_v41  ;;  %v882_v14 = vrot.slane %v13106_v0, 2  ;;  %v21187_v44 = vld [vmem:[#allocation19_spill] sm:$0xff]  ;;  %v314_v0 = vld [vmem:[%s20586_s0 + $0x1f0] sm:$0xff] }
 0x18e   :  { %2383 = vmatprep.subr.bf16.mxu0 %v21105_v28  ;;  %v13598_v53 = vpack.c.bf16 %v860_v5, %v858_v37  ;;  %v873_v8 = vsel %vm810_vm1, %v871_v48, %v872_v49  ;;  %v875_v21 = vsel %vm810_vm1, %v872_v49, %v874_v52  ;;  %v884_v41 = vrot.slane %v21187_v44, 2  ;;  %v13651_v5 = vld [vmem:[#allocation2 + $0x180] sm:$0xff]  ;;  %379 = vst [vmem:[#allocation2 + $0x331] sm:$0xff] %v314_v0  ;;  %v21197_v0 = vld [vmem:[#allocation33_spill] sm:$0xff] }
 0x18f   :  { %v855_v60 = vsel %vm810_vm1, %v852_v22, %v854_v54  ;;  %v13629_v22 = vpack.c.bf16 %v875_v21, %v873_v8  ;;  %v876_v54 = vrot.slane %v13078_v9, 2  ;;  %v12312_v52 = vld [vmem:[#allocation2 + $0x1c0] sm:$0x3]  ;;  %v21193_v21 = vld [vmem:[#allocation39_spill] sm:$0xff] }
 0x190   :  { %v885_v37 = vsel %vm810_vm1, %v882_v14, %v884_v41  ;;  %v894_v8 = vrot.slane %v12312_v52, 2 }
 0x191   :  { %2384 = vmatpush1.bf16.msra.mxu0 %v12120_v42  ;;  %v13585_v42 = vpack.c.bf16 %v855_v60, %v853_v56  ;;  %v877_v56 = vrot.slane %v13080_v11, 2  ;;  %v881_v11 = vrot.slane %v13104_v12, 2  ;;  %v315_v12 = vld [vmem:[%s20586_s0 + $0x1f8] sm:$0xff] }
 0x192   :  { %2385 = vmatprep.subr.bf16.mxu0 %v21105_v28  ;;  %380 = vst [vmem:[#allocation2 + $0x339] sm:$0xff] %v315_v12  ;;  %v902_v12 = vrot.slane %v21197_v0, 2 }
 0x193   :  { %v878_v30 = vsel %vm810_vm1, %v876_v54, %v877_v56  ;;  %v880_v60 = vsel %vm810_vm1, %v877_v56, %v879_v15  ;;  %v895_v54 = vsel %vm810_vm1, %v13477_v24, %v894_v8  ;;  %v21194_v15 = vld [vmem:[#allocation29_spill] sm:$0xff]  ;;  %v21202_v8 = vld [vmem:[#allocation38_spill] sm:$0xff] }
 0x194   :  { %2149 = vmatmul.mubr.bf16.gmra.mrb[20].mxu0 %v13549_v43  ;;  %v13642_v9 = vpack.c.bf16 %v880_v60, %v878_v30  ;;  %v1159_v56 = vpack.c.bf16 %v895_v54, %v13477_v24  ;;  %v21195_v30 = vld [vmem:[#allocation30_spill] sm:$0xff] }
 0x195   :  { %2156 = vmatprep.mubr.bf16.mxu0 %v12979_v61  ;;  %2386 = vmatpush1.bf16.msra.mxu0 %v12121_v32  ;;  %v864_v32 = vrot.slane %v13000_v19, 2  ;;  %v868_v19 = vsel %vm810_vm1, %v866_v3, %v867_v40  ;;  %v21191_v3 = vld [vmem:[#allocation23_spill] sm:$0xff]  ;;  %v897_v60 = vrot.slane %v21195_v30, 2 }
 0x196   :  { %2387 = vmatprep.subr.bf16.mxu0 %v21105_v28 }
 0x197   :  { %v865_v10 = vsel %vm810_vm1, %v862_v59, %v864_v32  ;;  %v13665_v32 = vpack.c.bf16 %v13653_v58, %v13651_v5 }
 0x198   :  { %v13607_v2 = vpack.c.bf16 %v865_v10, %v863_v51  ;;  %v21190_v51 = vld [vmem:[#allocation22_spill] sm:$0xff] }
 0x199   :  { %2388 = vmatpush1.bf16.msra.mxu0 %v12122_v26  ;;  %v870_v26 = vsel %vm810_vm1, %v867_v40, %v869_v17  ;;  %21189 = vst [vmem:[#allocation19_spill] sm:$0xff] %v13665_v32  ;;  %v886_v10 = vrot.slane %v21190_v51, 2  ;;  %v887_v40 = vrot.slane %v21191_v3, 2  ;;  %v21192_v17 = vld [vmem:[#allocation24_spill] sm:$0xff]  ;;  %v21198_v51 = vld [vmem:[#allocation34_spill] sm:$0xff] }
 0x19a   :  { %2389 = vmatprep.subr.bf16.mxu0 %v21105_v28  ;;  %v13620_v47 = vpack.c.bf16 %v870_v26, %v868_v19  ;;  %v12126_v19 = vld [vmem:[%s20585_s1 + $0x178] sm:$0xff]   ;;  %v21199_v3 = vld [vmem:[#allocation50_spill] sm:$0xff] }
 0x19b   :  { %v888_v26 = vsel %vm810_vm1, %v886_v10, %v887_v40  ;;  %v904_v10 = vrot.slane %v21198_v51, 2  ;;  %v21208_v51 = vld [vmem:[#allocation47_spill] sm:$0xff] }
 0x19c   :  { %2157 = vmatmul.mubr.bf16.gmra.mrb[24].mxu0 %v13563_v1 }
 0x19d   :  { %2164 = vmatprep.mubr.bf16.mxu0 %v13004_v25  ;;  %2390 = vmatpush1.bf16.msra.mxu0 %v12123_v36  ;;  %v883_v36 = vsel %vm810_vm1, %v881_v11, %v882_v14  ;;  %v21196_v11 = vld [vmem:[#allocation31_spill] sm:$0xff] }
 0x19e   :  { %2391 = vmatprep.subr.bf16.mxu0 %v21105_v28  ;;  %v13655_v59 = vpack.c.bf16 %v885_v37, %v883_v36  ;;  %v899_v14 = vrot.slane %v21196_v11, 2  ;;  %v901_v37 = vrot.slane %v13189_v13, 2  ;;  %v909_v13 = vrot.slane %v21202_v8, 2 }
 0x1a0   :  { %v900_v41 = vsel %vm810_vm1, %v897_v60, %v899_v14  ;;  %v21206_v14 = vld [vmem:[#allocation43_spill] sm:$0xff] }
 0x1a1   :  { %2392 = vmatpush1.bf16.msra.mxu0 %v12124_v18  ;;  %v889_v18 = vrot.slane %v21192_v17, 2  ;;  %v905_v17 = vsel %vm810_vm1, %v902_v12, %v904_v10  ;;  %v916_v10 = vrot.slane %v21208_v51, 2  ;;  %v21216_v51 = vld [vmem:[#allocation57_spill] sm:$0xff] }
 0x1a2   :  { %2393 = vmatprep.subr.bf16.mxu0 %v21105_v28 }
 0x1a3   :  { %v890_v48 = vsel %vm810_vm1, %v887_v40, %v889_v18  ;;  %v903_v40 = vsel %vm810_vm1, %v901_v37, %v902_v12 }
 0x1a4   :  { %2165 = vmatmul.mubr.bf16.gmra.mrb[28].mxu0 %v13576_v20  ;;  %v13678_v49 = vpack.c.bf16 %v890_v48, %v888_v26  ;;  %v13700_v18 = vpack.c.bf16 %v905_v17, %v903_v40  ;;  %v21201_v48 = vld [vmem:[#allocation37_spill] sm:$0xff]  ;;  %v21209_v40 = vld [vmem:[#allocation48_spill] sm:$0xff] }
 0x1a5   :  { %2172 = vmatprep.mubr.bf16.mxu0 %v13033_v50  ;;  %2394 = vmatpush1.bf16.msra.mxu0 %v12125_v29  ;;  %v896_v29 = vrot.slane %v21194_v15, 2  ;;  %v907_v52 = vrot.slane %v21201_v48, 2  ;;  %v917_v17 = vrot.slane %v21209_v40, 2  ;;  %v21211_v48 = vld [vmem:[#allocation65_spill] sm:$0xff]  ;;  %v21217_v40 = vld [vmem:[#allocation58_spill] sm:$0xff] }
 0x1a6   :  { %2395 = vmatprep.subr.bf16.mxu0 %v21105_v28 }
 0x1a7   :  { %v898_v44 = vsel %vm810_vm1, %v896_v29, %v897_v60  ;;  %v21204_v29 = vld [vmem:[#allocation41_spill] sm:$0xff]  ;;  %v21205_v60 = vld [vmem:[#allocation42_spill] sm:$0xff] }
 0x1a8   :  { %v13691_v36 = vpack.c.bf16 %v900_v41, %v898_v44  ;;  %v911_v30 = vrot.slane %v21204_v29, 2  ;;  %v912_v11 = vrot.slane %v21205_v60, 2  ;;  %v914_v44 = vrot.slane %v21206_v14, 2  ;;  %v21207_v41 = vld [vmem:[#allocation60_spill] sm:$0xff]  ;;  %v21213_v29 = vld [vmem:[#allocation53_spill] sm:$0xff]  ;;  %v21214_v60 = vld [vmem:[#allocation54_spill] sm:$0xff] }
 0x1a9   :  { %2396 = vmatpush1.bf16.msra.mxu0 %v12126_v19  ;;  %v21200_v19 = vld [vmem:[#allocation36_spill] sm:$0xff]  ;;  %v21215_v14 = vld [vmem:[#allocation70_spill] sm:$0xff] }
 0x1aa   :  { %2654 = vmatprep.subr.bf16.mxu0 %v21105_v28  ;;  %v906_v26 = vrot.slane %v21200_v19, 2  ;;  %v913_v37 = vsel %vm810_vm1, %v911_v30, %v912_v11  ;;  %v915_v0 = vsel %vm810_vm1, %v912_v11, %v914_v44  ;;  %v21210_v19 = vld [vmem:[#allocation49_spill] sm:$0xff]  ;;  %v922_v30 = vrot.slane %v21213_v29, 2 }
 0x1ab   :  { %v13718_v12 = vpack.c.bf16 %v915_v0, %v913_v37  ;;  %v924_v11 = vrot.slane %v21214_v60, 2  ;;  %v21221_v60 = vld [vmem:[#allocation63_spill] sm:$0xff] }
 0x1ac   :  { %2173 = vmatmul.mubr.bf16.gmra.mrb[32].mxu0 %v13585_v42  ;;  %v908_v54 = vsel %vm810_vm1, %v906_v26, %v907_v52  ;;  %v919_v26 = vrot.slane %v21210_v19, 2  ;;  %v21218_v19 = vld [vmem:[#allocation59_spill] sm:$0xff] }
 0x1ad   :  { %2180 = vmatprep.mubr.bf16.mxu0 %v13058_v31  ;;  %v925_v37 = vsel %vm810_vm1, %v922_v30, %v924_v11  ;;  %v932_v11 = vrot.slane %v21221_v60, 2  ;;  %v21227_v60 = vld [vmem:[#allocation85_spill] sm:$0xff] }
 0x1ae   :  { %v920_v8 = vsel %vm810_vm1, %v917_v17, %v919_v26  ;;  %v929_v26 = vrot.slane %v21218_v19, 2 }
 0x1b4   :  { %2181 = vmatmul.mubr.bf16.gmra.mrb[36].mxu0 %v13598_v53 }
 0x1b5   :  { %2188 = vmatprep.mubr.bf16.mxu0 %v13087_v33  ;;  %v21262_v33 = vld [vmem:[#allocation28_spill] sm:$0xff] }
 0x1bc   :  { %2189 = vmatmul.mubr.bf16.gmra.mrb[40].mxu0 %v13607_v2 }
 0x1bd   :  { %2196 = vmatprep.mubr.bf16.mxu0 %v13112_v34  ;;  %v1042_v34 = vrot.slane %v13653_v58, 1 }
 0x1c4   :  { %2197 = vmatmul.mubr.bf16.gmra.mrb[44].mxu0 %v13620_v47 }
 0x1c5   :  { %2204 = vmatprep.mubr.bf16.mxu0 %v13141_v45  ;;  %v12145_v45 = vld [vmem:[%s20585_s1 + $0x218] sm:$0xff]  }
 0x1cc   :  { %2205 = vmatmul.mubr.bf16.gmra.mrb[48].mxu0 %v13629_v22 }
 0x1cd   :  { %2212 = vmatprep.mubr.bf16.mxu0 %v13160_v57  ;;  %v21261_v57 = vld [vmem:[#allocation26_spill] sm:$0xff] }
 0x1d4   :  { %2213 = vmatmul.mubr.bf16.gmra.mrb[52].mxu0 %v13642_v9 }
 0x1d5   :  { %2220 = vmatprep.mubr.bf16.mxu0 %v21188_v35 }
 0x1dc   :  { %2221 = vmatmul.mubr.bf16.gmra.mrb[56].mxu0 %v13655_v59 }
 0x1dd   :  { %2228 = vmatprep.mubr.bf16.mxu0 %v13665_v32  ;;  %v1056_v32 = vrot.slane %v13653_v58, 2  ;;  %v21265_v58 = vld [vmem:[#allocation46_spill] sm:$0xff] }
 0x1e4   :  { %2229 = vmatmul.mubr.bf16.gmra.mrb[60].mxu0 %v13678_v49 }
 0x1e5   :  { %2236 = vmatprep.mubr.bf16.mxu0 %v21193_v21  ;;  %v21203_v21 = vld [vmem:[#allocation55_spill] sm:$0xff] }
 0x1ec   :  { %2237 = vmatmul.mubr.bf16.gmra.mrb[64].mxu0 %v1159_v56  ;;  %v910_v56 = vsel %vm810_vm1, %v907_v52, %v909_v13  ;;  %v918_v52 = vsel %vm810_vm1, %v916_v10, %v917_v17  ;;  %v926_v10 = vrot.slane %v21216_v51, 2  ;;  %v927_v17 = vrot.slane %v21217_v40, 2  ;;  %v21223_v51 = vld [vmem:[#allocation80_spill] sm:$0xff] }
 0x1ed   :  { %2244 = vmatprep.mubr.bf16.mxu0 %v13236_v55  ;;  %v13709_v15 = vpack.c.bf16 %v910_v56, %v908_v54  ;;  %v13727_v13 = vpack.c.bf16 %v920_v8, %v918_v52  ;;  %v21212_v54 = vld [vmem:[#allocation52_spill] sm:$0xff]  ;;  %v21219_v52 = vld [vmem:[#allocation75_spill] sm:$0xff]  ;;  %v431_v55 = vld [vmem:[#allocation2 + $0x190] sm:$0x3] }
 0x1ee   :  { %v921_v56 = vrot.slane %v21212_v54, 2  ;;  %v928_v8 = vsel %vm810_vm1, %v926_v10, %v927_v17  ;;  %v930_v54 = vsel %vm810_vm1, %v927_v17, %v929_v26  ;;  %v21224_v10 = vld [vmem:[#allocation67_spill] sm:$0xff]  ;;  %v21225_v26 = vld [vmem:[#allocation68_spill] sm:$0xff]  ;;  %v1058_v35 = vrot.slane %v431_v55, 2 }
 0x1ef   :  { %v13745_v29 = vpack.c.bf16 %v930_v54, %v928_v8  ;;  %v936_v17 = vrot.slane %v21224_v10, 2  ;;  %v937_v8 = vrot.slane %v21225_v26, 2  ;;  %v21226_v54 = vld [vmem:[#allocation69_spill] sm:$0xff] }
 0x1f0   :  { %v923_v44 = vsel %vm810_vm1, %v921_v56, %v922_v30  ;;  %v21220_v56 = vld [vmem:[#allocation62_spill] sm:$0xff]  ;;  %v21231_v26 = vld [vmem:[#allocation89_spill] sm:$0xff] }
 0x1f1   :  { %v13736_v0 = vpack.c.bf16 %v925_v37, %v923_v44  ;;  %v931_v30 = vrot.slane %v21220_v56, 2  ;;  %v21222_v44 = vld [vmem:[#allocation64_spill] sm:$0xff]  ;;  %v939_v56 = vrot.slane %v21226_v54, 2 }
 0x1f2   :  { %v934_v37 = vrot.slane %v21222_v44, 2  ;;  %v938_v44 = vsel %vm810_vm1, %v936_v17, %v937_v8  ;;  %v21232_v17 = vld [vmem:[#allocation77_spill] sm:$0xff] }
 0x1f3   :  { %v933_v40 = vsel %vm810_vm1, %v931_v30, %v932_v11  ;;  %v21228_v30 = vld [vmem:[#allocation72_spill] sm:$0xff] }
 0x1f4   :  { %2245 = vmatmul.mubr.bf16.gmra.mrb[68].mxu0 %v13691_v36  ;;  %v935_v19 = vsel %vm810_vm1, %v932_v11, %v934_v37  ;;  %v941_v11 = vrot.slane %v21228_v30, 2  ;;  %v21229_v37 = vld [vmem:[#allocation73_spill] sm:$0xff] }
 0x1f5   :  { %2252 = vmatprep.mubr.bf16.mxu0 %v21199_v3  ;;  %v12144_v3 = vld [vmem:[%s20585_s1 + $0x210] sm:$0xff]  }
 0x1fc   :  { %2253 = vmatmul.mubr.bf16.gmra.mrb[72].mxu0 %v13700_v18 }
 0x1fd   :  { %2260 = vmatprep.mubr.bf16.mxu0 %v21203_v21  ;;  %v12142_v21 = vld [vmem:[%s20585_s1 + $0x1f0] sm:$0xff]  }
 0x204   :  { %2261 = vmatmul.mubr.bf16.gmra.mrb[76].mxu0 %v13709_v15 }
 0x205   :  { %2268 = vmatprep.mubr.bf16.mxu0 %v21207_v41  ;;  %v21260_v41 = vld [vmem:[#allocation21_spill] sm:$0xff] }
 0x20c   :  { %2269 = vmatmul.mubr.bf16.gmra.mrb[80].mxu0 %v13718_v12 }
 0x20d   :  { %2276 = vmatprep.mubr.bf16.mxu0 %v21211_v48 }
 0x214   :  { %2277 = vmatmul.mubr.bf16.gmra.mrb[84].mxu0 %v13727_v13 }
 0x215   :  { %2284 = vmatprep.mubr.bf16.mxu0 %v21215_v14 }
 0x21c   :  { %2285 = vmatmul.mubr.bf16.gmra.mrb[88].mxu0 %v13736_v0 }
 0x21d   :  { %2292 = vmatprep.mubr.bf16.mxu0 %v21219_v52  ;;  %v13754_v52 = vpack.c.bf16 %v935_v19, %v933_v40  ;;  %v942_v40 = vrot.slane %v21229_v37, 2  ;;  %v21230_v19 = vld [vmem:[#allocation74_spill] sm:$0xff] }
 0x21e   :  { %v944_v10 = vrot.slane %v21230_v19, 2 }
 0x21f   :  { %v943_v54 = vsel %vm810_vm1, %v941_v11, %v942_v40  ;;  %v21235_v11 = vld [vmem:[#allocation82_spill] sm:$0xff] }
 0x224   :  { %2293 = vmatmul.mubr.bf16.gmra.mrb[92].mxu0 %v13745_v29 }
 0x225   :  { %2300 = vmatprep.mubr.bf16.mxu0 %v21223_v51  ;;  %v940_v51 = vsel %vm810_vm1, %v937_v8, %v939_v56  ;;  %v946_v8 = vrot.slane %v21232_v17, 2 }
 0x226   :  { %v13763_v14 = vpack.c.bf16 %v940_v51, %v938_v44  ;;  %v21233_v51 = vld [vmem:[#allocation78_spill] sm:$0xff]  ;;  %v21234_v44 = vld [vmem:[#allocation79_spill] sm:$0xff] }
 0x227   :  { %v947_v56 = vrot.slane %v21233_v51, 2  ;;  %v949_v30 = vrot.slane %v21234_v44, 2 }
 0x229   :  { %v948_v37 = vsel %vm810_vm1, %v946_v8, %v947_v56  ;;  %v950_v19 = vsel %vm810_vm1, %v947_v56, %v949_v30  ;;  %v956_v8 = vrot.slane %v13402_v39, 2  ;;  %v21238_v56 = vld [vmem:[#allocation87_spill] sm:$0xff] }
 0x22a   :  { %v957_v30 = vrot.slane %v21238_v56, 2 }
 0x22c   :  { %2301 = vmatmul.mubr.bf16.gmra.mrb[96].mxu0 %v13754_v52 }
 0x22d   :  { %2308 = vmatprep.mubr.bf16.mxu0 %v21227_v60  ;;  %v945_v60 = vsel %vm810_vm1, %v942_v40, %v944_v10  ;;  %v951_v40 = vrot.slane %v21235_v11, 2  ;;  %v958_v11 = vsel %vm810_vm1, %v956_v8, %v957_v30  ;;  %v13810_v8 = vld [vmem:[#allocation2 + $0x338] sm:$0xff] }
 0x22e   :  { %v13772_v48 = vpack.c.bf16 %v945_v60, %v943_v54  ;;  %v21236_v60 = vld [vmem:[#allocation83_spill] sm:$0xff]  ;;  %v21237_v54 = vld [vmem:[#allocation84_spill] sm:$0xff] }
 0x22f   :  { %v952_v10 = vrot.slane %v21236_v60, 2  ;;  %v954_v17 = vrot.slane %v21237_v54, 2 }
 0x231   :  { %v953_v51 = vsel %vm810_vm1, %v951_v40, %v952_v10  ;;  %v955_v44 = vsel %vm810_vm1, %v952_v10, %v954_v17  ;;  %v21240_v40 = vld [vmem:[#allocation91_spill] sm:$0xff]  ;;  %v21241_v17 = vld [vmem:[#allocation92_spill] sm:$0xff] }
 0x232   :  { %v961_v10 = vrot.slane %v21240_v40, 2  ;;  %v21245_v40 = vld [vmem:[#allocation97_spill] sm:$0xff] }
 0x234   :  { %2309 = vmatmul.mubr.bf16.gmra.mrb[100].mxu0 %v13763_v14 }
 0x235   :  { %2316 = vmatprep.mubr.bf16.mxu0 %v21231_v26  ;;  %v13781_v26 = vpack.c.bf16 %v950_v19, %v948_v37  ;;  %v21239_v37 = vld [vmem:[#allocation88_spill] sm:$0xff] }
 0x236   :  { %v959_v19 = vrot.slane %v21239_v37, 2 }
 0x238   :  { %v960_v60 = vsel %vm810_vm1, %v957_v30, %v959_v19 }
 0x239   :  { %v13799_v54 = vpack.c.bf16 %v960_v60, %v958_v11  ;;  %v21244_v11 = vld [vmem:[#allocation96_spill] sm:$0xff] }
 0x23a   :  { %v966_v60 = vrot.slane %v21244_v11, 2  ;;  %v21248_v11 = vld [vmem:[#allocation45_spill] sm:$0xff] }
 0x23c   :  { %2317 = vmatmul.mubr.bf16.gmra.mrb[104].mxu0 %v13772_v48 }
 0x23d   :  { %2324 = vmatprep.mubr.bf16.mxu0 %v13429_v63  ;;  %v13790_v63 = vpack.c.bf16 %v955_v44, %v953_v51  ;;  %v962_v51 = vrot.slane %v21241_v17, 2  ;;  %v21242_v44 = vld [vmem:[#allocation93_spill] sm:$0xff]  ;;  %v967_v17 = vrot.slane %v21245_v40, 2  ;;  %v12130_v40 = vld [vmem:[%s20585_s1 + $0x198] sm:$0xff]  }
 0x23e   :  { %v964_v39 = vrot.slane %v21242_v44, 2  ;;  %v21246_v44 = vld [vmem:[#allocation98_spill] sm:$0xff] }
 0x23f   :  { %v963_v56 = vsel %vm810_vm1, %v961_v10, %v962_v51  ;;  %v968_v10 = vsel %vm810_vm1, %v966_v60, %v967_v17  ;;  %v12128_v60 = vld [vmem:[%s20585_s1 + $0x188] sm:$0xff]  }
 0x240   :  { %v965_v37 = vsel %vm810_vm1, %v962_v51, %v964_v39 }
 0x241   :  { %v13812_v30 = vpack.c.bf16 %v965_v37, %v963_v56  ;;  %v12127_v56 = vld [vmem:[%s20585_s1 + $0x180] sm:$0xff]  }
 0x242   :  { %v21247_v37 = vld [vmem:[#allocation4_spill] sm:$0xff] }
 0x244   :  { %2325 = vmatmul.mubr.bf16.gmra.mrb[108].mxu0 %v13781_v26 }
 0x245   :  { %2332 = vmatprep.mubr.bf16.mxu0 %v13448_v7  ;;  %v21259_v7 = vld [vmem:[#allocation18_spill] sm:$0xff] }
 0x24c   :  { %2333 = vmatmul.mubr.bf16.gmra.mrb[112].mxu0 %v13790_v63 }
 0x24d   :  { %2340 = vmatprep.mubr.bf16.mxu0 %v13461_v46  ;;  %v13808_v46 = vld [vmem:[#allocation2 + $0x330] sm:$0xff] }
 0x24e   :  { %v13816_v19 = vpack.c.bf16 %v13810_v8, %v13808_v46 }
 0x250   :  { %21243 = vst [vmem:[#allocation22_spill] sm:$0xff] %v13816_v19 }
 0x254   :  { %2341 = vmatmul.mubr.bf16.gmra.mrb[116].mxu0 %v13799_v54 }
 0x255   :  { %2348 = vmatprep.mubr.bf16.mxu0 %v13475_v27  ;;  %v969_v27 = vrot.slane %v21246_v44, 2  ;;  %v21250_v44 = vld [vmem:[#allocation7_spill] sm:$0xff] }
 0x257   :  { %v970_v51 = vsel %vm810_vm1, %v967_v17, %v969_v27  ;;  %v12129_v27 = vld [vmem:[%s20585_s1 + $0x190] sm:$0xff]   ;;  %v12131_v17 = vld [vmem:[%s20585_s1 + $0x1a0] sm:$0xff]  }
 0x258   :  { %v13825_v39 = vpack.c.bf16 %v970_v51, %v968_v10  ;;  %v12132_v10 = vld [vmem:[%s20585_s1 + $0x1a8] sm:$0xff]   ;;  %v12133_v51 = vld [vmem:[%s20585_s1 + $0x1b0] sm:$0xff]  }
 0x25c   :  { %2349 = vmatmul.mubr.bf16.gmra.mrb[120].mxu0 %v13812_v30 }
 0x25d   :  { %2356 = vmatprep.mubr.bf16.mxu0 %v13816_v19  ;;  %v12140_v19 = vld [vmem:[%s20585_s1 + $0x1e8] sm:$0xff]  }
 0x264   :  { %2357 = vmatmul.mubr.bf16.gmra.mrb[124].mxu0 %v13825_v39 }
 0x265   :  { %2397 = vmatprep.mubr.bf16.mxu0 %v13494_v62  ;;  %v21249_v62 = vld [vmem:[#allocation5_spill] sm:$0xff] }
 0x26c   :  { %2398 = vmatmul.mubr.bf16.vlgmr.msra.gmra.mrb[0].mxu0 %v21247_v37  ;;  %v12134_v37 = vld [vmem:[%s20585_s1 + $0x1b8] sm:$0xff]  }
 0x26d   :  { %2655 = vmatpush1.bf16.msra.mxu0 %v12127_v56  ;;  %2405 = vmatprep.mubr.bf16.mxu0 %v21248_v11  ;;  %v21251_v56 = vld [vmem:[#allocation9_spill] sm:$0xff]  ;;  %v12135_v11 = vld [vmem:[%s20585_s1 + $0x1c0] sm:$0xff]  }
 0x26e   :  { %2656 = vmatprep.subr.bf16.mxu0 %v21105_v28 }
 0x271   :  { %2657 = vmatpush1.bf16.msra.mxu0 %v12128_v60  ;;  %v21252_v60 = vld [vmem:[#allocation10_spill] sm:$0xff] }
 0x272   :  { %2658 = vmatprep.subr.bf16.mxu0 %v21105_v28 }
 0x274   :  { %2406 = vmatmul.mubr.bf16.gmra.mrb[4].mxu0 %v21249_v62 }
 0x275   :  { %2413 = vmatprep.mubr.bf16.mxu0 %v13518_v6  ;;  %2659 = vmatpush1.bf16.msra.mxu0 %v12129_v27  ;;  %v12136_v27 = vld [vmem:[%s20585_s1 + $0x1c8] sm:$0xff]  }
 0x276   :  { %2660 = vmatprep.subr.bf16.mxu0 %v21105_v28 }
 0x279   :  { %2661 = vmatpush1.bf16.msra.mxu0 %v12130_v40  ;;  %v12137_v40 = vld [vmem:[%s20585_s1 + $0x1d0] sm:$0xff]  }
 0x27a   :  { %2662 = vmatprep.subr.bf16.mxu0 %v21105_v28 }
 0x27c   :  { %2414 = vmatmul.mubr.bf16.gmra.mrb[8].mxu0 %v21250_v44 }
 0x27d   :  { %2421 = vmatprep.mubr.bf16.mxu0 %v13532_v16  ;;  %2663 = vmatpush1.bf16.msra.mxu0 %v12131_v17  ;;  %v21253_v17 = vld [vmem:[#allocation11_spill] sm:$0xff] }
 0x27e   :  { %2664 = vmatprep.subr.bf16.mxu0 %v21105_v28 }
 0x281   :  { %2665 = vmatpush1.bf16.msra.mxu0 %v12132_v10  ;;  %v21254_v10 = vld [vmem:[#allocation12_spill] sm:$0xff] }
 0x282   :  { %2666 = vmatprep.subr.bf16.mxu0 %v21105_v28 }
 0x284   :  { %2422 = vmatmul.mubr.bf16.gmra.mrb[12].mxu0 %v21251_v56 }
 0x285   :  { %2429 = vmatprep.mubr.bf16.mxu0 %v13549_v43  ;;  %2667 = vmatpush1.bf16.msra.mxu0 %v12133_v51  ;;  %v12138_v51 = vld [vmem:[%s20585_s1 + $0x1d8] sm:$0xff]  }
 0x286   :  { %2668 = vmatprep.subr.bf16.mxu0 %v21105_v28 }
 0x289   :  { %2669 = vmatpush1.bf16.msra.mxu0 %v12134_v37  ;;  %v21255_v37 = vld [vmem:[#allocation13_spill] sm:$0xff] }
 0x28a   :  { %2670 = vmatprep.subr.bf16.mxu0 %v21105_v28 }
 0x28c   :  { %2430 = vmatmul.mubr.bf16.gmra.mrb[16].mxu0 %v21252_v60 }
 0x28d   :  { %2437 = vmatprep.mubr.bf16.mxu0 %v13563_v1  ;;  %2671 = vmatpush1.bf16.msra.mxu0 %v12135_v11  ;;  %v21256_v11 = vld [vmem:[#allocation14_spill] sm:$0xff] }
 0x28e   :  { %2672 = vmatprep.subr.bf16.mxu0 %v21105_v28 }
 0x291   :  { %2673 = vmatpush1.bf16.msra.mxu0 %v12136_v27  ;;  %v12139_v27 = vld [vmem:[%s20585_s1 + $0x1e0] sm:$0xff]  }
 0x292   :  { %2674 = vmatprep.subr.bf16.mxu0 %v21105_v28 }
 0x294   :  { %2438 = vmatmul.mubr.bf16.gmra.mrb[20].mxu0 %v21253_v17 }
 0x295   :  { %2445 = vmatprep.mubr.bf16.mxu0 %v13576_v20  ;;  %2675 = vmatpush1.bf16.msra.mxu0 %v12137_v40  ;;  %v21257_v40 = vld [vmem:[#allocation15_spill] sm:$0xff] }
 0x296   :  { %2676 = vmatprep.subr.bf16.mxu0 %v21105_v28 }
 0x299   :  { %2677 = vmatpush1.bf16.msra.mxu0 %v12138_v51  ;;  %v21258_v51 = vld [vmem:[#allocation16_spill] sm:$0xff] }
 0x29a   :  { %2678 = vmatprep.subr.bf16.mxu0 %v21105_v28 }
 0x29c   :  { %2446 = vmatmul.mubr.bf16.gmra.mrb[24].mxu0 %v21254_v10 }
 0x29d   :  { %2453 = vmatprep.mubr.bf16.mxu0 %v13585_v42  ;;  %2679 = vmatpush1.bf16.msra.mxu0 %v12139_v27  ;;  %v12141_v27 = vld [vmem:[%s20585_s1 + $0x200] sm:$0xff]  }
 0x29e   :  { %2680 = vmatprep.subr.bf16.mxu0 %v21105_v28  ;;  %10717 = vmatprep.subr.bf16.mxu1 %v12141_v27 }
 0x29f   :  { %10718 = vmatpush3.bf16.msra.mxu1 %v12141_v27  ;;  %v1055_v27 = vrot.slane %v13651_v5, 2 }
 0x2a1   :  { %2681 = vmatpush1.bf16.msra.mxu0 %v12140_v19  ;;  %v12143_v19 = vld [vmem:[%s20585_s1 + $0x208] sm:$0xff]  }
 0x2a2   :  { %2682 = vmatprep.subr.bf16.mxu0 %v21105_v28  ;;  %10719 = vmatprep.subr.bf16.mxu1 %v12143_v19 }
 0x2a3   :  { %10720 = vmatpush3.bf16.msra.mxu1 %v12143_v19  ;;  %v1057_v19 = vsel %vm810_vm1, %v1055_v27, %v1056_v32 }
 0x2a4   :  { %2454 = vmatmul.mubr.bf16.gmra.mrb[28].mxu0 %v21255_v37  ;;  %10721 = vmatprep.subr.bf16.mxu1 %v12144_v3 }
 0x2a5   :  { %2461 = vmatprep.mubr.bf16.mxu0 %v13598_v53  ;;  %2683 = vmatpush1.bf16.msra.mxu0 %v12142_v21  ;;  %v12146_v21 = vld [vmem:[%s20585_s1 + $0x220] sm:$0xff]  }
 0x2a6   :  { %2684 = vmatprep.subr.bf16.mxu0 %v21105_v28 }
 0x2a7   :  { %10722 = vmatpush3.bf16.msra.mxu1 %v12144_v3 }
 0x2a8   :  { %10723 = vmatprep.subr.bf16.mxu1 %v12145_v45 }
 0x2ab   :  { %10724 = vmatpush3.bf16.msra.mxu1 %v12145_v45 }
 0x2ac   :  { %2462 = vmatmul.mubr.bf16.gmra.mrb[32].mxu0 %v21256_v11  ;;  %10725 = vmatprep.subr.bf16.mxu1 %v12146_v21 }
 0x2ad   :  { %2469 = vmatprep.mubr.bf16.mxu0 %v13607_v2 }
 0x2af   :  { %10726 = vmatpush3.bf16.msra.mxu1 %v12146_v21 }
 0x2b4   :  { %2470 = vmatmul.mubr.bf16.gmra.mrb[36].mxu0 %v21257_v40 }
 0x2b5   :  { %2477 = vmatprep.mubr.bf16.mxu0 %v13620_v47 }
 0x2bc   :  { %2478 = vmatmul.mubr.bf16.gmra.mrb[40].mxu0 %v21258_v51  ;;  %v12147_v51 = vld [vmem:[%s20585_s1 + $0x1f8] sm:$0xff]  }
 0x2bd   :  { %2485 = vmatprep.mubr.bf16.mxu0 %v13629_v22  ;;  %2685 = vmatpush1.bf16.msra.mxu0 %v12147_v51  ;;  %v14002_v51 = vld [vmem:[#allocation2 + $0x1a8] sm:$0x3] }
 0x2be   :  { %5119 = vmatprep.subr.bf16.mxu0 %v21105_v28 }
 0x2c4   :  { %2486 = vmatmul.mubr.bf16.gmra.mrb[44].mxu0 %v21259_v7  ;;  %v1044_v7 = vrot.slane %v431_v55, 1  ;;  %v12149_v55 = vld [vmem:[%s20585_s1 + $0x230] sm:$0xff]  }
 0x2c5   :  { %2493 = vmatprep.mubr.bf16.mxu0 %v13642_v9 }
 0x2cc   :  { %2494 = vmatmul.mubr.bf16.gmra.mrb[48].mxu0 %v21260_v41  ;;  %v1059_v41 = vsel %vm810_vm1, %v1056_v32, %v1058_v35  ;;  %v12148_v35 = vld [vmem:[%s20585_s1 + $0x228] sm:$0xff]   ;;  %v1045_v32 = vsel %vm585_vm0, %v1042_v34, %v1044_v7  ;;  %v21264_v7 = vld [vmem:[#allocation40_spill] sm:$0xff] }
 0x2cd   :  { %2501 = vmatprep.mubr.bf16.mxu0 %v13655_v59  ;;  %v1153_v3 = vpack.c.bf16 %v1059_v41, %v1057_v19  ;;  %10727 = vmatprep.subr.bf16.mxu1 %v12148_v35  ;;  %v21276_v41 = vld [vmem:[#allocation100_spill] sm:$0xff]  ;;  %v1092_v19 = vrot.slane %v14002_v51, 2 }
 0x2ce   :  { %10728 = vmatpush3.bf16.msra.mxu1 %v12148_v35 }
 0x2cf   :  { %10729 = vmatprep.subr.bf16.mxu1 %v12149_v55  ;;  %v1093_v35 = vsel %vm810_vm1, %v13477_v24, %v1092_v19 }
 0x2d2   :  { %10730 = vmatpush3.bf16.msra.mxu1 %v12149_v55 }
 0x2d4   :  { %2502 = vmatmul.mubr.bf16.gmra.mrb[52].mxu0 %v21261_v57  ;;  %v1041_v57 = vrot.slane %v13651_v5, 1 }
 0x2d5   :  { %2509 = vmatprep.mubr.bf16.mxu0 %v13678_v49 }
 0x2d6   :  { %v1043_v45 = vsel %vm585_vm0, %v1041_v57, %v1042_v34  ;;  %v12150_v57 = vld [vmem:[%s20585_s1 + $0x238] sm:$0xff]  }
 0x2d7   :  { %v13951_v5 = vpack.c.bf16 %v1045_v32, %v1043_v45  ;;  %10731 = vmatprep.subr.bf16.mxu1 %v12150_v57  ;;  %v21263_v34 = vld [vmem:[#allocation35_spill] sm:$0xff]  ;;  %v1047_v32 = vrot.slane %v13810_v8, 1 }
 0x2d8   :  { %10732 = vmatpush3.bf16.msra.mxu1 %v12150_v57  ;;  %v1156_v57 = vpack.c.bf16 %v1093_v35, %v13477_v24  ;;  %v21278_v24 = vld [vmem:[#allocation6_spill] sm:$0xff]  ;;  %v21292_v35 = vld [vmem:[#allocation55_spill] sm:$0xff] }
 0x2d9   :  { %10957 = vmatprep.subr.bf16.mxu1 %v21105_v28 }
 0x2db   :  { %10734 = vmatmul.mubr.bf16.vlgmr.msra.gmra.mrb[0].mxu1 %v13518_v6  ;;  %v21266_v6 = vld [vmem:[#allocation51_spill] sm:$0xff] }
 0x2dc   :  { %2510 = vmatmul.mubr.bf16.gmra.mrb[56].mxu0 %v21262_v33  ;;  %10737 = vmatprep.mubr.bf16.mxu1 %v13532_v16  ;;  %v21267_v16 = vld [vmem:[#allocation56_spill] sm:$0xff] }
 0x2dd   :  { %2517 = vmatprep.mubr.bf16.mxu0 %v1153_v3 }
 0x2e3   :  { %10738 = vmatmul.mubr.bf16.gmra.mrb[4].mxu1 %v13549_v43  ;;  %v21268_v43 = vld [vmem:[#allocation61_spill] sm:$0xff] }
 0x2e4   :  { %2518 = vmatmul.mubr.bf16.gmra.mrb[60].mxu0 %v13951_v5  ;;  %10741 = vmatprep.mubr.bf16.mxu1 %v13563_v1  ;;  %v21269_v1 = vld [vmem:[#allocation66_spill] sm:$0xff] }
 0x2e5   :  { %2525 = vmatprep.mubr.bf16.mxu0 %v13691_v36 }
 0x2eb   :  { %10742 = vmatmul.mubr.bf16.gmra.mrb[8].mxu1 %v13576_v20  ;;  %v21270_v20 = vld [vmem:[#allocation71_spill] sm:$0xff] }
 0x2ec   :  { %2526 = vmatmul.mubr.bf16.gmra.mrb[64].mxu0 %v21263_v34  ;;  %10745 = vmatprep.mubr.bf16.mxu1 %v13585_v42  ;;  %v21271_v42 = vld [vmem:[#allocation76_spill] sm:$0xff]  ;;  %v21277_v34 = vld [vmem:[#allocation102_spill] sm:$0xff] }
 0x2ed   :  { %2533 = vmatprep.mubr.bf16.mxu0 %v13700_v18 }
 0x2f3   :  { %10746 = vmatmul.mubr.bf16.gmra.mrb[12].mxu1 %v13598_v53  ;;  %v21272_v53 = vld [vmem:[#allocation81_spill] sm:$0xff] }
 0x2f4   :  { %2534 = vmatmul.mubr.bf16.gmra.mrb[68].mxu0 %v21264_v7  ;;  %10749 = vmatprep.mubr.bf16.mxu1 %v13607_v2  ;;  %v21273_v2 = vld [vmem:[#allocation86_spill] sm:$0xff] }
 0x2f5   :  { %2541 = vmatprep.mubr.bf16.mxu0 %v13709_v15 }
 0x2fb   :  { %10750 = vmatmul.mubr.bf16.gmra.mrb[16].mxu1 %v13620_v47  ;;  %v21274_v47 = vld [vmem:[#allocation90_spill] sm:$0xff] }
 0x2fc   :  { %2542 = vmatmul.mubr.bf16.gmra.mrb[72].mxu0 %v21265_v58  ;;  %10753 = vmatprep.mubr.bf16.mxu1 %v13629_v22  ;;  %v21275_v22 = vld [vmem:[#allocation95_spill] sm:$0xff] }
 0x2fd   :  { %2549 = vmatprep.mubr.bf16.mxu0 %v13718_v12 }
 0x303   :  { %10754 = vmatmul.mubr.bf16.gmra.mrb[20].mxu1 %v13642_v9  ;;  %v485_v9 = vld [vmem:[#allocation2 + $0x340] sm:$0x3] }
 0x304   :  { %2550 = vmatmul.mubr.bf16.gmra.mrb[76].mxu0 %v21266_v6  ;;  %10757 = vmatprep.mubr.bf16.mxu1 %v13655_v59  ;;  %v1060_v59 = vrot.slane %v13808_v46, 2  ;;  %v1063_v36 = vrot.slane %v485_v9, 2  ;;  %v1049_v55 = vrot.slane %v485_v9, 1 }
 0x305   :  { %2557 = vmatprep.mubr.bf16.mxu0 %v13727_v13 }
 0x30b   :  { %10758 = vmatmul.mubr.bf16.gmra.mrb[24].mxu1 %v13678_v49  ;;  %v1061_v49 = vrot.slane %v13810_v8, 2  ;;  %v1078_v8 = vrot.slane %v14002_v51, 1 }
 0x30c   :  { %2558 = vmatmul.mubr.bf16.gmra.mrb[80].mxu0 %v21267_v16  ;;  %10761 = vmatprep.mubr.bf16.mxu1 %v1153_v3  ;;  %v1046_v3 = vrot.slane %v13808_v46, 1 }
 0x30d   :  { %2565 = vmatprep.mubr.bf16.mxu0 %v13736_v0  ;;  %v1062_v27 = vsel %vm810_vm1, %v1060_v59, %v1061_v49  ;;  %v1064_v21 = vsel %vm810_vm1, %v1061_v49, %v1063_v36  ;;  %v1050_v49 = vsel %vm585_vm0, %v1047_v32, %v1049_v55  ;;  %v21290_v36 = vld [vmem:[#allocation44_spill] sm:$0xff] }
 0x30e   :  { %v1207_v45 = vpack.c.bf16 %v1064_v21, %v1062_v27  ;;  %v1048_v59 = vsel %vm585_vm0, %v1046_v3, %v1047_v32  ;;  %v21291_v3 = vld [vmem:[#allocation50_spill] sm:$0xff]  ;;  %v21293_v55 = vld [vmem:[#allocation60_spill] sm:$0xff] }
 0x30f   :  { %v14016_v46 = vpack.c.bf16 %v1050_v49, %v1048_v59 }
 0x313   :  { %10762 = vmatmul.mubr.bf16.gmra.mrb[28].mxu1 %v1156_v57  ;;  %v21294_v57 = vld [vmem:[#allocation65_spill] sm:$0xff] }
 0x314   :  { %2566 = vmatmul.mubr.bf16.gmra.mrb[84].mxu0 %v21268_v43  ;;  %10765 = vmatprep.mubr.bf16.mxu1 %v13700_v18  ;;  %v21279_v18 = vld [vmem:[#allocation8_spill] sm:$0xff] }
 0x315   :  { %2573 = vmatprep.mubr.bf16.mxu0 %v13745_v29 }
 0x31b   :  { %10766 = vmatmul.mubr.bf16.gmra.mrb[32].mxu1 %v13709_v15 }
 0x31c   :  { %2574 = vmatmul.mubr.bf16.gmra.mrb[88].mxu0 %v21269_v1  ;;  %10769 = vmatprep.mubr.bf16.mxu1 %v13718_v12 }
 0x31d   :  { %2581 = vmatprep.mubr.bf16.mxu0 %v13754_v52 }
 0x323   :  { %10770 = vmatmul.mubr.bf16.gmra.mrb[36].mxu1 %v13727_v13  ;;  %v21287_v13 = vld [vmem:[#allocation27_spill] sm:$0xff] }
 0x324   :  { %2582 = vmatmul.mubr.bf16.gmra.mrb[92].mxu0 %v21270_v20  ;;  %10773 = vmatprep.mubr.bf16.mxu1 %v13736_v0 }
 0x325   :  { %2589 = vmatprep.mubr.bf16.mxu0 %v13763_v14 }
 0x32b   :  { %10774 = vmatmul.mubr.bf16.gmra.mrb[40].mxu1 %v13745_v29 }
 0x32c   :  { %2590 = vmatmul.mubr.bf16.gmra.mrb[96].mxu0 %v21271_v42  ;;  %10777 = vmatprep.mubr.bf16.mxu1 %v13754_v52 }
 0x32d   :  { %2597 = vmatprep.mubr.bf16.mxu0 %v13772_v48 }
 0x333   :  { %10778 = vmatmul.mubr.bf16.gmra.mrb[44].mxu1 %v13763_v14 }
 0x334   :  { %2598 = vmatmul.mubr.bf16.gmra.mrb[100].mxu0 %v21272_v53  ;;  %10781 = vmatprep.mubr.bf16.mxu1 %v13772_v48  ;;  %v21285_v48 = vld [vmem:[#allocation25_spill] sm:$0xff] }
 0x335   :  { %2605 = vmatprep.mubr.bf16.mxu0 %v13781_v26 }
 0x33b   :  { %10782 = vmatmul.mubr.bf16.gmra.mrb[48].mxu1 %v13781_v26  ;;  %v12313_v26 = vld [vmem:[#allocation2] sm:$0xff] }
 0x33c   :  { %2606 = vmatmul.mubr.bf16.gmra.mrb[104].mxu0 %v21273_v2  ;;  %10785 = vmatprep.mubr.bf16.mxu1 %v13790_v63 }
 0x33d   :  { %2613 = vmatprep.mubr.bf16.mxu0 %v13790_v63  ;;  %v21284_v63 = vld [vmem:[#allocation21_spill] sm:$0xff] }
 0x343   :  { %10786 = vmatmul.mubr.bf16.gmra.mrb[52].mxu1 %v13799_v54 }
 0x344   :  { %2614 = vmatmul.mubr.bf16.gmra.mrb[108].mxu0 %v21274_v47  ;;  %10789 = vmatprep.mubr.bf16.mxu1 %v13812_v30 }
 0x345   :  { %2621 = vmatprep.mubr.bf16.mxu0 %v13799_v54  ;;  %v14075_v54 = vrot.slane %v12313_v26, 1 }
 0x34b   :  { %10790 = vmatmul.mubr.bf16.gmra.mrb[56].mxu1 %v13825_v39 }
 0x34c   :  { %2622 = vmatmul.mubr.bf16.gmra.mrb[112].mxu0 %v21275_v22  ;;  %10793 = vmatprep.mubr.bf16.mxu1 %v1207_v45 }
 0x34d   :  { %2629 = vmatprep.mubr.bf16.mxu0 %v13812_v30  ;;  %v21288_v30 = vld [vmem:[#allocation32_spill] sm:$0xff] }
 0x354   :  { %2630 = vmatmul.mubr.bf16.gmra.mrb[116].mxu0 %v21276_v41 }
 0x355   :  { %2637 = vmatprep.mubr.bf16.mxu0 %v13825_v39  ;;  %v14080_v39 = vld [vmem:[#allocation2 + $0x358] sm:$0x3] }
 0x35c   :  { %2638 = vmatmul.mubr.bf16.gmra.mrb[120].mxu0 %v21277_v34 }
 0x35d   :  { %2645 = vmatprep.mubr.bf16.mxu0 %v1207_v45 }
 0x364   :  { %2646 = vmatmul.mubr.bf16.gmra.mrb[124].mxu0 %v14016_v46 }
 0x365   :  { %2686 = vmatprep.mubr.bf16.mxu0 %v21249_v62  ;;  %v1094_v62 = vrot.slane %v12313_v26, 2 }
 0x36c   :  { %2687 = vmatmul.mubr.bf16.vlgmr.msra.gmra.mrb[0].mxu0 %v21278_v24  ;;  %v12151_v24 = vld [vmem:[%s20587_s4] sm:$0xff]  }
 0x36d   :  { %2694 = vmatprep.mubr.bf16.mxu0 %v21250_v44  ;;  %v1097_v44 = vrot.slane %v14080_v39, 2  ;;  %5120 = vmatpush1.bf16.msra.mxu0 %v12151_v24  ;;  %v21306_v24 = vld [vmem:[#allocation101_spill] sm:$0xff] }
 0x36e   :  { %5121 = vmatprep.subr.bf16.mxu0 %v21105_v28 }
 0x374   :  { %2695 = vmatmul.mubr.bf16.gmra.mrb[4].mxu0 %v21279_v18  ;;  %v21295_v18 = vld [vmem:[#allocation70_spill] sm:$0xff] }
 0x375   :  { %2702 = vmatprep.mubr.bf16.mxu0 %v21251_v56  ;;  %v1098_v56 = vsel %vm810_vm1, %v1094_v62, %v1097_v44 }
 0x37c   :  { %2703 = vmatmul.mubr.bf16.gmra.mrb[8].mxu0 %v12887_v4  ;;  %v21280_v4 = vld [vmem:[#allocation16_spill] sm:$0xff] }
 0x37d   :  { %2710 = vmatprep.mubr.bf16.mxu0 %v21252_v60 }
 0x384   :  { %2711 = vmatmul.mubr.bf16.gmra.mrb[12].mxu0 %v12920_v23  ;;  %v21281_v23 = vld [vmem:[#allocation17_spill] sm:$0xff] }
 0x385   :  { %2718 = vmatprep.mubr.bf16.mxu0 %v21253_v17  ;;  %v1210_v17 = vpack.c.bf16 %v1098_v56, %v1094_v62 }
 0x387   :  { %10794 = vmatmul.mubr.bf16.gmra.mrb[60].mxu1 %v1210_v17 }
 0x38c   :  { %2719 = vmatmul.mubr.bf16.gmra.mrb[16].mxu0 %v12950_v38  ;;  %v21282_v38 = vld [vmem:[#allocation18_spill] sm:$0xff] }
 0x38d   :  { %2726 = vmatprep.mubr.bf16.mxu0 %v21254_v10  ;;  %v21289_v10 = vld [vmem:[#allocation19_spill] sm:$0xff] }
 0x394   :  { %2727 = vmatmul.mubr.bf16.gmra.mrb[20].mxu0 %v12979_v61  ;;  %v21283_v61 = vld [vmem:[#allocation20_spill] sm:$0xff] }
 0x395   :  { %2734 = vmatprep.mubr.bf16.mxu0 %v21255_v37 }
 0x39c   :  { %2735 = vmatmul.mubr.bf16.gmra.mrb[24].mxu0 %v13004_v25 }
 0x39d   :  { %2742 = vmatprep.mubr.bf16.mxu0 %v21256_v11 }
 0x3a4   :  { %2743 = vmatmul.mubr.bf16.gmra.mrb[28].mxu0 %v13033_v50 }
 0x3a5   :  { %2750 = vmatprep.mubr.bf16.mxu0 %v21257_v40  ;;  %v14092_v40 = vpack.c.bf16 %v12313_v26, %v12313_v26  ;;  %v12153_v26 = vld [vmem:[%s20587_s4 + $0x10] sm:$0xff]  }
 0x3ac   :  { %2751 = vmatmul.mubr.bf16.gmra.mrb[32].mxu0 %v13058_v31  ;;  %v21286_v31 = vld [vmem:[#allocation26_spill] sm:$0xff] }
 0x3ad   :  { %2758 = vmatprep.mubr.bf16.mxu0 %v21280_v4 }
 0x3ae   :  { %v14055_v15 = vpop.f32.mrb[0].mxu1 }
 0x3af   :  { %v14057_v25 = vpop.f32.mrb[1].mxu1 }
 0x3b0   :  { %v14059_v12 = vpop.f32.mrb[2].mxu1 }
 0x3b1   :  { %v14061_v50 = vpop.f32.mrb[3].mxu1 }
 0x3b4   :  { %2759 = vmatmul.mubr.bf16.gmra.mrb[36].mxu0 %v21281_v23 }
 0x3b5   :  { %2766 = vmatprep.mubr.bf16.mxu0 %v21282_v38 }
 0x3b6   :  { %v14067_v14 = vpop.f32.mrb[4].mxu1 }
 0x3b7   :  { %v14069_v0 = vpop.f32.mrb[5].mxu1 }
 0x3b8   :  { %v14071_v52 = vpop.f32.mrb[6].mxu1 }
 0x3b9   :  { %v14073_v29 = vpop.f32.mrb[7].mxu1 }
 0x3bc   :  { %2767 = vmatmul.mubr.bf16.gmra.mrb[40].mxu0 %v21283_v61  ;;  %v12152_v61 = vld [vmem:[%s20587_s4 + $0x8] sm:$0xff]  }
 0x3bd   :  { %2774 = vmatprep.mubr.bf16.mxu0 %v21284_v63  ;;  %5122 = vmatpush1.bf16.msra.mxu0 %v12152_v61 }
 0x3be   :  { %v14088_v37 = vpop.f32.mrb[8].mxu1  ;;  %5123 = vmatprep.subr.bf16.mxu0 %v21105_v28 }
 0x3bf   :  { %v14090_v11 = vpop.f32.mrb[9].mxu1 }
 0x3c1   :  { %5124 = vmatpush1.bf16.msra.mxu0 %v12153_v26 }
 0x3c2   :  { %5125 = vmatprep.subr.bf16.mxu0 %v21105_v28 }
 0x3c4   :  { %2775 = vmatmul.mubr.bf16.gmra.mrb[44].mxu0 %v21285_v48 }
 0x3c5   :  { %2782 = vmatprep.mubr.bf16.mxu0 %v21286_v31 }
 0x3cc   :  { %2783 = vmatmul.mubr.bf16.gmra.mrb[48].mxu0 %v21287_v13 }
 0x3cd   :  { %2790 = vmatprep.mubr.bf16.mxu0 %v21262_v33  ;;  %v1079_v33 = vsel %vm585_vm0, %v14075_v54, %v1078_v8 }
 0x3ce   :  { %v1155_v60 = vpack.c.bf16 %v1079_v33, %v14075_v54 }
 0x3d4   :  { %2791 = vmatmul.mubr.bf16.gmra.mrb[52].mxu0 %v21288_v30 }
 0x3d5   :  { %2798 = vmatprep.mubr.bf16.mxu0 %v13951_v5  ;;  %v14094_v5 = vpop.f32.mrb[10].mxu1 }
 0x3d6   :  { %v14096_v9 = vpop.f32.mrb[11].mxu1 }
 0x3d7   :  { %v14102_v51 = vpop.f32.mrb[12].mxu1 }
 0x3d8   :  { %v14104_v27 = vpop.f32.mrb[13].mxu1 }
 0x3d9   :  { %v14106_v21 = vpop.f32.mrb[14].mxu1 }
 0x3da   :  { %v14108_v19 = vpop.f32.mrb[15].mxu1 }
 0x3dc   :  { %2799 = vmatmul.mubr.bf16.gmra.mrb[56].mxu0 %v21289_v10 }
 0x3dd   :  { %2806 = vmatprep.mubr.bf16.mxu0 %v1155_v60 }
 0x3e4   :  { %2807 = vmatmul.mubr.bf16.gmra.mrb[60].mxu0 %v14092_v40 }
 0x3e5   :  { %2814 = vmatprep.mubr.bf16.mxu0 %v21264_v7  ;;  %v14114_v7 = vpop.f32.mrb[16].mxu1 }
 0x3e6   :  { %v14116_v45 = vpop.f32.mrb[17].mxu1 }
 0x3ec   :  { %2815 = vmatmul.mubr.bf16.gmra.mrb[64].mxu0 %v21290_v36  ;;  %v21303_v36 = vld [vmem:[#allocation99_spill] sm:$0xff] }
 0x3ed   :  { %2822 = vmatprep.mubr.bf16.mxu0 %v21265_v58  ;;  %v14118_v58 = vpop.f32.mrb[18].mxu1 }
 0x3ee   :  { %v14120_v32 = vpop.f32.mrb[19].mxu1 }
 0x3f4   :  { %2823 = vmatmul.mubr.bf16.gmra.mrb[68].mxu0 %v21291_v3 }
 0x3f5   :  { %2830 = vmatprep.mubr.bf16.mxu0 %v21266_v6  ;;  %v14126_v6 = vpop.f32.mrb[20].mxu1 }
 0x3f6   :  { %v14128_v59 = vpop.f32.mrb[21].mxu1 }
 0x3fc   :  { %2831 = vmatmul.mubr.bf16.gmra.mrb[72].mxu0 %v21292_v35 }
 0x3fd   :  { %2838 = vmatprep.mubr.bf16.mxu0 %v21267_v16  ;;  %v14130_v16 = vpop.f32.mrb[22].mxu1 }
 0x3fe   :  { %v14132_v49 = vpop.f32.mrb[23].mxu1 }
 0x404   :  { %2839 = vmatmul.mubr.bf16.gmra.mrb[76].mxu0 %v21293_v55 }
 0x405   :  { %2846 = vmatprep.mubr.bf16.mxu0 %v21268_v43  ;;  %v21296_v43 = vld [vmem:[#allocation75_spill] sm:$0xff] }
 0x40c   :  { %2847 = vmatmul.mubr.bf16.gmra.mrb[80].mxu0 %v21294_v57 }
 0x40d   :  { %2854 = vmatprep.mubr.bf16.mxu0 %v21269_v1  ;;  %v14142_v1 = vpop.f32.mrb[24].mxu1 }
 0x40e   :  { %v14144_v4 = vpop.f32.mrb[25].mxu1 }
 0x40f   :  { %v14146_v23 = vpop.f32.mrb[26].mxu1 }
 0x410   :  { %v14148_v38 = vpop.f32.mrb[27].mxu1 }
 0x411   :  { %v14158_v63 = vpop.f32.mrb[28].mxu1 }
 0x412   :  { %v14160_v48 = vpop.f32.mrb[29].mxu1 }
 0x413   :  { %v14162_v31 = vpop.f32.mrb[30].mxu1 }
 0x414   :  { %2855 = vmatmul.mubr.bf16.gmra.mrb[84].mxu0 %v21295_v18  ;;  %v14164_v13 = vpop.f32.mrb[31].mxu1 }
 0x415   :  { %2862 = vmatprep.mubr.bf16.mxu0 %v21270_v20  ;;  %v21297_v20 = vld [vmem:[#allocation80_spill] sm:$0xff]  ;;  %v14174_v8 = vpop.f32.mrb[32].mxu1 }
 0x416   :  { %v14176_v33 = vpop.f32.mrb[33].mxu1 }
 0x417   :  { %v14181_v56 = vpop.f32.mrb[34].mxu1 }
 0x41c   :  { %2863 = vmatmul.mubr.bf16.gmra.mrb[88].mxu0 %v21296_v43 }
 0x41d   :  { %2870 = vmatprep.mubr.bf16.mxu0 %v21271_v42  ;;  %v21298_v42 = vld [vmem:[#allocation85_spill] sm:$0xff] }
 0x424   :  { %2871 = vmatmul.mubr.bf16.gmra.mrb[92].mxu0 %v21297_v20 }
 0x425   :  { %2878 = vmatprep.mubr.bf16.mxu0 %v21272_v53  ;;  %v21299_v53 = vld [vmem:[#allocation89_spill] sm:$0xff] }
 0x42c   :  { %2879 = vmatmul.mubr.bf16.gmra.mrb[96].mxu0 %v21298_v42 }
 0x42d   :  { %2886 = vmatprep.mubr.bf16.mxu0 %v21273_v2  ;;  %v21300_v2 = vld [vmem:[#allocation94_spill] sm:$0xff] }
 0x434   :  { %2887 = vmatmul.mubr.bf16.gmra.mrb[100].mxu0 %v21299_v53 }
 0x435   :  { %2894 = vmatprep.mubr.bf16.mxu0 %v21274_v47  ;;  %v14183_v47 = vpop.f32.mrb[35].mxu1 }
 0x436   :  { %v14202_v18 = vpop.f32.mrb[36].mxu1 }
 0x437   :  { %v14204_v43 = vpop.f32.mrb[37].mxu1 }
 0x438   :  { %v14209_v20 = vpop.f32.mrb[38].mxu1 }
 0x439   :  { %v14211_v26 = vpop.f32.mrb[39].mxu1 }
 0x43c   :  { %2895 = vmatmul.mubr.bf16.gmra.mrb[104].mxu0 %v21300_v2  ;;  %v12155_v2 = vld [vmem:[%s20587_s4 + $0x20] sm:$0xff]  }
 0x43d   :  { %2902 = vmatprep.mubr.bf16.mxu0 %v21275_v22  ;;  %v12154_v22 = vld [vmem:[%s20587_s4 + $0x18] sm:$0xff]  }
 0x43e   :  { %5126 = vmatpush1.bf16.msra.mxu0 %v12154_v22 }
 0x43f   :  { %v2688_v30 = vpop.f32.mrb[0].mxu0  ;;  %5127 = vmatprep.subr.bf16.mxu0 %v21105_v28 }
 0x440   :  { %v14179_v62 = vadd.f32 %v14057_v25, %v2688_v30  ;;  %v2690_v44 = vpop.f32.mrb[1].mxu0  ;;  %v21309_v30 = vld [vmem:[#allocation103_spill] sm:$0xff] }
 0x441   :  { %v2691_v60 = vpop.f32.mrb[2].mxu0 }
 0x442   :  { %21301 = vst [vmem:[#allocation23_spill] sm:$0xff] %v14179_v62  ;;  %v14186_v17 = vadd.f32 %v14061_v50, %v2691_v60  ;;  %v2693_v10 = vpop.f32.mrb[3].mxu0  ;;  %5128 = vmatpush1.bf16.msra.mxu0 %v12155_v2 }
 0x443   :  { %5129 = vmatprep.subr.bf16.mxu0 %v21105_v28 }
 0x444   :  { %21302 = vst [vmem:[#allocation24_spill] sm:$0xff] %v14186_v17  ;;  %2903 = vmatmul.mubr.bf16.gmra.mrb[108].mxu0 %v21303_v36 }
 0x445   :  { %2910 = vmatprep.mubr.bf16.mxu0 %v21276_v41 }
 0x447   :  { %v2696_v25 = vpop.f32.mrb[4].mxu0 }
 0x448   :  { %v14195_v3 = vadd.f32 %v14055_v15, %v2696_v25  ;;  %v2698_v35 = vpop.f32.mrb[5].mxu0  ;;  %v21312_v25 = vld [vmem:[#allocation22_spill] sm:$0xff] }
 0x449   :  { %v2699_v55 = vpop.f32.mrb[6].mxu0 }
 0x44a   :  { %21304 = vst [vmem:[#allocation39_spill] sm:$0xff] %v14195_v3  ;;  %v14198_v50 = vadd.f32 %v14059_v12, %v2699_v55  ;;  %v2701_v57 = vpop.f32.mrb[7].mxu0 }
 0x44c   :  { %21305 = vst [vmem:[#allocation29_spill] sm:$0xff] %v14198_v50  ;;  %2911 = vmatmul.mubr.bf16.gmra.mrb[112].mxu0 %v21306_v24 }
 0x44d   :  { %2918 = vmatprep.mubr.bf16.mxu0 %v21277_v34  ;;  %v1083_v34 = vrot.slane %v14080_v39, 1 }
 0x44f   :  { %v2704_v41 = vpop.f32.mrb[8].mxu0 }
 0x450   :  { %v14207_v61 = vadd.f32 %v14069_v0, %v2704_v41  ;;  %v2706_v15 = vpop.f32.mrb[9].mxu0  ;;  %v1084_v0 = vsel %vm585_vm0, %v14075_v54, %v1083_v34 }
 0x451   :  { %v2707_v42 = vpop.f32.mrb[10].mxu0  ;;  %v1209_v10 = vpack.c.bf16 %v1084_v0, %v14075_v54 }
 0x452   :  { %21307 = vst [vmem:[#allocation30_spill] sm:$0xff] %v14207_v61  ;;  %v14214_v12 = vadd.f32 %v14073_v29, %v2707_v42  ;;  %v2709_v53 = vpop.f32.mrb[11].mxu0  ;;  %v12156_v42 = vld [vmem:[%s20587_s4 + $0x28] sm:$0xff]  }
 0x453   :  { %5130 = vmatpush1.bf16.msra.mxu0 %v12156_v42 }
 0x454   :  { %21308 = vst [vmem:[#allocation31_spill] sm:$0xff] %v14214_v12  ;;  %2919 = vmatmul.mubr.bf16.gmra.mrb[116].mxu0 %v21309_v30  ;;  %5131 = vmatprep.subr.bf16.mxu0 %v21105_v28 }
 0x455   :  { %2926 = vmatprep.mubr.bf16.mxu0 %v14016_v46  ;;  %v14233_v46 = vpop.f32.mrb[40].mxu1 }
 0x456   :  { %v14235_v55 = vpop.f32.mrb[41].mxu1 }
 0x457   :  { %v2712_v44 = vpop.f32.mrb[12].mxu0  ;;  %v14240_v24 = vpop.f32.mrb[42].mxu1 }
 0x458   :  { %v14226_v29 = vadd.f32 %v14067_v14, %v2712_v44  ;;  %v2714_v60 = vpop.f32.mrb[13].mxu0  ;;  %v14242_v54 = vpop.f32.mrb[43].mxu1 }
 0x459   :  { %v2715_v39 = vpop.f32.mrb[14].mxu0  ;;  %v14258_v0 = vpop.f32.mrb[44].mxu1 }
 0x45a   :  { %21310 = vst [vmem:[#allocation33_spill] sm:$0xff] %v14226_v29  ;;  %v14230_v22 = vadd.f32 %v14071_v52, %v2715_v39  ;;  %v2717_v36 = vpop.f32.mrb[15].mxu0  ;;  %v14260_v60 = vpop.f32.mrb[45].mxu1 }
 0x45c   :  { %21311 = vst [vmem:[#allocation34_spill] sm:$0xff] %v14230_v22  ;;  %2927 = vmatmul.mubr.bf16.gmra.mrb[120].mxu0 %v21312_v25 }
 0x45d   :  { %2934 = vmatprep.mubr.bf16.mxu0 %v1209_v10  ;;  %v14265_v10 = vpop.f32.mrb[46].mxu1 }
 0x45f   :  { %v2720_v35 = vpop.f32.mrb[16].mxu0 }
 0x460   :  { %v14238_v57 = vadd.f32 %v14090_v11, %v2720_v35  ;;  %v2722_v14 = vpop.f32.mrb[17].mxu0  ;;  %v12157_v35 = vld [vmem:[%s20587_s4 + $0x30] sm:$0xff]  }
 0x461   :  { %v2723_v41 = vpop.f32.mrb[18].mxu0  ;;  %5132 = vmatpush1.bf16.msra.mxu0 %v12157_v35 }
 0x462   :  { %21313 = vst [vmem:[#allocation36_spill] sm:$0xff] %v14238_v57  ;;  %v14245_v52 = vadd.f32 %v14096_v9, %v2723_v41  ;;  %v2725_v15 = vpop.f32.mrb[19].mxu0  ;;  %5133 = vmatprep.subr.bf16.mxu0 %v21105_v28 }
 0x464   :  { %21314 = vst [vmem:[#allocation37_spill] sm:$0xff] %v14245_v52  ;;  %2935 = vmatmul.mubr.bf16.gmra.mrb[124].mxu0 %v14092_v40 }
 0x467   :  { %v2728_v11 = vpop.f32.mrb[20].mxu0 }
 0x468   :  { %v14253_v53 = vadd.f32 %v14088_v37, %v2728_v11  ;;  %v2730_v34 = vpop.f32.mrb[21].mxu0  ;;  %v14267_v37 = vpop.f32.mrb[47].mxu1 }
 0x469   :  { %v2731_v2 = vpop.f32.mrb[22].mxu0  ;;  %v14287_v34 = vpop.f32.mrb[48].mxu1 }
 0x46a   :  { %21315 = vst [vmem:[#allocation38_spill] sm:$0xff] %v14253_v53  ;;  %v14256_v30 = vadd.f32 %v14094_v5, %v2731_v2  ;;  %v2733_v9 = vpop.f32.mrb[23].mxu0  ;;  %21322 = vst [vmem:[#allocation52_spill] sm:$0xff] %v14287_v34 }
 0x46b   :  { %v14289_v9 = vpop.f32.mrb[49].mxu1 }
 0x46c   :  { %21316 = vst [vmem:[#allocation41_spill] sm:$0xff] %v14256_v30 }
 0x46f   :  { %v2736_v44 = vpop.f32.mrb[24].mxu0 }
 0x470   :  { %v14263_v40 = vadd.f32 %v14104_v27, %v2736_v44  ;;  %v2738_v39 = vpop.f32.mrb[25].mxu0 }
 0x471   :  { %v2739_v36 = vpop.f32.mrb[26].mxu0  ;;  %v14295_v39 = vpop.f32.mrb[50].mxu1 }
 0x472   :  { %21317 = vst [vmem:[#allocation42_spill] sm:$0xff] %v14263_v40  ;;  %v14270_v25 = vadd.f32 %v14108_v19, %v2739_v36  ;;  %v2741_v5 = vpop.f32.mrb[27].mxu0  ;;  %v14285_v19 = vld [vmem:[%s20587_s4 + $0x80] sm:$0xff]   ;;  %21324 = vst [vmem:[#allocation54_spill] sm:$0xff] %v14295_v39 }
 0x473   :  { %21321 = vst [vmem:[#allocation49_spill] sm:$0xff] %v14285_v19  ;;  %10973 = vmatpush1.bf16.msra.mxu1 %v14285_v19  ;;  %v14300_v5 = vpop.f32.mrb[51].mxu1 }
 0x474   :  { %21318 = vst [vmem:[#allocation43_spill] sm:$0xff] %v14270_v25  ;;  %10958 = vmatprep.subr.bf16.mxu1 %v21105_v28 }
 0x477   :  { %v2744_v14 = vpop.f32.mrb[28].mxu0 }
 0x478   :  { %v14277_v27 = vadd.f32 %v14102_v51, %v2744_v14  ;;  %v2746_v41 = vpop.f32.mrb[29].mxu0 }
 0x479   :  { %v2747_v15 = vpop.f32.mrb[30].mxu0  ;;  %v12160_v41 = vld [vmem:[%s20587_s4 + $0x38] sm:$0xff]  }
 0x47a   :  { %21319 = vst [vmem:[#allocation47_spill] sm:$0xff] %v14277_v27  ;;  %v14280_v42 = vadd.f32 %v14106_v21, %v2747_v15  ;;  %v2749_v11 = vpop.f32.mrb[31].mxu0  ;;  %v3302_v21 = vmul.f32 %v14186_v17, %v14186_v17  ;;  %v3301_v15 = vmul.f32 %v14179_v62, %v14179_v62  ;;  %5134 = vmatpush1.bf16.msra.mxu0 %v12160_v41 }
 0x47b   :  { %v3303_v11 = vmul.f32 %v14195_v3, %v14195_v3  ;;  %5135 = vmatprep.subr.bf16.mxu0 %v21105_v28 }
 0x47c   :  { %21320 = vst [vmem:[#allocation48_spill] sm:$0xff] %v14280_v42 }
 0x47f   :  { %v2752_v2 = vpop.f32.mrb[32].mxu0 }
 0x480   :  { %v14292_v44 = vadd.f32 %v14116_v45, %v2752_v2  ;;  %v2754_v51 = vpop.f32.mrb[33].mxu0  ;;  %v14308_v45 = vld [vmem:[%s20587_s4 + $0x88] sm:$0xff]   ;;  %v3365_v2 = vadd.f32 %v3302_v21, %v3301_v15 }
 0x481   :  { %v2755_v36 = vpop.f32.mrb[34].mxu0  ;;  %10974 = vmatpush1.bf16.msra.mxu1 %v14308_v45 }
 0x482   :  { %21323 = vst [vmem:[#allocation53_spill] sm:$0xff] %v14292_v44  ;;  %v14303_v35 = vadd.f32 %v14120_v32, %v2755_v36  ;;  %v2757_v14 = vpop.f32.mrb[35].mxu0  ;;  %v3232_v32 = vadd.f32 %v14186_v17, %v14179_v62  ;;  %10959 = vmatprep.subr.bf16.mxu1 %v21105_v28  ;;  %v3366_v36 = vadd.f32 %v3365_v2, %v3303_v11 }
 0x483   :  { %v3304_v14 = vmul.f32 %v14198_v50, %v14198_v50  ;;  %v3305_v17 = vmul.f32 %v14207_v61, %v14207_v61  ;;  %v3306_v2 = vmul.f32 %v14214_v12, %v14214_v12 }
 0x484   :  { %21325 = vst [vmem:[#allocation57_spill] sm:$0xff] %v14303_v35  ;;  %v3233_v51 = vadd.f32 %v3232_v32, %v14195_v3 }
 0x485   :  { %v3367_v32 = vadd.f32 %v3366_v36, %v3304_v14 }
 0x486   :  { %v3234_v21 = vadd.f32 %v3233_v51, %v14198_v50 }
 0x487   :  { %v2760_v19 = vpop.f32.mrb[36].mxu0  ;;  %v3368_v3 = vadd.f32 %v3367_v32, %v3305_v17 }
 0x488   :  { %v14326_v39 = vadd.f32 %v14114_v7, %v2760_v19  ;;  %v2762_v34 = vpop.f32.mrb[37].mxu0  ;;  %v3235_v11 = vadd.f32 %v3234_v21, %v14207_v61  ;;  %v14340_v7 = vld [vmem:[%s20587_s4 + $0x90] sm:$0xff]   ;;  %v14342_v19 = vpop.f32.mrb[52].mxu1 }
 0x489   :  { %v2763_v41 = vpop.f32.mrb[38].mxu0  ;;  %21327 = vst [vmem:[#allocation59_spill] sm:$0xff] %v14340_v7  ;;  %v3307_v34 = vmul.f32 %v14226_v29, %v14226_v29  ;;  %v14346_v51 = vpop.f32.mrb[53].mxu1  ;;  %10975 = vmatpush1.bf16.msra.mxu1 %v14340_v7 }
 0x48a   :  { %21326 = vst [vmem:[#allocation58_spill] sm:$0xff] %v14326_v39  ;;  %v14332_v15 = vadd.f32 %v14118_v58, %v2763_v41  ;;  %v2765_v62 = vpop.f32.mrb[39].mxu0  ;;  %v14353_v17 = vpop.f32.mrb[54].mxu1  ;;  %v3369_v41 = vadd.f32 %v3368_v3, %v3306_v2  ;;  %10960 = vmatprep.subr.bf16.mxu1 %v21105_v28  ;;  %v12163_v3 = vld [vmem:[%s20587_s4 + $0x40] sm:$0xff]  }
 0x48b   :  { %v3236_v62 = vadd.f32 %v3235_v11, %v14214_v12  ;;  %v14356_v32 = vpop.f32.mrb[55].mxu1  ;;  %5136 = vmatpush1.bf16.msra.mxu0 %v12163_v3  ;;  %v3310_v3 = vmul.f32 %v14245_v52, %v14245_v52 }
 0x48c   :  { %v3370_v2 = vadd.f32 %v3369_v41, %v3307_v34  ;;  %5137 = vmatprep.subr.bf16.mxu0 %v21105_v28 }
 0x48d   :  { %v3237_v61 = vadd.f32 %v3236_v62, %v14226_v29 }
 0x48f   :  { %v2768_v58 = vpop.f32.mrb[40].mxu0  ;;  %v3238_v62 = vadd.f32 %v3237_v61, %v14230_v22  ;;  %v3311_v61 = vmul.f32 %v14253_v53, %v14253_v53 }
 0x490   :  { %v14350_v36 = vadd.f32 %v14128_v59, %v2768_v58  ;;  %v2770_v14 = vpop.f32.mrb[41].mxu0  ;;  %v14365_v59 = vld [vmem:[%s20587_s4 + $0x98] sm:$0xff]   ;;  %v3308_v58 = vmul.f32 %v14230_v22, %v14230_v22  ;;  %v3316_v22 = vmul.f32 %v14280_v42, %v14280_v42 }
 0x491   :  { %v2771_v21 = vpop.f32.mrb[42].mxu0  ;;  %21328 = vst [vmem:[#allocation62_spill] sm:$0xff] %v14365_v59  ;;  %10976 = vmatpush1.bf16.msra.mxu1 %v14365_v59 }
 0x492   :  { %v14360_v50 = vadd.f32 %v14132_v49, %v2771_v21  ;;  %v2773_v11 = vpop.f32.mrb[43].mxu0  ;;  %v3309_v49 = vmul.f32 %v14238_v57, %v14238_v57  ;;  %10961 = vmatprep.subr.bf16.mxu1 %v21105_v28  ;;  %v3371_v14 = vadd.f32 %v3370_v2, %v3308_v58 }
 0x493   :  { %v3239_v11 = vadd.f32 %v3238_v62, %v14238_v57 }
 0x494   :  { %v3372_v29 = vadd.f32 %v3371_v14, %v3309_v49 }
 0x495   :  { %v3240_v2 = vadd.f32 %v3239_v11, %v14245_v52 }
 0x496   :  { %v3373_v58 = vadd.f32 %v3372_v29, %v3310_v3 }
 0x497   :  { %v2776_v21 = vpop.f32.mrb[44].mxu0  ;;  %v3241_v62 = vadd.f32 %v3240_v2, %v14253_v53 }
 0x498   :  { %v14380_v34 = vadd.f32 %v14126_v6, %v2776_v21  ;;  %v2778_v41 = vpop.f32.mrb[45].mxu0  ;;  %v14394_v6 = vld [vmem:[%s20587_s4 + $0xa0] sm:$0xff]   ;;  %v14396_v21 = vpop.f32.mrb[56].mxu1  ;;  %v3374_v49 = vadd.f32 %v3373_v58, %v3311_v61 }
 0x499   :  { %v2779_v12 = vpop.f32.mrb[46].mxu0  ;;  %10977 = vmatpush1.bf16.msra.mxu1 %v14394_v6  ;;  %v3313_v41 = vmul.f32 %v14263_v40, %v14263_v40  ;;  %v3242_v2 = vadd.f32 %v3241_v62, %v14256_v30 }
 0x49a   :  { %v14385_v59 = vadd.f32 %v14130_v16, %v2779_v12  ;;  %v2781_v7 = vpop.f32.mrb[47].mxu0  ;;  %v3312_v16 = vmul.f32 %v14256_v30, %v14256_v30  ;;  %10962 = vmatprep.subr.bf16.mxu1 %v21105_v28 }
 0x49b   :  { %v14400_v7 = vpop.f32.mrb[57].mxu1  ;;  %v3243_v52 = vadd.f32 %v3242_v2, %v14263_v40 }
 0x49c   :  { %v14406_v11 = vpop.f32.mrb[58].mxu1  ;;  %v3375_v53 = vadd.f32 %v3374_v49, %v3312_v16 }
 0x49d   :  { %v14411_v61 = vpop.f32.mrb[59].mxu1  ;;  %v3244_v30 = vadd.f32 %v3243_v52, %v14270_v25 }
 0x49e   :  { %v3376_v62 = vadd.f32 %v3375_v53, %v3313_v41 }
 0x49f   :  { %v2784_v12 = vpop.f32.mrb[48].mxu0  ;;  %v3245_v40 = vadd.f32 %v3244_v30, %v14277_v27 }
 0x4a0   :  { %v14403_v14 = vadd.f32 %v14144_v4, %v2784_v12  ;;  %v2786_v29 = vpop.f32.mrb[49].mxu0  ;;  %v14420_v12 = vld [vmem:[%s20587_s4 + $0xa8] sm:$0xff]  }
 0x4a1   :  { %v2787_v3 = vpop.f32.mrb[50].mxu0  ;;  %21329 = vst [vmem:[#allocation63_spill] sm:$0xff] %v14420_v12  ;;  %v12166_v29 = vld [vmem:[%s20587_s4 + $0x48] sm:$0xff]   ;;  %10978 = vmatpush1.bf16.msra.mxu1 %v14420_v12  ;;  %v3317_v12 = vmul.f32 %v14292_v44, %v14292_v44  ;;  %v3246_v52 = vadd.f32 %v3245_v40, %v14280_v42 }
 0x4a2   :  { %v14415_v58 = vadd.f32 %v14148_v38, %v2787_v3  ;;  %v2789_v4 = vpop.f32.mrb[51].mxu0  ;;  %5138 = vmatpush1.bf16.msra.mxu0 %v12166_v29  ;;  %v3314_v38 = vmul.f32 %v14270_v25, %v14270_v25  ;;  %10963 = vmatprep.subr.bf16.mxu1 %v21105_v28  ;;  %v3315_v3 = vmul.f32 %v14277_v27, %v14277_v27 }
 0x4a3   :  { %5139 = vmatprep.subr.bf16.mxu0 %v21105_v28 }
 0x4a4   :  { %v3377_v2 = vadd.f32 %v3376_v62, %v3314_v38  ;;  %v14451_v38 = vpop.f32.mrb[60].mxu1 }
 0x4a5   :  { %v14453_v62 = vpop.f32.mrb[61].mxu1 }
 0x4a6   :  { %v3378_v57 = vadd.f32 %v3377_v2, %v3315_v3  ;;  %v3247_v3 = vadd.f32 %v3246_v52, %v14292_v44  ;;  %v14460_v40 = vpop.f32.mrb[62].mxu1  ;;  %v3318_v2 = vmul.f32 %v14303_v35, %v14303_v35 }
 0x4a7   :  { %v2792_v4 = vpop.f32.mrb[52].mxu0 }
 0x4a8   :  { %v14435_v49 = vadd.f32 %v14142_v1, %v2792_v4  ;;  %v2794_v16 = vpop.f32.mrb[53].mxu0  ;;  %v14449_v1 = vld [vmem:[%s20587_s4 + $0xb0] sm:$0xff]   ;;  %v3379_v30 = vadd.f32 %v3378_v57, %v3316_v22  ;;  %v14465_v22 = vpop.f32.mrb[63].mxu1 }
 0x4a9   :  { %v2795_v29 = vpop.f32.mrb[54].mxu0  ;;  %10979 = vmatpush1.bf16.msra.mxu1 %v14449_v1 }
 0x4aa   :  { %v14439_v53 = vadd.f32 %v14146_v23, %v2795_v29  ;;  %v2797_v41 = vpop.f32.mrb[55].mxu0  ;;  %v3380_v29 = vadd.f32 %v3379_v30, %v3317_v12  ;;  %10964 = vmatprep.subr.bf16.mxu1 %v21105_v28  ;;  %v3319_v12 = vmul.f32 %v14326_v39, %v14326_v39  ;;  %v3248_v30 = vadd.f32 %v3247_v3, %v14303_v35 }
 0x4ab   :  { %v3321_v3 = vmul.f32 %v14350_v36, %v14350_v36 }
 0x4af   :  { %v2800_v23 = vpop.f32.mrb[56].mxu0 }
 0x4b0   :  { %v14457_v4 = vadd.f32 %v14160_v48, %v2800_v23  ;;  %v2802_v16 = vpop.f32.mrb[57].mxu0  ;;  %v14473_v48 = vld [vmem:[%s20587_s4 + $0xb8] sm:$0xff]   ;;  %v12169_v23 = vld [vmem:[%s20587_s4 + $0x50] sm:$0xff]  }
 0x4b1   :  { %v2803_v41 = vpop.f32.mrb[58].mxu0  ;;  %10980 = vmatpush1.bf16.msra.mxu1 %v14473_v48  ;;  %5140 = vmatpush1.bf16.msra.mxu0 %v12169_v23  ;;  %v3249_v16 = vadd.f32 %v3248_v30, %v14326_v39 }
 0x4b2   :  { %v14468_v57 = vadd.f32 %v14164_v13, %v2803_v41  ;;  %v2805_v52 = vpop.f32.mrb[59].mxu0  ;;  %v3381_v13 = vadd.f32 %v3380_v29, %v3318_v2  ;;  %10965 = vmatprep.subr.bf16.mxu1 %v21105_v28  ;;  %5141 = vmatprep.subr.bf16.mxu0 %v21105_v28 }
 0x4b3   :  { %v3320_v52 = vmul.f32 %v14332_v15, %v14332_v15  ;;  %v3250_v2 = vadd.f32 %v3249_v16, %v14332_v15 }
 0x4b4   :  { %v3382_v41 = vadd.f32 %v3381_v13, %v3319_v12  ;;  %v3322_v13 = vmul.f32 %v14360_v50, %v14360_v50 }
 0x4b5   :  { %v3251_v12 = vadd.f32 %v3250_v2, %v14350_v36 }
 0x4b6   :  { %v3383_v30 = vadd.f32 %v3382_v41, %v3320_v52 }
 0x4b7   :  { %v2808_v44 = vpop.f32.mrb[60].mxu0 }
 0x4b8   :  { %v14488_v42 = vadd.f32 %v14158_v63, %v2808_v44  ;;  %v2810_v27 = vpop.f32.mrb[61].mxu0  ;;  %v3384_v39 = vadd.f32 %v3383_v30, %v3321_v3  ;;  %v3323_v63 = vmul.f32 %v14380_v34, %v14380_v34  ;;  %v3252_v44 = vadd.f32 %v3251_v12, %v14360_v50 }
 0x4b9   :  { %v2811_v23 = vpop.f32.mrb[62].mxu0  ;;  %v3324_v3 = vmul.f32 %v14385_v59, %v14385_v59  ;;  %v3325_v30 = vmul.f32 %v14403_v14, %v14403_v14 }
 0x4ba   :  { %v14494_v29 = vadd.f32 %v14162_v31, %v2811_v23  ;;  %v2813_v35 = vpop.f32.mrb[63].mxu0  ;;  %v3385_v31 = vadd.f32 %v3384_v39, %v3322_v13 }
 0x4bb   :  { %v3253_v35 = vadd.f32 %v3252_v44, %v14380_v34 }
 0x4bc   :  { %v3386_v2 = vadd.f32 %v3385_v31, %v3323_v63 }
 0x4bd   :  { %v3254_v12 = vadd.f32 %v3253_v35, %v14385_v59  ;;  %v3327_v35 = vmul.f32 %v14435_v49, %v14435_v49 }
 0x4bf   :  { %v2816_v27 = vpop.f32.mrb[64].mxu0  ;;  %v3255_v39 = vadd.f32 %v3254_v12, %v14403_v14  ;;  %v3328_v12 = vmul.f32 %v14439_v53, %v14439_v53 }
 0x4c0   :  { %v14503_v25 = vadd.f32 %v14176_v33, %v2816_v27  ;;  %v2818_v16 = vpop.f32.mrb[65].mxu0  ;;  %v3387_v33 = vadd.f32 %v3386_v2, %v3324_v3 }
 0x4c1   :  { %v2819_v23 = vpop.f32.mrb[66].mxu0 }
 0x4c2   :  { %v14507_v41 = vadd.f32 %v14183_v47, %v2819_v23  ;;  %v2821_v52 = vpop.f32.mrb[67].mxu0  ;;  %v3326_v47 = vmul.f32 %v14415_v58, %v14415_v58  ;;  %v3388_v63 = vadd.f32 %v3387_v33, %v3325_v30 }
 0x4c3   :  { %v3256_v52 = vadd.f32 %v3255_v39, %v14415_v58 }
 0x4c4   :  { %v3389_v2 = vadd.f32 %v3388_v63, %v3326_v47 }
 0x4c5   :  { %v3257_v3 = vadd.f32 %v3256_v52, %v14435_v49 }
 0x4c7   :  { %v2824_v27 = vpop.f32.mrb[68].mxu0 }
 0x4c8   :  { %v14516_v13 = vadd.f32 %v14174_v8, %v2824_v27  ;;  %v2826_v44 = vpop.f32.mrb[69].mxu0  ;;  %v3390_v8 = vadd.f32 %v3389_v2, %v3327_v35  ;;  %v3330_v35 = vmul.f32 %v14468_v57, %v14468_v57 }
 0x4c9   :  { %v2827_v16 = vpop.f32.mrb[70].mxu0 }
 0x4ca   :  { %v14521_v31 = vadd.f32 %v14181_v56, %v2827_v16  ;;  %v2829_v23 = vpop.f32.mrb[71].mxu0  ;;  %v3329_v56 = vmul.f32 %v14457_v4, %v14457_v4  ;;  %v3258_v16 = vadd.f32 %v3257_v3, %v14439_v53  ;;  %v3391_v63 = vadd.f32 %v3390_v8, %v3328_v12 }
 0x4cc   :  { %v3259_v23 = vadd.f32 %v3258_v16, %v14457_v4  ;;  %v3392_v52 = vadd.f32 %v3391_v63, %v3329_v56  ;;  %v3332_v56 = vmul.f32 %v14494_v29, %v14494_v29  ;;  %v3333_v63 = vmul.f32 %v14503_v25, %v14503_v25 }
 0x4cf   :  { %v2832_v27 = vpop.f32.mrb[72].mxu0 }
 0x4d0   :  { %v14530_v30 = vadd.f32 %v14204_v43, %v2832_v27  ;;  %v2834_v33 = vpop.f32.mrb[73].mxu0  ;;  %v3331_v43 = vmul.f32 %v14488_v42, %v14488_v42  ;;  %v3260_v27 = vadd.f32 %v3259_v23, %v14468_v57 }
 0x4d1   :  { %v2835_v44 = vpop.f32.mrb[74].mxu0 }
 0x4d2   :  { %21330 = vst [vmem:[#allocation64_spill] sm:$0xff] %v14530_v30  ;;  %v14536_v39 = vadd.f32 %v14211_v26, %v2835_v44  ;;  %v2837_v47 = vpop.f32.mrb[75].mxu0  ;;  %v3393_v26 = vadd.f32 %v3392_v52, %v3330_v35  ;;  %v3261_v8 = vadd.f32 %v3260_v27, %v14488_v42 }
 0x4d4   :  { %v3394_v47 = vadd.f32 %v3393_v26, %v3331_v43  ;;  %v3262_v23 = vadd.f32 %v3261_v8, %v14494_v29  ;;  %v3335_v8 = vmul.f32 %v14516_v13, %v14516_v13 }
 0x4d6   :  { %v3263_v35 = vadd.f32 %v3262_v23, %v14503_v25  ;;  %v3336_v23 = vmul.f32 %v14521_v31, %v14521_v31 }
 0x4d7   :  { %v2840_v2 = vpop.f32.mrb[76].mxu0 }
 0x4d8   :  { %v14545_v33 = vadd.f32 %v14202_v18, %v2840_v2  ;;  %v2842_v3 = vpop.f32.mrb[77].mxu0  ;;  %v3395_v18 = vadd.f32 %v3394_v47, %v3332_v56 }
 0x4d9   :  { %v2843_v44 = vpop.f32.mrb[78].mxu0 }
 0x4da   :  { %v14549_v12 = vadd.f32 %v14209_v20, %v2843_v44  ;;  %v2845_v16 = vpop.f32.mrb[79].mxu0  ;;  %v3334_v20 = vmul.f32 %v14507_v41, %v14507_v41  ;;  %v3396_v43 = vadd.f32 %v3395_v18, %v3333_v63  ;;  %v14574_v63 = vld [vmem:[%s20587_s4 + $0xc0] sm:$0xff]  }
 0x4db   :  { %v3264_v16 = vadd.f32 %v3263_v35, %v14507_v41  ;;  %v3337_v35 = vmul.f32 %v14530_v30, %v14530_v30  ;;  %10981 = vmatpush1.bf16.msra.mxu1 %v14574_v63 }
 0x4dc   :  { %v3397_v47 = vadd.f32 %v3396_v43, %v3334_v20  ;;  %10966 = vmatprep.subr.bf16.mxu1 %v21105_v28 }
 0x4dd   :  { %v3265_v56 = vadd.f32 %v3264_v16, %v14516_v13 }
 0x4df   :  { %v2848_v2 = vpop.f32.mrb[80].mxu0  ;;  %v3266_v20 = vadd.f32 %v3265_v56, %v14521_v31 }
 0x4e0   :  { %v14558_v52 = vadd.f32 %v14235_v55, %v2848_v2  ;;  %v2850_v27 = vpop.f32.mrb[81].mxu0  ;;  %v3398_v55 = vadd.f32 %v3397_v47, %v3335_v8  ;;  %v3339_v47 = vmul.f32 %v14545_v33, %v14545_v33 }
 0x4e1   :  { %v2851_v3 = vpop.f32.mrb[82].mxu0  ;;  %v3267_v8 = vadd.f32 %v3266_v20, %v14530_v30 }
 0x4e2   :  { %v14563_v26 = vadd.f32 %v14242_v54, %v2851_v3  ;;  %v2853_v44 = vpop.f32.mrb[83].mxu0 }
 0x4e3   :  { %v3399_v44 = vadd.f32 %v3398_v55, %v3336_v23 }
 0x4e5   :  { %v3400_v16 = vadd.f32 %v3399_v44, %v3337_v35  ;;  %v3340_v35 = vmul.f32 %v14549_v12, %v14549_v12  ;;  %v3341_v44 = vmul.f32 %v14558_v52, %v14558_v52 }
 0x4e7   :  { %v2856_v2 = vpop.f32.mrb[84].mxu0 }
 0x4e8   :  { %v14577_v54 = vadd.f32 %v14233_v46, %v2856_v2  ;;  %v2858_v18 = vpop.f32.mrb[85].mxu0  ;;  %v3338_v46 = vmul.f32 %v14536_v39, %v14536_v39 }
 0x4e9   :  { %v2859_v27 = vpop.f32.mrb[86].mxu0  ;;  %v3268_v18 = vadd.f32 %v3267_v8, %v14536_v39 }
 0x4ea   :  { %v14584_v43 = vadd.f32 %v14240_v24, %v2859_v27  ;;  %v2861_v3 = vpop.f32.mrb[87].mxu0  ;;  %v3401_v27 = vadd.f32 %v3400_v16, %v3338_v46 }
 0x4eb   :  { %v3269_v55 = vadd.f32 %v3268_v18, %v14545_v33 }
 0x4ec   :  { %21331 = vst [vmem:[#allocation67_spill] sm:$0xff] %v14584_v43  ;;  %v3402_v30 = vadd.f32 %v3401_v27, %v3339_v47 }
 0x4ed   :  { %v3270_v8 = vadd.f32 %v3269_v55, %v14549_v12  ;;  %v3343_v55 = vmul.f32 %v14577_v54, %v14577_v54 }
 0x4ef   :  { %v2864_v2 = vpop.f32.mrb[88].mxu0  ;;  %v3271_v46 = vadd.f32 %v3270_v8, %v14558_v52  ;;  %v3344_v8 = vmul.f32 %v14584_v43, %v14584_v43 }
 0x4f0   :  { %v14594_v56 = vadd.f32 %v14260_v60, %v2864_v2  ;;  %v2866_v24 = vpop.f32.mrb[89].mxu0  ;;  %v3403_v60 = vadd.f32 %v3402_v30, %v3340_v35 }
 0x4f1   :  { %v2867_v3 = vpop.f32.mrb[90].mxu0  ;;  %v3272_v30 = vadd.f32 %v3271_v46, %v14563_v26 }
 0x4f2   :  { %21332 = vst [vmem:[#allocation68_spill] sm:$0xff] %v14594_v56  ;;  %v14598_v23 = vadd.f32 %v14267_v37, %v2867_v3  ;;  %v2869_v20 = vpop.f32.mrb[91].mxu0  ;;  %v3342_v37 = vmul.f32 %v14563_v26, %v14563_v26  ;;  %v3404_v47 = vadd.f32 %v3403_v60, %v3341_v44 }
 0x4f3   :  { %v3273_v35 = vadd.f32 %v3272_v30, %v14577_v54 }
 0x4f4   :  { %21333 = vst [vmem:[#allocation69_spill] sm:$0xff] %v14598_v23  ;;  %v3405_v20 = vadd.f32 %v3404_v47, %v3342_v37 }
 0x4f7   :  { %v2872_v2 = vpop.f32.mrb[92].mxu0 }
 0x4f8   :  { %v14607_v16 = vadd.f32 %v14258_v0, %v2872_v2  ;;  %v2874_v18 = vpop.f32.mrb[93].mxu0  ;;  %v3406_v0 = vadd.f32 %v3405_v20, %v3343_v55  ;;  %v3346_v55 = vmul.f32 %v14598_v23, %v14598_v23  ;;  %v12172_v20 = vld [vmem:[%s20587_s4 + $0x58] sm:$0xff]  }
 0x4f9   :  { %v2875_v24 = vpop.f32.mrb[94].mxu0  ;;  %5142 = vmatpush1.bf16.msra.mxu0 %v12172_v20  ;;  %v12175_v20 = vld [vmem:[%s20587_s4 + $0x60] sm:$0xff]  }
 0x4fa   :  { %21334 = vst [vmem:[#allocation72_spill] sm:$0xff] %v14607_v16  ;;  %v14612_v27 = vadd.f32 %v14265_v10, %v2875_v24  ;;  %v2877_v3 = vpop.f32.mrb[95].mxu0  ;;  %v3345_v10 = vmul.f32 %v14594_v56, %v14594_v56  ;;  %v3274_v24 = vadd.f32 %v3273_v35, %v14584_v43  ;;  %v3407_v47 = vadd.f32 %v3406_v0, %v3344_v8  ;;  %v21338_v8 = vld [vmem:[#allocation52_spill] sm:$0xff] }
 0x4fb   :  { %5143 = vmatprep.subr.bf16.mxu0 %v21105_v28 }
 0x4fc   :  { %21335 = vst [vmem:[#allocation73_spill] sm:$0xff] %v14612_v27  ;;  %v3275_v3 = vadd.f32 %v3274_v24, %v14594_v56  ;;  %v3408_v30 = vadd.f32 %v3407_v47, %v3345_v10  ;;  %v14651_v24 = vld [vmem:[%s20587_s4 + $0xd0] sm:$0xff]  }
 0x4fd   :  { %v21340_v47 = vld [vmem:[#allocation54_spill] sm:$0xff]  ;;  %5144 = vmatpush1.bf16.msra.mxu0 %v12175_v20 }
 0x4fe   :  { %v3276_v0 = vadd.f32 %v3275_v3, %v14598_v23  ;;  %v3409_v10 = vadd.f32 %v3408_v30, %v3346_v55  ;;  %v3348_v55 = vmul.f32 %v14612_v27, %v14612_v27  ;;  %5145 = vmatprep.subr.bf16.mxu0 %v21105_v28 }
 0x4ff   :  { %v2880_v2 = vpop.f32.mrb[96].mxu0 }
 0x500   :  { %v14621_v44 = vadd.f32 %v14289_v9, %v2880_v2  ;;  %v2882_v60 = vpop.f32.mrb[97].mxu0  ;;  %v14635_v9 = vld [vmem:[%s20587_s4 + $0xc8] sm:$0xff]  }
 0x501   :  { %v2883_v18 = vpop.f32.mrb[98].mxu0  ;;  %10982 = vmatpush1.bf16.msra.mxu1 %v14635_v9 }
 0x502   :  { %21336 = vst [vmem:[#allocation74_spill] sm:$0xff] %v14621_v44  ;;  %v14627_v46 = vadd.f32 %v14300_v5, %v2883_v18  ;;  %v2885_v37 = vpop.f32.mrb[99].mxu0  ;;  %v3347_v5 = vmul.f32 %v14607_v16, %v14607_v16  ;;  %10967 = vmatprep.subr.bf16.mxu1 %v21105_v28  ;;  %v3349_v30 = vmul.f32 %v14621_v44, %v14621_v44 }
 0x503   :  { %v3277_v37 = vadd.f32 %v3276_v0, %v14607_v16  ;;  %v14670_v0 = vld [vmem:[%s20587_s4 + $0xd8] sm:$0xff]  }
 0x504   :  { %21337 = vst [vmem:[#allocation77_spill] sm:$0xff] %v14627_v46 }
 0x505   :  { %10983 = vmatpush1.bf16.msra.mxu1 %v14651_v24 }
 0x506   :  { %10968 = vmatprep.subr.bf16.mxu1 %v21105_v28 }
 0x507   :  { %v2888_v35 = vpop.f32.mrb[100].mxu0 }
 0x508   :  { %v14645_v2 = vadd.f32 %v21338_v8, %v2888_v35  ;;  %v2890_v60 = vpop.f32.mrb[101].mxu0  ;;  %v3410_v8 = vadd.f32 %v3409_v10, %v3347_v5  ;;  %v3278_v5 = vadd.f32 %v3277_v37, %v14612_v27  ;;  %v3350_v37 = vmul.f32 %v14627_v46, %v14627_v46 }
 0x509   :  { %v2891_v18 = vpop.f32.mrb[102].mxu0  ;;  %v12178_v60 = vld [vmem:[%s20587_s4 + $0x68] sm:$0xff]   ;;  %10984 = vmatpush1.bf16.msra.mxu1 %v14670_v0 }
 0x50a   :  { %21339 = vst [vmem:[#allocation78_spill] sm:$0xff] %v14645_v2  ;;  %v14656_v3 = vadd.f32 %v21340_v47, %v2891_v18  ;;  %v2893_v35 = vpop.f32.mrb[103].mxu0  ;;  %v3411_v10 = vadd.f32 %v3410_v8, %v3348_v55  ;;  %v3279_v47 = vadd.f32 %v3278_v5, %v14621_v44  ;;  %10969 = vmatprep.subr.bf16.mxu1 %v21105_v28  ;;  %v14688_v8 = vld [vmem:[%s20587_s4 + $0xe0] sm:$0xff]   ;;  %v12180_v5 = vld [vmem:[%s20587_s4 + $0x70] sm:$0xff]  }
 0x50b   :  { %5146 = vmatpush1.bf16.msra.mxu0 %v12178_v60  ;;  %v3351_v60 = vmul.f32 %v14645_v2, %v14645_v2 }
 0x50c   :  { %v3412_v27 = vadd.f32 %v3411_v10, %v3349_v30  ;;  %5147 = vmatprep.subr.bf16.mxu0 %v21105_v28  ;;  %v3280_v30 = vadd.f32 %v3279_v47, %v14627_v46  ;;  %v3717_v10 = vld [vmem:[#allocation3 + $0x10] sm:$0x3]  ;;  %v3352_v56 = vmul.f32 %v14656_v3, %v14656_v3 }
 0x50d   :  { %10985 = vmatpush1.bf16.msra.mxu1 %v14688_v8  ;;  %v3922_v47 = vrot.slane %v3717_v10, 1 }
 0x50e   :  { %10970 = vmatprep.subr.bf16.mxu1 %v21105_v28  ;;  %v3281_v46 = vadd.f32 %v3280_v30, %v14645_v2 }
 0x50f   :  { %v2896_v18 = vpop.f32.mrb[104].mxu0  ;;  %5148 = vmatpush1.bf16.msra.mxu0 %v12180_v5 }
 0x510   :  { %v14680_v35 = vadd.f32 %v14346_v51, %v2896_v18  ;;  %v2898_v20 = vpop.f32.mrb[105].mxu0  ;;  %v3413_v18 = vadd.f32 %v3412_v27, %v3350_v37  ;;  %5149 = vmatprep.subr.bf16.mxu0 %v21105_v28  ;;  %v14718_v27 = vld [vmem:[%s20587_s4 + $0xf0] sm:$0xff]   ;;  %v3282_v2 = vadd.f32 %v3281_v46, %v14656_v3 }
 0x511   :  { %v2899_v16 = vpop.f32.mrb[106].mxu0  ;;  %v12314_v20 = vld [vmem:[#allocation2] sm:$0xff] }
 0x512   :  { %v14692_v55 = vadd.f32 %v14356_v32, %v2899_v16  ;;  %v2901_v51 = vpop.f32.mrb[107].mxu0  ;;  %v14705_v32 = vld [vmem:[%s20587_s4 + $0xe8] sm:$0xff]   ;;  %v12181_v16 = vld [vmem:[%s20587_s4 + $0x78] sm:$0xff]   ;;  %v3414_v5 = vadd.f32 %v3413_v18, %v3351_v60  ;;  %v14722_v23 = vpack.c.bf16 %v12314_v20, %v12314_v20  ;;  %v3283_v46 = vadd.f32 %v3282_v2, %v14680_v35 }
 0x513   :  { %v14711_v51 = vrot.slane %v12314_v20, 1  ;;  %10986 = vmatpush1.bf16.msra.mxu1 %v14705_v32  ;;  %5150 = vmatpush1.bf16.msra.mxu0 %v12181_v16  ;;  %v3353_v20 = vmul.f32 %v14680_v35, %v14680_v35  ;;  %v21343_v16 = vld [vmem:[#allocation49_spill] sm:$0xff] }
 0x514   :  { %21342 = vst [vmem:[#allocation82_spill] sm:$0xff] %v14722_v23  ;;  %10971 = vmatprep.subr.bf16.mxu1 %v21105_v28  ;;  %5408 = vmatprep.subr.bf16.mxu0 %v21105_v28 }
 0x515   :  { %21341 = vst [vmem:[#allocation79_spill] sm:$0xff] %v14711_v51  ;;  %v3923_v37 = vsel %vm585_vm0, %v14711_v51, %v3922_v47 }
 0x516   :  { %v4436_v30 = vpack.c.bf16 %v3923_v37, %v14711_v51 }
 0x517   :  { %v2904_v44 = vpop.f32.mrb[108].mxu0  ;;  %10987 = vmatpush1.bf16.msra.mxu1 %v14718_v27 }
 0x518   :  { %v14727_v10 = vadd.f32 %v14342_v19, %v2904_v44  ;;  %v2906_v60 = vpop.f32.mrb[109].mxu0  ;;  %5151 = vmatprep.mubr.bf16.mxu0 %v4436_v30  ;;  %v14743_v19 = vld [vmem:[%s20587_s4 + $0xf8] sm:$0xff]   ;;  %v3415_v44 = vadd.f32 %v3414_v5, %v3352_v56  ;;  %10972 = vmatprep.subr.bf16.mxu1 %v21105_v28 }
 0x519   :  { %v2907_v18 = vpop.f32.mrb[110].mxu0  ;;  %5152 = vmatmul.mubr.bf16.vlgmr.msra.gmra.mrb[128].mxu0 %v14722_v23  ;;  %v3284_v60 = vadd.f32 %v3283_v46, %v14692_v55 }
 0x51a   :  { %v14736_v47 = vadd.f32 %v14353_v17, %v2907_v18  ;;  %v2909_v43 = vpop.f32.mrb[111].mxu0  ;;  %5409 = vmatpush1.bf16.msra.mxu0 %v21343_v16  ;;  %v3354_v17 = vmul.f32 %v14692_v55, %v14692_v55  ;;  %v3355_v56 = vmul.f32 %v14727_v10, %v14727_v10 }
 0x51b   :  { %5410 = vmatprep.subr.bf16.mxu0 %v21105_v28  ;;  %v3416_v43 = vadd.f32 %v3415_v44, %v3353_v20  ;;  %10988 = vmatpush1.bf16.msra.mxu1 %v14743_v19  ;;  %v3285_v18 = vadd.f32 %v3284_v60, %v14727_v10 }
 0x51c   :  { %5697 = vmatprep.subr.bf16.mxu1 %v21105_v28 }
 0x51d   :  { %v3417_v20 = vadd.f32 %v3416_v43, %v3354_v17 }
 0x51e   :  { %5411 = vmatpush1.bf16.msra.mxu0 %v14308_v45  ;;  %v3286_v45 = vadd.f32 %v3285_v18, %v14736_v47 }
 0x51f   :  { %v2912_v37 = vpop.f32.mrb[112].mxu0  ;;  %5412 = vmatprep.subr.bf16.mxu0 %v21105_v28  ;;  %v3418_v16 = vadd.f32 %v3417_v20, %v3355_v56  ;;  %v21345_v56 = vld [vmem:[#allocation62_spill] sm:$0xff] }
 0x520   :  { %v14756_v2 = vadd.f32 %v14400_v7, %v2912_v37  ;;  %v2914_v5 = vpop.f32.mrb[113].mxu0  ;;  %v3356_v7 = vmul.f32 %v14736_v47, %v14736_v47  ;;  %v21344_v37 = vld [vmem:[#allocation59_spill] sm:$0xff] }
 0x521   :  { %v2915_v30 = vpop.f32.mrb[114].mxu0 }
 0x522   :  { %v14763_v44 = vadd.f32 %v14411_v61, %v2915_v30  ;;  %v2917_v46 = vpop.f32.mrb[115].mxu0  ;;  %5413 = vmatpush1.bf16.msra.mxu0 %v21344_v37  ;;  %v3357_v5 = vmul.f32 %v14756_v2, %v14756_v2  ;;  %v3419_v60 = vadd.f32 %v3418_v16, %v3356_v7  ;;  %v3287_v61 = vadd.f32 %v3286_v45, %v14756_v2 }
 0x523   :  { %5414 = vmatprep.subr.bf16.mxu0 %v21105_v28 }
 0x524   :  { %v3358_v20 = vmul.f32 %v14763_v44, %v14763_v44  ;;  %v3420_v18 = vadd.f32 %v3419_v60, %v3357_v5  ;;  %v3288_v16 = vadd.f32 %v3287_v61, %v14763_v44  ;;  %v21346_v61 = vld [vmem:[#allocation63_spill] sm:$0xff] }
 0x526   :  { %5415 = vmatpush1.bf16.msra.mxu0 %v21345_v56  ;;  %v3421_v7 = vadd.f32 %v3420_v18, %v3358_v20 }
 0x527   :  { %v2920_v23 = vpop.f32.mrb[116].mxu0  ;;  %5416 = vmatprep.subr.bf16.mxu0 %v21105_v28 }
 0x528   :  { %v14773_v17 = vadd.f32 %v14396_v21, %v2920_v23  ;;  %v2922_v43 = vpop.f32.mrb[117].mxu0 }
 0x529   :  { %v2923_v30 = vpop.f32.mrb[118].mxu0 }
 0x52a   :  { %v14781_v46 = vadd.f32 %v14406_v11, %v2923_v30  ;;  %v2925_v37 = vpop.f32.mrb[119].mxu0  ;;  %v3359_v21 = vmul.f32 %v14773_v17, %v14773_v17  ;;  %5417 = vmatpush1.bf16.msra.mxu0 %v14394_v6  ;;  %v3289_v23 = vadd.f32 %v3288_v16, %v14773_v17 }
 0x52b   :  { %5418 = vmatprep.subr.bf16.mxu0 %v21105_v28 }
 0x52c   :  { %v3422_v43 = vadd.f32 %v3421_v7, %v3359_v21  ;;  %v3360_v5 = vmul.f32 %v14781_v46, %v14781_v46  ;;  %v3290_v6 = vadd.f32 %v3289_v23, %v14781_v46 }
 0x52e   :  { %5419 = vmatpush1.bf16.msra.mxu0 %v21346_v61  ;;  %v3423_v37 = vadd.f32 %v3422_v43, %v3360_v5 }
 0x52f   :  { %v2928_v45 = vpop.f32.mrb[120].mxu0  ;;  %5420 = vmatprep.subr.bf16.mxu0 %v21105_v28 }
 0x530   :  { %v14792_v11 = vadd.f32 %v14453_v62, %v2928_v45  ;;  %v2930_v60 = vpop.f32.mrb[121].mxu0 }
 0x531   :  { %v2931_v56 = vpop.f32.mrb[122].mxu0 }
 0x532   :  { %v14798_v30 = vadd.f32 %v14465_v22, %v2931_v56  ;;  %v2933_v20 = vpop.f32.mrb[123].mxu0  ;;  %v3361_v18 = vmul.f32 %v14792_v11, %v14792_v11  ;;  %v3291_v16 = vadd.f32 %v3290_v6, %v14792_v11  ;;  %5421 = vmatpush1.bf16.msra.mxu0 %v14449_v1 }
 0x533   :  { %5422 = vmatprep.subr.bf16.mxu0 %v21105_v28 }
 0x534   :  { %v3362_v62 = vmul.f32 %v14798_v30, %v14798_v30  ;;  %v3424_v21 = vadd.f32 %v3423_v37, %v3361_v18  ;;  %v3292_v22 = vadd.f32 %v3291_v16, %v14798_v30 }
 0x536   :  { %5423 = vmatpush1.bf16.msra.mxu0 %v14473_v48  ;;  %v3425_v60 = vadd.f32 %v3424_v21, %v3362_v62 }
 0x537   :  { %v2936_v7 = vpop.f32.mrb[124].mxu0  ;;  %5424 = vmatprep.subr.bf16.mxu0 %v21105_v28 }
 0x538   :  { %v14808_v23 = vadd.f32 %v14451_v38, %v2936_v7  ;;  %v2938_v45 = vpop.f32.mrb[125].mxu0 }
 0x539   :  { %v2939_v43 = vpop.f32.mrb[126].mxu0 }
 0x53a   :  { %v3293_v1 = vadd.f32 %v3292_v22, %v14808_v23  ;;  %v3363_v5 = vmul.f32 %v14808_v23, %v14808_v23  ;;  %v3229_v61 = vadd.f32 %v14460_v40, %v2939_v43  ;;  %v2941_v56 = vpop.f32.mrb[127].mxu0  ;;  %5425 = vmatpush1.bf16.msra.mxu0 %v14574_v63 }
 0x53b   :  { %5426 = vmatprep.subr.bf16.mxu0 %v21105_v28 }
 0x53c   :  { %v3426_v6 = vadd.f32 %v3425_v60, %v3363_v5  ;;  %v3294_v38 = vadd.f32 %v3293_v1, %v3229_v61  ;;  %v3364_v20 = vmul.f32 %v3229_v61, %v3229_v61 }
 0x53e   :  { %v3295_v48 = vrot.slane %v3294_v38, 4  ;;  %v3427_v18 = vadd.f32 %v3426_v6, %v3364_v20  ;;  %5427 = vmatpush1.bf16.msra.mxu0 %v14635_v9 }
 0x53f   :  { %5428 = vmatprep.subr.bf16.mxu0 %v21105_v28 }
 0x540   :  { %v3296_v37 = vadd.f32 %v3295_v48, %v3294_v38  ;;  %v3428_v16 = vrot.slane %v3427_v18, 4 }
 0x542   :  { %v3297_v7 = vrot.slane %v3296_v37, 2  ;;  %v3429_v62 = vadd.f32 %v3428_v16, %v3427_v18  ;;  %5429 = vmatpush1.bf16.msra.mxu0 %v14651_v24  ;;  %v3443_v18 = vld [vmem:[%s20589_s3] sm:$0x1] }
 0x543   :  { %5430 = vmatprep.subr.bf16.mxu0 %v21105_v28 }
 0x544   :  { %v3298_v21 = vadd.f32 %v3297_v7, %v3296_v37  ;;  %v3430_v40 = vrot.slane %v3429_v62, 2  ;;  %v21348_v7 = vld [vmem:[#allocation23_spill] sm:$0xff] }
 0x546   :  { %v3299_v22 = vrot.slane %v3298_v21, 1  ;;  %v3431_v63 = vadd.f32 %v3430_v40, %v3429_v62  ;;  %5431 = vmatpush1.bf16.msra.mxu0 %v14670_v0  ;;  %v3447_v0 = vlaneseq }
 0x547   :  { %5432 = vmatprep.subr.bf16.mxu0 %v21105_v28 }
 0x548   :  { %v3300_v45 = vadd.f32 %v3299_v22, %v3298_v21  ;;  %v3432_v43 = vrot.slane %v3431_v63, 1  ;;  %v3448_v38 = vshrl.u32 %v3447_v0, 7  ;;  %v21349_v21 = vld [vmem:[#allocation24_spill] sm:$0xff]  ;;  %v21350_v22 = vld [vmem:[#allocation39_spill] sm:$0xff] }
 0x54a   :  { %v3433_v1 = vadd.f32 %v3432_v43, %v3431_v63  ;;  %v3434_v9 = vmul.f32 0.001953125, %v3300_v45  ;;  %5433 = vmatpush1.bf16.msra.mxu0 %v14688_v8  ;;  %v3439_v8 = vld [vmem:[%s20588_s2] sm:$0x1]  ;;  %v14835_v20 = vsub.s32 0, %v3448_v38  ;;  %v21351_v45 = vld [vmem:[#allocation29_spill] sm:$0xff] }
 0x54b   :  { %5434 = vmatprep.subr.bf16.mxu0 %v21105_v28  ;;  %v21356_v38 = vld [vmem:[#allocation36_spill] sm:$0xff] }
 0x54c   :  { %v3435_v5 = vmul.f32 0.001953125, %v3433_v1  ;;  %v3436_v60 = vmul.f32 %v3434_v9, %v3434_v9  ;;  %21347 = vst [vmem:[#allocation83_spill] sm:$0xff] %v14835_v20  ;;  %v21352_v1 = vld [vmem:[#allocation30_spill] sm:$0xff] }
 0x54e   :  { %v3437_v56 = vsub.f32 %v3435_v5, %v3436_v60  ;;  %5435 = vmatpush1.bf16.msra.mxu0 %v14705_v32 }
 0x54f   :  { %5436 = vmatprep.subr.bf16.mxu0 %v21105_v28 }
 0x550   :  { %v3438_v24 = vmax.f32 %v3437_v56, 0.0  ;;  %v21354_v56 = vld [vmem:[#allocation33_spill] sm:$0xff] }
 0x552   :  { %v3440_v6 = vadd.f32 1e-05, %v3438_v24  ;;  %5437 = vmatpush1.bf16.msra.mxu0 %v14718_v27 }
 0x553   :  { %5438 = vmatprep.subr.bf16.mxu0 %v21105_v28  ;;  %v21374_v28 = vld [vmem:[#allocation68_spill] sm:$0xff] }
 0x554   :  { %12295 = vrsqrt.f32 %v3440_v6  ;;  %v21355_v6 = vld [vmem:[#allocation34_spill] sm:$0xff] }
 0x556   :  { %5439 = vmatpush1.bf16.msra.mxu0 %v14743_v19 }
 0x55e   :  { %v12296_v48 = vpop.eup %12295 }
 0x55f   :  { %v3442_v32 = vmul.f32 %v12296_v48, %v3439_v8  ;;  %v21357_v48 = vld [vmem:[#allocation37_spill] sm:$0xff] }
 0x561   :  { %v3444_v37 = vmul.f32 %v3442_v32, %v3434_v9  ;;  %v14841_v27 = vrot.slane %v3442_v32, %v14835_v20 }
 0x563   :  { %v3445_v16 = vsub.f32 %v3443_v18, %v3444_v37  ;;  %v3515_v19 = vmul.f32 %v14841_v27, %v3229_v61  ;;  %v14846_v62 = vmul.f32 %v14841_v27, %v21348_v7  ;;  %v14850_v40 = vmul.f32 %v14841_v27, %v21349_v21  ;;  %v21353_v61 = vld [vmem:[#allocation31_spill] sm:$0xff]  ;;  %v21358_v18 = vld [vmem:[#allocation38_spill] sm:$0xff] }
 0x564   :  { %v14854_v63 = vmul.f32 %v14841_v27, %v21350_v22  ;;  %v14858_v43 = vmul.f32 %v14841_v27, %v21351_v45  ;;  %v14862_v9 = vmul.f32 %v14841_v27, %v21352_v1  ;;  %v14866_v5 = vmul.f32 %v14841_v27, %v21353_v61  ;;  %v21360_v21 = vld [vmem:[#allocation42_spill] sm:$0xff]  ;;  %v21361_v1 = vld [vmem:[#allocation43_spill] sm:$0xff] }
 0x565   :  { %v14869_v60 = vrot.slane %v3445_v16, %v14835_v20  ;;  %v14873_v24 = vmul.f32 %v14841_v27, %v21354_v56  ;;  %v14877_v0 = vmul.f32 %v14841_v27, %v21355_v6  ;;  %v14881_v8 = vmul.f32 %v14841_v27, %v21356_v38  ;;  %v21359_v16 = vld [vmem:[#allocation41_spill] sm:$0xff]  ;;  %v21362_v56 = vld [vmem:[#allocation47_spill] sm:$0xff]  ;;  %v21363_v38 = vld [vmem:[#allocation48_spill] sm:$0xff] }
 0x566   :  { %v14885_v32 = vmul.f32 %v14841_v27, %v21357_v48  ;;  %v14889_v37 = vmul.f32 %v14841_v27, %v21358_v18  ;;  %v14893_v7 = vmul.f32 %v14841_v27, %v21359_v16  ;;  %v14897_v22 = vmul.f32 %v14841_v27, %v21360_v21  ;;  %v21364_v18 = vld [vmem:[#allocation53_spill] sm:$0xff] }
 0x567   :  { %v3585_v45 = vadd.f32 %v14869_v60, %v3515_v19  ;;  %v14902_v61 = vmul.f32 %v14841_v27, %v21361_v1  ;;  %v14906_v6 = vmul.f32 %v14841_v27, %v21362_v56  ;;  %v14910_v48 = vmul.f32 %v14841_v27, %v21363_v38  ;;  %v21365_v21 = vld [vmem:[#allocation57_spill] sm:$0xff]  ;;  %v21366_v19 = vld [vmem:[#allocation58_spill] sm:$0xff] }
 0x568   :  { %v14914_v16 = vmul.f32 %v14841_v27, %v21364_v18  ;;  %v14918_v20 = vmul.f32 %v14841_v27, %v21365_v21  ;;  %v14922_v1 = vmul.f32 %v14841_v27, %v21366_v19  ;;  %v14926_v56 = vmul.f32 %v14841_v27, %v14332_v15 }
 0x569   :  { %v3649_v51 = vmax.f32 %v3585_v45, 0.0  ;;  %v14930_v38 = vmul.f32 %v14841_v27, %v14350_v36  ;;  %v14934_v18 = vmul.f32 %v14841_v27, %v14360_v50  ;;  %v14938_v21 = vmul.f32 %v14841_v27, %v14380_v34 }
 0x56a   :  { %v14942_v19 = vmul.f32 %v14841_v27, %v14385_v59  ;;  %v14946_v15 = vmul.f32 %v14841_v27, %v14403_v14  ;;  %v14950_v36 = vmul.f32 %v14841_v27, %v14415_v58  ;;  %v14954_v50 = vmul.f32 %v14841_v27, %v14435_v49 }
 0x56b   :  { %3714 = vst [vmem:[#allocation3 + $0x339] sm:$0xff] %v3649_v51  ;;  %v14958_v34 = vmul.f32 %v14841_v27, %v14439_v53  ;;  %v14962_v59 = vmul.f32 %v14841_v27, %v14457_v4  ;;  %v14966_v14 = vmul.f32 %v14841_v27, %v14468_v57  ;;  %v14970_v58 = vmul.f32 %v14841_v27, %v14488_v42  ;;  %v21367_v51 = vld [vmem:[#allocation64_spill] sm:$0xff] }
 0x56c   :  { %v14974_v49 = vmul.f32 %v14841_v27, %v14494_v29  ;;  %v14978_v53 = vmul.f32 %v14841_v27, %v14503_v25  ;;  %v14982_v4 = vmul.f32 %v14841_v27, %v14507_v41  ;;  %v14986_v57 = vmul.f32 %v14841_v27, %v14516_v13 }
 0x56d   :  { %v14990_v42 = vmul.f32 %v14841_v27, %v14521_v31  ;;  %v14994_v29 = vmul.f32 %v14841_v27, %v21367_v51  ;;  %v14998_v25 = vmul.f32 %v14841_v27, %v14536_v39  ;;  %v15002_v41 = vmul.f32 %v14841_v27, %v14545_v33  ;;  %v21372_v51 = vld [vmem:[#allocation67_spill] sm:$0xff] }
 0x56e   :  { %v15006_v13 = vmul.f32 %v14841_v27, %v14549_v12  ;;  %v15010_v31 = vmul.f32 %v14841_v27, %v14558_v52  ;;  %v15014_v45 = vmul.f32 %v14841_v27, %v14563_v26  ;;  %v15018_v39 = vmul.f32 %v14841_v27, %v14577_v54 }
 0x56f   :  { %v15022_v33 = vmul.f32 %v14841_v27, %v21372_v51  ;;  %v15026_v12 = vmul.f32 %v14841_v27, %v21374_v28 }
 0x570   :  { %21368 = vst [vmem:[#allocation84_spill] sm:$0xff] %v15006_v13  ;;  %21369 = vst [vmem:[#allocation87_spill] sm:$0xff] %v15010_v31  ;;  %v21376_v13 = vld [vmem:[#allocation69_spill] sm:$0xff]  ;;  %v21377_v31 = vld [vmem:[#allocation72_spill] sm:$0xff] }
 0x571   :  { %21370 = vst [vmem:[#allocation88_spill] sm:$0xff] %v15014_v45  ;;  %21371 = vst [vmem:[#allocation91_spill] sm:$0xff] %v15018_v39  ;;  %v15030_v52 = vmul.f32 %v14841_v27, %v21376_v13  ;;  %v15034_v26 = vmul.f32 %v14841_v27, %v21377_v31  ;;  %v21378_v45 = vld [vmem:[#allocation73_spill] sm:$0xff]  ;;  %v21379_v39 = vld [vmem:[#allocation74_spill] sm:$0xff]  ;;  %v15054_v31 = vmul.f32 %v14841_v27, %v14656_v3 }
 0x572   :  { %21373 = vst [vmem:[#allocation92_spill] sm:$0xff] %v15022_v33  ;;  %21375 = vst [vmem:[#allocation93_spill] sm:$0xff] %v15026_v12  ;;  %v15038_v54 = vmul.f32 %v14841_v27, %v21378_v45  ;;  %v15042_v51 = vmul.f32 %v14841_v27, %v21379_v39  ;;  %v21380_v33 = vld [vmem:[#allocation77_spill] sm:$0xff]  ;;  %v21381_v12 = vld [vmem:[#allocation78_spill] sm:$0xff]  ;;  %v15058_v45 = vmul.f32 %v14841_v27, %v14680_v35 }
 0x573   :  { %v15046_v28 = vmul.f32 %v14841_v27, %v21380_v33  ;;  %v15050_v13 = vmul.f32 %v14841_v27, %v21381_v12  ;;  %v15062_v39 = vmul.f32 %v14841_v27, %v14692_v55  ;;  %v15066_v33 = vmul.f32 %v14841_v27, %v14727_v10 }
 0x574   :  { %v15070_v12 = vmul.f32 %v14841_v27, %v14736_v47  ;;  %v15074_v3 = vmul.f32 %v14841_v27, %v14756_v2  ;;  %v15078_v35 = vmul.f32 %v14841_v27, %v14763_v44  ;;  %v15082_v55 = vmul.f32 %v14841_v27, %v14773_v17 }
 0x575   :  { %v15086_v10 = vmul.f32 %v14841_v27, %v14781_v46  ;;  %v15090_v47 = vmul.f32 %v14841_v27, %v14792_v11  ;;  %v15094_v2 = vmul.f32 %v14841_v27, %v14798_v30  ;;  %v15098_v44 = vmul.f32 %v14841_v27, %v14808_v23 }
 0x576   :  { %v15102_v17 = vadd.f32 %v14869_v60, %v14846_v62  ;;  %v15106_v46 = vadd.f32 %v14869_v60, %v14850_v40  ;;  %v15110_v11 = vadd.f32 %v14869_v60, %v14854_v63  ;;  %v15114_v30 = vadd.f32 %v14869_v60, %v14858_v43 }
 0x577   :  { %v15118_v23 = vadd.f32 %v14869_v60, %v14862_v9  ;;  %v15122_v27 = vadd.f32 %v14869_v60, %v14866_v5  ;;  %v15126_v62 = vadd.f32 %v14869_v60, %v14873_v24  ;;  %v15130_v40 = vadd.f32 %v14869_v60, %v14877_v0 }
 0x578   :  { %v15134_v63 = vadd.f32 %v14869_v60, %v14881_v8  ;;  %v15138_v43 = vadd.f32 %v14869_v60, %v14885_v32  ;;  %v15142_v9 = vadd.f32 %v14869_v60, %v14889_v37  ;;  %v15146_v5 = vadd.f32 %v14869_v60, %v14893_v7 }
 0x579   :  { %v15150_v24 = vadd.f32 %v14869_v60, %v14897_v22  ;;  %v15154_v0 = vadd.f32 %v14869_v60, %v14902_v61  ;;  %v15158_v8 = vadd.f32 %v14869_v60, %v14906_v6  ;;  %v15162_v32 = vadd.f32 %v14869_v60, %v14910_v48 }
 0x57a   :  { %v15166_v37 = vadd.f32 %v14869_v60, %v14914_v16  ;;  %v15170_v7 = vadd.f32 %v14869_v60, %v14918_v20  ;;  %v15174_v22 = vadd.f32 %v14869_v60, %v14922_v1  ;;  %v15178_v61 = vadd.f32 %v14869_v60, %v14926_v56 }
 0x57b   :  { %v15182_v6 = vadd.f32 %v14869_v60, %v14930_v38  ;;  %v15186_v48 = vadd.f32 %v14869_v60, %v14934_v18  ;;  %v15190_v20 = vadd.f32 %v14869_v60, %v14938_v21  ;;  %v15194_v16 = vadd.f32 %v14869_v60, %v14942_v19 }
 0x57c   :  { %v15198_v1 = vadd.f32 %v14869_v60, %v14946_v15  ;;  %v15202_v56 = vadd.f32 %v14869_v60, %v14950_v36  ;;  %v15206_v38 = vadd.f32 %v14869_v60, %v14954_v50  ;;  %v15210_v18 = vadd.f32 %v14869_v60, %v14958_v34 }
 0x57d   :  { %v15214_v21 = vadd.f32 %v14869_v60, %v14962_v59  ;;  %v15218_v19 = vadd.f32 %v14869_v60, %v14966_v14  ;;  %v15222_v15 = vadd.f32 %v14869_v60, %v14970_v58  ;;  %v15226_v36 = vadd.f32 %v14869_v60, %v14974_v49 }
 0x57e   :  { %v15230_v50 = vadd.f32 %v14869_v60, %v14978_v53  ;;  %v15234_v34 = vadd.f32 %v14869_v60, %v14982_v4  ;;  %v15238_v59 = vadd.f32 %v14869_v60, %v14986_v57  ;;  %v15242_v14 = vadd.f32 %v14869_v60, %v14990_v42  ;;  %v21387_v4 = vld [vmem:[#allocation84_spill] sm:$0xff] }
 0x57f   :  { %v15246_v58 = vadd.f32 %v14869_v60, %v14994_v29  ;;  %v15250_v49 = vadd.f32 %v14869_v60, %v14998_v25  ;;  %v15254_v53 = vadd.f32 %v14869_v60, %v15002_v41  ;;  %v15258_v57 = vadd.f32 %v14869_v60, %v21387_v4 }
 0x580   :  { %21382 = vst [vmem:[#allocation96_spill] sm:$0xff] %v15238_v59  ;;  %21383 = vst [vmem:[#allocation97_spill] sm:$0xff] %v15242_v14  ;;  %v21388_v59 = vld [vmem:[#allocation87_spill] sm:$0xff]  ;;  %v21389_v14 = vld [vmem:[#allocation88_spill] sm:$0xff] }
 0x581   :  { %21384 = vst [vmem:[#allocation98_spill] sm:$0xff] %v15246_v58  ;;  %21385 = vst [vmem:[#allocation4_spill] sm:$0xff] %v15250_v49  ;;  %v15262_v42 = vadd.f32 %v14869_v60, %v21388_v59  ;;  %v15266_v29 = vadd.f32 %v14869_v60, %v21389_v14  ;;  %v21390_v58 = vld [vmem:[#allocation91_spill] sm:$0xff]  ;;  %v21391_v49 = vld [vmem:[#allocation92_spill] sm:$0xff]  ;;  %v15282_v59 = vadd.f32 %v14869_v60, %v15030_v52 }
 0x582   :  { %21386 = vst [vmem:[#allocation45_spill] sm:$0xff] %v15254_v53  ;;  %v15270_v25 = vadd.f32 %v14869_v60, %v21390_v58  ;;  %v15274_v41 = vadd.f32 %v14869_v60, %v21391_v49  ;;  %v21392_v53 = vld [vmem:[#allocation93_spill] sm:$0xff]  ;;  %v15286_v14 = vadd.f32 %v14869_v60, %v15034_v26  ;;  %v15290_v58 = vadd.f32 %v14869_v60, %v15038_v54 }
 0x583   :  { %v15278_v4 = vadd.f32 %v14869_v60, %v21392_v53  ;;  %v15294_v49 = vadd.f32 %v14869_v60, %v15042_v51  ;;  %v15298_v53 = vadd.f32 %v14869_v60, %v15046_v28  ;;  %v15302_v52 = vadd.f32 %v14869_v60, %v15050_v13 }
 0x584   :  { %v15306_v26 = vadd.f32 %v14869_v60, %v15054_v31  ;;  %v15310_v54 = vadd.f32 %v14869_v60, %v15058_v45  ;;  %v15314_v51 = vadd.f32 %v14869_v60, %v15062_v39  ;;  %v15318_v28 = vadd.f32 %v14869_v60, %v15066_v33 }
 0x585   :  { %v15322_v13 = vadd.f32 %v14869_v60, %v15070_v12  ;;  %v15326_v31 = vadd.f32 %v14869_v60, %v15074_v3  ;;  %v15330_v45 = vadd.f32 %v14869_v60, %v15078_v35  ;;  %v15334_v39 = vadd.f32 %v14869_v60, %v15082_v55 }
 0x586   :  { %v15338_v33 = vadd.f32 %v14869_v60, %v15086_v10  ;;  %v15342_v12 = vadd.f32 %v14869_v60, %v15090_v47  ;;  %v15346_v3 = vadd.f32 %v14869_v60, %v15094_v2  ;;  %v15350_v35 = vadd.f32 %v14869_v60, %v15098_v44 }
 0x587   :  { %21393 = vst [vmem:[#allocation5_spill] sm:$0xff] %v15330_v45  ;;  %21394 = vst [vmem:[#allocation7_spill] sm:$0xff] %v15334_v39  ;;  %v3586_v45 = vmax.f32 %v15102_v17, 0.0  ;;  %v3587_v55 = vmax.f32 %v15106_v46, 0.0  ;;  %v3588_v39 = vmax.f32 %v15110_v11, 0.0  ;;  %v3589_v10 = vmax.f32 %v15114_v30, 0.0 }
 0x588   :  { %21395 = vst [vmem:[#allocation9_spill] sm:$0xff] %v15338_v33  ;;  %21396 = vst [vmem:[#allocation10_spill] sm:$0xff] %v15342_v12  ;;  %v3590_v33 = vmax.f32 %v15118_v23, 0.0  ;;  %v3591_v47 = vmax.f32 %v15122_v27, 0.0  ;;  %v3592_v12 = vmax.f32 %v15126_v62, 0.0  ;;  %v3593_v2 = vmax.f32 %v15130_v40, 0.0 }
 0x589   :  { %21397 = vst [vmem:[#allocation11_spill] sm:$0xff] %v15346_v3  ;;  %v3594_v3 = vmax.f32 %v15134_v63, 0.0  ;;  %3651 = vst [vmem:[#allocation3 + $0x19] sm:$0xff] %v3586_v45  ;;  %v3595_v60 = vmax.f32 %v15138_v43, 0.0  ;;  %v3596_v44 = vmax.f32 %v15142_v9, 0.0  ;;  %v3597_v17 = vmax.f32 %v15146_v5, 0.0 }
 0x58a   :  { %v3598_v46 = vmax.f32 %v15150_v24, 0.0  ;;  %3652 = vst [vmem:[#allocation3 + $0x21] sm:$0xff] %v3587_v55  ;;  %3653 = vst [vmem:[#allocation3 + $0x31] sm:$0xff] %v3588_v39  ;;  %v3599_v11 = vmax.f32 %v15154_v0, 0.0  ;;  %v3600_v30 = vmax.f32 %v15158_v8, 0.0  ;;  %v3601_v23 = vmax.f32 %v15162_v32, 0.0 }
 0x58b   :  { %3654 = vst [vmem:[#allocation3 + $0x39] sm:$0xff] %v3589_v10  ;;  %3655 = vst [vmem:[#allocation3 + $0x49] sm:$0xff] %v3590_v33  ;;  %v3602_v27 = vmax.f32 %v15166_v37, 0.0  ;;  %v3603_v62 = vmax.f32 %v15170_v7, 0.0  ;;  %v3604_v40 = vmax.f32 %v15174_v22, 0.0  ;;  %v3605_v63 = vmax.f32 %v15178_v61, 0.0 }
 0x58c   :  { %3656 = vst [vmem:[#allocation3 + $0x51] sm:$0xff] %v3591_v47  ;;  %3657 = vst [vmem:[#allocation3 + $0x61] sm:$0xff] %v3592_v12  ;;  %v3606_v43 = vmax.f32 %v15182_v6, 0.0  ;;  %v3607_v9 = vmax.f32 %v15186_v48, 0.0  ;;  %v3608_v5 = vmax.f32 %v15190_v20, 0.0  ;;  %v3609_v24 = vmax.f32 %v15194_v16, 0.0 }
 0x58d   :  { %3658 = vst [vmem:[#allocation3 + $0x69] sm:$0xff] %v3593_v2  ;;  %3659 = vst [vmem:[#allocation3 + $0x79] sm:$0xff] %v3594_v3  ;;  %v3610_v0 = vmax.f32 %v15198_v1, 0.0  ;;  %v3611_v8 = vmax.f32 %v15202_v56, 0.0  ;;  %v3612_v32 = vmax.f32 %v15206_v38, 0.0  ;;  %v3613_v37 = vmax.f32 %v15210_v18, 0.0 }
 0x58e   :  { %3660 = vst [vmem:[#allocation3 + $0x81] sm:$0xff] %v3595_v60  ;;  %3661 = vst [vmem:[#allocation3 + $0x91] sm:$0xff] %v3596_v44  ;;  %v3614_v7 = vmax.f32 %v15214_v21, 0.0  ;;  %v3615_v22 = vmax.f32 %v15218_v19, 0.0  ;;  %v3616_v61 = vmax.f32 %v15222_v15, 0.0  ;;  %v3617_v6 = vmax.f32 %v15226_v36, 0.0 }
 0x58f   :  { %3662 = vst [vmem:[#allocation3 + $0x99] sm:$0xff] %v3597_v17  ;;  %3663 = vst [vmem:[#allocation3 + $0xa9] sm:$0xff] %v3598_v46  ;;  %v3618_v48 = vmax.f32 %v15230_v50, 0.0  ;;  %v3619_v20 = vmax.f32 %v15234_v34, 0.0  ;;  %v21398_v16 = vld [vmem:[#allocation96_spill] sm:$0xff]  ;;  %v21399_v56 = vld [vmem:[#allocation97_spill] sm:$0xff] }
 0x590   :  { %3664 = vst [vmem:[#allocation3 + $0xb1] sm:$0xff] %v3599_v11  ;;  %3665 = vst [vmem:[#allocation3 + $0xc1] sm:$0xff] %v3600_v30  ;;  %v3620_v1 = vmax.f32 %v21398_v16, 0.0  ;;  %v3621_v38 = vmax.f32 %v21399_v56, 0.0  ;;  %v21400_v18 = vld [vmem:[#allocation98_spill] sm:$0xff]  ;;  %v21401_v19 = vld [vmem:[#allocation4_spill] sm:$0xff] }
 0x591   :  { %3666 = vst [vmem:[#allocation3 + $0xc9] sm:$0xff] %v3601_v23  ;;  %3667 = vst [vmem:[#allocation3 + $0xd9] sm:$0xff] %v3602_v27  ;;  %v3622_v21 = vmax.f32 %v21400_v18, 0.0  ;;  %v3623_v15 = vmax.f32 %v21401_v19, 0.0  ;;  %v21402_v36 = vld [vmem:[#allocation45_spill] sm:$0xff]  ;;  %v3625_v45 = vmax.f32 %v15258_v57, 0.0 }
 0x592   :  { %3668 = vst [vmem:[#allocation3 + $0xe1] sm:$0xff] %v3603_v62  ;;  %3669 = vst [vmem:[#allocation3 + $0xf1] sm:$0xff] %v3604_v40  ;;  %v3624_v50 = vmax.f32 %v21402_v36, 0.0  ;;  %v3626_v39 = vmax.f32 %v15262_v42, 0.0  ;;  %v3627_v34 = vmax.f32 %v15266_v29, 0.0  ;;  %v3628_v33 = vmax.f32 %v15270_v25, 0.0 }
 0x593   :  { %3670 = vst [vmem:[#allocation3 + $0xf9] sm:$0xff] %v3605_v63  ;;  %3671 = vst [vmem:[#allocation3 + $0x109] sm:$0xff] %v3606_v43  ;;  %v3629_v12 = vmax.f32 %v15274_v41, 0.0  ;;  %v3630_v3 = vmax.f32 %v15278_v4, 0.0  ;;  %v3631_v57 = vmax.f32 %v15282_v59, 0.0  ;;  %v3632_v42 = vmax.f32 %v15286_v14, 0.0 }
 0x594   :  { %3672 = vst [vmem:[#allocation3 + $0x111] sm:$0xff] %v3607_v9  ;;  %3673 = vst [vmem:[#allocation3 + $0x121] sm:$0xff] %v3608_v5  ;;  %v3633_v55 = vmax.f32 %v15290_v58, 0.0  ;;  %v3634_v10 = vmax.f32 %v15294_v49, 0.0  ;;  %v15401_v29 = vld [vmem:[#allocation3 + $0x18] sm:$0xff]  ;;  %v15403_v25 = vld [vmem:[#allocation3 + $0x20] sm:$0xff] }
 0x595   :  { %3674 = vst [vmem:[#allocation3 + $0x129] sm:$0xff] %v3609_v24  ;;  %3675 = vst [vmem:[#allocation3 + $0x139] sm:$0xff] %v3610_v0  ;;  %v3635_v41 = vmax.f32 %v15298_v53, 0.0  ;;  %v3636_v4 = vmax.f32 %v15302_v52, 0.0  ;;  %v3637_v59 = vmax.f32 %v15306_v26, 0.0  ;;  %v3638_v14 = vmax.f32 %v15310_v54, 0.0 }
 0x596   :  { %3676 = vst [vmem:[#allocation3 + $0x141] sm:$0xff] %v3611_v8  ;;  %3677 = vst [vmem:[#allocation3 + $0x151] sm:$0xff] %v3612_v32  ;;  %v15409_v58 = vld [vmem:[#allocation3 + $0x28] sm:$0x3]  ;;  %v3639_v49 = vmax.f32 %v15314_v51, 0.0  ;;  %v3640_v47 = vmax.f32 %v15318_v28, 0.0 }
 0x597   :  { %3678 = vst [vmem:[#allocation3 + $0x159] sm:$0xff] %v3613_v37  ;;  %3679 = vst [vmem:[#allocation3 + $0x169] sm:$0xff] %v3614_v7  ;;  %v3641_v2 = vmax.f32 %v15322_v13, 0.0  ;;  %v3642_v53 = vmax.f32 %v15326_v31, 0.0  ;;  %v15415_v52 = vld [vmem:[#allocation3 + $0x30] sm:$0xff]  ;;  %v15417_v26 = vld [vmem:[#allocation3 + $0x38] sm:$0xff] }
 0x598   :  { %3680 = vst [vmem:[#allocation3 + $0x171] sm:$0xff] %v3615_v22  ;;  %3681 = vst [vmem:[#allocation3 + $0x181] sm:$0xff] %v3616_v61  ;;  %v21403_v54 = vld [vmem:[#allocation5_spill] sm:$0xff]  ;;  %v21404_v44 = vld [vmem:[#allocation7_spill] sm:$0xff]  ;;  %v3648_v23 = vmax.f32 %v15350_v35, 0.0  ;;  %v3924_v27 = vrot.slane %v15401_v29, 1 }
 0x599   :  { %3682 = vst [vmem:[#allocation3 + $0x189] sm:$0xff] %v3617_v6  ;;  %3683 = vst [vmem:[#allocation3 + $0x1c9] sm:$0xff] %v3618_v48  ;;  %v3643_v60 = vmax.f32 %v21403_v54, 0.0  ;;  %v3644_v17 = vmax.f32 %v21404_v44, 0.0  ;;  %v21405_v46 = vld [vmem:[#allocation9_spill] sm:$0xff]  ;;  %v21406_v11 = vld [vmem:[#allocation10_spill] sm:$0xff] }
 0x59a   :  { %3684 = vst [vmem:[#allocation3 + $0x1d1] sm:$0xff] %v3619_v20  ;;  %3685 = vst [vmem:[#allocation3 + $0x1e1] sm:$0xff] %v3620_v1  ;;  %v3645_v51 = vmax.f32 %v21405_v46, 0.0  ;;  %v3646_v28 = vmax.f32 %v21406_v11, 0.0  ;;  %v15423_v13 = vld [vmem:[#allocation3 + $0x40] sm:$0x3]  ;;  %v15451_v1 = vpack.c.bf16 %v15403_v25, %v15401_v29 }
 0x59b   :  { %3686 = vst [vmem:[#allocation3 + $0x1e9] sm:$0xff] %v3621_v38  ;;  %3687 = vst [vmem:[#allocation3 + $0x1f9] sm:$0xff] %v3622_v21  ;;  %v21407_v31 = vld [vmem:[#allocation11_spill] sm:$0xff]  ;;  %v3925_v62 = vrot.slane %v15403_v25, 1  ;;  %v3927_v40 = vrot.slane %v15409_v58, 1  ;;  %v3929_v63 = vrot.slane %v15415_v52, 1 }
 0x59c   :  { %3688 = vst [vmem:[#allocation3 + $0x201] sm:$0xff] %v3623_v15  ;;  %3689 = vst [vmem:[#allocation3 + $0x211] sm:$0xff] %v3624_v50  ;;  %v3647_v30 = vmax.f32 %v21407_v31, 0.0  ;;  %v3930_v43 = vrot.slane %v15417_v26, 1  ;;  %v3932_v9 = vrot.slane %v15423_v13, 1  ;;  %v15436_v0 = vld [vmem:[#allocation3 + $0x48] sm:$0xff] }
 0x59d   :  { %3690 = vst [vmem:[#allocation3 + $0x219] sm:$0xff] %v3625_v45  ;;  %3691 = vst [vmem:[#allocation3 + $0x229] sm:$0xff] %v3626_v39  ;;  %v3926_v35 = vsel %vm585_vm0, %v3924_v27, %v3925_v62  ;;  %v3928_v5 = vsel %vm585_vm0, %v3925_v62, %v3927_v40  ;;  %v15438_v8 = vld [vmem:[#allocation3 + $0x50] sm:$0xff]  ;;  %v15440_v32 = vld [vmem:[#allocation3 + $0x58] sm:$0x3]  ;;  %v3934_v19 = vrot.slane %v15436_v0, 1 }
 0x59e   :  { %3692 = vst [vmem:[#allocation3 + $0x231] sm:$0xff] %v3627_v34  ;;  %3693 = vst [vmem:[#allocation3 + $0x241] sm:$0xff] %v3628_v33  ;;  %v3931_v24 = vsel %vm585_vm0, %v3929_v63, %v3930_v43  ;;  %v15444_v7 = vpack.c.bf16 %v3928_v5, %v3926_v35  ;;  %v3933_v6 = vsel %vm585_vm0, %v3930_v43, %v3932_v9  ;;  %v3935_v15 = vrot.slane %v15438_v8, 1  ;;  %v15535_v9 = vld [vmem:[#allocation3 + $0x78] sm:$0xff]  ;;  %v15537_v5 = vld [vmem:[#allocation3 + $0x80] sm:$0xff] }
 0x59f   :  { %3694 = vst [vmem:[#allocation3 + $0x249] sm:$0xff] %v3629_v12  ;;  %3695 = vst [vmem:[#allocation3 + $0x259] sm:$0xff] %v3630_v3  ;;  %v15458_v18 = vpack.c.bf16 %v3933_v6, %v3931_v24  ;;  %v3937_v36 = vrot.slane %v15440_v32, 1  ;;  %v12183_v12 = vld [vmem:[%s20587_s4 + $0x100] sm:$0xff]   ;;  %v15539_v24 = vld [vmem:[#allocation3 + $0x88] sm:$0x3] }
 0x5a0   :  { %3696 = vst [vmem:[#allocation3 + $0x261] sm:$0xff] %v3631_v57  ;;  %3697 = vst [vmem:[#allocation3 + $0x271] sm:$0xff] %v3632_v42  ;;  %5159 = vmatprep.mubr.bf16.mxu0 %v15444_v7 }
 0x5a1   :  { %3698 = vst [vmem:[#allocation3 + $0x279] sm:$0xff] %v3633_v55  ;;  %3699 = vst [vmem:[#allocation3 + $0x289] sm:$0xff] %v3634_v10  ;;  %5160 = vmatmul.mubr.bf16.gmra.mrb[132].mxu0 %v15451_v1 }
 0x5a2   :  { %3700 = vst [vmem:[#allocation3 + $0x291] sm:$0xff] %v3635_v41  ;;  %3701 = vst [vmem:[#allocation3 + $0x2a1] sm:$0xff] %v3636_v4  ;;  %5167 = vmatprep.mubr.bf16.mxu0 %v15458_v18  ;;  %v3936_v41 = vsel %vm585_vm0, %v3934_v19, %v3935_v15  ;;  %v3938_v4 = vsel %vm585_vm0, %v3935_v15, %v3937_v36  ;;  %v3947_v19 = vrot.slane %v15539_v24, 1 }
 0x5a3   :  { %3702 = vst [vmem:[#allocation3 + $0x2a9] sm:$0xff] %v3637_v59  ;;  %3703 = vst [vmem:[#allocation3 + $0x2b9] sm:$0xff] %v3638_v14  ;;  %v15488_v59 = vld [vmem:[#allocation3 + $0x60] sm:$0xff]  ;;  %v15491_v14 = vld [vmem:[#allocation3 + $0x68] sm:$0xff]  ;;  %v15504_v54 = vpack.c.bf16 %v3938_v4, %v3936_v41 }
 0x5a4   :  { %3704 = vst [vmem:[#allocation3 + $0x2c1] sm:$0xff] %v3639_v49  ;;  %3705 = vst [vmem:[#allocation3 + $0x2d1] sm:$0xff] %v3640_v47  ;;  %v15493_v49 = vld [vmem:[#allocation3 + $0x70] sm:$0x3]  ;;  %v12184_v47 = vld [vmem:[%s20587_s4 + $0x108] sm:$0xff]   ;;  %v3940_v46 = vrot.slane %v15491_v14, 1 }
 0x5a5   :  { %3706 = vst [vmem:[#allocation3 + $0x2d9] sm:$0xff] %v3641_v2  ;;  %3707 = vst [vmem:[#allocation3 + $0x2e9] sm:$0xff] %v3642_v53  ;;  %v3787_v22 = vld [vmem:[#allocation3 + $0x240] sm:$0xff]  ;;  %v15501_v2 = vpack.c.bf16 %v15417_v26, %v15415_v52  ;;  %v21414_v53 = vmov 0  }
 0x5a6   :  { %3708 = vst [vmem:[#allocation3 + $0x2f1] sm:$0xff] %v3643_v60  ;;  %3709 = vst [vmem:[#allocation3 + $0x301] sm:$0xff] %v3644_v17  ;;  %v15442_v37 = vld [vmem:[#allocation3 + $0x258] sm:$0xff]  ;;  %v3788_v61 = vld [vmem:[#allocation3 + $0x248] sm:$0xff]  ;;  %v4253_v16 = vrot.slane %v3787_v22, 2  ;;  %v3939_v60 = vrot.slane %v15488_v59, 1 }
 0x5a7   :  { %3710 = vst [vmem:[#allocation3 + $0x309] sm:$0xff] %v3645_v51  ;;  %3711 = vst [vmem:[#allocation3 + $0x319] sm:$0xff] %v3646_v28  ;;  %v15447_v48 = vld [vmem:[#allocation3 + $0x260] sm:$0xff]  ;;  %v3789_v20 = vld [vmem:[#allocation3 + $0x250] sm:$0x3]  ;;  %v4254_v38 = vrot.slane %v3788_v61, 2  ;;  %v15547_v61 = vpack.c.bf16 %v15438_v8, %v15436_v0 }
 0x5a8   :  { %3712 = vst [vmem:[#allocation3 + $0x321] sm:$0xff] %v3647_v30  ;;  %3713 = vst [vmem:[#allocation3 + $0x331] sm:$0xff] %v3648_v23  ;;  %v15455_v56 = vpack.c.bf16 %v15447_v48, %v15442_v37  ;;  %v4256_v21 = vrot.slane %v3789_v20, 2  ;;  %v15466_v45 = vld [vmem:[#allocation3 + $0x270] sm:$0xff]  ;;  %v15468_v39 = vld [vmem:[#allocation3 + $0x278] sm:$0xff]  ;;  %v4258_v3 = vrot.slane %v15442_v37, 2  ;;  %v3941_v43 = vsel %vm585_vm0, %v3939_v60, %v3940_v46 }
 0x5a9   :  { %21408 = vst [vmem:[#allocation12_spill] sm:$0xff] %v15451_v1  ;;  %21410 = vst [vmem:[#allocation14_spill] sm:$0xff] %v15458_v18  ;;  %v4255_v50 = vsel %vm810_vm1, %v4253_v16, %v4254_v38  ;;  %v15471_v34 = vld [vmem:[#allocation3 + $0x268] sm:$0x3]  ;;  %v4259_v57 = vrot.slane %v15447_v48, 2  ;;  %v15483_v55 = vpack.c.bf16 %v15468_v39, %v15466_v45  ;;  %5168 = vmatmul.mubr.bf16.gmra.mrb[136].mxu0 %v15501_v2  ;;  %v3942_v51 = vrot.slane %v15493_v49, 1 }
 0x5aa   :  { %21409 = vst [vmem:[#allocation13_spill] sm:$0xff] %v15455_v56  ;;  %5616 = vmatprep.mubr.bf16.mxu1 %v15455_v56  ;;  %v4257_v33 = vsel %vm810_vm1, %v4254_v38, %v4256_v21  ;;  %v4261_v10 = vrot.slane %v15471_v34, 2  ;;  %21413 = vst [vmem:[#allocation35_spill] sm:$0xff] %v15501_v2  ;;  %v15512_v11 = vld [vmem:[#allocation3 + $0x288] sm:$0xff]  ;;  %v15514_v28 = vld [vmem:[#allocation3 + $0x290] sm:$0xff]  ;;  %5175 = vmatprep.mubr.bf16.mxu0 %v15504_v54  ;;  %v4263_v23 = vrot.slane %v15466_v45, 2 }
 0x5ab   :  { %v15479_v42 = vpack.c.bf16 %v4257_v33, %v4255_v50  ;;  %21412 = vst [vmem:[#allocation28_spill] sm:$0xff] %v15483_v55  ;;  %21415 = vst [vmem:[#allocation40_spill] sm:$0xff] %v15504_v54  ;;  %v4260_v44 = vsel %vm810_vm1, %v4258_v3, %v4259_v57  ;;  %v15517_v31 = vld [vmem:[#allocation3 + $0x280] sm:$0x3]  ;;  %v12185_v30 = vld [vmem:[%s20587_s4 + $0x110] sm:$0xff]   ;;  %v4264_v27 = vrot.slane %v15468_v39, 2  ;;  %v15529_v40 = vpack.c.bf16 %v15514_v28, %v15512_v11 }
 0x5ac   :  { %v4262_v17 = vsel %vm810_vm1, %v4259_v57, %v4261_v10  ;;  %v4266_v63 = vrot.slane %v15517_v31, 2  ;;  %v3943_v35 = vsel %vm585_vm0, %v3940_v46, %v3942_v51  ;;  %v12186_v22 = vld [vmem:[%s20587_s4 + $0x118] sm:$0xff]   ;;  %21418 = vst [vmem:[#allocation56_spill] sm:$0xff] %v15547_v61  ;;  %v3944_v38 = vrot.slane %v15535_v9, 1  ;;  %v15558_v15 = vld [vmem:[#allocation3 + $0x2a0] sm:$0xff]  ;;  %v15560_v36 = vld [vmem:[#allocation3 + $0x2a8] sm:$0xff] }
 0x5ad   :  { %21411 = vst [vmem:[#allocation15_spill] sm:$0xff] %v15479_v42  ;;  %5617 = vmatmul.mubr.bf16.vlgmr.msra.gmra.mrb[64].mxu1 %v15479_v42  ;;  %v15524_v62 = vpack.c.bf16 %v4262_v17, %v4260_v44  ;;  %21417 = vst [vmem:[#allocation51_spill] sm:$0xff] %v15529_v40  ;;  %v4265_v6 = vsel %vm810_vm1, %v4263_v23, %v4264_v27  ;;  %v15551_v20 = vpack.c.bf16 %v3943_v35, %v3941_v43  ;;  %v15563_v50 = vld [vmem:[#allocation3 + $0x298] sm:$0x3]  ;;  %v12187_v33 = vld [vmem:[%s20587_s4 + $0x120] sm:$0xff]  }
 0x5ae   :  { %5624 = vmatprep.mubr.bf16.mxu1 %v15483_v55  ;;  %5698 = vmatpush1.bf16.msra.mxu1 %v12183_v12  ;;  %v4267_v16 = vsel %vm810_vm1, %v4264_v27, %v4266_v63  ;;  %v3945_v21 = vrot.slane %v15537_v5, 1  ;;  %v4268_v12 = vrot.slane %v15512_v11, 2  ;;  %v4269_v3 = vrot.slane %v15514_v28, 2  ;;  %v15581_v60 = vld [vmem:[#allocation3 + $0x90] sm:$0xff]  ;;  %v15583_v44 = vld [vmem:[#allocation3 + $0x98] sm:$0xff]  ;;  %v12188_v51 = vld [vmem:[%s20587_s4 + $0x128] sm:$0xff]  }
 0x5af   :  { %5699 = vmatprep.subr.bf16.mxu1 %v21414_v53  ;;  %21416 = vst [vmem:[#allocation46_spill] sm:$0xff] %v15524_v62  ;;  %21419 = vst [vmem:[#allocation61_spill] sm:$0xff] %v15551_v20  ;;  %v15570_v57 = vpack.c.bf16 %v4267_v16, %v4265_v6  ;;  %v15575_v10 = vpack.c.bf16 %v15560_v36, %v15558_v15  ;;  %v4271_v41 = vrot.slane %v15563_v50, 2  ;;  %v15585_v17 = vld [vmem:[#allocation3 + $0xa0] sm:$0x3]  ;;  %v3949_v43 = vrot.slane %v15581_v60, 1 }
 0x5b0   :  { %v3946_v4 = vsel %vm585_vm0, %v3944_v38, %v3945_v21  ;;  %v15590_v46 = vpack.c.bf16 %v15491_v14, %v15488_v59  ;;  %v15599_v27 = vld [vmem:[#allocation3 + $0x2b0] sm:$0x3]  ;;  %v3950_v35 = vrot.slane %v15583_v44, 1  ;;  %v4273_v38 = vrot.slane %v15558_v15, 2  ;;  %v15650_v42 = vld [vmem:[#allocation3 + $0x2d8] sm:$0xff]  ;;  %v15666_v1 = vld [vmem:[#allocation3 + $0x2e8] sm:$0xff] }
 0x5b1   :  { %5176 = vmatmul.mubr.bf16.gmra.mrb[140].mxu0 %v15547_v61  ;;  %21420 = vst [vmem:[#allocation66_spill] sm:$0xff] %v15570_v57  ;;  %21421 = vst [vmem:[#allocation71_spill] sm:$0xff] %v15575_v10  ;;  %v4272_v63 = vsel %vm810_vm1, %v4269_v3, %v4271_v41  ;;  %v15630_v41 = vld [vmem:[#allocation3 + $0x2c8] sm:$0x3]  ;;  %v15683_v55 = vld [vmem:[#allocation3 + $0x2f0] sm:$0xff]  ;;  %v4153_v54 = vrot.slane %v15415_v52, 2 }
 0x5b2   :  { %5700 = vmatpush1.bf16.msra.mxu1 %v12184_v47  ;;  %5183 = vmatprep.mubr.bf16.mxu0 %v15551_v20  ;;  %v3948_v47 = vsel %vm585_vm0, %v3945_v21, %v3947_v19  ;;  %21422 = vst [vmem:[#allocation76_spill] sm:$0xff] %v15590_v46  ;;  %v4274_v21 = vrot.slane %v15560_v36, 2  ;;  %v15610_v19 = vld [vmem:[#allocation3 + $0x2b8] sm:$0xff]  ;;  %v3951_v6 = vsel %vm585_vm0, %v3949_v43, %v3950_v35  ;;  %v15639_v61 = vld [vmem:[#allocation3 + $0xa8] sm:$0xff]  ;;  %v15922_v18 = vld [vmem:[#allocation3 + $0x130] sm:$0x3] }
 0x5b3   :  { %5701 = vmatprep.subr.bf16.mxu1 %v21414_v53  ;;  %v15597_v23 = vpack.c.bf16 %v3948_v47, %v3946_v4  ;;  %v12189_v4 = vld [vmem:[%s20587_s4 + $0x130] sm:$0xff]   ;;  %v4276_v47 = vrot.slane %v15599_v27, 2 }
 0x5b4   :  { %v4275_v2 = vsel %vm810_vm1, %v4273_v38, %v4274_v21 }
 0x5b5   :  { %5625 = vmatmul.mubr.bf16.gmra.mrb[68].mxu1 %v15524_v62  ;;  %21423 = vst [vmem:[#allocation81_spill] sm:$0xff] %v15597_v23  ;;  %v4277_v43 = vsel %vm810_vm1, %v4274_v21, %v4276_v47  ;;  %v3954_v21 = vrot.slane %v15639_v61, 1 }
 0x5b6   :  { %5632 = vmatprep.mubr.bf16.mxu1 %v15529_v40  ;;  %5702 = vmatpush1.bf16.msra.mxu1 %v12185_v30  ;;  %v4270_v30 = vsel %vm810_vm1, %v4268_v12, %v4269_v3  ;;  %v15628_v12 = vld [vmem:[#allocation3 + $0x2d0] sm:$0xff] }
 0x5b7   :  { %5703 = vmatprep.subr.bf16.mxu1 %v21414_v53  ;;  %v15680_v40 = vpack.c.bf16 %v15650_v42, %v15628_v12 }
 0x5b9   :  { %5184 = vmatmul.mubr.bf16.gmra.mrb[144].mxu0 %v15590_v46  ;;  %v12190_v46 = vld [vmem:[%s20587_s4 + $0x138] sm:$0xff]   ;;  %21429 = vst [vmem:[#allocation6_spill] sm:$0xff] %v15680_v40 }
 0x5ba   :  { %5704 = vmatpush1.bf16.msra.mxu1 %v12186_v22  ;;  %v3952_v22 = vrot.slane %v15585_v17, 1  ;;  %5191 = vmatprep.mubr.bf16.mxu0 %v15597_v23 }
 0x5bb   :  { %5705 = vmatprep.subr.bf16.mxu1 %v21414_v53 }
 0x5bc   :  { %v3953_v16 = vsel %vm585_vm0, %v3950_v35, %v3952_v22  ;;  %v15656_v35 = vpack.c.bf16 %v15537_v5, %v15535_v9  ;;  %v4151_v22 = vrot.slane %v15409_v58, 2 }
 0x5bd   :  { %5633 = vmatmul.mubr.bf16.gmra.mrb[72].mxu1 %v15570_v57  ;;  %v15625_v57 = vpack.c.bf16 %v4272_v63, %v4270_v30  ;;  %v15641_v30 = vld [vmem:[#allocation3 + $0xb0] sm:$0xff]  ;;  %v15643_v63 = vld [vmem:[#allocation3 + $0xb8] sm:$0x3]  ;;  %v15663_v38 = vpack.c.bf16 %v3953_v16, %v3951_v6  ;;  %v4148_v6 = vrot.slane %v15401_v29, 2  ;;  %v15676_v16 = vpack.c.bf16 %v4277_v43, %v4275_v2  ;;  %v12191_v43 = vld [vmem:[%s20587_s4 + $0x140] sm:$0xff]  }
 0x5be   :  { %5640 = vmatprep.mubr.bf16.mxu1 %v15575_v10  ;;  %5706 = vmatpush1.bf16.msra.mxu1 %v12187_v33  ;;  %v15612_v33 = vld [vmem:[#allocation3 + $0x2c0] sm:$0xff]  ;;  %21426 = vst [vmem:[#allocation95_spill] sm:$0xff] %v15656_v35  ;;  %v3957_v47 = vrot.slane %v15643_v63, 1  ;;  %v4284_v10 = vrot.slane %v15650_v42, 2  ;;  %v15691_v29 = vpack.c.bf16 %v15583_v44, %v15581_v60 }
 0x5bf   :  { %5707 = vmatprep.subr.bf16.mxu1 %v21414_v53  ;;  %21424 = vst [vmem:[#allocation86_spill] sm:$0xff] %v15625_v57  ;;  %v15635_v3 = vpack.c.bf16 %v15612_v33, %v15610_v19  ;;  %v4279_v62 = vrot.slane %v15612_v33, 2  ;;  %21427 = vst [vmem:[#allocation100_spill] sm:$0xff] %v15663_v38 }
 0x5c0   :  { %21428 = vst [vmem:[#allocation102_spill] sm:$0xff] %v15676_v16  ;;  %21430 = vst [vmem:[#allocation8_spill] sm:$0xff] %v15691_v29 }
 0x5c1   :  { %21425 = vst [vmem:[#allocation90_spill] sm:$0xff] %v15635_v3  ;;  %5192 = vmatmul.mubr.bf16.gmra.mrb[148].mxu0 %v15656_v35  ;;  %v4149_v35 = vrot.slane %v15403_v25, 2 }
 0x5c2   :  { %5708 = vmatpush1.bf16.msra.mxu1 %v12188_v51  ;;  %v4278_v51 = vrot.slane %v15610_v19, 2  ;;  %5199 = vmatprep.mubr.bf16.mxu0 %v15663_v38  ;;  %v15732_v38 = vld [vmem:[#allocation3 + $0x300] sm:$0xff] }
 0x5c3   :  { %5709 = vmatprep.subr.bf16.mxu1 %v21414_v53  ;;  %21435 = vst [vmem:[#allocation21_spill] sm:$0xff] %v15732_v38 }
 0x5c4   :  { %v4280_v56 = vsel %vm810_vm1, %v4278_v51, %v4279_v62  ;;  %v15702_v51 = vld [vmem:[#allocation3 + $0xc0] sm:$0xff] }
 0x5c5   :  { %5641 = vmatmul.mubr.bf16.gmra.mrb[76].mxu1 %v15625_v57  ;;  %v4281_v57 = vrot.slane %v15630_v41, 2 }
 0x5c6   :  { %5648 = vmatprep.mubr.bf16.mxu1 %v15635_v3  ;;  %5710 = vmatpush1.bf16.msra.mxu1 %v12189_v4  ;;  %v3955_v4 = vrot.slane %v15641_v30, 1  ;;  %v4283_v3 = vrot.slane %v15628_v12, 2 }
 0x5c7   :  { %5711 = vmatprep.subr.bf16.mxu1 %v21414_v53  ;;  %v4282_v23 = vsel %vm810_vm1, %v4279_v62, %v4281_v57  ;;  %v4150_v62 = vsel %vm810_vm1, %v4148_v6, %v4149_v35  ;;  %v4152_v57 = vsel %vm810_vm1, %v4149_v35, %v4151_v22  ;;  %v15719_v6 = vld [vmem:[#allocation3 + $0xd0] sm:$0x3]  ;;  %v4154_v35 = vrot.slane %v15417_v26, 2  ;;  %v15736_v26 = vld [vmem:[#allocation3 + $0x308] sm:$0xff] }
 0x5c8   :  { %v3956_v25 = vsel %vm585_vm0, %v3954_v21, %v3955_v4  ;;  %v3958_v58 = vsel %vm585_vm0, %v3955_v4, %v3957_v47  ;;  %v15708_v20 = vpack.c.bf16 %v4152_v57, %v4150_v62  ;;  %v15715_v4 = vpack.c.bf16 %v15683_v55, %v15666_v1  ;;  %v15717_v47 = vld [vmem:[#allocation3 + $0xc8] sm:$0xff] }
 0x5c9   :  { %v4156_v22 = vrot.slane %v15423_v13, 2  ;;  %v15724_v62 = vpack.c.bf16 %v4282_v23, %v4280_v56  ;;  %v15726_v52 = vpack.c.bf16 %v3958_v58, %v3956_v25  ;;  %v12192_v57 = vld [vmem:[%s20587_s4 + $0x148] sm:$0xff]   ;;  %v3959_v21 = vrot.slane %v15702_v51, 1  ;;  %5200 = vmatmul.mubr.bf16.gmra.mrb[152].mxu0 %v15691_v29 }
 0x5ca   :  { %5712 = vmatpush1.bf16.msra.mxu1 %v12190_v46  ;;  %v15700_v46 = vld [vmem:[#allocation3 + $0x2e0] sm:$0x3]  ;;  %21431 = vst [vmem:[#allocation16_spill] sm:$0xff] %v15708_v20  ;;  %21432 = vst [vmem:[#allocation17_spill] sm:$0xff] %v15715_v4  ;;  %v4155_v13 = vsel %vm810_vm1, %v4153_v54, %v4154_v35  ;;  %v4158_v23 = vrot.slane %v15436_v0, 2  ;;  %v3960_v25 = vrot.slane %v15717_v47, 1  ;;  %v4285_v54 = vsel %vm810_vm1, %v4283_v3, %v4284_v10 }
 0x5cb   :  { %5713 = vmatprep.subr.bf16.mxu1 %v21414_v53  ;;  %21433 = vst [vmem:[#allocation18_spill] sm:$0xff] %v15724_v62  ;;  %21434 = vst [vmem:[#allocation20_spill] sm:$0xff] %v15726_v52  ;;  %v4286_v2 = vrot.slane %v15700_v46, 2  ;;  %v4157_v56 = vsel %vm810_vm1, %v4154_v35, %v4156_v22  ;;  %v3962_v58 = vrot.slane %v15719_v6, 1  ;;  %5207 = vmatprep.mubr.bf16.mxu0 %v15726_v52  ;;  %v4163_v29 = vrot.slane %v15488_v59, 2 }
 0x5cc   :  { %v15752_v35 = vpack.c.bf16 %v15641_v30, %v15639_v61  ;;  %v4166_v0 = vrot.slane %v15493_v49, 2  ;;  %v3961_v59 = vsel %vm585_vm0, %v3959_v21, %v3960_v25  ;;  %v15782_v52 = vld [vmem:[#allocation3 + $0xe8] sm:$0x3]  ;;  %v12194_v21 = vld [vmem:[%s20587_s4 + $0x158] sm:$0xff]  }
 0x5cd   :  { %5649 = vmatmul.mubr.bf16.gmra.mrb[80].mxu1 %v15676_v16  ;;  %v15745_v16 = vpack.c.bf16 %v4157_v56, %v4155_v13  ;;  %v4287_v22 = vsel %vm810_vm1, %v4284_v10, %v4286_v2  ;;  %v15761_v56 = vld [vmem:[#allocation3 + $0x2f8] sm:$0x3]  ;;  %v4164_v2 = vrot.slane %v15491_v14, 2 }
 0x5ce   :  { %5656 = vmatprep.mubr.bf16.mxu1 %v15680_v40  ;;  %5714 = vmatpush1.bf16.msra.mxu1 %v12191_v43  ;;  %v4159_v43 = vrot.slane %v15438_v8, 2  ;;  %v4161_v40 = vrot.slane %v15440_v32, 2  ;;  %21437 = vst [vmem:[#allocation26_spill] sm:$0xff] %v15752_v35  ;;  %v12193_v32 = vld [vmem:[%s20587_s4 + $0x150] sm:$0xff]   ;;  %21438 = vst [vmem:[#allocation27_spill] sm:$0xff] %v15761_v56  ;;  %v4291_v14 = vrot.slane %v15761_v56, 2 }
 0x5cf   :  { %5715 = vmatprep.subr.bf16.mxu1 %v21414_v53  ;;  %21436 = vst [vmem:[#allocation25_spill] sm:$0xff] %v15745_v16  ;;  %v4165_v49 = vsel %vm810_vm1, %v4163_v29, %v4164_v2  ;;  %v4167_v13 = vsel %vm810_vm1, %v4164_v2, %v4166_v0  ;;  %v15804_v29 = vld [vmem:[#allocation3 + $0x320] sm:$0xff]  ;;  %v3967_v0 = vrot.slane %v15782_v52, 1  ;;  %v4171_v2 = vrot.slane %v15539_v24, 2 }
 0x5d0   :  { %v4160_v8 = vsel %vm810_vm1, %v4158_v23, %v4159_v43  ;;  %v4162_v3 = vsel %vm810_vm1, %v4159_v43, %v4161_v40  ;;  %v15767_v23 = vld [vmem:[#allocation3 + $0xd8] sm:$0xff]  ;;  %v15778_v40 = vpack.c.bf16 %v15736_v26, %v15732_v38  ;;  %v3963_v43 = vsel %vm585_vm0, %v3960_v25, %v3962_v58 }
 0x5d1   :  { %v15771_v10 = vpack.c.bf16 %v4162_v3, %v4160_v8  ;;  %v15785_v8 = vpack.c.bf16 %v4287_v22, %v4285_v54  ;;  %v15788_v3 = vld [vmem:[#allocation3 + $0x318] sm:$0xff]  ;;  %v3964_v25 = vrot.slane %v15767_v23, 1  ;;  %v15798_v54 = vpack.c.bf16 %v4167_v13, %v4165_v49  ;;  %5208 = vmatmul.mubr.bf16.gmra.mrb[156].mxu0 %v15752_v35 }
 0x5d2   :  { %5716 = vmatpush1.bf16.msra.mxu1 %v12192_v57  ;;  %v15769_v57 = vld [vmem:[#allocation3 + $0xe0] sm:$0xff]  ;;  %21440 = vst [vmem:[#allocation19_spill] sm:$0xff] %v15778_v40  ;;  %v4168_v22 = vrot.slane %v15535_v9, 2  ;;  %v21445_v13 = vrot.slane %v15666_v1, 2  ;;  %v4173_v49 = vrot.slane %v15581_v60, 2  ;;  %v4174_v35 = vrot.slane %v15583_v44, 2 }
 0x5d3   :  { %5717 = vmatprep.subr.bf16.mxu1 %v21414_v53  ;;  %21439 = vst [vmem:[#allocation32_spill] sm:$0xff] %v15771_v10  ;;  %21441 = vst [vmem:[#allocation44_spill] sm:$0xff] %v15785_v8  ;;  %v3965_v58 = vrot.slane %v15769_v57, 1  ;;  %v12195_v60 = vld [vmem:[%s20587_s4 + $0x160] sm:$0xff]  }
 0x5d4   :  { %21442 = vst [vmem:[#allocation50_spill] sm:$0xff] %v15798_v54  ;;  %v4176_v54 = vrot.slane %v15585_v17, 2  ;;  %v4175_v44 = vsel %vm810_vm1, %v4173_v49, %v4174_v35  ;;  %v21452_v49 = vrot.slane %v15736_v26, 2 }
 0x5d5   :  { %5657 = vmatmul.mubr.bf16.gmra.mrb[84].mxu1 %v15724_v62  ;;  %v15801_v62 = vpack.c.bf16 %v3963_v43, %v3961_v59  ;;  %v15817_v59 = vpack.c.bf16 %v15717_v47, %v15702_v51  ;;  %v3966_v43 = vsel %vm585_vm0, %v3964_v25, %v3965_v58  ;;  %v15844_v25 = vld [vmem:[#allocation3 + $0xf8] sm:$0xff] }
 0x5d6   :  { %5664 = vmatprep.mubr.bf16.mxu1 %v15715_v4  ;;  %5718 = vmatpush1.bf16.msra.mxu1 %v12193_v32  ;;  %v4169_v32 = vrot.slane %v15537_v5, 2  ;;  %v21444_v4 = vrot.slane %v15683_v55, 2  ;;  %v4177_v17 = vsel %vm810_vm1, %v4174_v35, %v4176_v54  ;;  %v15858_v54 = vld [vmem:[#allocation3 + $0x310] sm:$0x3]  ;;  %v4184_v35 = vrot.slane %v15717_v47, 2 }
 0x5d7   :  { %21443 = vst [vmem:[#allocation55_spill] sm:$0xff] %v15801_v62  ;;  %5719 = vmatprep.subr.bf16.mxu1 %v21414_v53  ;;  %21446 = vst [vmem:[#allocation60_spill] sm:$0xff] %v15817_v59  ;;  %5215 = vmatprep.mubr.bf16.mxu0 %v15801_v62  ;;  %v4188_v62 = vrot.slane %v15767_v23, 2 }
 0x5d8   :  { %v4290_v9 = vsel %vm810_vm1, %v21445_v13, %v21444_v4  ;;  %v4170_v5 = vsel %vm810_vm1, %v4168_v22, %v4169_v32  ;;  %v4172_v24 = vsel %vm810_vm1, %v4169_v32, %v4171_v2  ;;  %v4292_v13 = vsel %vm810_vm1, %v21444_v4, %v4291_v14  ;;  %v15842_v2 = vld [vmem:[#allocation3 + $0xf0] sm:$0xff]  ;;  %21451 = vst [vmem:[#allocation85_spill] sm:$0xff] %v15858_v54 }
 0x5d9   :  { %v15834_v22 = vpack.c.bf16 %v4172_v24, %v4170_v5  ;;  %v3968_v32 = vsel %vm585_vm0, %v3965_v58, %v3967_v0  ;;  %v4178_v14 = vrot.slane %v15639_v61, 2  ;;  %v15846_v4 = vpack.c.bf16 %v4177_v17, %v4175_v44  ;;  %v15874_v44 = vld [vmem:[#allocation3 + $0x338] sm:$0xff]  ;;  %v12196_v17 = vld [vmem:[%s20587_s4 + $0x168] sm:$0xff]   ;;  %5216 = vmatmul.mubr.bf16.gmra.mrb[160].mxu0 %v15817_v59 }
 0x5da   :  { %5720 = vmatpush1.bf16.msra.mxu1 %v12194_v21  ;;  %v4179_v5 = vrot.slane %v15641_v30, 2  ;;  %v4181_v58 = vrot.slane %v15643_v63, 2  ;;  %v15851_v0 = vpack.c.bf16 %v4292_v13, %v4290_v9  ;;  %v15856_v61 = vpack.c.bf16 %v15804_v29, %v15788_v3  ;;  %v15867_v63 = vld [vmem:[#allocation3 + $0x100] sm:$0x3]  ;;  %v15872_v13 = vld [vmem:[#allocation3 + $0x330] sm:$0xff] }
 0x5db   :  { %21447 = vst [vmem:[#allocation65_spill] sm:$0xff] %v15834_v22  ;;  %5721 = vmatprep.subr.bf16.mxu1 %v21414_v53  ;;  %21448 = vst [vmem:[#allocation70_spill] sm:$0xff] %v15846_v4  ;;  %v21453_v24 = vrot.slane %v15732_v38, 2  ;;  %v15870_v9 = vpack.c.bf16 %v3968_v32, %v3966_v43  ;;  %v3969_v43 = vrot.slane %v15842_v2, 1  ;;  %v15885_v32 = vld [vmem:[#allocation3 + $0x328] sm:$0x3] }
 0x5dc   :  { %21449 = vst [vmem:[#allocation75_spill] sm:$0xff] %v15851_v0  ;;  %21450 = vst [vmem:[#allocation80_spill] sm:$0xff] %v15856_v61  ;;  %v4180_v10 = vsel %vm810_vm1, %v4178_v14, %v4179_v5  ;;  %v4296_v14 = vrot.slane %v15858_v54, 2  ;;  %v4301_v4 = vrot.slane %v15885_v32, 2  ;;  %v15911_v22 = vld [vmem:[#allocation3 + $0x120] sm:$0xff]  ;;  %v4193_v56 = vrot.slane %v15842_v2, 2 }
 0x5dd   :  { %5665 = vmatmul.mubr.bf16.gmra.mrb[88].mxu1 %v15785_v8  ;;  %v15865_v30 = vsel %vm810_vm1, %v21453_v24, %v21452_v49  ;;  %21454 = vst [vmem:[#allocation89_spill] sm:$0xff] %v15870_v9  ;;  %v4182_v49 = vsel %vm810_vm1, %v4179_v5, %v4181_v58  ;;  %v4183_v24 = vrot.slane %v15702_v51, 2  ;;  %21455 = vst [vmem:[#allocation94_spill] sm:$0xff] %v15885_v32  ;;  %v3972_v51 = vrot.slane %v15867_v63, 1  ;;  %v15897_v58 = vld [vmem:[#allocation3 + $0x108] sm:$0xff]  ;;  %v15899_v8 = vld [vmem:[#allocation3 + $0x110] sm:$0xff] }
 0x5de   :  { %5672 = vmatprep.mubr.bf16.mxu1 %v15778_v40  ;;  %5722 = vmatpush1.bf16.msra.mxu1 %v12195_v60  ;;  %v3970_v60 = vrot.slane %v15844_v25, 1  ;;  %v15887_v21 = vpack.c.bf16 %v4182_v49, %v4180_v10  ;;  %v15894_v5 = vpack.c.bf16 %v15769_v57, %v15767_v23  ;;  %v4186_v40 = vrot.slane %v15719_v6, 2  ;;  %v3750_v49 = vld [vmem:[#allocation3 + $0x118] sm:$0x3]  ;;  %v15913_v6 = vld [vmem:[#allocation3 + $0x128] sm:$0xff] }
 0x5df   :  { %5723 = vmatprep.subr.bf16.mxu1 %v21414_v53  ;;  %5223 = vmatprep.mubr.bf16.mxu0 %v15870_v9  ;;  %v4185_v59 = vsel %vm810_vm1, %v4183_v24, %v4184_v35  ;;  %v4189_v10 = vrot.slane %v15769_v57, 2  ;;  %v4191_v9 = vrot.slane %v15782_v52, 2  ;;  %v3974_v23 = vrot.slane %v15897_v58, 1 }
 0x5e0   :  { %21456 = vst [vmem:[#allocation99_spill] sm:$0xff] %v15887_v21  ;;  %21457 = vst [vmem:[#allocation101_spill] sm:$0xff] %v15894_v5  ;;  %v12197_v21 = vld [vmem:[%s20587_s4 + $0x170] sm:$0xff]   ;;  %v4187_v47 = vsel %vm810_vm1, %v4184_v35, %v4186_v40  ;;  %v3971_v24 = vsel %vm585_vm0, %v3969_v43, %v3970_v60  ;;  %v3973_v54 = vsel %vm585_vm0, %v3970_v60, %v3972_v51  ;;  %v3977_v38 = vrot.slane %v3750_v49, 1 }
 0x5e1   :  { %v15924_v32 = vpack.c.bf16 %v4187_v47, %v4185_v59  ;;  %v4190_v40 = vsel %vm810_vm1, %v4188_v62, %v4189_v10  ;;  %v4192_v57 = vsel %vm810_vm1, %v4189_v10, %v4191_v9  ;;  %v3979_v52 = vrot.slane %v15911_v22, 1  ;;  %v12198_v62 = vld [vmem:[%s20587_s4 + $0x178] sm:$0xff]   ;;  %5224 = vmatmul.mubr.bf16.gmra.mrb[164].mxu0 %v15894_v5 }
 0x5e2   :  { %5724 = vmatpush1.bf16.msra.mxu1 %v12196_v17  ;;  %v3975_v17 = vrot.slane %v15899_v8, 1  ;;  %v3980_v35 = vrot.slane %v15913_v6, 1  ;;  %v15932_v43 = vpack.c.bf16 %v4192_v57, %v4190_v40  ;;  %v21460_v59 = vrot.slane %v15736_v26, 2 }
 0x5e3   :  { %5725 = vmatprep.subr.bf16.mxu1 %v21414_v53  ;;  %21458 = vst [vmem:[#allocation103_spill] sm:$0xff] %v15924_v32  ;;  %v3982_v9 = vrot.slane %v15922_v18, 1  ;;  %v4194_v51 = vrot.slane %v15844_v25, 2  ;;  %v4196_v47 = vrot.slane %v15867_v63, 2  ;;  %v15945_v10 = vpack.c.bf16 %v3973_v54, %v3971_v24 }
 0x5e4   :  { %21459 = vst [vmem:[#allocation22_spill] sm:$0xff] %v15932_v43  ;;  %v4297_v60 = vsel %vm810_vm1, %v21460_v59, %v4296_v14  ;;  %v21462_v40 = vrot.slane %v15804_v29, 2  ;;  %v21463_v57 = vrot.slane %v15788_v3, 2  ;;  %v3976_v59 = vsel %vm585_vm0, %v3974_v23, %v3975_v17  ;;  %v15959_v43 = vld [vmem:[#allocation3 + $0x140] sm:$0xff] }
 0x5e5   :  { %5673 = vmatmul.mubr.bf16.gmra.mrb[92].mxu1 %v15851_v0  ;;  %21461 = vst [vmem:[#allocation52_spill] sm:$0xff] %v15945_v10  ;;  %v4195_v54 = vsel %vm810_vm1, %v4193_v56, %v4194_v51  ;;  %v4197_v63 = vsel %vm810_vm1, %v4194_v51, %v4196_v47  ;;  %v4198_v24 = vrot.slane %v15897_v58, 2  ;;  %5231 = vmatprep.mubr.bf16.mxu0 %v15945_v10  ;;  %v3985_v51 = vrot.slane %v15959_v43, 1 }
 0x5e6   :  { %5680 = vmatprep.mubr.bf16.mxu1 %v15856_v61  ;;  %5726 = vmatpush1.bf16.msra.mxu1 %v12197_v21  ;;  %v4300_v0 = vsel %vm810_vm1, %v21463_v57, %v21462_v40  ;;  %v21464_v21 = vmov %v21462_v40  ;;  %v15957_v61 = vld [vmem:[#allocation3 + $0x138] sm:$0xff]  ;;  %v4199_v40 = vrot.slane %v15899_v8, 2  ;;  %v3981_v23 = vsel %vm585_vm0, %v3979_v52, %v3980_v35 }
 0x5e7   :  { %v4302_v14 = vsel %vm810_vm1, %v21464_v21, %v4301_v4  ;;  %5727 = vmatprep.subr.bf16.mxu1 %v21414_v53  ;;  %v3978_v4 = vsel %vm585_vm0, %v3975_v17, %v3977_v38  ;;  %v15969_v57 = vpack.c.bf16 %v4197_v63, %v4195_v54  ;;  %v4201_v21 = vrot.slane %v3750_v49, 2  ;;  %v3756_v17 = vld [vmem:[#allocation3 + $0x148] sm:$0x3] }
 0x5e8   :  { %v3983_v5 = vsel %vm585_vm0, %v3980_v35, %v3982_v9  ;;  %v3984_v56 = vrot.slane %v15957_v61, 1  ;;  %v4200_v47 = vsel %vm810_vm1, %v4198_v24, %v4199_v40  ;;  %v15976_v32 = vpack.c.bf16 %v4297_v60, %v15865_v30  ;;  %v15991_v9 = vld [vmem:[#allocation3 + $0x158] sm:$0xff] }
 0x5e9   :  { %21465 = vst [vmem:[#allocation54_spill] sm:$0xff] %v15969_v57  ;;  %v15980_v38 = vpack.c.bf16 %v15874_v44, %v15872_v13  ;;  %v4202_v49 = vsel %vm810_vm1, %v4199_v40, %v4201_v21  ;;  %v4203_v52 = vrot.slane %v15911_v22, 2  ;;  %v15987_v35 = vpack.c.bf16 %v15844_v25, %v15842_v2  ;;  %v3759_v40 = vld [vmem:[#allocation3 + $0x160] sm:$0x3] }
 0x5ea   :  { %5728 = vmatpush1.bf16.msra.mxu1 %v12198_v62  ;;  %21466 = vst [vmem:[#allocation49_spill] sm:$0xff] %v15976_v32  ;;  %v15989_v62 = vld [vmem:[#allocation3 + $0x150] sm:$0xff]  ;;  %v15993_v30 = vpack.c.bf16 %v4202_v49, %v4200_v47  ;;  %v4204_v60 = vrot.slane %v15913_v6, 2  ;;  %v4206_v54 = vrot.slane %v15922_v18, 2  ;;  %v15998_v63 = vpack.c.bf16 %v4302_v14, %v4300_v0 }
 0x5eb   :  { %21467 = vst [vmem:[#allocation59_spill] sm:$0xff] %v15980_v38  ;;  %5986 = vmatprep.subr.bf16.mxu1 %v21414_v53  ;;  %21468 = vst [vmem:[#allocation62_spill] sm:$0xff] %v15987_v35  ;;  %v16000_v24 = vpack.c.bf16 %v3978_v4, %v3976_v59  ;;  %v16004_v2 = vpack.c.bf16 %v15899_v8, %v15897_v58  ;;  %v16006_v25 = vpack.c.bf16 %v3983_v5, %v3981_v23 }
 0x5ec   :  { %21469 = vst [vmem:[#allocation63_spill] sm:$0xff] %v15993_v30  ;;  %21470 = vst [vmem:[#allocation23_spill] sm:$0xff] %v15998_v63  ;;  %v16010_v21 = vsel %vm585_vm0, %v3984_v56, %v3985_v51  ;;  %v3987_v47 = vrot.slane %v3756_v17, 1  ;;  %v4205_v18 = vsel %vm810_vm1, %v4203_v52, %v4204_v60  ;;  %v4207_v0 = vsel %vm810_vm1, %v4204_v60, %v4206_v54  ;;  %v16027_v60 = vld [vmem:[#allocation3 + $0x168] sm:$0xff] }
 0x5ed   :  { %5681 = vmatmul.mubr.bf16.gmra.mrb[96].mxu1 %v15976_v32  ;;  %21471 = vst [vmem:[#allocation24_spill] sm:$0xff] %v16000_v24  ;;  %21472 = vst [vmem:[#allocation39_spill] sm:$0xff] %v16004_v2  ;;  %v3989_v14 = vrot.slane %v15989_v62, 1  ;;  %v3990_v59 = vrot.slane %v15991_v9, 1  ;;  %v16016_v4 = vpack.c.bf16 %v4207_v0, %v4205_v18  ;;  %v4208_v8 = vrot.slane %v15957_v61, 2  ;;  %5232 = vmatmul.mubr.bf16.gmra.mrb[168].mxu0 %v15987_v35  ;;  %v16032_v35 = vld [vmem:[#allocation3 + $0x170] sm:$0xff] }
 0x5ee   :  { %21473 = vst [vmem:[#allocation29_spill] sm:$0xff] %v16006_v25  ;;  %5688 = vmatprep.mubr.bf16.mxu1 %v15980_v38  ;;  %v3992_v5 = vrot.slane %v3759_v40, 1  ;;  %v4209_v58 = vrot.slane %v15959_v43, 2  ;;  %v4211_v23 = vrot.slane %v3756_v17, 2  ;;  %v21475_v56 = vrot.slane %v15447_v48, 1  ;;  %5239 = vmatprep.mubr.bf16.mxu0 %v16000_v24 }
 0x5ef   :  { %21474 = vst [vmem:[#allocation30_spill] sm:$0xff] %v16016_v4  ;;  %v21476_v49 = vrot.slane %v15442_v37, 1  ;;  %v4037_v54 = vrot.slane %v15471_v34, 1  ;;  %v4213_v18 = vrot.slane %v15989_v62, 2  ;;  %v4214_v0 = vrot.slane %v15991_v9, 2 }
 0x5f0   :  { %v4216_v38 = vrot.slane %v3759_v40, 2  ;;  %v16034_v17 = vld [vmem:[#allocation3 + $0x178] sm:$0x3]  ;;  %v4210_v32 = vsel %vm810_vm1, %v4208_v8, %v4209_v58  ;;  %v4212_v37 = vsel %vm810_vm1, %v4209_v58, %v4211_v23  ;;  %v4042_v34 = vrot.slane %v15517_v31, 1 }
 0x5f1   :  { %v4036_v52 = vsel %vm585_vm0, %v21476_v49, %v21475_v56  ;;  %v21477_v56 = vrot.slane %v15468_v39, 1  ;;  %v21478_v49 = vrot.slane %v15466_v45, 1  ;;  %v16044_v24 = vpack.c.bf16 %v4212_v37, %v4210_v32 }
 0x5f2   :  { %v21479_v40 = vrot.slane %v15447_v48, 1  ;;  %v4215_v10 = vsel %vm810_vm1, %v4213_v18, %v4214_v0  ;;  %v4217_v8 = vsel %vm810_vm1, %v4214_v0, %v4216_v38  ;;  %v4218_v31 = vrot.slane %v16027_v60, 2  ;;  %v16074_v0 = vld [vmem:[#allocation3 + $0x1c8] sm:$0xff] }
 0x5f3   :  { %v4041_v4 = vsel %vm585_vm0, %v21478_v49, %v21477_v56  ;;  %v16053_v58 = vpack.c.bf16 %v4217_v8, %v4215_v10  ;;  %v21481_v45 = vmov %v21477_v56  ;;  %v4219_v48 = vrot.slane %v16032_v35, 2 }
 0x5f4   :  { %v4038_v30 = vsel %vm585_vm0, %v21479_v40, %v4037_v54  ;;  %v4043_v23 = vsel %vm585_vm0, %v21481_v45, %v4042_v34  ;;  %v4221_v54 = vrot.slane %v16034_v17, 2  ;;  %v21483_v38 = vrot.slane %v15514_v28, 1  ;;  %v16105_v45 = vld [vmem:[#allocation3 + $0x1e0] sm:$0xff] }
 0x5f5   :  { %v16051_v57 = vpack.c.bf16 %v4038_v30, %v4036_v52  ;;  %5689 = vmatmul.mubr.bf16.gmra.mrb[100].mxu1 %v15998_v63  ;;  %v16060_v32 = vpack.c.bf16 %v4043_v23, %v4041_v4  ;;  %v21484_v30 = vrot.slane %v15512_v11, 1  ;;  %v3988_v39 = vsel %vm585_vm0, %v3985_v51, %v3987_v47  ;;  %5240 = vmatmul.mubr.bf16.gmra.mrb[172].mxu0 %v16004_v2  ;;  %v16107_v23 = vld [vmem:[#allocation3 + $0x1e8] sm:$0xff]  ;;  %v21515_v63 = vld [vmem:[#allocation32_spill] sm:$0xff] }
 0x5f6   :  { %5729 = vmatprep.mubr.bf16.mxu1 %v15708_v20  ;;  %v3991_v52 = vsel %vm585_vm0, %v3989_v14, %v3990_v59  ;;  %v3993_v18 = vsel %vm585_vm0, %v3990_v59, %v3992_v5  ;;  %v4047_v4 = vrot.slane %v15563_v50, 1  ;;  %v4220_v37 = vsel %vm810_vm1, %v4218_v31, %v4219_v48  ;;  %v16087_v50 = vld [vmem:[#allocation3 + $0x1d0] sm:$0xff]  ;;  %v16089_v59 = vld [vmem:[#allocation3 + $0x1d8] sm:$0x3]  ;;  %5247 = vmatprep.mubr.bf16.mxu0 %v16006_v25 }
 0x5f7   :  { %21480 = vst [vmem:[#allocation31_spill] sm:$0xff] %v16051_v57  ;;  %21482 = vst [vmem:[#allocation33_spill] sm:$0xff] %v16060_v32  ;;  %v4046_v10 = vsel %vm585_vm0, %v21484_v30, %v21483_v38  ;;  %v4222_v56 = vsel %vm810_vm1, %v4219_v48, %v4221_v54  ;;  %v21485_v11 = vrot.slane %v15560_v36, 1  ;;  %v21486_v49 = vrot.slane %v15558_v15, 1  ;;  %v12199_v54 = vld [vmem:[%s20587_s4 + $0x180] sm:$0xff]  }
 0x5f8   :  { %v4052_v51 = vrot.slane %v15599_v27, 1  ;;  %v16091_v5 = vpack.c.bf16 %v4222_v56, %v4220_v37  ;;  %v21487_v40 = vmov %v21483_v38  ;;  %v16099_v27 = vpack.c.bf16 %v15913_v6, %v15911_v22  ;;  %v16125_v38 = vld [vmem:[#allocation3 + $0x1f0] sm:$0x3]  ;;  %v16139_v56 = vld [vmem:[#allocation3 + $0x200] sm:$0xff] }
 0x5f9   :  { %v4051_v34 = vsel %vm585_vm0, %v21486_v49, %v21485_v11  ;;  %v4048_v15 = vsel %vm585_vm0, %v21487_v40, %v4047_v4  ;;  %v16103_v8 = vpack.c.bf16 %v15959_v43, %v15957_v61  ;;  %v21490_v28 = vmov %v21485_v11 }
 0x5fa   :  { %21488 = vst [vmem:[#allocation34_spill] sm:$0xff] %v16099_v27  ;;  %v16109_v31 = vpack.c.bf16 %v4048_v15, %v4046_v10  ;;  %v4053_v48 = vsel %vm585_vm0, %v21490_v28, %v4052_v51  ;;  %v16118_v22 = vpack.c.bf16 %v3988_v39, %v16010_v21  ;;  %v16120_v6 = vpack.c.bf16 %v3993_v18, %v3991_v52  ;;  %v16137_v18 = vld [vmem:[#allocation3 + $0x1f8] sm:$0xff]  ;;  %v12200_v28 = vld [vmem:[%s20587_s4 + $0x188] sm:$0xff]   ;;  %v16189_v39 = vld [vmem:[#allocation3 + $0x230] sm:$0xff] }
 0x5fb   :  { %v16122_v61 = vpack.c.bf16 %v4053_v48, %v4051_v34  ;;  %v4228_v43 = vrot.slane %v16074_v0, 2  ;;  %v4229_v30 = vrot.slane %v16087_v50, 2  ;;  %v4231_v36 = vrot.slane %v16089_v59, 2  ;;  %v16145_v34 = vld [vmem:[#allocation3 + $0x208] sm:$0x3] }
 0x5fc   :  { %21489 = vst [vmem:[#allocation36_spill] sm:$0xff] %v16109_v31  ;;  %21491 = vst [vmem:[#allocation37_spill] sm:$0xff] %v16118_v22  ;;  %v21494_v10 = vrot.slane %v15612_v33, 1  ;;  %v21495_v4 = vrot.slane %v15610_v19, 1  ;;  %v4057_v21 = vrot.slane %v15630_v41, 1  ;;  %v4233_v11 = vrot.slane %v16105_v45, 2 }
 0x5fd   :  { %21492 = vst [vmem:[#allocation38_spill] sm:$0xff] %v16120_v6  ;;  %21493 = vst [vmem:[#allocation41_spill] sm:$0xff] %v16122_v61  ;;  %v4234_v49 = vrot.slane %v16107_v23, 2  ;;  %5730 = vmatmul.mubr.bf16.vlgmr.msra.gmra.mrb[104].mxu1 %v15444_v7  ;;  %v4230_v41 = vsel %vm810_vm1, %v4228_v43, %v4229_v30  ;;  %v4232_v51 = vsel %vm810_vm1, %v4229_v30, %v4231_v36  ;;  %v16156_v7 = vld [vmem:[#allocation3 + $0x210] sm:$0xff]  ;;  %v4236_v30 = vrot.slane %v16125_v38, 2  ;;  %v16165_v33 = vld [vmem:[#allocation3 + $0x218] sm:$0xff] }
 0x5fe   :  { %v4056_v37 = vsel %vm585_vm0, %v21495_v4, %v21494_v10  ;;  %v21496_v40 = vmov %v21494_v10  ;;  %5737 = vmatprep.mubr.bf16.mxu1 %v15745_v16  ;;  %5987 = vmatpush1.bf16.msra.mxu1 %v12199_v54  ;;  %v16158_v48 = vpack.c.bf16 %v4232_v51, %v4230_v41  ;;  %v21498_v54 = vrot.slane %v15650_v42, 1  ;;  %v16187_v19 = vld [vmem:[#allocation3 + $0x228] sm:$0xff] }
 0x5ff   :  { %v4058_v15 = vsel %vm585_vm0, %v21496_v40, %v4057_v21  ;;  %v4235_v43 = vsel %vm810_vm1, %v4233_v11, %v4234_v49  ;;  %5988 = vmatprep.subr.bf16.mxu1 %v21414_v53  ;;  %v21499_v36 = vrot.slane %v15628_v12, 1  ;;  %v4062_v21 = vrot.slane %v15700_v46, 1  ;;  %5248 = vmatmul.mubr.bf16.gmra.mrb[176].mxu0 %v16099_v27  ;;  %v16176_v11 = vld [vmem:[#allocation3 + $0x220] sm:$0x3] }
 0x600   :  { %v16160_v10 = vpack.c.bf16 %v4058_v15, %v4056_v37  ;;  %v4238_v41 = vrot.slane %v16137_v18, 2  ;;  %v4239_v37 = vrot.slane %v16139_v56, 2  ;;  %v4237_v51 = vsel %vm810_vm1, %v4234_v49, %v4236_v30  ;;  %5255 = vmatprep.mubr.bf16.mxu0 %v16118_v22 }
 0x601   :  { %v4061_v4 = vsel %vm585_vm0, %v21499_v36, %v21498_v54  ;;  %v4241_v40 = vrot.slane %v16145_v34, 2  ;;  %v21500_v15 = vrot.slane %v15683_v55, 1  ;;  %v21501_v12 = vrot.slane %v15666_v1, 1  ;;  %v21502_v36 = vld [vmem:[#allocation27_spill] sm:$0xff] }
 0x602   :  { %21497 = vst [vmem:[#allocation42_spill] sm:$0xff] %v16160_v10  ;;  %v4067_v46 = vrot.slane %v21502_v36, 1  ;;  %v16191_v52 = vpack.c.bf16 %v4237_v51, %v4235_v43  ;;  %v21503_v49 = vrot.slane %v15650_v42, 1  ;;  %v4240_v47 = vsel %vm810_vm1, %v4238_v41, %v4239_v37  ;;  %5989 = vmatpush1.bf16.msra.mxu1 %v12200_v28 }
 0x603   :  { %v4066_v54 = vsel %vm585_vm0, %v21501_v12, %v21500_v15  ;;  %v4243_v1 = vrot.slane %v16156_v7, 2  ;;  %v12201_v15 = vld [vmem:[%s20587_s4 + $0x190] sm:$0xff]   ;;  %v16201_v12 = vld [vmem:[#allocation3 + $0x238] sm:$0x3]  ;;  %v4242_v43 = vsel %vm810_vm1, %v4239_v37, %v4241_v40  ;;  %v21505_v51 = vrot.slane %v15683_v55, 1  ;;  %5990 = vmatprep.subr.bf16.mxu1 %v21414_v53 }
 0x604   :  { %v4063_v30 = vsel %vm585_vm0, %v21503_v49, %v4062_v21  ;;  %v4244_v21 = vrot.slane %v16165_v33, 2  ;;  %v16211_v41 = vpack.c.bf16 %v4242_v43, %v4240_v47  ;;  %v4246_v49 = vrot.slane %v16176_v11, 2  ;;  %v3819_v40 = vld [vmem:[#allocation3 + $0x340] sm:$0x3]  ;;  %v21511_v43 = vld [vmem:[#allocation14_spill] sm:$0xff] }
 0x605   :  { %v16203_v36 = vpack.c.bf16 %v4063_v30, %v4061_v4  ;;  %v4068_v42 = vsel %vm585_vm0, %v21505_v51, %v4067_v46  ;;  %v21507_v14 = vrot.slane %v15736_v26, 1  ;;  %v21508_v4 = vld [vmem:[#allocation21_spill] sm:$0xff]  ;;  %v4248_v27 = vrot.slane %v16187_v19, 2  ;;  %5738 = vmatmul.mubr.bf16.gmra.mrb[108].mxu1 %v21511_v43  ;;  %v16238_v43 = vld [vmem:[#allocation3 + $0x180] sm:$0xff] }
 0x606   :  { %v16213_v28 = vpack.c.bf16 %v4068_v42, %v4066_v54  ;;  %v21509_v30 = vrot.slane %v21508_v4, 1  ;;  %v4245_v55 = vsel %vm810_vm1, %v4243_v1, %v4244_v21  ;;  %v21510_v46 = vld [vmem:[#allocation85_spill] sm:$0xff]  ;;  %v4249_v47 = vrot.slane %v16189_v39, 2  ;;  %5745 = vmatprep.mubr.bf16.mxu1 %v21515_v63  ;;  %5991 = vmatpush1.bf16.msra.mxu1 %v12201_v15 }
 0x607   :  { %21504 = vst [vmem:[#allocation43_spill] sm:$0xff] %v16203_v36  ;;  %v4072_v51 = vrot.slane %v21510_v46, 1  ;;  %v4247_v54 = vsel %vm810_vm1, %v4244_v21, %v4246_v49  ;;  %v4251_v42 = vrot.slane %v16201_v12, 2  ;;  %v21512_v2 = vrot.slane %v15804_v29, 1  ;;  %v12202_v46 = vld [vmem:[%s20587_s4 + $0x198] sm:$0xff]   ;;  %v16240_v21 = vld [vmem:[#allocation3 + $0x188] sm:$0xff]  ;;  %5992 = vmatprep.subr.bf16.mxu1 %v21414_v53  ;;  %5256 = vmatmul.mubr.bf16.gmra.mrb[180].mxu0 %v16103_v8 }
 0x608   :  { %21506 = vst [vmem:[#allocation47_spill] sm:$0xff] %v16213_v28  ;;  %v4071_v37 = vsel %vm585_vm0, %v21509_v30, %v21507_v14  ;;  %v21513_v4 = vrot.slane %v15788_v3, 1  ;;  %v21514_v30 = vld [vmem:[#allocation94_spill] sm:$0xff]  ;;  %v16242_v49 = vpack.c.bf16 %v4247_v54, %v4245_v55  ;;  %v21516_v16 = vrot.slane %v15736_v26, 1  ;;  %5263 = vmatprep.mubr.bf16.mxu0 %v16120_v6 }
 0x609   :  { %v4077_v1 = vrot.slane %v21514_v30, 1  ;;  %v4252_v30 = vsel %vm810_vm1, %v4249_v47, %v4251_v42  ;;  %v21517_v63 = vrot.slane %v15804_v29, 1  ;;  %v21518_v55 = vrot.slane %v15874_v44, 2 }
 0x60a   :  { %v4076_v14 = vsel %vm585_vm0, %v21513_v4, %v21512_v2  ;;  %v4073_v3 = vsel %vm585_vm0, %v21516_v16, %v4072_v51  ;;  %v4250_v2 = vsel %vm810_vm1, %v4248_v27, %v4249_v47  ;;  %v4395_v4 = vrot.slane %v3819_v40, 2  ;;  %5993 = vmatpush1.bf16.msra.mxu1 %v12202_v46 }
 0x60b   :  { %v16249_v15 = vpack.c.bf16 %v4073_v3, %v4071_v37  ;;  %v4078_v20 = vsel %vm585_vm0, %v21517_v63, %v4077_v1  ;;  %v21519_v54 = vrot.slane %v15872_v13, 2  ;;  %v16261_v16 = vpack.c.bf16 %v4252_v30, %v4250_v2  ;;  %5994 = vmatprep.subr.bf16.mxu1 %v21414_v53 }
 0x60c   :  { %v16263_v27 = vpack.c.bf16 %v4078_v20, %v4076_v14  ;;  %v21520_v37 = vmov %v21518_v55  ;;  %v21521_v29 = vrot.slane %v15874_v44, 1  ;;  %v21522_v63 = vrot.slane %v15872_v13, 1  ;;  %v12203_v20 = vld [vmem:[%s20587_s4 + $0x1a0] sm:$0xff]  }
 0x60d   :  { %v4394_v26 = vsel %vm810_vm1, %v21519_v54, %v21518_v55  ;;  %v4396_v51 = vsel %vm810_vm1, %v21520_v37, %v4395_v4  ;;  %v4381_v1 = vrot.slane %v3819_v40, 1  ;;  %v16278_v3 = vpack.c.bf16 %v16240_v21, %v16238_v43  ;;  %v16283_v14 = vld [vmem:[#allocation3 + $0x1c0] sm:$0x3] }
 0x60e   :  { %v4380_v47 = vsel %vm585_vm0, %v21522_v63, %v21521_v29  ;;  %v16274_v42 = vpack.c.bf16 %v4396_v51, %v4394_v26  ;;  %v21523_v13 = vmov %v21521_v29  ;;  %v21524_v4 = vrot.slane %v16032_v35, 1  ;;  %v21528_v37 = vld [vmem:[#allocation40_spill] sm:$0xff]  ;;  %v21529_v51 = vld [vmem:[#allocation50_spill] sm:$0xff]  ;;  %5995 = vmatpush1.bf16.msra.mxu1 %v12203_v20 }
 0x60f   :  { %v4382_v2 = vsel %vm585_vm0, %v21523_v13, %v4381_v1  ;;  %v21525_v40 = vrot.slane %v16027_v60, 1  ;;  %v21526_v46 = vrot.slane %v16034_v17, 1  ;;  %5746 = vmatmul.mubr.bf16.gmra.mrb[112].mxu1 %v21528_v37  ;;  %v16305_v44 = vpack.c.bf16 %v15991_v9, %v15989_v62  ;;  %v12204_v17 = vld [vmem:[%s20587_s4 + $0x1a8] sm:$0xff]   ;;  %5996 = vmatprep.subr.bf16.mxu1 %v21414_v53  ;;  %v12205_v62 = vld [vmem:[%s20587_s4 + $0x1b0] sm:$0xff]  }
 0x610   :  { %v21527_v55 = vmov %v21524_v4  ;;  %v16299_v26 = vpack.c.bf16 %v4382_v2, %v4380_v47  ;;  %5753 = vmatprep.mubr.bf16.mxu1 %v21529_v51  ;;  %v4002_v29 = vrot.slane %v16283_v14, 1  ;;  %v21530_v47 = vld [vmem:[#allocation79_spill] sm:$0xff]  ;;  %v21531_v9 = vld [vmem:[#allocation61_spill] sm:$0xff]  ;;  %v16327_v2 = vpack.c.bf16 %v16032_v35, %v16027_v60  ;;  %v12207_v35 = vld [vmem:[%s20587_s4 + $0x1c0] sm:$0xff]  }
 0x611   :  { %v3996_v30 = vsel %vm585_vm0, %v21525_v40, %v21524_v4  ;;  %v3998_v54 = vsel %vm585_vm0, %v21527_v55, %v21526_v46  ;;  %5264 = vmatmul.mubr.bf16.gmra.mrb[184].mxu0 %v16305_v44  ;;  %v21532_v13 = vld [vmem:[#allocation65_spill] sm:$0xff]  ;;  %v12206_v4 = vld [vmem:[%s20587_s4 + $0x1b8] sm:$0xff]   ;;  %v4004_v40 = vrot.slane %v16074_v0, 1  ;;  %v4007_v46 = vrot.slane %v16089_v59, 1 }
 0x612   :  { %v16311_v63 = vpack.c.bf16 %v3998_v54, %v3996_v30  ;;  %v4003_v1 = vsel %vm585_vm0, %v21530_v47, %v4002_v29  ;;  %5997 = vmatpush1.bf16.msra.mxu1 %v12204_v17  ;;  %v4005_v30 = vrot.slane %v16087_v50, 1  ;;  %v21533_v54 = vld [vmem:[#allocation81_spill] sm:$0xff]  ;;  %v21534_v29 = vld [vmem:[#allocation70_spill] sm:$0xff] }
 0x613   :  { %5998 = vmatprep.subr.bf16.mxu1 %v21414_v53  ;;  %v4490_v20 = vpack.c.bf16 %v4003_v1, %v21530_v47  ;;  %v12208_v59 = vld [vmem:[%s20587_s4 + $0x1c8] sm:$0xff]   ;;  %v21535_v47 = vld [vmem:[#allocation82_spill] sm:$0xff]  ;;  %v4009_v1 = vrot.slane %v16105_v45, 1 }
 0x614   :  { %5271 = vmatprep.mubr.bf16.mxu0 %v16311_v63  ;;  %v4006_v60 = vsel %vm585_vm0, %v4004_v40, %v4005_v30  ;;  %v4008_v55 = vsel %vm585_vm0, %v4005_v30, %v4007_v46  ;;  %v21536_v46 = vld [vmem:[#allocation100_spill] sm:$0xff] }
 0x615   :  { %v16348_v17 = vpack.c.bf16 %v4008_v55, %v4006_v60  ;;  %v4014_v55 = vrot.slane %v16137_v18, 1 }
 0x616   :  { %5999 = vmatpush1.bf16.msra.mxu1 %v12205_v62  ;;  %v4010_v62 = vrot.slane %v16107_v23, 1 }
 0x617   :  { %5754 = vmatmul.mubr.bf16.gmra.mrb[116].mxu1 %v21531_v9  ;;  %6000 = vmatprep.subr.bf16.mxu1 %v21414_v53 }
 0x618   :  { %5761 = vmatprep.mubr.bf16.mxu1 %v21532_v13  ;;  %v4011_v40 = vsel %vm585_vm0, %v4009_v1, %v4010_v62 }
 0x619   :  { %5272 = vmatmul.mubr.bf16.gmra.mrb[188].mxu0 %v16327_v2 }
 0x61a   :  { %5279 = vmatprep.mubr.bf16.mxu0 %v4490_v20  ;;  %6001 = vmatpush1.bf16.msra.mxu1 %v12206_v4  ;;  %v4012_v20 = vrot.slane %v16125_v38, 1  ;;  %v12209_v4 = vld [vmem:[%s20587_s4 + $0x1d0] sm:$0xff]   ;;  %v16366_v38 = vpack.c.bf16 %v16087_v50, %v16074_v0  ;;  %v21538_v50 = vld [vmem:[#allocation20_spill] sm:$0xff] }
 0x61b   :  { %6002 = vmatprep.subr.bf16.mxu1 %v21414_v53 }
 0x61c   :  { %v4013_v30 = vsel %vm585_vm0, %v4010_v62, %v4012_v20  ;;  %v21539_v62 = vld [vmem:[#allocation103_spill] sm:$0xff]  ;;  %v16382_v20 = vpack.c.bf16 %v16107_v23, %v16105_v45 }
 0x61d   :  { %v16368_v60 = vpack.c.bf16 %v4013_v30, %v4011_v40  ;;  %v4020_v30 = vrot.slane %v16165_v33, 1 }
 0x61e   :  { %6003 = vmatpush1.bf16.msra.mxu1 %v12207_v35  ;;  %v21537_v35 = vld [vmem:[#allocation99_spill] sm:$0xff]  ;;  %21540 = vst [vmem:[#allocation48_spill] sm:$0xff] %v16382_v20 }
 0x61f   :  { %5762 = vmatmul.mubr.bf16.gmra.mrb[120].mxu1 %v21533_v54  ;;  %6004 = vmatprep.subr.bf16.mxu1 %v21414_v53 }
 0x620   :  { %5769 = vmatprep.mubr.bf16.mxu1 %v21534_v29 }
 0x621   :  { %5280 = vmatmul.mubr.bf16.gmra.mrb[192].mxu0 %v21535_v47  ;;  %v4017_v47 = vrot.slane %v16145_v34, 1  ;;  %v4019_v34 = vrot.slane %v16156_v7, 1 }
 0x622   :  { %5287 = vmatprep.mubr.bf16.mxu0 %v16348_v17  ;;  %6005 = vmatpush1.bf16.msra.mxu1 %v12208_v59  ;;  %v4015_v59 = vrot.slane %v16139_v56, 1 }
 0x623   :  { %6006 = vmatprep.subr.bf16.mxu1 %v21414_v53  ;;  %v4021_v45 = vsel %vm585_vm0, %v4019_v34, %v4020_v30  ;;  %v4027_v34 = vrot.slane %v16201_v12, 1  ;;  %v12315_v12 = vld [vmem:[#allocation3 + $0x240] sm:$0xff] }
 0x624   :  { %v4016_v1 = vsel %vm585_vm0, %v4014_v55, %v4015_v59  ;;  %v4018_v0 = vsel %vm585_vm0, %v4015_v59, %v4017_v47  ;;  %v4022_v55 = vrot.slane %v16176_v11, 1  ;;  %v21541_v59 = vld [vmem:[#allocation55_spill] sm:$0xff]  ;;  %v21542_v47 = vld [vmem:[#allocation22_spill] sm:$0xff]  ;;  %v4024_v11 = vrot.slane %v16187_v19, 1 }
 0x625   :  { %v16387_v40 = vpack.c.bf16 %v4018_v0, %v4016_v1  ;;  %v16401_v1 = vpack.c.bf16 %v16139_v56, %v16137_v18  ;;  %v21545_v18 = vld [vmem:[#allocation54_spill] sm:$0xff]  ;;  %v16416_v56 = vpack.c.bf16 %v16165_v33, %v16156_v7 }
 0x626   :  { %6007 = vmatpush1.bf16.msra.mxu1 %v12209_v4  ;;  %v12210_v4 = vld [vmem:[%s20587_s4 + $0x1d8] sm:$0xff]   ;;  %v4023_v23 = vsel %vm585_vm0, %v4020_v30, %v4022_v55 }
 0x627   :  { %5770 = vmatmul.mubr.bf16.gmra.mrb[124].mxu1 %v21536_v46  ;;  %6008 = vmatprep.subr.bf16.mxu1 %v21414_v53  ;;  %21543 = vst [vmem:[#allocation53_spill] sm:$0xff] %v16401_v1  ;;  %v16403_v0 = vpack.c.bf16 %v4023_v23, %v4021_v45  ;;  %v12211_v45 = vld [vmem:[%s20587_s4 + $0x1e0] sm:$0xff]  }
 0x628   :  { %5777 = vmatprep.mubr.bf16.mxu1 %v21537_v35 }
 0x629   :  { %5288 = vmatmul.mubr.bf16.gmra.mrb[196].mxu0 %v16366_v38 }
 0x62a   :  { %5295 = vmatprep.mubr.bf16.mxu0 %v16368_v60  ;;  %6009 = vmatpush1.bf16.msra.mxu1 %v12210_v4  ;;  %v4025_v4 = vrot.slane %v16189_v39, 1 }
 0x62b   :  { %6010 = vmatprep.subr.bf16.mxu1 %v21414_v53 }
 0x62c   :  { %v4026_v30 = vsel %vm585_vm0, %v4024_v11, %v4025_v4  ;;  %v4028_v55 = vsel %vm585_vm0, %v4025_v4, %v4027_v34  ;;  %v4029_v11 = vrot.slane %v12315_v12, 1  ;;  %v12317_v34 = vld [vmem:[#allocation3 + $0x250] sm:$0x3] }
 0x62d   :  { %v16421_v23 = vpack.c.bf16 %v4028_v55, %v4026_v30  ;;  %v21547_v30 = vld [vmem:[#allocation63_spill] sm:$0xff]  ;;  %v16432_v55 = vpack.c.bf16 %v16189_v39, %v16187_v19  ;;  %v12213_v39 = vld [vmem:[%s20587_s4 + $0x1e8] sm:$0xff]  }
 0x62e   :  { %6011 = vmatpush1.bf16.msra.mxu1 %v12211_v45  ;;  %v16437_v45 = vld [vmem:[%s20587_s4 + $0x200] sm:$0xff]   ;;  %v21551_v19 = vld [vmem:[#allocation13_spill] sm:$0xff] }
 0x62f   :  { %5778 = vmatmul.mubr.bf16.gmra.mrb[128].mxu1 %v21538_v50  ;;  %6012 = vmatprep.subr.bf16.mxu1 %v21414_v53 }
 0x630   :  { %5785 = vmatprep.mubr.bf16.mxu1 %v21539_v62  ;;  %10797 = vmatprep.subr.bf16.mxu0 %v16437_v45 }
 0x631   :  { %5296 = vmatmul.mubr.bf16.gmra.mrb[200].mxu0 %v16382_v20  ;;  %v21546_v20 = vld [vmem:[#allocation52_spill] sm:$0xff] }
 0x632   :  { %5303 = vmatprep.mubr.bf16.mxu0 %v16387_v40  ;;  %6013 = vmatpush1.bf16.msra.mxu1 %v12213_v39  ;;  %v4388_v39 = vrot.slane %v16240_v21, 2 }
 0x633   :  { %6014 = vmatprep.subr.bf16.mxu1 %v21414_v53 }
 0x637   :  { %5786 = vmatmul.mubr.bf16.gmra.mrb[132].mxu1 %v21541_v59  ;;  %v21544_v59 = vld [vmem:[#allocation89_spill] sm:$0xff] }
 0x638   :  { %5793 = vmatprep.mubr.bf16.mxu1 %v21542_v47 }
 0x639   :  { %5304 = vmatmul.mubr.bf16.gmra.mrb[204].mxu0 %v16401_v1  ;;  %v12316_v1 = vld [vmem:[#allocation3 + $0x248] sm:$0xff] }
 0x63a   :  { %5311 = vmatprep.mubr.bf16.mxu0 %v16403_v0  ;;  %v4030_v4 = vrot.slane %v12316_v1, 1 }
 0x63c   :  { %v4031_v7 = vsel %vm585_vm0, %v4029_v11, %v4030_v4  ;;  %v21549_v11 = vld [vmem:[#allocation30_spill] sm:$0xff] }
 0x63f   :  { %5794 = vmatmul.mubr.bf16.gmra.mrb[136].mxu1 %v21544_v59  ;;  %v4032_v59 = vrot.slane %v12317_v34, 1 }
 0x640   :  { %5801 = vmatprep.mubr.bf16.mxu1 %v21545_v18 }
 0x641   :  { %5312 = vmatmul.mubr.bf16.gmra.mrb[208].mxu0 %v16416_v56  ;;  %v4033_v33 = vsel %vm585_vm0, %v4030_v4, %v4032_v59  ;;  %v21548_v59 = vld [vmem:[#allocation24_spill] sm:$0xff]  ;;  %v16446_v4 = vpack.c.bf16 %v12316_v1, %v12315_v12  ;;  %v12214_v1 = vld [vmem:[%s20587_s4 + $0x1f0] sm:$0xff]  }
 0x642   :  { %5319 = vmatprep.mubr.bf16.mxu0 %v16421_v23  ;;  %v16439_v34 = vpack.c.bf16 %v4033_v33, %v4031_v7  ;;  %v21552_v12 = vld [vmem:[#allocation28_spill] sm:$0xff]  ;;  %6015 = vmatpush1.bf16.msra.mxu1 %v12214_v1  ;;  %v3765_v7 = vld [vmem:[#allocation3 + $0x190] sm:$0x3]  ;;  %v4387_v33 = vrot.slane %v16238_v43, 2 }
 0x643   :  { %21550 = vst [vmem:[#allocation57_spill] sm:$0xff] %v16446_v4  ;;  %6016 = vmatprep.subr.bf16.mxu1 %v21414_v53 }
 0x647   :  { %5802 = vmatmul.mubr.bf16.gmra.mrb[140].mxu1 %v21546_v20 }
 0x648   :  { %5809 = vmatprep.mubr.bf16.mxu1 %v21547_v30 }
 0x649   :  { %5320 = vmatmul.mubr.bf16.gmra.mrb[212].mxu0 %v16432_v55 }
 0x64a   :  { %5327 = vmatprep.mubr.bf16.mxu0 %v16439_v34 }
 0x64f   :  { %5810 = vmatmul.mubr.bf16.gmra.mrb[144].mxu1 %v21548_v59  ;;  %v4376_v59 = vrot.slane %v3765_v7, 1 }
 0x650   :  { %5817 = vmatprep.mubr.bf16.mxu1 %v21549_v11 }
 0x651   :  { %5328 = vmatmul.mubr.bf16.gmra.mrb[216].mxu0 %v16446_v4  ;;  %v4373_v4 = vrot.slane %v16238_v43, 1  ;;  %v21555_v43 = vld [vmem:[#allocation90_spill] sm:$0xff] }
 0x652   :  { %5335 = vmatprep.mubr.bf16.mxu0 %v16051_v57 }
 0x657   :  { %5818 = vmatmul.mubr.bf16.gmra.mrb[148].mxu1 %v16006_v25  ;;  %v4389_v25 = vsel %vm810_vm1, %v4387_v33, %v4388_v39 }
 0x658   :  { %5825 = vmatprep.mubr.bf16.mxu1 %v16044_v24 }
 0x659   :  { %5336 = vmatmul.mubr.bf16.gmra.mrb[220].mxu0 %v21551_v19  ;;  %v4390_v19 = vrot.slane %v3765_v7, 2 }
 0x65a   :  { %5343 = vmatprep.mubr.bf16.mxu0 %v16060_v32 }
 0x65b   :  { %v4391_v1 = vsel %vm810_vm1, %v4388_v39, %v4390_v19  ;;  %v21554_v39 = vld [vmem:[#allocation71_spill] sm:$0xff] }
 0x65f   :  { %5826 = vmatmul.mubr.bf16.gmra.mrb[152].mxu1 %v16118_v22  ;;  %v21553_v22 = vld [vmem:[#allocation51_spill] sm:$0xff] }
 0x660   :  { %5833 = vmatprep.mubr.bf16.mxu1 %v16053_v58 }
 0x661   :  { %5344 = vmatmul.mubr.bf16.gmra.mrb[224].mxu0 %v21552_v12  ;;  %v16474_v12 = vpack.c.bf16 %v4391_v1, %v4389_v25  ;;  %v21559_v1 = vld [vmem:[#allocation80_spill] sm:$0xff] }
 0x662   :  { %5351 = vmatprep.mubr.bf16.mxu0 %v16109_v31 }
 0x667   :  { %5834 = vmatmul.mubr.bf16.gmra.mrb[156].mxu1 %v16120_v6  ;;  %v4374_v6 = vrot.slane %v16240_v21, 1  ;;  %v21558_v21 = vld [vmem:[#allocation19_spill] sm:$0xff] }
 0x668   :  { %5841 = vmatprep.mubr.bf16.mxu1 %v16091_v5 }
 0x669   :  { %5352 = vmatmul.mubr.bf16.gmra.mrb[228].mxu0 %v21553_v22  ;;  %v12216_v22 = vld [vmem:[%s20587_s4 + $0x1f8] sm:$0xff]   ;;  %v4375_v33 = vsel %vm585_vm0, %v4373_v4, %v4374_v6  ;;  %v4377_v19 = vsel %vm585_vm0, %v4374_v6, %v4376_v59  ;;  %v21556_v6 = vld [vmem:[#allocation6_spill] sm:$0xff] }
 0x66a   :  { %5359 = vmatprep.mubr.bf16.mxu0 %v16122_v61  ;;  %6017 = vmatpush1.bf16.msra.mxu1 %v12216_v22  ;;  %v16488_v25 = vpack.c.bf16 %v4377_v19, %v4375_v33  ;;  %v21557_v22 = vld [vmem:[#allocation17_spill] sm:$0xff]  ;;  %v12319_v4 = vld [vmem:[#allocation3 + $0x10] sm:$0x3]  ;;  %v21560_v33 = vld [vmem:[#allocation12_spill] sm:$0xff] }
 0x66b   :  { %8450 = vmatprep.subr.bf16.mxu1 %v21414_v53  ;;  %v4146_v7 = vrot.slane %v12319_v4, 2  ;;  %v12215_v4 = vld [vmem:[%s20587_s4 + $0x208] sm:$0xff]  }
 0x66f   :  { %5842 = vmatmul.mubr.bf16.gmra.mrb[160].mxu1 %v16311_v63 }
 0x670   :  { %5849 = vmatprep.mubr.bf16.mxu1 %v16474_v12 }
 0x671   :  { %5360 = vmatmul.mubr.bf16.gmra.mrb[232].mxu0 %v21554_v39  ;;  %v21568_v39 = vld [vmem:[#allocation76_spill] sm:$0xff] }
 0x672   :  { %5367 = vmatprep.mubr.bf16.mxu0 %v16160_v10 }
 0x677   :  { %5850 = vmatmul.mubr.bf16.gmra.mrb[164].mxu1 %v16488_v25 }
 0x678   :  { %5857 = vmatprep.mubr.bf16.mxu1 %v16158_v48 }
 0x679   :  { %5368 = vmatmul.mubr.bf16.gmra.mrb[236].mxu0 %v21555_v43  ;;  %v21567_v43 = vld [vmem:[#allocation25_spill] sm:$0xff] }
 0x67a   :  { %5375 = vmatprep.mubr.bf16.mxu0 %v16203_v36 }
 0x67f   :  { %5858 = vmatmul.mubr.bf16.gmra.mrb[168].mxu1 %v16348_v17  ;;  %v16506_v17 = vld [vmem:[#allocation2] sm:$0xff] }
 0x680   :  { %5865 = vmatprep.mubr.bf16.mxu1 %v16191_v52  ;;  %v16509_v59 = vrot.slane %v16506_v17, 2 }
 0x681   :  { %5376 = vmatmul.mubr.bf16.gmra.mrb[240].mxu0 %v21556_v6  ;;  %v21562_v6 = vld [vmem:[#allocation35_spill] sm:$0xff] }
 0x682   :  { %5383 = vmatprep.mubr.bf16.mxu0 %v16213_v28  ;;  %v4147_v19 = vsel %vm810_vm1, %v16509_v59, %v4146_v7  ;;  %v12217_v7 = vld [vmem:[%s20587_s4 + $0x210] sm:$0xff]  }
 0x687   :  { %5866 = vmatmul.mubr.bf16.gmra.mrb[172].mxu1 %v16368_v60 }
 0x688   :  { %5873 = vmatprep.mubr.bf16.mxu1 %v16211_v41 }
 0x689   :  { %5384 = vmatmul.mubr.bf16.gmra.mrb[244].mxu0 %v21557_v22  ;;  %v21561_v22 = vld [vmem:[#allocation15_spill] sm:$0xff] }
 0x68a   :  { %5391 = vmatprep.mubr.bf16.mxu0 %v16249_v15 }
 0x68f   :  { %5874 = vmatmul.mubr.bf16.gmra.mrb[176].mxu1 %v16387_v40 }
 0x690   :  { %5881 = vmatprep.mubr.bf16.mxu1 %v16242_v49 }
 0x691   :  { %5392 = vmatmul.mubr.bf16.gmra.mrb[248].mxu0 %v21558_v21  ;;  %v4437_v21 = vpack.c.bf16 %v4147_v19, %v16509_v59  ;;  %v12218_v19 = vld [vmem:[%s20587_s4 + $0x218] sm:$0xff]  }
 0x692   :  { %5399 = vmatprep.mubr.bf16.mxu0 %v16263_v27 }
 0x697   :  { %5882 = vmatmul.mubr.bf16.gmra.mrb[180].mxu1 %v16403_v0 }
 0x698   :  { %5889 = vmatprep.mubr.bf16.mxu1 %v16261_v16 }
 0x699   :  { %5400 = vmatmul.mubr.bf16.gmra.mrb[252].mxu0 %v21559_v1  ;;  %v21565_v1 = vld [vmem:[#allocation56_spill] sm:$0xff] }
 0x69a   :  { %5440 = vmatprep.mubr.bf16.mxu0 %v21560_v33  ;;  %v21563_v33 = vld [vmem:[#allocation46_spill] sm:$0xff] }
 0x69f   :  { %5890 = vmatmul.mubr.bf16.gmra.mrb[184].mxu1 %v16421_v23 }
 0x6a0   :  { %5897 = vmatprep.mubr.bf16.mxu1 %v21561_v22 }
 0x6a1   :  { %5441 = vmatmul.mubr.bf16.vlgmr.msra.gmra.mrb[128].mxu0 %v4437_v21  ;;  %v21564_v21 = vld [vmem:[#allocation16_spill] sm:$0xff] }
 0x6a2   :  { %5448 = vmatprep.mubr.bf16.mxu0 %v21562_v6  ;;  %10798 = vmatpush3.bf16.msra.mxu0 %v16437_v45  ;;  %v12219_v45 = vld [vmem:[%s20587_s4 + $0x220] sm:$0xff]  }
 0x6a3   :  { %10799 = vmatprep.subr.bf16.mxu0 %v12215_v4 }
 0x6a6   :  { %10800 = vmatpush3.bf16.msra.mxu0 %v12215_v4  ;;  %v21566_v4 = vld [vmem:[#allocation66_spill] sm:$0xff] }
 0x6a7   :  { %5898 = vmatmul.mubr.bf16.gmra.mrb[188].mxu1 %v16439_v34  ;;  %10801 = vmatprep.subr.bf16.mxu0 %v12217_v7 }
 0x6a8   :  { %5905 = vmatprep.mubr.bf16.mxu1 %v21563_v33  ;;  %v21570_v33 = vld [vmem:[#allocation32_spill] sm:$0xff] }
 0x6a9   :  { %5449 = vmatmul.mubr.bf16.gmra.mrb[132].mxu0 %v21564_v21  ;;  %v21569_v21 = vld [vmem:[#allocation86_spill] sm:$0xff] }
 0x6aa   :  { %5456 = vmatprep.mubr.bf16.mxu0 %v21565_v1  ;;  %10802 = vmatpush3.bf16.msra.mxu0 %v12217_v7  ;;  %v12220_v7 = vld [vmem:[%s20587_s4 + $0x228] sm:$0xff]  }
 0x6ab   :  { %10803 = vmatprep.subr.bf16.mxu0 %v12218_v19 }
 0x6ae   :  { %10804 = vmatpush3.bf16.msra.mxu0 %v12218_v19  ;;  %v21571_v19 = vld [vmem:[#allocation95_spill] sm:$0xff] }
 0x6af   :  { %5906 = vmatmul.mubr.bf16.gmra.mrb[64].mxu1 %v16051_v57  ;;  %10805 = vmatprep.subr.bf16.mxu0 %v12219_v45  ;;  %v21576_v57 = vld [vmem:[#allocation44_spill] sm:$0xff] }
 0x6b0   :  { %5913 = vmatprep.mubr.bf16.mxu1 %v21566_v4  ;;  %v21572_v4 = vld [vmem:[#allocation102_spill] sm:$0xff] }
 0x6b1   :  { %5457 = vmatmul.mubr.bf16.gmra.mrb[136].mxu0 %v21567_v43 }
 0x6b2   :  { %5464 = vmatprep.mubr.bf16.mxu0 %v21568_v39  ;;  %10806 = vmatpush3.bf16.msra.mxu0 %v12219_v45  ;;  %v21573_v45 = vld [vmem:[#allocation8_spill] sm:$0xff] }
 0x6b3   :  { %10807 = vmatprep.subr.bf16.mxu0 %v12220_v7 }
 0x6b6   :  { %10808 = vmatpush3.bf16.msra.mxu0 %v12220_v7  ;;  %v12221_v7 = vld [vmem:[%s20587_s4 + $0x230] sm:$0xff]  }
 0x6b7   :  { %5914 = vmatmul.mubr.bf16.gmra.mrb[68].mxu1 %v16060_v32  ;;  %v21575_v32 = vld [vmem:[#allocation26_spill] sm:$0xff]  ;;  %10809 = vmatprep.subr.bf16.mxu0 %v12221_v7 }
 0x6b8   :  { %5921 = vmatprep.mubr.bf16.mxu1 %v21569_v21  ;;  %v21574_v21 = vld [vmem:[#allocation18_spill] sm:$0xff] }
 0x6b9   :  { %5465 = vmatmul.mubr.bf16.gmra.mrb[140].mxu0 %v21570_v33 }
 0x6ba   :  { %5472 = vmatprep.mubr.bf16.mxu0 %v21571_v19  ;;  %10810 = vmatpush3.bf16.msra.mxu0 %v12221_v7  ;;  %v21582_v7 = vld [vmem:[#allocation23_spill] sm:$0xff] }
 0x6bf   :  { %5922 = vmatmul.mubr.bf16.gmra.mrb[72].mxu1 %v16109_v31  ;;  %v12222_v31 = vld [vmem:[%s20587_s4 + $0x238] sm:$0xff]  }
 0x6c0   :  { %5929 = vmatprep.mubr.bf16.mxu1 %v21572_v4  ;;  %10811 = vmatprep.subr.bf16.mxu0 %v12222_v31  ;;  %v21581_v4 = vld [vmem:[#allocation62_spill] sm:$0xff] }
 0x6c1   :  { %5473 = vmatmul.mubr.bf16.gmra.mrb[144].mxu0 %v21529_v51 }
 0x6c2   :  { %5480 = vmatprep.mubr.bf16.mxu0 %v21573_v45  ;;  %10812 = vmatpush3.bf16.msra.mxu0 %v12222_v31  ;;  %v21583_v31 = vld [vmem:[#allocation39_spill] sm:$0xff] }
 0x6c7   :  { %5930 = vmatmul.mubr.bf16.gmra.mrb[76].mxu1 %v16122_v61  ;;  %v21577_v61 = vld [vmem:[#allocation60_spill] sm:$0xff] }
 0x6c8   :  { %5937 = vmatprep.mubr.bf16.mxu1 %v21574_v21  ;;  %v21580_v21 = vld [vmem:[#allocation49_spill] sm:$0xff] }
 0x6c9   :  { %5481 = vmatmul.mubr.bf16.gmra.mrb[148].mxu0 %v21532_v13 }
 0x6ca   :  { %5488 = vmatprep.mubr.bf16.mxu0 %v21575_v32 }
 0x6cf   :  { %5938 = vmatmul.mubr.bf16.gmra.mrb[80].mxu1 %v16160_v10  ;;  %v21578_v10 = vld [vmem:[#allocation75_spill] sm:$0xff] }
 0x6d0   :  { %5945 = vmatprep.mubr.bf16.mxu1 %v21576_v57  ;;  %v21579_v57 = vld [vmem:[#allocation101_spill] sm:$0xff] }
 0x6d1   :  { %5489 = vmatmul.mubr.bf16.gmra.mrb[152].mxu0 %v21534_v29 }
 0x6d2   :  { %5496 = vmatprep.mubr.bf16.mxu0 %v21577_v61 }
 0x6d7   :  { %5946 = vmatmul.mubr.bf16.gmra.mrb[84].mxu1 %v16203_v36  ;;  %v21585_v36 = vld [vmem:[#allocation14_spill] sm:$0xff] }
 0x6d8   :  { %5953 = vmatprep.mubr.bf16.mxu1 %v21578_v10 }
 0x6d9   :  { %5497 = vmatmul.mubr.bf16.gmra.mrb[156].mxu0 %v21537_v35 }
 0x6da   :  { %5504 = vmatprep.mubr.bf16.mxu0 %v21579_v57 }
 0x6df   :  { %5954 = vmatmul.mubr.bf16.gmra.mrb[88].mxu1 %v16213_v28  ;;  %v21584_v28 = vld [vmem:[#allocation34_spill] sm:$0xff] }
 0x6e0   :  { %5961 = vmatprep.mubr.bf16.mxu1 %v21580_v21 }
 0x6e1   :  { %5505 = vmatmul.mubr.bf16.gmra.mrb[160].mxu0 %v21539_v62 }
 0x6e2   :  { %5512 = vmatprep.mubr.bf16.mxu0 %v21581_v4 }
 0x6e7   :  { %5962 = vmatmul.mubr.bf16.gmra.mrb[92].mxu1 %v16249_v15 }
 0x6e8   :  { %5969 = vmatprep.mubr.bf16.mxu1 %v21582_v7 }
 0x6e9   :  { %5513 = vmatmul.mubr.bf16.gmra.mrb[164].mxu0 %v21542_v47 }
 0x6ea   :  { %5520 = vmatprep.mubr.bf16.mxu0 %v21583_v31 }
 0x6ef   :  { %5970 = vmatmul.mubr.bf16.gmra.mrb[96].mxu1 %v16263_v27 }
 0x6f0   :  { %5977 = vmatprep.mubr.bf16.mxu1 %v16274_v42 }
 0x6f1   :  { %5521 = vmatmul.mubr.bf16.gmra.mrb[168].mxu0 %v21545_v18 }
 0x6f2   :  { %5528 = vmatprep.mubr.bf16.mxu0 %v21584_v28 }
 0x6f7   :  { %5978 = vmatmul.mubr.bf16.gmra.mrb[100].mxu1 %v16299_v26 }
 0x6f8   :  { %6018 = vmatprep.mubr.bf16.mxu1 %v21585_v36  ;;  %v4226_v36 = vrot.slane %v16283_v14, 2 }
 0x6f9   :  { %5529 = vmatmul.mubr.bf16.gmra.mrb[172].mxu0 %v21547_v30 }
 0x6fa   :  { %5536 = vmatprep.mubr.bf16.mxu0 %v16103_v8 }
 0x6ff   :  { %6019 = vmatmul.mubr.bf16.vlgmr.msra.gmra.mrb[104].mxu1 %v21562_v6 }
 0x700   :  { %6026 = vmatprep.mubr.bf16.mxu1 %v21528_v37  ;;  %v4227_v37 = vsel %vm810_vm1, %v16509_v59, %v4226_v36  ;;  %v21589_v36 = vld [vmem:[#allocation89_spill] sm:$0xff] }
 0x701   :  { %5537 = vmatmul.mubr.bf16.gmra.mrb[176].mxu0 %v21549_v11 }
 0x702   :  { %5544 = vmatprep.mubr.bf16.mxu0 %v16305_v44 }
 0x707   :  { %6027 = vmatmul.mubr.bf16.gmra.mrb[108].mxu1 %v21565_v1  ;;  %v21588_v1 = vld [vmem:[#allocation53_spill] sm:$0xff] }
 0x708   :  { %6034 = vmatprep.mubr.bf16.mxu1 %v21531_v9  ;;  %v4491_v9 = vpack.c.bf16 %v4227_v37, %v16509_v59 }
 0x709   :  { %5545 = vmatmul.mubr.bf16.gmra.mrb[180].mxu0 %v16044_v24 }
 0x70a   :  { %5552 = vmatprep.mubr.bf16.mxu0 %v16327_v2 }
 0x70f   :  { %6035 = vmatmul.mubr.bf16.gmra.mrb[112].mxu1 %v21568_v39 }
 0x710   :  { %6042 = vmatprep.mubr.bf16.mxu1 %v21533_v54  ;;  %v21586_v54 = vld [vmem:[#allocation48_spill] sm:$0xff] }
 0x711   :  { %5553 = vmatmul.mubr.bf16.gmra.mrb[184].mxu0 %v16053_v58 }
 0x712   :  { %5560 = vmatprep.mubr.bf16.mxu0 %v16278_v3 }
 0x717   :  { %6043 = vmatmul.mubr.bf16.gmra.mrb[116].mxu1 %v21571_v19 }
 0x718   :  { %6050 = vmatprep.mubr.bf16.mxu1 %v21536_v46 }
 0x719   :  { %5561 = vmatmul.mubr.bf16.gmra.mrb[188].mxu0 %v16091_v5 }
 0x71a   :  { %5568 = vmatprep.mubr.bf16.mxu0 %v16366_v38  ;;  %v21587_v38 = vld [vmem:[#allocation55_spill] sm:$0xff] }
 0x71f   :  { %6051 = vmatmul.mubr.bf16.gmra.mrb[120].mxu1 %v21573_v45 }
 0x720   :  { %6058 = vmatprep.mubr.bf16.mxu1 %v21538_v50 }
 0x721   :  { %5569 = vmatmul.mubr.bf16.gmra.mrb[192].mxu0 %v4491_v9 }
 0x722   :  { %5576 = vmatprep.mubr.bf16.mxu0 %v21586_v54 }
 0x724   :  { %v16610_v39 = vpop.f32.mrb[216].mxu0 }
 0x725   :  { %v5331_v14 = vpop.f32.mrb[217].mxu0 }
 0x726   :  { %v16613_v46 = vpop.f32.mrb[218].mxu0 }
 0x727   :  { %6059 = vmatmul.mubr.bf16.gmra.mrb[124].mxu1 %v21575_v32  ;;  %v5334_v6 = vpop.f32.mrb[219].mxu0 }
 0x728   :  { %6066 = vmatprep.mubr.bf16.mxu1 %v21587_v38 }
 0x729   :  { %5577 = vmatmul.mubr.bf16.gmra.mrb[196].mxu0 %v16158_v48 }
 0x72a   :  { %5584 = vmatprep.mubr.bf16.mxu0 %v21588_v1 }
 0x72c   :  { %v16618_v19 = vpop.f32.mrb[220].mxu0 }
 0x72d   :  { %v5339_v50 = vpop.f32.mrb[221].mxu0 }
 0x72e   :  { %v16621_v45 = vpop.f32.mrb[222].mxu0  ;;  %v21593_v50 = vld [vmem:[#allocation24_spill] sm:$0xff] }
 0x72f   :  { %6067 = vmatmul.mubr.bf16.gmra.mrb[128].mxu1 %v21577_v61  ;;  %v5342_v37 = vpop.f32.mrb[223].mxu0 }
 0x730   :  { %6074 = vmatprep.mubr.bf16.mxu1 %v21589_v36 }
 0x731   :  { %5585 = vmatmul.mubr.bf16.gmra.mrb[200].mxu0 %v16191_v52 }
 0x732   :  { %5592 = vmatprep.mubr.bf16.mxu0 %v16416_v56 }
 0x734   :  { %v16626_v32 = vpop.f32.mrb[224].mxu0 }
 0x735   :  { %v5347_v9 = vpop.f32.mrb[225].mxu0 }
 0x736   :  { %v16629_v48 = vpop.f32.mrb[226].mxu0 }
 0x737   :  { %6075 = vmatmul.mubr.bf16.gmra.mrb[132].mxu1 %v21579_v57  ;;  %21590 = vst [vmem:[#allocation58_spill] sm:$0xff] %v16629_v48  ;;  %v5350_v14 = vpop.f32.mrb[227].mxu0  ;;  %v21594_v57 = vld [vmem:[#allocation57_spill] sm:$0xff] }
 0x738   :  { %6082 = vmatprep.mubr.bf16.mxu1 %v21546_v20  ;;  %v21597_v14 = vld [vmem:[#allocation29_spill] sm:$0xff] }
 0x739   :  { %5593 = vmatmul.mubr.bf16.gmra.mrb[204].mxu0 %v16211_v41 }
 0x73a   :  { %5600 = vmatprep.mubr.bf16.mxu0 %v16432_v55 }
 0x73c   :  { %v16634_v61 = vpop.f32.mrb[228].mxu0 }
 0x73d   :  { %21591 = vst [vmem:[#allocation64_spill] sm:$0xff] %v16634_v61  ;;  %v5355_v38 = vpop.f32.mrb[229].mxu0 }
 0x73e   :  { %v16637_v6 = vpop.f32.mrb[230].mxu0 }
 0x73f   :  { %6083 = vmatmul.mubr.bf16.gmra.mrb[136].mxu1 %v21581_v4  ;;  %21592 = vst [vmem:[#allocation67_spill] sm:$0xff] %v16637_v6  ;;  %v5358_v36 = vpop.f32.mrb[231].mxu0 }
 0x740   :  { %6090 = vmatprep.mubr.bf16.mxu1 %v21593_v50 }
 0x741   :  { %5601 = vmatmul.mubr.bf16.gmra.mrb[208].mxu0 %v16242_v49 }
 0x742   :  { %5608 = vmatprep.mubr.bf16.mxu0 %v21594_v57 }
 0x744   :  { %v16642_v20 = vpop.f32.mrb[232].mxu0 }
 0x745   :  { %21595 = vst [vmem:[#allocation68_spill] sm:$0xff] %v16642_v20  ;;  %v5363_v37 = vpop.f32.mrb[233].mxu0  ;;  %v21600_v20 = vld [vmem:[#allocation37_spill] sm:$0xff] }
 0x746   :  { %v16645_v9 = vpop.f32.mrb[234].mxu0 }
 0x747   :  { %6091 = vmatmul.mubr.bf16.gmra.mrb[140].mxu1 %v21583_v31  ;;  %21596 = vst [vmem:[#allocation69_spill] sm:$0xff] %v16645_v9  ;;  %v5366_v38 = vpop.f32.mrb[235].mxu0 }
 0x748   :  { %6098 = vmatprep.mubr.bf16.mxu1 %v21597_v14  ;;  %v21603_v38 = vld [vmem:[#allocation38_spill] sm:$0xff] }
 0x749   :  { %5609 = vmatmul.mubr.bf16.gmra.mrb[212].mxu0 %v16261_v16 }
 0x74a   :  { %10813 = vmatprep.mubr.bf16.mxu0 %v21567_v43 }
 0x74c   :  { %v16650_v4 = vpop.f32.mrb[236].mxu0 }
 0x74d   :  { %21598 = vst [vmem:[#allocation72_spill] sm:$0xff] %v16650_v4  ;;  %v5371_v50 = vpop.f32.mrb[237].mxu0 }
 0x74e   :  { %v16653_v36 = vpop.f32.mrb[238].mxu0 }
 0x74f   :  { %6099 = vmatmul.mubr.bf16.gmra.mrb[144].mxu1 %v21584_v28  ;;  %21599 = vst [vmem:[#allocation73_spill] sm:$0xff] %v16653_v36  ;;  %v5374_v37 = vpop.f32.mrb[239].mxu0 }
 0x750   :  { %6106 = vmatprep.mubr.bf16.mxu1 %v21600_v20 }
 0x751   :  { %10814 = vmatmul.mubr.bf16.vlgmr.msra.gmra.mrb[0].mxu0 %v21570_v33 }
 0x752   :  { %10817 = vmatprep.mubr.bf16.mxu0 %v21529_v51 }
 0x754   :  { %v16658_v31 = vpop.f32.mrb[240].mxu0 }
 0x755   :  { %21601 = vst [vmem:[#allocation74_spill] sm:$0xff] %v16658_v31  ;;  %v5379_v14 = vpop.f32.mrb[241].mxu0 }
 0x756   :  { %v16661_v43 = vpop.f32.mrb[242].mxu0 }
 0x757   :  { %6107 = vmatmul.mubr.bf16.gmra.mrb[148].mxu1 %v16103_v8  ;;  %21602 = vst [vmem:[#allocation77_spill] sm:$0xff] %v16661_v43  ;;  %v5382_v50 = vpop.f32.mrb[243].mxu0  ;;  %v3768_v8 = vld [vmem:[#allocation3 + $0x1a8] sm:$0x3] }
 0x758   :  { %6114 = vmatprep.mubr.bf16.mxu1 %v21603_v38 }
 0x759   :  { %10818 = vmatmul.mubr.bf16.gmra.mrb[4].mxu0 %v21532_v13  ;;  %v16677_v13 = vrot.slane %v16506_v17, 1 }
 0x75a   :  { %10821 = vmatprep.mubr.bf16.mxu0 %v21534_v29  ;;  %v4410_v29 = vrot.slane %v3768_v8, 1 }
 0x75c   :  { %v16666_v28 = vpop.f32.mrb[244].mxu0 }
 0x75d   :  { %21604 = vst [vmem:[#allocation78_spill] sm:$0xff] %v16666_v28  ;;  %v5387_v20 = vpop.f32.mrb[245].mxu0 }
 0x75e   :  { %v16669_v51 = vpop.f32.mrb[246].mxu0 }
 0x75f   :  { %6115 = vmatmul.mubr.bf16.gmra.mrb[152].mxu1 %v16305_v44  ;;  %21605 = vst [vmem:[#allocation84_spill] sm:$0xff] %v16669_v51  ;;  %v5390_v33 = vpop.f32.mrb[247].mxu0 }
 0x760   :  { %6122 = vmatprep.mubr.bf16.mxu1 %v16311_v63 }
 0x761   :  { %10822 = vmatmul.mubr.bf16.gmra.mrb[8].mxu0 %v21537_v35  ;;  %v4411_v35 = vsel %vm585_vm0, %v16677_v13, %v4410_v29  ;;  %v4424_v29 = vrot.slane %v3768_v8, 2 }
 0x762   :  { %10825 = vmatprep.mubr.bf16.mxu0 %v21539_v62  ;;  %v4487_v62 = vpack.c.bf16 %v4411_v35, %v16677_v13 }
 0x764   :  { %v16674_v37 = vpop.f32.mrb[248].mxu0 }
 0x765   :  { %21606 = vst [vmem:[#allocation87_spill] sm:$0xff] %v16674_v37  ;;  %v5395_v14 = vpop.f32.mrb[249].mxu0 }
 0x766   :  { %v16680_v44 = vpop.f32.mrb[250].mxu0 }
 0x767   :  { %6123 = vmatmul.mubr.bf16.gmra.mrb[156].mxu1 %v16327_v2  ;;  %21607 = vst [vmem:[#allocation88_spill] sm:$0xff] %v16680_v44  ;;  %v5398_v63 = vpop.f32.mrb[251].mxu0 }
 0x768   :  { %6130 = vmatprep.mubr.bf16.mxu1 %v16488_v25  ;;  %v16696_v25 = vpack.c.bf16 %v16506_v17, %v16506_v17 }
 0x769   :  { %10826 = vmatmul.mubr.bf16.gmra.mrb[12].mxu0 %v21542_v47 }
 0x76a   :  { %10829 = vmatprep.mubr.bf16.mxu0 %v21545_v18 }
 0x76c   :  { %v16688_v38 = vpop.f32.mrb[252].mxu0 }
 0x76d   :  { %21608 = vst [vmem:[#allocation91_spill] sm:$0xff] %v16688_v38  ;;  %v5403_v50 = vpop.f32.mrb[253].mxu0 }
 0x76e   :  { %v16691_v2 = vpop.f32.mrb[254].mxu0 }
 0x76f   :  { %6131 = vmatmul.mubr.bf16.gmra.mrb[160].mxu1 %v16278_v3  ;;  %21609 = vst [vmem:[#allocation92_spill] sm:$0xff] %v16691_v2  ;;  %v5406_v20 = vpop.f32.mrb[255].mxu0 }
 0x770   :  { %6138 = vmatprep.mubr.bf16.mxu1 %v4487_v62 }
 0x771   :  { %10830 = vmatmul.mubr.bf16.gmra.mrb[16].mxu0 %v21547_v30 }
 0x772   :  { %10833 = vmatprep.mubr.bf16.mxu0 %v21549_v11 }
 0x774   :  { %v16699_v47 = vpop.f32.mrb[128].mxu0 }
 0x775   :  { %v5444_v18 = vpop.f32.mrb[129].mxu0 }
 0x776   :  { %v16702_v33 = vpop.f32.mrb[130].mxu0  ;;  %v21611_v18 = vld [vmem:[#allocation46_spill] sm:$0xff] }
 0x777   :  { %6139 = vmatmul.mubr.bf16.gmra.mrb[164].mxu1 %v16696_v25  ;;  %v5447_v3 = vpop.f32.mrb[131].mxu0 }
 0x778   :  { %6146 = vmatprep.mubr.bf16.mxu1 %v16368_v60  ;;  %v4425_v60 = vsel %vm810_vm1, %v16509_v59, %v4424_v29 }
 0x779   :  { %10834 = vmatmul.mubr.bf16.gmra.mrb[20].mxu0 %v16044_v24 }
 0x77a   :  { %10837 = vmatprep.mubr.bf16.mxu0 %v16053_v58  ;;  %v4488_v58 = vpack.c.bf16 %v4425_v60, %v16509_v59  ;;  %v21615_v60 = vld [vmem:[#allocation86_spill] sm:$0xff] }
 0x77c   :  { %v16707_v30 = vpop.f32.mrb[132].mxu0 }
 0x77d   :  { %v5452_v17 = vpop.f32.mrb[133].mxu0 }
 0x77e   :  { %v16710_v11 = vpop.f32.mrb[134].mxu0  ;;  %v21613_v17 = vld [vmem:[#allocation13_spill] sm:$0xff] }
 0x77f   :  { %6147 = vmatmul.mubr.bf16.gmra.mrb[168].mxu1 %v21586_v54  ;;  %v5455_v14 = vpop.f32.mrb[135].mxu0  ;;  %v12223_v54 = vld [vmem:[%s20590_s7] sm:$0xff]  }
 0x780   :  { %6154 = vmatprep.mubr.bf16.mxu1 %v16387_v40  ;;  %8451 = vmatpush1.bf16.msra.mxu1 %v12223_v54 }
 0x781   :  { %10838 = vmatmul.mubr.bf16.gmra.mrb[24].mxu0 %v16091_v5  ;;  %8452 = vmatprep.subr.bf16.mxu1 %v21414_v53 }
 0x782   :  { %10841 = vmatprep.mubr.bf16.mxu0 %v16474_v12 }
 0x784   :  { %v16717_v24 = vpop.f32.mrb[136].mxu0 }
 0x785   :  { %v5460_v63 = vpop.f32.mrb[137].mxu0 }
 0x786   :  { %v16724_v40 = vpop.f32.mrb[138].mxu0 }
 0x787   :  { %6155 = vmatmul.mubr.bf16.gmra.mrb[172].mxu1 %v21588_v1  ;;  %v5463_v5 = vpop.f32.mrb[139].mxu0 }
 0x788   :  { %6162 = vmatprep.mubr.bf16.mxu1 %v16403_v0  ;;  %v21617_v5 = vld [vmem:[#allocation28_spill] sm:$0xff] }
 0x789   :  { %10842 = vmatmul.mubr.bf16.gmra.mrb[28].mxu0 %v4488_v58  ;;  %v21616_v58 = vld [vmem:[#allocation102_spill] sm:$0xff] }
 0x78a   :  { %10845 = vmatprep.mubr.bf16.mxu0 %v16191_v52  ;;  %v12224_v52 = vld [vmem:[%s20590_s7 + $0x8] sm:$0xff]  }
 0x78b   :  { %8453 = vmatpush1.bf16.msra.mxu1 %v12224_v52 }
 0x78c   :  { %v16729_v12 = vpop.f32.mrb[140].mxu0  ;;  %8454 = vmatprep.subr.bf16.mxu1 %v21414_v53 }
 0x78d   :  { %v5468_v8 = vpop.f32.mrb[141].mxu0 }
 0x78e   :  { %v16732_v35 = vpop.f32.mrb[142].mxu0 }
 0x78f   :  { %6163 = vmatmul.mubr.bf16.gmra.mrb[176].mxu1 %v16416_v56  ;;  %v5471_v1 = vpop.f32.mrb[143].mxu0 }
 0x790   :  { %6170 = vmatprep.mubr.bf16.mxu1 %v16421_v23  ;;  %v21618_v1 = vld [vmem:[#allocation36_spill] sm:$0xff] }
 0x791   :  { %10846 = vmatmul.mubr.bf16.gmra.mrb[32].mxu0 %v16211_v41 }
 0x792   :  { %10849 = vmatprep.mubr.bf16.mxu0 %v16242_v49 }
 0x794   :  { %v16737_v0 = vpop.f32.mrb[144].mxu0 }
 0x795   :  { %v5476_v62 = vpop.f32.mrb[145].mxu0 }
 0x796   :  { %v16743_v50 = vpop.f32.mrb[146].mxu0  ;;  %v21619_v62 = vld [vmem:[#allocation18_spill] sm:$0xff] }
 0x797   :  { %6171 = vmatmul.mubr.bf16.gmra.mrb[180].mxu1 %v16432_v55  ;;  %v5479_v56 = vpop.f32.mrb[147].mxu0  ;;  %v21610_v55 = vld [vmem:[#allocation31_spill] sm:$0xff] }
 0x798   :  { %6178 = vmatprep.mubr.bf16.mxu1 %v16439_v34  ;;  %v21612_v34 = vld [vmem:[#allocation66_spill] sm:$0xff]  ;;  %v21620_v56 = vld [vmem:[#allocation44_spill] sm:$0xff] }
 0x799   :  { %10850 = vmatmul.mubr.bf16.gmra.mrb[36].mxu0 %v16261_v16  ;;  %v12225_v16 = vld [vmem:[%s20590_s7 + $0x10] sm:$0xff]  }
 0x79a   :  { %10853 = vmatprep.mubr.bf16.mxu0 %v21561_v22  ;;  %8455 = vmatpush1.bf16.msra.mxu1 %v12225_v16  ;;  %v21622_v16 = vld [vmem:[#allocation41_spill] sm:$0xff] }
 0x79b   :  { %8456 = vmatprep.subr.bf16.mxu1 %v21414_v53 }
 0x79c   :  { %v16749_v41 = vpop.f32.mrb[148].mxu0 }
 0x79d   :  { %v5484_v49 = vpop.f32.mrb[149].mxu0 }
 0x79e   :  { %v16752_v23 = vpop.f32.mrb[150].mxu0 }
 0x79f   :  { %6179 = vmatmul.mubr.bf16.gmra.mrb[184].mxu1 %v21594_v57  ;;  %v5487_v20 = vpop.f32.mrb[151].mxu0  ;;  %v21614_v57 = vld [vmem:[#allocation33_spill] sm:$0xff] }
 0x7a0   :  { %6186 = vmatprep.mubr.bf16.mxu1 %v21610_v55  ;;  %v21621_v20 = vld [vmem:[#allocation51_spill] sm:$0xff] }
 0x7a1   :  { %10854 = vmatmul.mubr.bf16.gmra.mrb[40].mxu0 %v21611_v18 }
 0x7a2   :  { %10857 = vmatprep.mubr.bf16.mxu0 %v21612_v34  ;;  %v12226_v34 = vld [vmem:[%s20590_s7 + $0x18] sm:$0xff]  }
 0x7a3   :  { %8457 = vmatpush1.bf16.msra.mxu1 %v12226_v34  ;;  %v21626_v34 = vld [vmem:[#allocation43_spill] sm:$0xff] }
 0x7a4   :  { %v16757_v3 = vpop.f32.mrb[152].mxu0  ;;  %8458 = vmatprep.subr.bf16.mxu1 %v21414_v53 }
 0x7a5   :  { %v5492_v22 = vpop.f32.mrb[153].mxu0 }
 0x7a6   :  { %v16763_v29 = vpop.f32.mrb[154].mxu0 }
 0x7a7   :  { %6187 = vmatmul.mubr.bf16.gmra.mrb[188].mxu1 %v21613_v17  ;;  %v5495_v14 = vpop.f32.mrb[155].mxu0  ;;  %v16787_v17 = vld [vmem:[#allocation3 + $0x358] sm:$0x3] }
 0x7a8   :  { %6194 = vmatprep.mubr.bf16.mxu1 %v21614_v57 }
 0x7a9   :  { %10858 = vmatmul.mubr.bf16.gmra.mrb[44].mxu0 %v21615_v60  ;;  %v21623_v60 = vld [vmem:[#allocation71_spill] sm:$0xff] }
 0x7aa   :  { %10861 = vmatprep.mubr.bf16.mxu0 %v21616_v58 }
 0x7ac   :  { %v16769_v63 = vpop.f32.mrb[156].mxu0 }
 0x7ad   :  { %v5500_v54 = vpop.f32.mrb[157].mxu0 }
 0x7ae   :  { %v16772_v8 = vpop.f32.mrb[158].mxu0  ;;  %v4429_v54 = vrot.slane %v16787_v17, 2 }
 0x7af   :  { %6195 = vmatmul.mubr.bf16.gmra.mrb[64].mxu1 %v21617_v5  ;;  %v5503_v52 = vpop.f32.mrb[159].mxu0  ;;  %v21624_v5 = vld [vmem:[#allocation42_spill] sm:$0xff] }
 0x7b0   :  { %6202 = vmatprep.mubr.bf16.mxu1 %v21618_v1 }
 0x7b1   :  { %10862 = vmatmul.mubr.bf16.gmra.mrb[48].mxu0 %v21619_v62 }
 0x7b2   :  { %10865 = vmatprep.mubr.bf16.mxu0 %v21620_v56  ;;  %v21625_v56 = vld [vmem:[#allocation90_spill] sm:$0xff] }
 0x7b4   :  { %v16777_v49 = vpop.f32.mrb[160].mxu0 }
 0x7b5   :  { %v5508_v55 = vpop.f32.mrb[161].mxu0 }
 0x7b6   :  { %v16780_v18 = vpop.f32.mrb[162].mxu0 }
 0x7b7   :  { %6203 = vmatmul.mubr.bf16.gmra.mrb[68].mxu1 %v21621_v20  ;;  %v5511_v22 = vpop.f32.mrb[163].mxu0  ;;  %v12227_v20 = vld [vmem:[%s20590_s7 + $0x20] sm:$0xff]  }
 0x7b8   :  { %6210 = vmatprep.mubr.bf16.mxu1 %v21622_v16  ;;  %8459 = vmatpush1.bf16.msra.mxu1 %v12227_v20  ;;  %v21627_v22 = vld [vmem:[#allocation6_spill] sm:$0xff] }
 0x7b9   :  { %10866 = vmatmul.mubr.bf16.gmra.mrb[52].mxu0 %v21578_v10  ;;  %v4430_v10 = vsel %vm810_vm1, %v16509_v59, %v4429_v54  ;;  %8460 = vmatprep.subr.bf16.mxu1 %v21414_v53 }
 0x7ba   :  { %10869 = vmatprep.mubr.bf16.mxu0 %v21580_v21  ;;  %v4542_v62 = vpack.c.bf16 %v4430_v10, %v16509_v59 }
 0x7bc   :  { %v16791_v57 = vpop.f32.mrb[164].mxu0 }
 0x7bd   :  { %v5516_v14 = vpop.f32.mrb[165].mxu0 }
 0x7be   :  { %v16794_v58 = vpop.f32.mrb[166].mxu0  ;;  %v21628_v14 = vld [vmem:[#allocation47_spill] sm:$0xff] }
 0x7bf   :  { %6211 = vmatmul.mubr.bf16.gmra.mrb[72].mxu1 %v21623_v60  ;;  %v5519_v1 = vpop.f32.mrb[167].mxu0 }
 0x7c0   :  { %6218 = vmatprep.mubr.bf16.mxu1 %v21624_v5 }
 0x7c1   :  { %10870 = vmatmul.mubr.bf16.gmra.mrb[56].mxu0 %v21582_v7 }
 0x7c2   :  { %10873 = vmatprep.mubr.bf16.mxu0 %v16274_v42 }
 0x7c4   :  { %v16802_v21 = vpop.f32.mrb[168].mxu0 }
 0x7c5   :  { %v5524_v52 = vpop.f32.mrb[169].mxu0 }
 0x7c6   :  { %v16806_v55 = vpop.f32.mrb[170].mxu0 }
 0x7c7   :  { %6219 = vmatmul.mubr.bf16.gmra.mrb[76].mxu1 %v21625_v56  ;;  %v5527_v7 = vpop.f32.mrb[171].mxu0 }
 0x7c8   :  { %6226 = vmatprep.mubr.bf16.mxu1 %v21626_v34  ;;  %v21629_v34 = vld [vmem:[#allocation17_spill] sm:$0xff] }
 0x7c9   :  { %10874 = vmatmul.mubr.bf16.gmra.mrb[60].mxu0 %v4542_v62 }
 0x7cc   :  { %v16813_v42 = vpop.f32.mrb[172].mxu0 }
 0x7cd   :  { %v5532_v16 = vpop.f32.mrb[173].mxu0 }
 0x7ce   :  { %v16816_v59 = vpop.f32.mrb[174].mxu0  ;;  %v12228_v16 = vld [vmem:[%s20590_s7 + $0x28] sm:$0xff]  }
 0x7cf   :  { %6227 = vmatmul.mubr.bf16.gmra.mrb[80].mxu1 %v21627_v22  ;;  %v5535_v60 = vpop.f32.mrb[175].mxu0 }
 0x7d0   :  { %6234 = vmatprep.mubr.bf16.mxu1 %v21628_v14  ;;  %8461 = vmatpush1.bf16.msra.mxu1 %v12228_v16 }
 0x7d1   :  { %8462 = vmatprep.subr.bf16.mxu1 %v21414_v53 }
 0x7d2   :  { %v6020_v54 = vpop.f32.mrb[104].mxu1 }
 0x7d3   :  { %v16820_v5 = vadd.f32 %v6020_v54, %v16699_v47  ;;  %v6022_v1 = vpop.f32.mrb[105].mxu1 }
 0x7d4   :  { %v6023_v10 = vpop.f32.mrb[106].mxu1  ;;  %v16825_v56 = vpop.f32.mrb[176].mxu0 }
 0x7d5   :  { %v16823_v52 = vadd.f32 %v6023_v10, %v16702_v33  ;;  %v6025_v62 = vpop.f32.mrb[107].mxu1  ;;  %v5540_v20 = vpop.f32.mrb[177].mxu0 }
 0x7d6   :  { %v16828_v7 = vpop.f32.mrb[178].mxu0  ;;  %v21630_v20 = vld [vmem:[#allocation19_spill] sm:$0xff] }
 0x7d7   :  { %6235 = vmatmul.mubr.bf16.gmra.mrb[84].mxu1 %v21629_v34  ;;  %v5543_v47 = vpop.f32.mrb[179].mxu0 }
 0x7d8   :  { %6242 = vmatprep.mubr.bf16.mxu1 %v16249_v15 }
 0x7da   :  { %v6028_v22 = vpop.f32.mrb[108].mxu1 }
 0x7db   :  { %v16836_v33 = vadd.f32 %v6028_v22, %v16707_v30  ;;  %v6030_v14 = vpop.f32.mrb[109].mxu1 }
 0x7dc   :  { %v6031_v60 = vpop.f32.mrb[110].mxu1  ;;  %v16841_v10 = vpop.f32.mrb[180].mxu0 }
 0x7dd   :  { %v16839_v54 = vadd.f32 %v6031_v60, %v16710_v11  ;;  %v6033_v1 = vpop.f32.mrb[111].mxu1  ;;  %v5548_v62 = vpop.f32.mrb[181].mxu0 }
 0x7de   :  { %v16844_v15 = vpop.f32.mrb[182].mxu0  ;;  %v4415_v1 = vrot.slane %v16787_v17, 1 }
 0x7df   :  { %6243 = vmatmul.mubr.bf16.gmra.mrb[88].mxu1 %v21630_v20  ;;  %v5551_v34 = vpop.f32.mrb[183].mxu0  ;;  %v21631_v20 = vld [vmem:[#allocation80_spill] sm:$0xff] }
 0x7e0   :  { %6250 = vmatprep.mubr.bf16.mxu1 %v16263_v27  ;;  %v12229_v27 = vld [vmem:[%s20590_s7 + $0x30] sm:$0xff]  }
 0x7e1   :  { %8463 = vmatpush1.bf16.msra.mxu1 %v12229_v27 }
 0x7e2   :  { %v6036_v16 = vpop.f32.mrb[112].mxu1  ;;  %8464 = vmatprep.subr.bf16.mxu1 %v21414_v53 }
 0x7e3   :  { %v16848_v30 = vadd.f32 %v6036_v16, %v16717_v24  ;;  %v6038_v47 = vpop.f32.mrb[113].mxu1 }
 0x7e4   :  { %v6039_v22 = vpop.f32.mrb[114].mxu1  ;;  %v16853_v60 = vpop.f32.mrb[184].mxu0 }
 0x7e5   :  { %v16851_v11 = vadd.f32 %v6039_v22, %v16724_v40  ;;  %v6041_v14 = vpop.f32.mrb[115].mxu1  ;;  %v5556_v62 = vpop.f32.mrb[185].mxu0  ;;  %v4416_v40 = vsel %vm585_vm0, %v16677_v13, %v4415_v1 }
 0x7e6   :  { %v16857_v2 = vpop.f32.mrb[186].mxu0  ;;  %v4541_v22 = vpack.c.bf16 %v4416_v40, %v16677_v13 }
 0x7e7   :  { %6251 = vmatmul.mubr.bf16.gmra.mrb[92].mxu1 %v21631_v20  ;;  %v5559_v24 = vpop.f32.mrb[187].mxu0 }
 0x7e8   :  { %6258 = vmatprep.mubr.bf16.mxu1 %v16299_v26  ;;  %v21632_v24 = vld [vmem:[#allocation59_spill] sm:$0xff] }
 0x7ea   :  { %v6044_v34 = vpop.f32.mrb[116].mxu1 }
 0x7eb   :  { %v16867_v17 = vadd.f32 %v6044_v34, %v16729_v12  ;;  %v6046_v16 = vpop.f32.mrb[117].mxu1 }
 0x7ec   :  { %v6047_v47 = vpop.f32.mrb[118].mxu1  ;;  %v16873_v26 = vpop.f32.mrb[188].mxu0 }
 0x7ed   :  { %v16871_v14 = vadd.f32 %v6047_v47, %v16732_v35  ;;  %v6049_v62 = vpop.f32.mrb[119].mxu1  ;;  %v5564_v20 = vpop.f32.mrb[189].mxu0 }
 0x7ee   :  { %v16876_v1 = vpop.f32.mrb[190].mxu0 }
 0x7ef   :  { %6259 = vmatmul.mubr.bf16.gmra.mrb[96].mxu1 %v21632_v24  ;;  %v5567_v27 = vpop.f32.mrb[191].mxu0 }
 0x7f0   :  { %6266 = vmatprep.mubr.bf16.mxu1 %v4541_v22  ;;  %v12230_v22 = vld [vmem:[%s20590_s7 + $0x38] sm:$0xff]  }
 0x7f1   :  { %8465 = vmatpush1.bf16.msra.mxu1 %v12230_v22 }
 0x7f2   :  { %v6052_v38 = vpop.f32.mrb[120].mxu1  ;;  %8466 = vmatprep.subr.bf16.mxu1 %v21414_v53 }
 0x7f3   :  { %v16879_v12 = vadd.f32 %v6052_v38, %v16737_v0  ;;  %v6054_v34 = vpop.f32.mrb[121].mxu1 }
 0x7f4   :  { %v6055_v16 = vpop.f32.mrb[122].mxu1  ;;  %v16884_v40 = vpop.f32.mrb[192].mxu0 }
 0x7f5   :  { %v16882_v13 = vadd.f32 %v6055_v16, %v16743_v50  ;;  %v6057_v35 = vpop.f32.mrb[123].mxu1  ;;  %v5572_v47 = vpop.f32.mrb[193].mxu0 }
 0x7f6   :  { %v16887_v62 = vpop.f32.mrb[194].mxu0 }
 0x7f7   :  { %6267 = vmatmul.mubr.bf16.gmra.mrb[100].mxu1 %v16696_v25  ;;  %v5575_v20 = vpop.f32.mrb[195].mxu0 }
 0x7fa   :  { %v6060_v38 = vpop.f32.mrb[124].mxu1 }
 0x7fb   :  { %v16894_v0 = vadd.f32 %v6060_v38, %v16749_v41  ;;  %v6062_v50 = vpop.f32.mrb[125].mxu1 }
 0x7fc   :  { %v6063_v24 = vpop.f32.mrb[126].mxu1  ;;  %v16899_v34 = vpop.f32.mrb[196].mxu0 }
 0x7fd   :  { %v16897_v27 = vadd.f32 %v6063_v24, %v16752_v23  ;;  %v6065_v25 = vpop.f32.mrb[127].mxu1  ;;  %v5580_v16 = vpop.f32.mrb[197].mxu0 }
 0x7fe   :  { %v16901_v35 = vpop.f32.mrb[198].mxu0 }
 0x7ff   :  { %v5583_v47 = vpop.f32.mrb[199].mxu0 }
 0x802   :  { %v6068_v20 = vpop.f32.mrb[128].mxu1 }
 0x803   :  { %v16904_v22 = vadd.f32 %v6068_v20, %v16757_v3  ;;  %v6070_v44 = vpop.f32.mrb[129].mxu1 }
 0x804   :  { %v6071_v37 = vpop.f32.mrb[130].mxu1  ;;  %v16909_v50 = vpop.f32.mrb[200].mxu0  ;;  %v12231_v44 = vld [vmem:[%s20590_s7 + $0x40] sm:$0xff]  }
 0x805   :  { %v16907_v41 = vadd.f32 %v6071_v37, %v16763_v29  ;;  %v6073_v38 = vpop.f32.mrb[131].mxu1  ;;  %v5588_v23 = vpop.f32.mrb[201].mxu0  ;;  %8467 = vmatpush1.bf16.msra.mxu1 %v12231_v44 }
 0x806   :  { %v16911_v24 = vpop.f32.mrb[202].mxu0  ;;  %8468 = vmatprep.subr.bf16.mxu1 %v21414_v53 }
 0x807   :  { %v5591_v25 = vpop.f32.mrb[203].mxu0 }
 0x80a   :  { %v6076_v16 = vpop.f32.mrb[132].mxu1 }
 0x80b   :  { %v16914_v51 = vadd.f32 %v6076_v16, %v16769_v63  ;;  %v6078_v47 = vpop.f32.mrb[133].mxu1 }
 0x80c   :  { %v6079_v3 = vpop.f32.mrb[134].mxu1  ;;  %v16922_v20 = vpop.f32.mrb[204].mxu0 }
 0x80d   :  { %v16920_v37 = vadd.f32 %v6079_v3, %v16772_v8  ;;  %v6081_v29 = vpop.f32.mrb[135].mxu1  ;;  %v5596_v38 = vpop.f32.mrb[205].mxu0 }
 0x80e   :  { %v16925_v23 = vpop.f32.mrb[206].mxu0 }
 0x80f   :  { %v5599_v63 = vpop.f32.mrb[207].mxu0 }
 0x812   :  { %v6084_v25 = vpop.f32.mrb[136].mxu1 }
 0x813   :  { %v16928_v16 = vadd.f32 %v6084_v25, %v16777_v49  ;;  %v6086_v47 = vpop.f32.mrb[137].mxu1  ;;  %v12232_v49 = vld [vmem:[%s20590_s7 + $0x48] sm:$0xff]  }
 0x814   :  { %v6087_v28 = vpop.f32.mrb[138].mxu1  ;;  %v16933_v3 = vpop.f32.mrb[208].mxu0  ;;  %8469 = vmatpush1.bf16.msra.mxu1 %v12232_v49 }
 0x815   :  { %v16931_v43 = vadd.f32 %v6087_v28, %v16780_v18  ;;  %v6089_v8 = vpop.f32.mrb[139].mxu1  ;;  %v5604_v29 = vpop.f32.mrb[209].mxu0  ;;  %8470 = vmatprep.subr.bf16.mxu1 %v21414_v53 }
 0x816   :  { %v16935_v44 = vpop.f32.mrb[210].mxu0 }
 0x817   :  { %v5607_v38 = vpop.f32.mrb[211].mxu0 }
 0x81a   :  { %v6092_v31 = vpop.f32.mrb[140].mxu1 }
 0x81b   :  { %v16938_v36 = vadd.f32 %v6092_v31, %v16791_v57  ;;  %v6094_v63 = vpop.f32.mrb[141].mxu1 }
 0x81c   :  { %v6095_v25 = vpop.f32.mrb[142].mxu1  ;;  %v16946_v47 = vpop.f32.mrb[212].mxu0 }
 0x81d   :  { %v16944_v28 = vadd.f32 %v6095_v25, %v16794_v58  ;;  %v6097_v18 = vpop.f32.mrb[143].mxu1  ;;  %v5612_v8 = vpop.f32.mrb[213].mxu0 }
 0x81e   :  { %v16949_v29 = vpop.f32.mrb[214].mxu0 }
 0x81f   :  { %v5615_v31 = vpop.f32.mrb[215].mxu0 }
 0x822   :  { %v6100_v57 = vpop.f32.mrb[144].mxu1 }
 0x823   :  { %v16952_v38 = vadd.f32 %v6100_v57, %v16802_v21  ;;  %v6102_v63 = vpop.f32.mrb[145].mxu1 }
 0x824   :  { %v6103_v4 = vpop.f32.mrb[146].mxu1  ;;  %v10815_v25 = vpop.f32.mrb[0].mxu0 }
 0x825   :  { %v16955_v9 = vadd.f32 %v6103_v4, %v16806_v55  ;;  %v6105_v58 = vpop.f32.mrb[147].mxu1  ;;  %v16958_v18 = vadd.f32 %v16836_v33, %v10815_v25  ;;  %v6309_v49 = vpop.f32.mrb[1].mxu0 }
 0x826   :  { %v16961_v8 = vadd.f32 %v16820_v5, %v6309_v49  ;;  %v10816_v6 = vpop.f32.mrb[2].mxu0 }
 0x827   :  { %v16964_v31 = vadd.f32 %v16839_v54, %v10816_v6  ;;  %v6312_v21 = vpop.f32.mrb[3].mxu0  ;;  %v12233_v6 = vld [vmem:[%s20590_s7 + $0x50] sm:$0xff]   ;;  %v6635_v54 = vmul.f32 %v16958_v18, %v16958_v18 }
 0x828   :  { %21633 = vst [vmem:[#allocation93_spill] sm:$0xff] %v16961_v8  ;;  %v16967_v57 = vadd.f32 %v16823_v52, %v6312_v21  ;;  %v6633_v33 = vmul.f32 %v16961_v8, %v16961_v8  ;;  %8471 = vmatpush1.bf16.msra.mxu1 %v12233_v6 }
 0x829   :  { %8472 = vmatprep.subr.bf16.mxu1 %v21414_v53 }
 0x82a   :  { %21634 = vst [vmem:[#allocation96_spill] sm:$0xff] %v16967_v57  ;;  %v6108_v63 = vpop.f32.mrb[148].mxu1  ;;  %v6564_v5 = vadd.f32 %v16967_v57, %v16961_v8  ;;  %v6634_v58 = vmul.f32 %v16967_v57, %v16967_v57  ;;  %v6636_v8 = vmul.f32 %v16964_v31, %v16964_v31 }
 0x82b   :  { %v16970_v4 = vadd.f32 %v6108_v63, %v16813_v42  ;;  %v6110_v55 = vpop.f32.mrb[149].mxu1 }
 0x82c   :  { %v6111_v52 = vpop.f32.mrb[150].mxu1  ;;  %v6565_v49 = vadd.f32 %v6564_v5, %v16958_v18  ;;  %v6697_v21 = vadd.f32 %v6634_v58, %v6633_v33  ;;  %v10819_v63 = vpop.f32.mrb[4].mxu0 }
 0x82d   :  { %v16984_v42 = vadd.f32 %v6111_v52, %v16816_v59  ;;  %v6113_v25 = vpop.f32.mrb[151].mxu1  ;;  %v16988_v55 = vadd.f32 %v16867_v17, %v10819_v63  ;;  %v6325_v57 = vpop.f32.mrb[5].mxu0 }
 0x82e   :  { %v6698_v61 = vadd.f32 %v6697_v21, %v6635_v54  ;;  %v16994_v48 = vadd.f32 %v16848_v30, %v6325_v57  ;;  %v6566_v59 = vadd.f32 %v6565_v49, %v16964_v31  ;;  %v10820_v52 = vpop.f32.mrb[6].mxu0 }
 0x82f   :  { %v16998_v33 = vadd.f32 %v16871_v14, %v10820_v52  ;;  %v6328_v5 = vpop.f32.mrb[7].mxu0 }
 0x830   :  { %v6567_v17 = vadd.f32 %v6566_v59, %v16994_v48  ;;  %v6637_v58 = vmul.f32 %v16994_v48, %v16994_v48  ;;  %v6699_v6 = vadd.f32 %v6698_v61, %v6636_v8  ;;  %v17004_v25 = vadd.f32 %v16851_v11, %v6328_v5 }
 0x831   :  { %v6639_v59 = vmul.f32 %v16988_v55, %v16988_v55 }
 0x832   :  { %v6116_v54 = vpop.f32.mrb[152].mxu1  ;;  %v6700_v49 = vadd.f32 %v6699_v6, %v6637_v58  ;;  %v6568_v21 = vadd.f32 %v6567_v17, %v17004_v25  ;;  %v6638_v14 = vmul.f32 %v17004_v25, %v17004_v25  ;;  %v6640_v17 = vmul.f32 %v16998_v33, %v16998_v33 }
 0x833   :  { %v17007_v30 = vadd.f32 %v6116_v54, %v16825_v56  ;;  %v6118_v57 = vpop.f32.mrb[153].mxu1 }
 0x834   :  { %v6119_v63 = vpop.f32.mrb[154].mxu1  ;;  %v6569_v8 = vadd.f32 %v6568_v21, %v16988_v55  ;;  %v6701_v52 = vadd.f32 %v6700_v49, %v6638_v14  ;;  %v10823_v56 = vpop.f32.mrb[8].mxu0 }
 0x835   :  { %v17015_v61 = vadd.f32 %v6119_v63, %v16828_v7  ;;  %v6121_v11 = vpop.f32.mrb[155].mxu1  ;;  %v17019_v5 = vadd.f32 %v16894_v0, %v10823_v56  ;;  %v6341_v58 = vpop.f32.mrb[9].mxu0 }
 0x836   :  { %v6702_v6 = vadd.f32 %v6701_v52, %v6639_v59  ;;  %v17024_v54 = vadd.f32 %v16879_v12, %v6341_v58  ;;  %v6570_v57 = vadd.f32 %v6569_v8, %v16998_v33  ;;  %v10824_v7 = vpop.f32.mrb[10].mxu0  ;;  %v12234_v58 = vld [vmem:[%s20590_s7 + $0x58] sm:$0xff]  }
 0x837   :  { %v17028_v63 = vadd.f32 %v16897_v27, %v10824_v7  ;;  %v6344_v21 = vpop.f32.mrb[11].mxu0  ;;  %8473 = vmatpush1.bf16.msra.mxu1 %v12234_v58 }
 0x838   :  { %v6571_v49 = vadd.f32 %v6570_v57, %v17024_v54  ;;  %v6641_v0 = vmul.f32 %v17024_v54, %v17024_v54  ;;  %v6703_v14 = vadd.f32 %v6702_v6, %v6640_v17  ;;  %v17034_v11 = vadd.f32 %v16882_v13, %v6344_v21  ;;  %8474 = vmatprep.subr.bf16.mxu1 %v21414_v53 }
 0x839   :  { %v6643_v13 = vmul.f32 %v17019_v5, %v17019_v5 }
 0x83a   :  { %v6124_v59 = vpop.f32.mrb[156].mxu1  ;;  %v6704_v8 = vadd.f32 %v6703_v14, %v6641_v0  ;;  %v6572_v56 = vadd.f32 %v6571_v49, %v17034_v11  ;;  %v6642_v27 = vmul.f32 %v17034_v11, %v17034_v11  ;;  %v6644_v14 = vmul.f32 %v17028_v63, %v17028_v63 }
 0x83b   :  { %v17037_v12 = vadd.f32 %v6124_v59, %v16841_v10  ;;  %v6126_v52 = vpop.f32.mrb[157].mxu1 }
 0x83c   :  { %v6127_v57 = vpop.f32.mrb[158].mxu1  ;;  %v6573_v6 = vadd.f32 %v6572_v56, %v17019_v5  ;;  %v6705_v7 = vadd.f32 %v6704_v8, %v6642_v27  ;;  %v10827_v21 = vpop.f32.mrb[12].mxu0 }
 0x83d   :  { %v17048_v17 = vadd.f32 %v6127_v57, %v16844_v15  ;;  %v6129_v10 = vpop.f32.mrb[159].mxu1  ;;  %v17052_v49 = vadd.f32 %v16914_v51, %v10827_v21  ;;  %v6357_v0 = vpop.f32.mrb[13].mxu0 }
 0x83e   :  { %v6706_v59 = vadd.f32 %v6705_v7, %v6643_v13  ;;  %v17058_v52 = vadd.f32 %v16904_v22, %v6357_v0  ;;  %v6574_v15 = vadd.f32 %v6573_v6, %v17028_v63  ;;  %v10828_v57 = vpop.f32.mrb[14].mxu0 }
 0x83f   :  { %v17062_v8 = vadd.f32 %v16920_v37, %v10828_v57  ;;  %v6360_v56 = vpop.f32.mrb[15].mxu0 }
 0x840   :  { %v6575_v51 = vadd.f32 %v6574_v15, %v17058_v52  ;;  %v6645_v27 = vmul.f32 %v17058_v52, %v17058_v52  ;;  %v6707_v58 = vadd.f32 %v6706_v59, %v6644_v14  ;;  %v17068_v10 = vadd.f32 %v16907_v41, %v6360_v56 }
 0x841   :  { %v6647_v15 = vmul.f32 %v17052_v49, %v17052_v49 }
 0x842   :  { %v6132_v13 = vpop.f32.mrb[160].mxu1  ;;  %v6708_v6 = vadd.f32 %v6707_v58, %v6645_v27  ;;  %v6576_v21 = vadd.f32 %v6575_v51, %v17068_v10  ;;  %v6646_v37 = vmul.f32 %v17068_v10, %v17068_v10  ;;  %v6648_v51 = vmul.f32 %v17062_v8, %v17062_v8 }
 0x843   :  { %v17071_v22 = vadd.f32 %v6132_v13, %v16853_v60  ;;  %v6134_v7 = vpop.f32.mrb[161].mxu1 }
 0x844   :  { %v6135_v0 = vpop.f32.mrb[162].mxu1  ;;  %v6577_v59 = vadd.f32 %v6576_v21, %v17052_v49  ;;  %v6709_v57 = vadd.f32 %v6708_v6, %v6646_v37  ;;  %v10831_v60 = vpop.f32.mrb[16].mxu0 }
 0x845   :  { %v17079_v14 = vadd.f32 %v6135_v0, %v16857_v2  ;;  %v6137_v41 = vpop.f32.mrb[163].mxu1  ;;  %v17083_v56 = vadd.f32 %v16938_v36, %v10831_v60  ;;  %v6373_v27 = vpop.f32.mrb[17].mxu0 }
 0x846   :  { %v6710_v58 = vadd.f32 %v6709_v57, %v6647_v15  ;;  %v17088_v13 = vadd.f32 %v16928_v16, %v6373_v27  ;;  %v6578_v7 = vadd.f32 %v6577_v59, %v17062_v8  ;;  %v10832_v2 = vpop.f32.mrb[18].mxu0  ;;  %v12235_v27 = vld [vmem:[%s20590_s7 + $0x60] sm:$0xff]  }
 0x847   :  { %v17092_v0 = vadd.f32 %v16944_v28, %v10832_v2  ;;  %v6376_v21 = vpop.f32.mrb[19].mxu0  ;;  %8475 = vmatpush1.bf16.msra.mxu1 %v12235_v27 }
 0x848   :  { %v6579_v6 = vadd.f32 %v6578_v7, %v17088_v13  ;;  %v6649_v36 = vmul.f32 %v17088_v13, %v17088_v13  ;;  %v6711_v37 = vadd.f32 %v6710_v58, %v6648_v51  ;;  %v17098_v41 = vadd.f32 %v16931_v43, %v6376_v21  ;;  %8476 = vmatprep.subr.bf16.mxu1 %v21414_v53 }
 0x849   :  { %v6651_v43 = vmul.f32 %v17083_v56, %v17083_v56 }
 0x84a   :  { %v6140_v15 = vpop.f32.mrb[164].mxu1  ;;  %v6712_v59 = vadd.f32 %v6711_v37, %v6649_v36  ;;  %v6580_v60 = vadd.f32 %v6579_v6, %v17098_v41  ;;  %v6650_v28 = vmul.f32 %v17098_v41, %v17098_v41  ;;  %v6652_v37 = vmul.f32 %v17092_v0, %v17092_v0 }
 0x84b   :  { %v17101_v16 = vadd.f32 %v6140_v15, %v16873_v26  ;;  %v6142_v57 = vpop.f32.mrb[165].mxu1 }
 0x84c   :  { %v6143_v7 = vpop.f32.mrb[166].mxu1  ;;  %v6581_v58 = vadd.f32 %v6580_v60, %v17083_v56  ;;  %v6713_v2 = vadd.f32 %v6712_v59, %v6650_v28  ;;  %v10835_v21 = vpop.f32.mrb[20].mxu0 }
 0x84d   :  { %v17112_v51 = vadd.f32 %v6143_v7, %v16876_v1  ;;  %v6145_v26 = vpop.f32.mrb[167].mxu1  ;;  %v17116_v6 = vadd.f32 %v16970_v4, %v10835_v21  ;;  %v6389_v36 = vpop.f32.mrb[21].mxu0 }
 0x84e   :  { %v6714_v15 = vadd.f32 %v6713_v2, %v6651_v43  ;;  %v17122_v57 = vadd.f32 %v16952_v38, %v6389_v36  ;;  %v6582_v1 = vadd.f32 %v6581_v58, %v17092_v0  ;;  %v10836_v7 = vpop.f32.mrb[22].mxu0 }
 0x84f   :  { %v17126_v59 = vadd.f32 %v16984_v42, %v10836_v7  ;;  %v6392_v60 = vpop.f32.mrb[23].mxu0 }
 0x850   :  { %v6583_v4 = vadd.f32 %v6582_v1, %v17122_v57  ;;  %v6653_v28 = vmul.f32 %v17122_v57, %v17122_v57  ;;  %v6715_v27 = vadd.f32 %v6714_v15, %v6652_v37  ;;  %v17132_v26 = vadd.f32 %v16955_v9, %v6392_v60 }
 0x851   :  { %v6655_v1 = vmul.f32 %v17116_v6, %v17116_v6 }
 0x852   :  { %v6148_v43 = vpop.f32.mrb[168].mxu1  ;;  %v6716_v58 = vadd.f32 %v6715_v27, %v6653_v28  ;;  %v6584_v21 = vadd.f32 %v6583_v4, %v17132_v26  ;;  %v6654_v42 = vmul.f32 %v17132_v26, %v17132_v26  ;;  %v6656_v4 = vmul.f32 %v17126_v59, %v17126_v59 }
 0x853   :  { %v17135_v38 = vadd.f32 %v6148_v43, %v16884_v40  ;;  %v6150_v2 = vpop.f32.mrb[169].mxu1 }
 0x854   :  { %v6151_v36 = vpop.f32.mrb[170].mxu1  ;;  %v6585_v15 = vadd.f32 %v6584_v21, %v17116_v6  ;;  %v6717_v7 = vadd.f32 %v6716_v58, %v6654_v42  ;;  %v10839_v40 = vpop.f32.mrb[24].mxu0 }
 0x855   :  { %v17143_v37 = vadd.f32 %v6151_v36, %v16887_v62  ;;  %v6153_v9 = vpop.f32.mrb[171].mxu1  ;;  %v17147_v60 = vadd.f32 %v17037_v12, %v10839_v40  ;;  %v6405_v28 = vpop.f32.mrb[25].mxu0 }
 0x856   :  { %v6718_v27 = vadd.f32 %v6717_v7, %v6655_v1  ;;  %v17152_v43 = vadd.f32 %v17007_v30, %v6405_v28  ;;  %v6586_v2 = vadd.f32 %v6585_v15, %v17126_v59  ;;  %v10840_v62 = vpop.f32.mrb[26].mxu0 }
 0x857   :  { %v17156_v36 = vadd.f32 %v17048_v17, %v10840_v62  ;;  %v6408_v21 = vpop.f32.mrb[27].mxu0 }
 0x858   :  { %v6587_v58 = vadd.f32 %v6586_v2, %v17152_v43  ;;  %v6657_v12 = vmul.f32 %v17152_v43, %v17152_v43  ;;  %v6719_v42 = vadd.f32 %v6718_v27, %v6656_v4  ;;  %v17162_v9 = vadd.f32 %v17015_v61, %v6408_v21 }
 0x859   :  { %v6659_v2 = vmul.f32 %v17147_v60, %v17147_v60 }
 0x85a   :  { %21635 = vst [vmem:[#allocation97_spill] sm:$0xff] %v17162_v9  ;;  %v6156_v1 = vpop.f32.mrb[172].mxu1  ;;  %v6720_v40 = vadd.f32 %v6719_v42, %v6657_v12  ;;  %v6588_v15 = vadd.f32 %v6587_v58, %v17162_v9  ;;  %v6658_v17 = vmul.f32 %v17162_v9, %v17162_v9  ;;  %v6660_v58 = vmul.f32 %v17156_v36, %v17156_v36 }
 0x85b   :  { %v11023_v30 = vadd.f32 %v6156_v1, %v16899_v34  ;;  %v6158_v7 = vpop.f32.mrb[173].mxu1 }
 0x85c   :  { %v6159_v28 = vpop.f32.mrb[174].mxu1  ;;  %v6589_v61 = vadd.f32 %v6588_v15, %v17147_v60  ;;  %v6721_v27 = vadd.f32 %v6720_v40, %v6658_v17  ;;  %v10843_v21 = vpop.f32.mrb[28].mxu0 }
 0x85d   :  { %v11024_v62 = vadd.f32 %v6159_v28, %v16901_v35  ;;  %v6161_v4 = vpop.f32.mrb[175].mxu1  ;;  %v17173_v34 = vadd.f32 %v17101_v16, %v10843_v21  ;;  %v6421_v12 = vpop.f32.mrb[29].mxu0 }
 0x85e   :  { %v6722_v42 = vadd.f32 %v6721_v27, %v6659_v2  ;;  %v17178_v1 = vadd.f32 %v17071_v22, %v6421_v12  ;;  %v6590_v7 = vadd.f32 %v6589_v61, %v17156_v36  ;;  %v10844_v9 = vpop.f32.mrb[30].mxu0 }
 0x85f   :  { %v17182_v35 = vadd.f32 %v17112_v51, %v10844_v9  ;;  %v6424_v15 = vpop.f32.mrb[31].mxu0  ;;  %v6663_v21 = vmul.f32 %v17173_v34, %v17173_v34 }
 0x860   :  { %v6591_v40 = vadd.f32 %v6590_v7, %v17178_v1  ;;  %v6661_v16 = vmul.f32 %v17178_v1, %v17178_v1  ;;  %v6723_v17 = vadd.f32 %v6722_v42, %v6660_v58  ;;  %v17188_v28 = vadd.f32 %v17079_v14, %v6424_v15 }
 0x861   :  { %21636 = vst [vmem:[#allocation98_spill] sm:$0xff] %v17182_v35 }
 0x862   :  { %21637 = vst [vmem:[#allocation4_spill] sm:$0xff] %v17188_v28  ;;  %v6164_v2 = vpop.f32.mrb[176].mxu1  ;;  %v6724_v27 = vadd.f32 %v6723_v17, %v6661_v16  ;;  %v6592_v61 = vadd.f32 %v6591_v40, %v17188_v28  ;;  %v6662_v51 = vmul.f32 %v17188_v28, %v17188_v28  ;;  %v6664_v40 = vmul.f32 %v17182_v35, %v17182_v35 }
 0x863   :  { %v11025_v22 = vadd.f32 %v6164_v2, %v16909_v50  ;;  %v6166_v4 = vpop.f32.mrb[177].mxu1 }
 0x864   :  { %v6167_v9 = vpop.f32.mrb[178].mxu1  ;;  %v6593_v14 = vadd.f32 %v6592_v61, %v17173_v34  ;;  %v6725_v42 = vadd.f32 %v6724_v27, %v6662_v51  ;;  %v10847_v7 = vpop.f32.mrb[32].mxu0 }
 0x865   :  { %v11026_v12 = vadd.f32 %v6167_v9, %v16911_v24  ;;  %v6169_v58 = vpop.f32.mrb[179].mxu1  ;;  %v17198_v15 = vadd.f32 %v11023_v30, %v10847_v7  ;;  %v6437_v50 = vpop.f32.mrb[33].mxu0 }
 0x866   :  { %v6726_v16 = vadd.f32 %v6725_v42, %v6663_v21  ;;  %v17203_v17 = vadd.f32 %v17135_v38, %v6437_v50  ;;  %v6594_v2 = vadd.f32 %v6593_v14, %v17182_v35  ;;  %v10848_v4 = vpop.f32.mrb[34].mxu0 }
 0x867   :  { %21638 = vst [vmem:[#allocation45_spill] sm:$0xff] %v17198_v15  ;;  %v17206_v28 = vadd.f32 %v11024_v62, %v10848_v4  ;;  %v6440_v24 = vpop.f32.mrb[35].mxu0 }
 0x868   :  { %21639 = vst [vmem:[#allocation5_spill] sm:$0xff] %v17203_v17  ;;  %v6595_v61 = vadd.f32 %v6594_v2, %v17203_v17  ;;  %v6665_v30 = vmul.f32 %v17203_v17, %v17203_v17  ;;  %v6727_v27 = vadd.f32 %v6726_v16, %v6664_v40  ;;  %v17212_v51 = vadd.f32 %v17143_v37, %v6440_v24 }
 0x869   :  { %21640 = vst [vmem:[#allocation7_spill] sm:$0xff] %v17206_v28 }
 0x86a   :  { %21641 = vst [vmem:[#allocation9_spill] sm:$0xff] %v17212_v51  ;;  %v6172_v9 = vpop.f32.mrb[180].mxu1  ;;  %v6728_v58 = vadd.f32 %v6727_v27, %v6665_v30  ;;  %v6666_v14 = vmul.f32 %v17212_v51, %v17212_v51  ;;  %v6596_v50 = vadd.f32 %v6595_v61, %v17212_v51 }
 0x86b   :  { %v11027_v21 = vadd.f32 %v6172_v9, %v16922_v20  ;;  %v6174_v38 = vpop.f32.mrb[181].mxu1  ;;  %v6667_v20 = vmul.f32 %v17198_v15, %v17198_v15 }
 0x86c   :  { %v6175_v62 = vpop.f32.mrb[182].mxu1  ;;  %v10851_v2 = vpop.f32.mrb[36].mxu0  ;;  %v6729_v4 = vadd.f32 %v6728_v58, %v6666_v14  ;;  %v6597_v9 = vadd.f32 %v6596_v50, %v17198_v15 }
 0x86d   :  { %v11028_v42 = vadd.f32 %v6175_v62, %v16925_v23  ;;  %v6177_v7 = vpop.f32.mrb[183].mxu1  ;;  %v17219_v40 = vadd.f32 %v11027_v21, %v10851_v2  ;;  %v6453_v37 = vpop.f32.mrb[37].mxu0 }
 0x86e   :  { %v17221_v16 = vadd.f32 %v11025_v22, %v6453_v37  ;;  %v10852_v24 = vpop.f32.mrb[38].mxu0  ;;  %v6730_v38 = vadd.f32 %v6729_v4, %v6667_v20  ;;  %v6668_v22 = vmul.f32 %v17206_v28, %v17206_v28  ;;  %v6598_v7 = vadd.f32 %v6597_v9, %v17206_v28 }
 0x86f   :  { %21642 = vst [vmem:[#allocation10_spill] sm:$0xff] %v17219_v40  ;;  %v17225_v30 = vadd.f32 %v11028_v42, %v10852_v24  ;;  %v6456_v27 = vpop.f32.mrb[39].mxu0 }
 0x870   :  { %21643 = vst [vmem:[#allocation11_spill] sm:$0xff] %v17221_v16  ;;  %v17228_v23 = vadd.f32 %v11026_v12, %v6456_v27  ;;  %v6669_v50 = vmul.f32 %v17221_v16, %v17221_v16  ;;  %v6731_v12 = vadd.f32 %v6730_v38, %v6668_v22  ;;  %v6599_v20 = vadd.f32 %v6598_v7, %v17221_v16 }
 0x871   :  { %21644 = vst [vmem:[#allocation27_spill] sm:$0xff] %v17225_v30 }
 0x872   :  { %21645 = vst [vmem:[#allocation21_spill] sm:$0xff] %v17228_v23  ;;  %v6180_v61 = vpop.f32.mrb[184].mxu1  ;;  %v6600_v38 = vadd.f32 %v6599_v20, %v17228_v23 }
 0x873   :  { %v11029_v58 = vadd.f32 %v6180_v61, %v16933_v3  ;;  %v6182_v21 = vpop.f32.mrb[185].mxu1  ;;  %v6732_v61 = vadd.f32 %v6731_v12, %v6669_v50  ;;  %v6671_v12 = vmul.f32 %v17219_v40, %v17219_v40 }
 0x874   :  { %v6183_v14 = vpop.f32.mrb[186].mxu1  ;;  %v10855_v2 = vpop.f32.mrb[40].mxu0 }
 0x875   :  { %v11030_v62 = vadd.f32 %v6183_v14, %v16935_v44  ;;  %v6185_v42 = vpop.f32.mrb[187].mxu1  ;;  %v6469_v37 = vpop.f32.mrb[41].mxu0  ;;  %v6670_v44 = vmul.f32 %v17228_v23, %v17228_v23 }
 0x876   :  { %v17237_v4 = vadd.f32 %v11029_v58, %v6469_v37  ;;  %v10856_v24 = vpop.f32.mrb[42].mxu0 }
 0x877   :  { %v6472_v3 = vpop.f32.mrb[43].mxu0  ;;  %v6733_v7 = vadd.f32 %v6732_v61, %v6670_v44 }
 0x878   :  { %21646 = vst [vmem:[#allocation85_spill] sm:$0xff] %v17237_v4  ;;  %v17240_v27 = vadd.f32 %v11030_v62, %v6472_v3 }
 0x87a   :  { %21647 = vst [vmem:[#allocation94_spill] sm:$0xff] %v17240_v27  ;;  %v6188_v9 = vpop.f32.mrb[188].mxu1 }
 0x87b   :  { %v11031_v21 = vadd.f32 %v6188_v9, %v16946_v47  ;;  %v6190_v14 = vpop.f32.mrb[189].mxu1  ;;  %v6601_v47 = vadd.f32 %v6600_v38, %v17219_v40  ;;  %v6734_v9 = vadd.f32 %v6733_v7, %v6671_v12  ;;  %v6673_v38 = vmul.f32 %v17237_v4, %v17237_v4 }
 0x87c   :  { %v6191_v42 = vpop.f32.mrb[190].mxu1  ;;  %v10859_v28 = vpop.f32.mrb[44].mxu0 }
 0x87d   :  { %v17246_v22 = vadd.f32 %v11031_v21, %v10855_v2  ;;  %v11032_v58 = vadd.f32 %v6191_v42, %v16949_v29  ;;  %v6193_v37 = vpop.f32.mrb[191].mxu1  ;;  %v6485_v62 = vpop.f32.mrb[45].mxu0  ;;  %v6672_v29 = vmul.f32 %v17225_v30, %v17225_v30  ;;  %v6602_v61 = vadd.f32 %v6601_v47, %v17225_v30 }
 0x87e   :  { %v10860_v50 = vpop.f32.mrb[46].mxu0  ;;  %v6674_v47 = vmul.f32 %v17240_v27, %v17240_v27 }
 0x87f   :  { %21648 = vst [vmem:[#allocation40_spill] sm:$0xff] %v17246_v22  ;;  %v17249_v3 = vadd.f32 %v11032_v58, %v10856_v24  ;;  %v6488_v16 = vpop.f32.mrb[47].mxu0  ;;  %v6735_v37 = vadd.f32 %v6734_v9, %v6672_v29 }
 0x881   :  { %21649 = vst [vmem:[#allocation50_spill] sm:$0xff] %v17249_v3  ;;  %v6736_v40 = vadd.f32 %v6735_v37, %v6673_v38 }
 0x882   :  { %v6196_v14 = vpop.f32.mrb[64].mxu1 }
 0x883   :  { %v11033_v2 = vadd.f32 %v6196_v14, %v16610_v39  ;;  %v6198_v20 = vpop.f32.mrb[65].mxu1 }
 0x884   :  { %v6199_v21 = vpop.f32.mrb[66].mxu1  ;;  %v10863_v58 = vpop.f32.mrb[48].mxu0  ;;  %v6603_v20 = vadd.f32 %v6602_v61, %v17237_v4 }
 0x885   :  { %v11034_v24 = vadd.f32 %v6199_v21, %v16613_v46  ;;  %v17259_v44 = vadd.f32 %v11033_v2, %v6485_v62  ;;  %v6201_v42 = vpop.f32.mrb[67].mxu1  ;;  %v6501_v7 = vpop.f32.mrb[49].mxu0 }
 0x886   :  { %v10864_v39 = vpop.f32.mrb[50].mxu0  ;;  %v6604_v42 = vadd.f32 %v6603_v20, %v17240_v27 }
 0x887   :  { %21650 = vst [vmem:[#allocation79_spill] sm:$0xff] %v17259_v44  ;;  %v17263_v12 = vadd.f32 %v11034_v24, %v6488_v16  ;;  %v6504_v14 = vpop.f32.mrb[51].mxu0  ;;  %v6737_v24 = vadd.f32 %v6736_v40, %v6674_v47 }
 0x889   :  { %21651 = vst [vmem:[#allocation61_spill] sm:$0xff] %v17263_v12 }
 0x88a   :  { %v6204_v46 = vpop.f32.mrb[68].mxu1 }
 0x88b   :  { %v11035_v62 = vadd.f32 %v6204_v46, %v16618_v19  ;;  %v6206_v2 = vpop.f32.mrb[69].mxu1  ;;  %v6675_v19 = vmul.f32 %v17246_v22, %v17246_v22 }
 0x88c   :  { %v6207_v21 = vpop.f32.mrb[70].mxu1  ;;  %v17273_v29 = vpop.f32.mrb[52].mxu0  ;;  %v6605_v2 = vadd.f32 %v6604_v42, %v17246_v22  ;;  %v6677_v42 = vmul.f32 %v17259_v44, %v17259_v44  ;;  %v21655_v22 = vld [vmem:[#allocation67_spill] sm:$0xff] }
 0x88d   :  { %v17270_v30 = vadd.f32 %v11035_v62, %v10859_v28  ;;  %v11036_v16 = vadd.f32 %v6207_v21, %v16621_v45  ;;  %v6209_v9 = vpop.f32.mrb[71].mxu1  ;;  %v6517_v61 = vpop.f32.mrb[53].mxu0  ;;  %v6738_v20 = vadd.f32 %v6737_v24, %v6675_v19  ;;  %v6676_v21 = vmul.f32 %v17249_v3, %v17249_v3 }
 0x88e   :  { %v17277_v37 = vpop.f32.mrb[54].mxu0 }
 0x88f   :  { %21652 = vst [vmem:[#allocation65_spill] sm:$0xff] %v17270_v30  ;;  %v17275_v38 = vadd.f32 %v11036_v16, %v10860_v50  ;;  %v6520_v46 = vpop.f32.mrb[55].mxu0  ;;  %v6606_v50 = vadd.f32 %v6605_v2, %v17249_v3  ;;  %v21653_v16 = vld [vmem:[#allocation58_spill] sm:$0xff]  ;;  %v6739_v24 = vadd.f32 %v6738_v20, %v6676_v21  ;;  %v6679_v20 = vmul.f32 %v17270_v30, %v17270_v30 }
 0x891   :  { %v6740_v2 = vadd.f32 %v6739_v24, %v6677_v42 }
 0x892   :  { %v6212_v28 = vpop.f32.mrb[72].mxu1 }
 0x893   :  { %v11037_v62 = vadd.f32 %v6212_v28, %v16626_v32  ;;  %v6214_v45 = vpop.f32.mrb[73].mxu1 }
 0x894   :  { %v6215_v40 = vpop.f32.mrb[74].mxu1  ;;  %v17289_v4 = vpop.f32.mrb[56].mxu0 }
 0x895   :  { %v17286_v47 = vadd.f32 %v11037_v62, %v6501_v7  ;;  %v11038_v9 = vadd.f32 %v6215_v40, %v21653_v16  ;;  %v6217_v27 = vpop.f32.mrb[75].mxu1  ;;  %v17293_v19 = vpop.f32.mrb[57].mxu0  ;;  %v6607_v7 = vadd.f32 %v6606_v50, %v17259_v44  ;;  %v21654_v40 = vld [vmem:[#allocation64_spill] sm:$0xff] }
 0x896   :  { %v17297_v28 = vpop.f32.mrb[58].mxu0  ;;  %v6678_v27 = vmul.f32 %v17263_v12, %v17263_v12 }
 0x897   :  { %v17295_v32 = vadd.f32 %v11038_v9, %v6504_v14  ;;  %v17299_v45 = vpop.f32.mrb[59].mxu0  ;;  %v6608_v14 = vadd.f32 %v6607_v7, %v17263_v12  ;;  %v6680_v7 = vmul.f32 %v17275_v38, %v17275_v38 }
 0x898   :  { %v6741_v42 = vadd.f32 %v6740_v2, %v6678_v27  ;;  %v21656_v27 = vld [vmem:[#allocation68_spill] sm:$0xff] }
 0x899   :  { %v6609_v44 = vadd.f32 %v6608_v14, %v17270_v30  ;;  %v6682_v17 = vmul.f32 %v17295_v32, %v17295_v32 }
 0x89a   :  { %v6220_v62 = vpop.f32.mrb[76].mxu1 }
 0x89b   :  { %v11039_v16 = vadd.f32 %v6220_v62, %v21654_v40  ;;  %v6222_v3 = vpop.f32.mrb[77].mxu1  ;;  %v6742_v40 = vadd.f32 %v6741_v42, %v6679_v20  ;;  %v6610_v2 = vadd.f32 %v6609_v44, %v17275_v38  ;;  %v21658_v20 = vld [vmem:[#allocation69_spill] sm:$0xff] }
 0x89c   :  { %v6223_v21 = vpop.f32.mrb[78].mxu1  ;;  %v17311_v50 = vpop.f32.mrb[60].mxu0 }
 0x89d   :  { %v17308_v9 = vadd.f32 %v11039_v16, %v10863_v58  ;;  %v11040_v23 = vadd.f32 %v6223_v21, %v21655_v22  ;;  %v6225_v15 = vpop.f32.mrb[79].mxu1  ;;  %v17313_v24 = vpop.f32.mrb[61].mxu0  ;;  %v6743_v14 = vadd.f32 %v6742_v40, %v6680_v7 }
 0x89e   :  { %v17318_v3 = vpop.f32.mrb[62].mxu0  ;;  %v6681_v15 = vmul.f32 %v17286_v47, %v17286_v47 }
 0x89f   :  { %v17316_v62 = vadd.f32 %v11040_v23, %v10864_v39  ;;  %v17322_v58 = vpop.f32.mrb[63].mxu0  ;;  %v6611_v39 = vadd.f32 %v6610_v2, %v17286_v47  ;;  %v6683_v44 = vmul.f32 %v17308_v9, %v17308_v9  ;;  %v21659_v2 = vld [vmem:[#allocation72_spill] sm:$0xff] }
 0x8a0   :  { %v6744_v51 = vadd.f32 %v6743_v14, %v6681_v15 }
 0x8a1   :  { %v6684_v14 = vmul.f32 %v17316_v62, %v17316_v62 }
 0x8a2   :  { %v6228_v22 = vpop.f32.mrb[80].mxu1  ;;  %v6745_v40 = vadd.f32 %v6744_v51, %v6682_v17 }
 0x8a3   :  { %v11041_v16 = vadd.f32 %v6228_v22, %v21656_v27  ;;  %v6230_v21 = vpop.f32.mrb[81].mxu1  ;;  %v6612_v22 = vadd.f32 %v6611_v39, %v17295_v32  ;;  %v12237_v39 = vld [vmem:[%s20590_s7 + $0x70] sm:$0xff]  }
 0x8a4   :  { %v6231_v23 = vpop.f32.mrb[82].mxu1  ;;  %v12320_v21 = vld [vmem:[#allocation2] sm:$0xff]  ;;  %v6746_v51 = vadd.f32 %v6745_v40, %v6683_v44  ;;  %v7048_v44 = vld [vmem:[#allocation2 + $0x10] sm:$0x3] }
 0x8a5   :  { %v17329_v30 = vadd.f32 %v11041_v16, %v6517_v61  ;;  %v11042_v42 = vadd.f32 %v6231_v23, %v21658_v20  ;;  %v6233_v12 = vpop.f32.mrb[83].mxu1  ;;  %v12236_v61 = vld [vmem:[%s20590_s7 + $0x68] sm:$0xff]   ;;  %v6613_v15 = vadd.f32 %v6612_v22, %v17308_v9  ;;  %v7250_v17 = vrot.slane %v12320_v21, 1 }
 0x8a6   :  { %v12238_v12 = vld [vmem:[%s20590_s7 + $0x200] sm:$0xff]   ;;  %v12239_v16 = vld [vmem:[%s20590_s7 + $0x208] sm:$0xff]   ;;  %8477 = vmatpush1.bf16.msra.mxu1 %v12236_v61  ;;  %v12240_v61 = vld [vmem:[%s20590_s7 + $0x210] sm:$0xff]  }
 0x8a7   :  { %21657 = vst [vmem:[#allocation81_spill] sm:$0xff] %v17329_v30  ;;  %v17334_v35 = vadd.f32 %v11042_v42, %v6520_v46  ;;  %10877 = vmatprep.subr.bf16.mxu0 %v12238_v12  ;;  %v21660_v42 = vld [vmem:[#allocation73_spill] sm:$0xff]  ;;  %8478 = vmatprep.subr.bf16.mxu1 %v21414_v53  ;;  %v6685_v40 = vmul.f32 %v17329_v30, %v17329_v30 }
 0x8a8   :  { %10878 = vmatpush3.bf16.msra.mxu0 %v12238_v12  ;;  %v12241_v12 = vld [vmem:[%s20590_s7 + $0x78] sm:$0xff]  }
 0x8a9   :  { %10879 = vmatprep.subr.bf16.mxu0 %v12239_v16 }
 0x8aa   :  { %v6236_v7 = vpop.f32.mrb[84].mxu1  ;;  %8479 = vmatpush1.bf16.msra.mxu1 %v12237_v39 }
 0x8ab   :  { %v11043_v46 = vadd.f32 %v6236_v7, %v21659_v2  ;;  %v6238_v27 = vpop.f32.mrb[85].mxu1  ;;  %v7253_v2 = vrot.slane %v7048_v44, 1  ;;  %8480 = vmatprep.subr.bf16.mxu1 %v21414_v53 }
 0x8ac   :  { %v6239_v23 = vpop.f32.mrb[86].mxu1  ;;  %v6614_v27 = vadd.f32 %v6613_v15, %v17316_v62  ;;  %10880 = vmatpush3.bf16.msra.mxu0 %v12239_v16  ;;  %v6686_v15 = vmul.f32 %v17334_v35, %v17334_v35 }
 0x8ad   :  { %v17356_v20 = vadd.f32 %v11043_v46, %v17273_v29  ;;  %v11044_v22 = vadd.f32 %v6239_v23, %v21660_v42  ;;  %v6241_v7 = vpop.f32.mrb[87].mxu1  ;;  %v6747_v46 = vadd.f32 %v6746_v51, %v6684_v14  ;;  %v7254_v23 = vsel %vm585_vm0, %v7250_v17, %v7253_v2  ;;  %10881 = vmatprep.subr.bf16.mxu0 %v12240_v61  ;;  %v21661_v14 = vld [vmem:[#allocation74_spill] sm:$0xff] }
 0x8ae   :  { %v6615_v42 = vadd.f32 %v6614_v27, %v17329_v30  ;;  %v7767_v51 = vpack.c.bf16 %v7254_v23, %v7250_v17  ;;  %v7766_v2 = vpack.c.bf16 %v12320_v21, %v12320_v21  ;;  %8481 = vmatpush1.bf16.msra.mxu1 %v12241_v12  ;;  %v21662_v17 = vld [vmem:[#allocation77_spill] sm:$0xff]  ;;  %v12243_v12 = vld [vmem:[%s20590_s7 + $0x220] sm:$0xff]  }
 0x8af   :  { %v17367_v29 = vadd.f32 %v11044_v22, %v17277_v37  ;;  %v6748_v7 = vadd.f32 %v6747_v46, %v6685_v40  ;;  %v12242_v37 = vld [vmem:[%s20590_s7 + $0x218] sm:$0xff]   ;;  %v6687_v16 = vmul.f32 %v17356_v20, %v17356_v20  ;;  %v12246_v40 = vld [vmem:[%s20590_s7 + $0x80] sm:$0xff]   ;;  %8739 = vmatprep.subr.bf16.mxu1 %v21414_v53 }
 0x8b0   :  { %8482 = vmatprep.mubr.bf16.mxu1 %v7767_v51  ;;  %v6616_v46 = vadd.f32 %v6615_v42, %v17334_v35  ;;  %10882 = vmatpush3.bf16.msra.mxu0 %v12240_v61  ;;  %v12248_v61 = vld [vmem:[%s20590_s7 + $0x88] sm:$0xff]  }
 0x8b1   :  { %v6749_v21 = vadd.f32 %v6748_v7, %v6686_v15  ;;  %10883 = vmatprep.subr.bf16.mxu0 %v12242_v37  ;;  %8483 = vmatmul.mubr.bf16.vlgmr.msra.gmra.mrb[192].mxu1 %v7766_v2  ;;  %v6688_v42 = vmul.f32 %v17367_v29, %v17367_v29 }
 0x8b2   :  { %v6244_v44 = vpop.f32.mrb[88].mxu1  ;;  %v6617_v51 = vadd.f32 %v6616_v46, %v17356_v20  ;;  %8740 = vmatpush1.bf16.msra.mxu1 %v12246_v40 }
 0x8b3   :  { %v11045_v39 = vadd.f32 %v6244_v44, %v21661_v14  ;;  %v6246_v22 = vpop.f32.mrb[89].mxu1  ;;  %8741 = vmatprep.subr.bf16.mxu1 %v21414_v53 }
 0x8b4   :  { %v6247_v27 = vpop.f32.mrb[90].mxu1  ;;  %10884 = vmatpush3.bf16.msra.mxu0 %v12242_v37  ;;  %v6618_v15 = vadd.f32 %v6617_v51, %v17367_v29  ;;  %v21663_v22 = vld [vmem:[#allocation78_spill] sm:$0xff] }
 0x8b5   :  { %v17388_v30 = vadd.f32 %v11045_v39, %v17293_v19  ;;  %v11046_v23 = vadd.f32 %v6247_v27, %v21662_v17  ;;  %v6249_v44 = vpop.f32.mrb[91].mxu1  ;;  %v6750_v19 = vadd.f32 %v6749_v21, %v6687_v16  ;;  %10885 = vmatprep.subr.bf16.mxu0 %v12243_v12  ;;  %v21664_v17 = vld [vmem:[#allocation84_spill] sm:$0xff]  ;;  %v12245_v21 = vld [vmem:[%s20590_s7 + $0x230] sm:$0xff]  }
 0x8b6   :  { %8742 = vmatpush1.bf16.msra.mxu1 %v12248_v61 }
 0x8b7   :  { %v17397_v14 = vadd.f32 %v11046_v23, %v17299_v45  ;;  %v12244_v45 = vld [vmem:[%s20590_s7 + $0x228] sm:$0xff]   ;;  %v6689_v39 = vmul.f32 %v17388_v30, %v17388_v30  ;;  %v6751_v27 = vadd.f32 %v6750_v19, %v6688_v42  ;;  %v6619_v37 = vadd.f32 %v6618_v15, %v17388_v30  ;;  %8743 = vmatprep.subr.bf16.mxu1 %v21414_v53 }
 0x8b8   :  { %10886 = vmatpush3.bf16.msra.mxu0 %v12243_v12 }
 0x8b9   :  { %10887 = vmatprep.subr.bf16.mxu0 %v12244_v45  ;;  %v6752_v51 = vadd.f32 %v6751_v27, %v6689_v39  ;;  %v6690_v19 = vmul.f32 %v17397_v14, %v17397_v14 }
 0x8ba   :  { %v6252_v7 = vpop.f32.mrb[92].mxu1 }
 0x8bb   :  { %v11047_v2 = vadd.f32 %v6252_v7, %v21663_v22  ;;  %v6254_v16 = vpop.f32.mrb[93].mxu1  ;;  %v12247_v7 = vld [vmem:[%s20590_s7 + $0x238] sm:$0xff]   ;;  %v6753_v15 = vadd.f32 %v6752_v51, %v6690_v19 }
 0x8bc   :  { %v6255_v40 = vpop.f32.mrb[94].mxu1  ;;  %10888 = vmatpush3.bf16.msra.mxu0 %v12244_v45  ;;  %v21665_v22 = vld [vmem:[#allocation87_spill] sm:$0xff] }
 0x8bd   :  { %v17414_v46 = vadd.f32 %v11047_v2, %v17289_v4  ;;  %v11048_v23 = vadd.f32 %v6255_v40, %v21664_v17  ;;  %v6257_v44 = vpop.f32.mrb[95].mxu1  ;;  %v6620_v4 = vadd.f32 %v6619_v37, %v17397_v14  ;;  %10889 = vmatprep.subr.bf16.mxu0 %v12245_v21  ;;  %v21666_v37 = vld [vmem:[#allocation88_spill] sm:$0xff] }
 0x8bf   :  { %v17424_v42 = vadd.f32 %v11048_v23, %v17297_v28  ;;  %v6691_v61 = vmul.f32 %v17414_v46, %v17414_v46  ;;  %v6621_v39 = vadd.f32 %v6620_v4, %v17414_v46  ;;  %v12249_v4 = vld [vmem:[%s20590_s7 + $0x90] sm:$0xff]  }
 0x8c0   :  { %10890 = vmatpush3.bf16.msra.mxu0 %v12245_v21  ;;  %8744 = vmatpush1.bf16.msra.mxu1 %v12249_v4 }
 0x8c1   :  { %v6754_v27 = vadd.f32 %v6753_v15, %v6691_v61  ;;  %v6692_v40 = vmul.f32 %v17424_v42, %v17424_v42  ;;  %10891 = vmatprep.subr.bf16.mxu0 %v12247_v7  ;;  %v6622_v44 = vadd.f32 %v6621_v39, %v17424_v42  ;;  %v21667_v39 = vld [vmem:[#allocation91_spill] sm:$0xff]  ;;  %8745 = vmatprep.subr.bf16.mxu1 %v21414_v53 }
 0x8c2   :  { %v6260_v12 = vpop.f32.mrb[96].mxu1 }
 0x8c3   :  { %v11049_v2 = vadd.f32 %v6260_v12, %v21665_v22  ;;  %v6262_v16 = vpop.f32.mrb[97].mxu1  ;;  %v6755_v12 = vadd.f32 %v6754_v27, %v6692_v40 }
 0x8c4   :  { %v6263_v28 = vpop.f32.mrb[98].mxu1  ;;  %10892 = vmatpush3.bf16.msra.mxu0 %v12247_v7 }
 0x8c5   :  { %v11050_v17 = vadd.f32 %v6263_v28, %v21666_v37  ;;  %v17438_v45 = vadd.f32 %v11049_v2, %v17313_v24  ;;  %v6265_v23 = vpop.f32.mrb[99].mxu1  ;;  %v21668_v37 = vld [vmem:[#allocation92_spill] sm:$0xff] }
 0x8c7   :  { %v6693_v51 = vmul.f32 %v17438_v45, %v17438_v45  ;;  %v17444_v19 = vadd.f32 %v11050_v17, %v17322_v58  ;;  %v6623_v61 = vadd.f32 %v6622_v44, %v17438_v45 }
 0x8c9   :  { %v6756_v21 = vadd.f32 %v6755_v12, %v6693_v51  ;;  %v6694_v15 = vmul.f32 %v17444_v19, %v17444_v19  ;;  %v6624_v16 = vadd.f32 %v6623_v61, %v17444_v19 }
 0x8ca   :  { %v6268_v24 = vpop.f32.mrb[100].mxu1 }
 0x8cb   :  { %v11051_v22 = vadd.f32 %v6268_v24, %v21667_v39  ;;  %v6270_v2 = vpop.f32.mrb[101].mxu1  ;;  %v6757_v40 = vadd.f32 %v6756_v21, %v6694_v15  ;;  %v12250_v21 = vld [vmem:[%s20590_s7 + $0x98] sm:$0xff]  }
 0x8cc   :  { %v6271_v58 = vpop.f32.mrb[102].mxu1  ;;  %8746 = vmatpush1.bf16.msra.mxu1 %v12250_v21  ;;  %v21669_v21 = vld [vmem:[#allocation83_spill] sm:$0xff] }
 0x8cd   :  { %v17456_v28 = vadd.f32 %v11051_v22, %v17311_v50  ;;  %v11052_v27 = vadd.f32 %v6271_v58, %v21668_v37  ;;  %v6273_v7 = vpop.f32.mrb[103].mxu1  ;;  %8747 = vmatprep.subr.bf16.mxu1 %v21414_v53 }
 0x8cf   :  { %v6625_v17 = vadd.f32 %v6624_v16, %v17456_v28  ;;  %v6695_v23 = vmul.f32 %v17456_v28, %v17456_v28  ;;  %v6561_v44 = vadd.f32 %v11052_v27, %v17318_v3 }
 0x8d1   :  { %v6758_v51 = vadd.f32 %v6757_v40, %v6695_v23  ;;  %v6626_v4 = vadd.f32 %v6625_v17, %v6561_v44  ;;  %v6696_v12 = vmul.f32 %v6561_v44, %v6561_v44 }
 0x8d3   :  { %v6627_v24 = vrot.slane %v6626_v4, 4  ;;  %v6759_v39 = vadd.f32 %v6758_v51, %v6696_v12 }
 0x8d5   :  { %v6628_v61 = vadd.f32 %v6627_v24, %v6626_v4  ;;  %v6760_v2 = vrot.slane %v6759_v39, 4  ;;  %v12251_v24 = vld [vmem:[%s20590_s7 + $0xa0] sm:$0xff]  }
 0x8d6   :  { %8748 = vmatpush1.bf16.msra.mxu1 %v12251_v24 }
 0x8d7   :  { %v6629_v50 = vrot.slane %v6628_v61, 2  ;;  %v6761_v22 = vadd.f32 %v6760_v2, %v6759_v39  ;;  %8749 = vmatprep.subr.bf16.mxu1 %v21414_v53  ;;  %v6771_v39 = vld [vmem:[%s20591_s5] sm:$0x1] }
 0x8d9   :  { %v6630_v15 = vadd.f32 %v6629_v50, %v6628_v61  ;;  %v6762_v58 = vrot.slane %v6761_v22, 2  ;;  %v6775_v50 = vld [vmem:[%s20592_s6] sm:$0x1] }
 0x8db   :  { %v6631_v16 = vrot.slane %v6630_v15, 1  ;;  %v6763_v37 = vadd.f32 %v6762_v58, %v6761_v22 }
 0x8dd   :  { %v6632_v3 = vadd.f32 %v6631_v16, %v6630_v15  ;;  %v6764_v27 = vrot.slane %v6763_v37, 1 }
 0x8df   :  { %v6765_v7 = vadd.f32 %v6764_v27, %v6763_v37  ;;  %v6766_v40 = vmul.f32 0.001953125, %v6632_v3  ;;  %v21670_v37 = vld [vmem:[#allocation93_spill] sm:$0xff]  ;;  %v21671_v27 = vld [vmem:[#allocation96_spill] sm:$0xff] }
 0x8e1   :  { %v6767_v17 = vmul.f32 0.001953125, %v6765_v7  ;;  %v6768_v23 = vmul.f32 %v6766_v40, %v6766_v40 }
 0x8e3   :  { %v6769_v51 = vsub.f32 %v6767_v17, %v6768_v23  ;;  %v12252_v17 = vld [vmem:[%s20590_s7 + $0xa8] sm:$0xff]  }
 0x8e4   :  { %8750 = vmatpush1.bf16.msra.mxu1 %v12252_v17  ;;  %v21678_v17 = vld [vmem:[#allocation7_spill] sm:$0xff] }
 0x8e5   :  { %v6770_v4 = vmax.f32 %v6769_v51, 0.0  ;;  %8751 = vmatprep.subr.bf16.mxu1 %v21414_v53 }
 0x8e7   :  { %v6772_v12 = vadd.f32 1e-05, %v6770_v4 }
 0x8e9   :  { %12297 = vrsqrt.f32 %v6772_v12 }
 0x8f3   :  { %v12298_v61 = vpop.eup %12297 }
 0x8f4   :  { %v6774_v2 = vmul.f32 %v12298_v61, %v6771_v39  ;;  %v21672_v61 = vld [vmem:[#allocation97_spill] sm:$0xff] }
 0x8f6   :  { %v6776_v22 = vmul.f32 %v6774_v2, %v6766_v40  ;;  %v17478_v15 = vrot.slane %v6774_v2, %v21669_v21  ;;  %v21673_v2 = vld [vmem:[#allocation4_spill] sm:$0xff] }
 0x8f8   :  { %v6777_v58 = vsub.f32 %v6775_v50, %v6776_v22  ;;  %v6847_v16 = vmul.f32 %v17478_v15, %v6561_v44  ;;  %v17483_v3 = vmul.f32 %v17478_v15, %v21670_v37  ;;  %v17487_v7 = vmul.f32 %v17478_v15, %v21671_v27  ;;  %v21674_v22 = vld [vmem:[#allocation98_spill] sm:$0xff]  ;;  %v21677_v37 = vld [vmem:[#allocation45_spill] sm:$0xff] }
 0x8f9   :  { %v17494_v40 = vmul.f32 %v17478_v15, %v16958_v18  ;;  %v17498_v23 = vmul.f32 %v17478_v15, %v16964_v31  ;;  %v17502_v44 = vmul.f32 %v17478_v15, %v16994_v48  ;;  %v17506_v51 = vmul.f32 %v17478_v15, %v17004_v25 }
 0x8fa   :  { %v17509_v4 = vrot.slane %v6777_v58, %v21669_v21  ;;  %v17513_v12 = vmul.f32 %v17478_v15, %v16988_v55  ;;  %v17517_v18 = vmul.f32 %v17478_v15, %v16998_v33  ;;  %v17521_v31 = vmul.f32 %v17478_v15, %v17024_v54  ;;  %v21675_v58 = vld [vmem:[#allocation5_spill] sm:$0xff] }
 0x8fb   :  { %v17525_v48 = vmul.f32 %v17478_v15, %v17034_v11  ;;  %v17529_v25 = vmul.f32 %v17478_v15, %v17019_v5  ;;  %v17533_v55 = vmul.f32 %v17478_v15, %v17028_v63  ;;  %v17537_v33 = vmul.f32 %v17478_v15, %v17058_v52  ;;  %v21688_v21 = vld [vmem:[#allocation85_spill] sm:$0xff] }
 0x8fc   :  { %v6917_v54 = vadd.f32 %v17509_v4, %v6847_v16  ;;  %v17543_v11 = vmul.f32 %v17478_v15, %v17068_v10  ;;  %v17547_v5 = vmul.f32 %v17478_v15, %v17052_v49  ;;  %v17551_v63 = vmul.f32 %v17478_v15, %v17062_v8  ;;  %v21676_v16 = vld [vmem:[#allocation9_spill] sm:$0xff] }
 0x8fd   :  { %v17555_v52 = vmul.f32 %v17478_v15, %v17088_v13  ;;  %v17559_v24 = vmul.f32 %v17478_v15, %v17098_v41  ;;  %v17563_v10 = vmul.f32 %v17478_v15, %v17083_v56  ;;  %v17567_v49 = vmul.f32 %v17478_v15, %v17092_v0 }
 0x8fe   :  { %v6981_v39 = vmax.f32 %v6917_v54, 0.0  ;;  %v17571_v8 = vmul.f32 %v17478_v15, %v17122_v57  ;;  %v17575_v13 = vmul.f32 %v17478_v15, %v17132_v26  ;;  %v17579_v41 = vmul.f32 %v17478_v15, %v17116_v6  ;;  %v21680_v54 = vld [vmem:[#allocation11_spill] sm:$0xff] }
 0x8ff   :  { %v17583_v56 = vmul.f32 %v17478_v15, %v17126_v59  ;;  %v17587_v0 = vmul.f32 %v17478_v15, %v17152_v43  ;;  %v17591_v57 = vmul.f32 %v17478_v15, %v21672_v61  ;;  %v17595_v26 = vmul.f32 %v17478_v15, %v17147_v60  ;;  %v21682_v61 = vld [vmem:[#allocation21_spill] sm:$0xff] }
 0x900   :  { %7045 = vst [vmem:[#allocation2 + $0x339] sm:$0xff] %v6981_v39  ;;  %v17599_v6 = vmul.f32 %v17478_v15, %v17156_v36  ;;  %v17603_v59 = vmul.f32 %v17478_v15, %v17178_v1  ;;  %v17607_v43 = vmul.f32 %v17478_v15, %v21673_v2  ;;  %v17611_v50 = vmul.f32 %v17478_v15, %v17173_v34 }
 0x901   :  { %v17615_v60 = vmul.f32 %v17478_v15, %v21674_v22  ;;  %v17619_v36 = vmul.f32 %v17478_v15, %v21675_v58  ;;  %v17623_v1 = vmul.f32 %v17478_v15, %v21676_v16  ;;  %v17627_v27 = vmul.f32 %v17478_v15, %v21677_v37  ;;  %v21684_v22 = vld [vmem:[#allocation10_spill] sm:$0xff]  ;;  %v21686_v16 = vld [vmem:[#allocation27_spill] sm:$0xff] }
 0x902   :  { %v17631_v34 = vmul.f32 %v17478_v15, %v21678_v17  ;;  %v17635_v39 = vmul.f32 %v17478_v15, %v21680_v54  ;;  %v17639_v2 = vmul.f32 %v17478_v15, %v21682_v61  ;;  %v17643_v58 = vmul.f32 %v17478_v15, %v21684_v22 }
 0x903   :  { %v17647_v37 = vmul.f32 %v17478_v15, %v21686_v16  ;;  %v17651_v17 = vmul.f32 %v17478_v15, %v21688_v21 }
 0x904   :  { %21679 = vst [vmem:[#allocation70_spill] sm:$0xff] %v17631_v34  ;;  %21681 = vst [vmem:[#allocation82_spill] sm:$0xff] %v17635_v39  ;;  %v21690_v34 = vld [vmem:[#allocation94_spill] sm:$0xff]  ;;  %v21691_v39 = vld [vmem:[#allocation40_spill] sm:$0xff] }
 0x905   :  { %21683 = vst [vmem:[#allocation100_spill] sm:$0xff] %v17639_v2  ;;  %21685 = vst [vmem:[#allocation99_spill] sm:$0xff] %v17643_v58  ;;  %v17655_v54 = vmul.f32 %v17478_v15, %v21690_v34  ;;  %v17659_v61 = vmul.f32 %v17478_v15, %v21691_v39  ;;  %v21692_v2 = vld [vmem:[#allocation50_spill] sm:$0xff]  ;;  %v21693_v58 = vld [vmem:[#allocation79_spill] sm:$0xff]  ;;  %v17679_v39 = vmul.f32 %v17478_v15, %v17275_v38 }
 0x906   :  { %21687 = vst [vmem:[#allocation20_spill] sm:$0xff] %v17647_v37  ;;  %21689 = vst [vmem:[#allocation103_spill] sm:$0xff] %v17651_v17  ;;  %v17663_v22 = vmul.f32 %v17478_v15, %v21692_v2  ;;  %v17667_v16 = vmul.f32 %v17478_v15, %v21693_v58  ;;  %v21694_v37 = vld [vmem:[#allocation61_spill] sm:$0xff]  ;;  %v17683_v2 = vmul.f32 %v17478_v15, %v17286_v47 }
 0x907   :  { %v17671_v21 = vmul.f32 %v17478_v15, %v21694_v37  ;;  %v21695_v17 = vld [vmem:[#allocation65_spill] sm:$0xff]  ;;  %v17687_v58 = vmul.f32 %v17478_v15, %v17295_v32  ;;  %v17691_v37 = vmul.f32 %v17478_v15, %v17308_v9  ;;  %v17703_v47 = vmul.f32 %v17478_v15, %v17334_v35 }
 0x908   :  { %v17675_v34 = vmul.f32 %v17478_v15, %v21695_v17  ;;  %v17695_v17 = vmul.f32 %v17478_v15, %v17316_v62  ;;  %v17707_v32 = vmul.f32 %v17478_v15, %v17356_v20  ;;  %v17711_v9 = vmul.f32 %v17478_v15, %v17367_v29 }
 0x909   :  { %v17715_v62 = vmul.f32 %v17478_v15, %v17388_v30  ;;  %v17723_v35 = vmul.f32 %v17478_v15, %v17414_v46  ;;  %v17727_v20 = vmul.f32 %v17478_v15, %v17424_v42  ;;  %v17731_v29 = vmul.f32 %v17478_v15, %v17438_v45  ;;  %v12253_v46 = vld [vmem:[%s20590_s7 + $0xb0] sm:$0xff]  }
 0x90a   :  { %21696 = vst [vmem:[#allocation22_spill] sm:$0xff] %v17675_v34  ;;  %v21697_v34 = vld [vmem:[#allocation81_spill] sm:$0xff]  ;;  %v17735_v30 = vmul.f32 %v17478_v15, %v17444_v19  ;;  %v17746_v42 = vadd.f32 %v17509_v4, %v17483_v3  ;;  %v17750_v45 = vadd.f32 %v17509_v4, %v17487_v7  ;;  %v17754_v19 = vadd.f32 %v17509_v4, %v17494_v40 }
 0x90b   :  { %v17699_v38 = vmul.f32 %v17478_v15, %v21697_v34  ;;  %v17719_v34 = vmul.f32 %v17478_v15, %v17397_v14  ;;  %v17739_v14 = vmul.f32 %v17478_v15, %v17456_v28  ;;  %v17758_v28 = vadd.f32 %v17509_v4, %v17498_v23  ;;  %8752 = vmatpush1.bf16.msra.mxu1 %v12253_v46  ;;  %v21703_v46 = vld [vmem:[#allocation70_spill] sm:$0xff] }
 0x90c   :  { %v17762_v15 = vadd.f32 %v17509_v4, %v17502_v44  ;;  %v17766_v3 = vadd.f32 %v17509_v4, %v17506_v51  ;;  %v17770_v7 = vadd.f32 %v17509_v4, %v17513_v12  ;;  %v17774_v40 = vadd.f32 %v17509_v4, %v17517_v18  ;;  %8753 = vmatprep.subr.bf16.mxu1 %v21414_v53 }
 0x90d   :  { %v17778_v23 = vadd.f32 %v17509_v4, %v17521_v31  ;;  %v17782_v44 = vadd.f32 %v17509_v4, %v17525_v48  ;;  %v17786_v51 = vadd.f32 %v17509_v4, %v17529_v25  ;;  %v17790_v12 = vadd.f32 %v17509_v4, %v17533_v55 }
 0x90e   :  { %v17795_v18 = vadd.f32 %v17509_v4, %v17537_v33  ;;  %v17799_v31 = vadd.f32 %v17509_v4, %v17543_v11  ;;  %v17803_v48 = vadd.f32 %v17509_v4, %v17547_v5  ;;  %v17807_v25 = vadd.f32 %v17509_v4, %v17551_v63 }
 0x90f   :  { %v17811_v55 = vadd.f32 %v17509_v4, %v17555_v52  ;;  %v17815_v33 = vadd.f32 %v17509_v4, %v17559_v24  ;;  %v17819_v11 = vadd.f32 %v17509_v4, %v17563_v10  ;;  %v17823_v5 = vadd.f32 %v17509_v4, %v17567_v49 }
 0x910   :  { %v17827_v63 = vadd.f32 %v17509_v4, %v17571_v8  ;;  %v17831_v52 = vadd.f32 %v17509_v4, %v17575_v13  ;;  %v17835_v24 = vadd.f32 %v17509_v4, %v17579_v41  ;;  %v17839_v10 = vadd.f32 %v17509_v4, %v17583_v56 }
 0x911   :  { %v17843_v49 = vadd.f32 %v17509_v4, %v17587_v0  ;;  %v17847_v8 = vadd.f32 %v17509_v4, %v17591_v57  ;;  %v17851_v13 = vadd.f32 %v17509_v4, %v17595_v26  ;;  %v17855_v41 = vadd.f32 %v17509_v4, %v17599_v6 }
 0x912   :  { %v17859_v56 = vadd.f32 %v17509_v4, %v17603_v59  ;;  %v17863_v0 = vadd.f32 %v17509_v4, %v17607_v43  ;;  %v17867_v57 = vadd.f32 %v17509_v4, %v17611_v50  ;;  %v17871_v26 = vadd.f32 %v17509_v4, %v17615_v60 }
 0x913   :  { %v17875_v6 = vadd.f32 %v17509_v4, %v17619_v36  ;;  %v17879_v59 = vadd.f32 %v17509_v4, %v17623_v1  ;;  %v17883_v43 = vadd.f32 %v17509_v4, %v17627_v27  ;;  %v17887_v50 = vadd.f32 %v17509_v4, %v21703_v46 }
 0x914   :  { %21698 = vst [vmem:[#allocation54_spill] sm:$0xff] %v17867_v57  ;;  %21699 = vst [vmem:[#allocation52_spill] sm:$0xff] %v17871_v26  ;;  %v21704_v57 = vld [vmem:[#allocation82_spill] sm:$0xff]  ;;  %v21705_v26 = vld [vmem:[#allocation100_spill] sm:$0xff] }
 0x915   :  { %21700 = vst [vmem:[#allocation63_spill] sm:$0xff] %v17875_v6  ;;  %21701 = vst [vmem:[#allocation30_spill] sm:$0xff] %v17879_v59  ;;  %v17891_v60 = vadd.f32 %v17509_v4, %v21704_v57  ;;  %v17895_v36 = vadd.f32 %v17509_v4, %v21705_v26  ;;  %v21706_v6 = vld [vmem:[#allocation99_spill] sm:$0xff]  ;;  %v21707_v59 = vld [vmem:[#allocation20_spill] sm:$0xff]  ;;  %v17911_v57 = vadd.f32 %v17509_v4, %v17655_v54 }
 0x916   :  { %21702 = vst [vmem:[#allocation12_spill] sm:$0xff] %v17883_v43  ;;  %v17899_v1 = vadd.f32 %v17509_v4, %v21706_v6  ;;  %v17903_v27 = vadd.f32 %v17509_v4, %v21707_v59  ;;  %v21708_v43 = vld [vmem:[#allocation103_spill] sm:$0xff]  ;;  %v17915_v26 = vadd.f32 %v17509_v4, %v17659_v61  ;;  %v17919_v6 = vadd.f32 %v17509_v4, %v17663_v22 }
 0x917   :  { %v17907_v46 = vadd.f32 %v17509_v4, %v21708_v43  ;;  %v17923_v59 = vadd.f32 %v17509_v4, %v17667_v16  ;;  %v17927_v43 = vadd.f32 %v17509_v4, %v17671_v21  ;;  %v17935_v61 = vadd.f32 %v17509_v4, %v17679_v39 }
 0x918   :  { %v17939_v22 = vadd.f32 %v17509_v4, %v17683_v2  ;;  %v17943_v16 = vadd.f32 %v17509_v4, %v17687_v58  ;;  %v17947_v21 = vadd.f32 %v17509_v4, %v17691_v37  ;;  %v17955_v39 = vadd.f32 %v17509_v4, %v17699_v38 }
 0x919   :  { %21709 = vst [vmem:[#allocation15_spill] sm:$0xff] %v17907_v46  ;;  %v21710_v46 = vld [vmem:[#allocation22_spill] sm:$0xff]  ;;  %v17959_v2 = vadd.f32 %v17509_v4, %v17703_v47  ;;  %v17963_v58 = vadd.f32 %v17509_v4, %v17707_v32  ;;  %v17967_v37 = vadd.f32 %v17509_v4, %v17711_v9  ;;  %v17975_v38 = vadd.f32 %v17509_v4, %v17719_v34 }
 0x91a   :  { %v17931_v54 = vadd.f32 %v17509_v4, %v21710_v46  ;;  %v17951_v46 = vadd.f32 %v17509_v4, %v17695_v17  ;;  %v17971_v17 = vadd.f32 %v17509_v4, %v17715_v62  ;;  %v17979_v47 = vadd.f32 %v17509_v4, %v17723_v35  ;;  %v12254_v35 = vld [vmem:[%s20590_s7 + $0xb8] sm:$0xff]  }
 0x91b   :  { %21711 = vst [vmem:[#allocation35_spill] sm:$0xff] %v17975_v38  ;;  %v17983_v32 = vadd.f32 %v17509_v4, %v17727_v20  ;;  %v17987_v9 = vadd.f32 %v17509_v4, %v17731_v29  ;;  %v17991_v62 = vadd.f32 %v17509_v4, %v17735_v30  ;;  %v17995_v34 = vadd.f32 %v17509_v4, %v17739_v14 }
 0x91c   :  { %v6918_v38 = vmax.f32 %v17746_v42, 0.0  ;;  %v6919_v20 = vmax.f32 %v17750_v45, 0.0  ;;  %v6921_v29 = vmax.f32 %v17758_v28, 0.0  ;;  %v6923_v30 = vmax.f32 %v17766_v3, 0.0  ;;  %8754 = vmatpush1.bf16.msra.mxu1 %v12254_v35 }
 0x91d   :  { %21712 = vst [vmem:[#allocation16_spill] sm:$0xff] %v17983_v32  ;;  %21713 = vst [vmem:[#allocation56_spill] sm:$0xff] %v17987_v9  ;;  %v6920_v32 = vmax.f32 %v17754_v19, 0.0  ;;  %v6922_v9 = vmax.f32 %v17762_v15, 0.0  ;;  %v6925_v4 = vmax.f32 %v17774_v40, 0.0  ;;  %v6926_v14 = vmax.f32 %v17778_v23, 0.0  ;;  %8755 = vmatprep.subr.bf16.mxu1 %v21414_v53 }
 0x91e   :  { %21714 = vst [vmem:[#allocation25_spill] sm:$0xff] %v17991_v62  ;;  %v6924_v62 = vmax.f32 %v17770_v7, 0.0  ;;  %6982 = vst [vmem:[#allocation2 + $0x19] sm:$0xff] %v6918_v38  ;;  %v6927_v42 = vmax.f32 %v17782_v44, 0.0  ;;  %v6928_v45 = vmax.f32 %v17786_v51, 0.0  ;;  %v6929_v19 = vmax.f32 %v17790_v12, 0.0 }
 0x91f   :  { %v6930_v28 = vmax.f32 %v17795_v18, 0.0  ;;  %6983 = vst [vmem:[#allocation2 + $0x21] sm:$0xff] %v6919_v20  ;;  %6984 = vst [vmem:[#allocation2 + $0x31] sm:$0xff] %v6920_v32  ;;  %v6931_v15 = vmax.f32 %v17799_v31, 0.0  ;;  %v6932_v3 = vmax.f32 %v17803_v48, 0.0  ;;  %v6933_v7 = vmax.f32 %v17807_v25, 0.0 }
 0x920   :  { %6985 = vst [vmem:[#allocation2 + $0x39] sm:$0xff] %v6921_v29  ;;  %6986 = vst [vmem:[#allocation2 + $0x49] sm:$0xff] %v6922_v9  ;;  %v6934_v40 = vmax.f32 %v17811_v55, 0.0  ;;  %v6935_v23 = vmax.f32 %v17815_v33, 0.0  ;;  %v6936_v44 = vmax.f32 %v17819_v11, 0.0  ;;  %v6937_v51 = vmax.f32 %v17823_v5, 0.0 }
 0x921   :  { %6987 = vst [vmem:[#allocation2 + $0x51] sm:$0xff] %v6923_v30  ;;  %6988 = vst [vmem:[#allocation2 + $0x61] sm:$0xff] %v6924_v62  ;;  %v6938_v12 = vmax.f32 %v17827_v63, 0.0  ;;  %v6939_v18 = vmax.f32 %v17831_v52, 0.0  ;;  %v6940_v31 = vmax.f32 %v17835_v24, 0.0  ;;  %v6941_v48 = vmax.f32 %v17839_v10, 0.0 }
 0x922   :  { %6989 = vst [vmem:[#allocation2 + $0x69] sm:$0xff] %v6925_v4  ;;  %6990 = vst [vmem:[#allocation2 + $0x79] sm:$0xff] %v6926_v14  ;;  %v6942_v25 = vmax.f32 %v17843_v49, 0.0  ;;  %v6943_v55 = vmax.f32 %v17847_v8, 0.0  ;;  %v6944_v33 = vmax.f32 %v17851_v13, 0.0  ;;  %v6945_v11 = vmax.f32 %v17855_v41, 0.0 }
 0x923   :  { %6991 = vst [vmem:[#allocation2 + $0x81] sm:$0xff] %v6927_v42  ;;  %6992 = vst [vmem:[#allocation2 + $0x91] sm:$0xff] %v6928_v45  ;;  %v6946_v5 = vmax.f32 %v17859_v56, 0.0  ;;  %v6947_v63 = vmax.f32 %v17863_v0, 0.0  ;;  %v21715_v52 = vld [vmem:[#allocation54_spill] sm:$0xff]  ;;  %v21716_v10 = vld [vmem:[#allocation52_spill] sm:$0xff] }
 0x924   :  { %6993 = vst [vmem:[#allocation2 + $0x99] sm:$0xff] %v6929_v19  ;;  %6994 = vst [vmem:[#allocation2 + $0xa9] sm:$0xff] %v6930_v28  ;;  %v6948_v24 = vmax.f32 %v21715_v52, 0.0  ;;  %v6949_v49 = vmax.f32 %v21716_v10, 0.0  ;;  %v21717_v38 = vld [vmem:[#allocation63_spill] sm:$0xff]  ;;  %v21718_v8 = vld [vmem:[#allocation30_spill] sm:$0xff] }
 0x925   :  { %6995 = vst [vmem:[#allocation2 + $0xb1] sm:$0xff] %v6931_v15  ;;  %6996 = vst [vmem:[#allocation2 + $0xc1] sm:$0xff] %v6932_v3  ;;  %v6950_v32 = vmax.f32 %v21717_v38, 0.0  ;;  %v6951_v13 = vmax.f32 %v21718_v8, 0.0  ;;  %v21719_v41 = vld [vmem:[#allocation12_spill] sm:$0xff]  ;;  %v6953_v9 = vmax.f32 %v17887_v50, 0.0 }
 0x926   :  { %6997 = vst [vmem:[#allocation2 + $0xc9] sm:$0xff] %v6933_v7  ;;  %6998 = vst [vmem:[#allocation2 + $0xd9] sm:$0xff] %v6934_v40  ;;  %v6952_v56 = vmax.f32 %v21719_v41, 0.0  ;;  %v6954_v62 = vmax.f32 %v17891_v60, 0.0  ;;  %v6955_v0 = vmax.f32 %v17895_v36, 0.0  ;;  %v6956_v35 = vmax.f32 %v17899_v1, 0.0 }
 0x927   :  { %6999 = vst [vmem:[#allocation2 + $0xe1] sm:$0xff] %v6935_v23  ;;  %7000 = vst [vmem:[#allocation2 + $0xf1] sm:$0xff] %v6936_v44  ;;  %v6957_v20 = vmax.f32 %v17903_v27, 0.0  ;;  %v21720_v29 = vld [vmem:[#allocation15_spill] sm:$0xff]  ;;  %v6959_v50 = vmax.f32 %v17911_v57, 0.0  ;;  %v6960_v60 = vmax.f32 %v17915_v26, 0.0 }
 0x928   :  { %7001 = vst [vmem:[#allocation2 + $0xf9] sm:$0xff] %v6937_v51  ;;  %7002 = vst [vmem:[#allocation2 + $0x109] sm:$0xff] %v6938_v12  ;;  %v6958_v30 = vmax.f32 %v21720_v29, 0.0  ;;  %v6961_v4 = vmax.f32 %v17919_v6, 0.0  ;;  %v6962_v14 = vmax.f32 %v17923_v59, 0.0  ;;  %v7049_v36 = vld [vmem:[#allocation2 + $0x18] sm:$0xff] }
 0x929   :  { %7003 = vst [vmem:[#allocation2 + $0x111] sm:$0xff] %v6939_v18  ;;  %7004 = vst [vmem:[#allocation2 + $0x121] sm:$0xff] %v6940_v31  ;;  %v18046_v1 = vld [vmem:[#allocation2 + $0x20] sm:$0xff]  ;;  %v6963_v27 = vmax.f32 %v17927_v43, 0.0  ;;  %v6964_v42 = vmax.f32 %v17931_v54, 0.0  ;;  %v6965_v45 = vmax.f32 %v17935_v61, 0.0 }
 0x92a   :  { %7005 = vst [vmem:[#allocation2 + $0x129] sm:$0xff] %v6941_v48  ;;  %7006 = vst [vmem:[#allocation2 + $0x139] sm:$0xff] %v6942_v25  ;;  %v6966_v57 = vmax.f32 %v17939_v22, 0.0  ;;  %v7051_v26 = vld [vmem:[#allocation2 + $0x28] sm:$0x3]  ;;  %v6967_v6 = vmax.f32 %v17943_v16, 0.0 }
 0x92b   :  { %7007 = vst [vmem:[#allocation2 + $0x141] sm:$0xff] %v6943_v55  ;;  %7008 = vst [vmem:[#allocation2 + $0x151] sm:$0xff] %v6944_v33  ;;  %v6968_v59 = vmax.f32 %v17947_v21, 0.0  ;;  %v6969_v19 = vmax.f32 %v17951_v46, 0.0  ;;  %v6970_v28 = vmax.f32 %v17955_v39, 0.0  ;;  %v18056_v43 = vld [vmem:[#allocation2 + $0x30] sm:$0xff]  ;;  %v18081_v33 = vpack.c.bf16 %v18046_v1, %v7049_v36 }
 0x92c   :  { %7009 = vst [vmem:[#allocation2 + $0x159] sm:$0xff] %v6945_v11  ;;  %7010 = vst [vmem:[#allocation2 + $0x169] sm:$0xff] %v6946_v5  ;;  %v18058_v54 = vld [vmem:[#allocation2 + $0x38] sm:$0xff]  ;;  %v6971_v61 = vmax.f32 %v17959_v2, 0.0  ;;  %v6972_v22 = vmax.f32 %v17963_v58, 0.0  ;;  %v6973_v16 = vmax.f32 %v17967_v37, 0.0 }
 0x92d   :  { %7011 = vst [vmem:[#allocation2 + $0x171] sm:$0xff] %v6947_v63  ;;  %7012 = vst [vmem:[#allocation2 + $0x181] sm:$0xff] %v6948_v24  ;;  %v6974_v21 = vmax.f32 %v17971_v17, 0.0  ;;  %v7054_v46 = vld [vmem:[#allocation2 + $0x40] sm:$0x3]  ;;  %v21721_v39 = vld [vmem:[#allocation35_spill] sm:$0xff] }
 0x92e   :  { %7013 = vst [vmem:[#allocation2 + $0x189] sm:$0xff] %v6949_v49  ;;  %7014 = vst [vmem:[#allocation2 + $0x1c9] sm:$0xff] %v6950_v32  ;;  %v6975_v15 = vmax.f32 %v21721_v39, 0.0  ;;  %v6976_v3 = vmax.f32 %v17979_v47, 0.0  ;;  %v21722_v7 = vld [vmem:[#allocation16_spill] sm:$0xff]  ;;  %v18068_v2 = vld [vmem:[#allocation2 + $0x48] sm:$0xff] }
 0x92f   :  { %7015 = vst [vmem:[#allocation2 + $0x1d1] sm:$0xff] %v6951_v13  ;;  %7016 = vst [vmem:[#allocation2 + $0x1e1] sm:$0xff] %v6952_v56  ;;  %v6977_v40 = vmax.f32 %v21722_v7, 0.0  ;;  %v21723_v23 = vld [vmem:[#allocation56_spill] sm:$0xff]  ;;  %v18070_v58 = vld [vmem:[#allocation2 + $0x50] sm:$0xff]  ;;  %v6980_v51 = vmax.f32 %v17995_v34, 0.0 }
 0x930   :  { %7017 = vst [vmem:[#allocation2 + $0x1e9] sm:$0xff] %v6953_v9  ;;  %7018 = vst [vmem:[#allocation2 + $0x1f9] sm:$0xff] %v6954_v62  ;;  %v6978_v44 = vmax.f32 %v21723_v23, 0.0  ;;  %v21724_v37 = vld [vmem:[#allocation25_spill] sm:$0xff]  ;;  %v7255_v47 = vrot.slane %v7049_v36, 1  ;;  %v7256_v12 = vrot.slane %v18046_v1, 1 }
 0x931   :  { %7019 = vst [vmem:[#allocation2 + $0x201] sm:$0xff] %v6955_v0  ;;  %7020 = vst [vmem:[#allocation2 + $0x211] sm:$0xff] %v6956_v35  ;;  %v6979_v17 = vmax.f32 %v21724_v37, 0.0  ;;  %v18075_v18 = vld [vmem:[#allocation2 + $0x58] sm:$0x3]  ;;  %v7258_v31 = vrot.slane %v7051_v26, 1 }
 0x932   :  { %7021 = vst [vmem:[#allocation2 + $0x219] sm:$0xff] %v6957_v20  ;;  %7022 = vst [vmem:[#allocation2 + $0x229] sm:$0xff] %v6958_v30  ;;  %v7484_v48 = vrot.slane %v18056_v43, 2  ;;  %v7485_v25 = vrot.slane %v18058_v54, 2  ;;  %v7487_v55 = vrot.slane %v7054_v46, 2  ;;  %v7257_v34 = vsel %vm585_vm0, %v7255_v47, %v7256_v12  ;;  %v18085_v63 = vld [vmem:[#allocation2 + $0x60] sm:$0xff] }
 0x933   :  { %7023 = vst [vmem:[#allocation2 + $0x231] sm:$0xff] %v6959_v50  ;;  %7024 = vst [vmem:[#allocation2 + $0x241] sm:$0xff] %v6960_v60  ;;  %v7489_v11 = vrot.slane %v18068_v2, 2  ;;  %v7490_v5 = vrot.slane %v18070_v58, 2  ;;  %v7259_v52 = vsel %vm585_vm0, %v7256_v12, %v7258_v31  ;;  %v7492_v49 = vrot.slane %v18075_v18, 2  ;;  %v18091_v38 = vld [vmem:[#allocation2 + $0x68] sm:$0xff] }
 0x934   :  { %7025 = vst [vmem:[#allocation2 + $0x249] sm:$0xff] %v6961_v4  ;;  %7026 = vst [vmem:[#allocation2 + $0x259] sm:$0xff] %v6962_v14  ;;  %v7486_v24 = vsel %vm810_vm1, %v7484_v48, %v7485_v25  ;;  %v7488_v10 = vsel %vm810_vm1, %v7485_v25, %v7487_v55  ;;  %v18093_v32 = vld [vmem:[#allocation2 + $0x70] sm:$0x3]  ;;  %v18095_v8 = vpack.c.bf16 %v7259_v52, %v7257_v34  ;;  %v7260_v56 = vrot.slane %v18056_v43, 1  ;;  %v18101_v9 = vld [vmem:[#allocation2 + $0x78] sm:$0xff] }
 0x935   :  { %7027 = vst [vmem:[#allocation2 + $0x261] sm:$0xff] %v6963_v27  ;;  %7028 = vst [vmem:[#allocation2 + $0x271] sm:$0xff] %v6964_v42  ;;  %v18097_v13 = vpack.c.bf16 %v7488_v10, %v7486_v24  ;;  %v7491_v41 = vsel %vm810_vm1, %v7489_v11, %v7490_v5  ;;  %v18103_v62 = vld [vmem:[#allocation2 + $0x80] sm:$0xff]  ;;  %v7493_v0 = vsel %vm810_vm1, %v7490_v5, %v7492_v49  ;;  %v7261_v35 = vrot.slane %v18058_v54, 1  ;;  %v18108_v30 = vld [vmem:[#allocation2 + $0x88] sm:$0x3] }
 0x936   :  { %7029 = vst [vmem:[#allocation2 + $0x279] sm:$0xff] %v6965_v45  ;;  %7030 = vst [vmem:[#allocation2 + $0x289] sm:$0xff] %v6966_v57  ;;  %v7263_v20 = vrot.slane %v7054_v46, 1  ;;  %v7494_v29 = vrot.slane %v18085_v63, 2  ;;  %8490 = vmatprep.mubr.bf16.mxu1 %v18095_v8  ;;  %v18112_v50 = vpack.c.bf16 %v7493_v0, %v7491_v41  ;;  %v7495_v60 = vrot.slane %v18091_v38, 2  ;;  %v18121_v42 = vld [vmem:[#allocation2 + $0x90] sm:$0xff] }
 0x937   :  { %7031 = vst [vmem:[#allocation2 + $0x291] sm:$0xff] %v6967_v6  ;;  %7032 = vst [vmem:[#allocation2 + $0x2a1] sm:$0xff] %v6968_v59  ;;  %10893 = vmatprep.mubr.bf16.mxu0 %v18097_v13  ;;  %v7497_v4 = vrot.slane %v18093_v32, 2  ;;  %8491 = vmatmul.mubr.bf16.gmra.mrb[196].mxu1 %v18081_v33  ;;  %v7262_v14 = vsel %vm585_vm0, %v7260_v56, %v7261_v35  ;;  %v7499_v1 = vrot.slane %v18101_v9, 2  ;;  %v7500_v27 = vrot.slane %v18103_v62, 2  ;;  %v18123_v45 = vld [vmem:[#allocation2 + $0x98] sm:$0xff] }
 0x938   :  { %7033 = vst [vmem:[#allocation2 + $0x2a9] sm:$0xff] %v6969_v19  ;;  %7034 = vst [vmem:[#allocation2 + $0x2b9] sm:$0xff] %v6970_v28  ;;  %v7264_v36 = vsel %vm585_vm0, %v7261_v35, %v7263_v20  ;;  %10894 = vmatmul.mubr.bf16.vlgmr.msra.gmra.mrb[64].mxu0 %v18112_v50  ;;  %v7496_v26 = vsel %vm810_vm1, %v7494_v29, %v7495_v60  ;;  %v7502_v59 = vrot.slane %v18108_v30, 2  ;;  %v18131_v19 = vld [vmem:[#allocation2 + $0xa0] sm:$0x3]  ;;  %v7268_v46 = vrot.slane %v18075_v18, 1 }
 0x939   :  { %7035 = vst [vmem:[#allocation2 + $0x2c1] sm:$0xff] %v6971_v61  ;;  %7036 = vst [vmem:[#allocation2 + $0x2d1] sm:$0xff] %v6972_v22  ;;  %v18126_v57 = vpack.c.bf16 %v7264_v36, %v7262_v14  ;;  %v7498_v6 = vsel %vm810_vm1, %v7495_v60, %v7497_v4  ;;  %v7501_v61 = vsel %vm810_vm1, %v7499_v1, %v7500_v27  ;;  %v7265_v22 = vrot.slane %v18068_v2, 1  ;;  %v18148_v23 = vld [vmem:[#allocation2 + $0xb0] sm:$0xff]  ;;  %v18161_v18 = vld [vmem:[#allocation2 + $0xc0] sm:$0xff] }
 0x93a   :  { %7037 = vst [vmem:[#allocation2 + $0x2d9] sm:$0xff] %v6973_v16  ;;  %7038 = vst [vmem:[#allocation2 + $0x2e9] sm:$0xff] %v6974_v21  ;;  %v18133_v28 = vpack.c.bf16 %v7498_v6, %v7496_v26  ;;  %v7266_v16 = vrot.slane %v18070_v58, 1  ;;  %v7503_v21 = vsel %vm810_vm1, %v7500_v27, %v7502_v59  ;;  %v7504_v39 = vrot.slane %v18121_v42, 2  ;;  %v18163_v31 = vld [vmem:[#allocation2 + $0xc8] sm:$0xff]  ;;  %v18183_v41 = vld [vmem:[#allocation2 + $0xd8] sm:$0xff] }
 0x93b   :  { %7039 = vst [vmem:[#allocation2 + $0x2f1] sm:$0xff] %v6975_v15  ;;  %7040 = vst [vmem:[#allocation2 + $0x301] sm:$0xff] %v6976_v3  ;;  %8498 = vmatprep.mubr.bf16.mxu1 %v18126_v57  ;;  %v7505_v15 = vrot.slane %v18123_v45, 2  ;;  %v7507_v7 = vrot.slane %v18131_v19, 2  ;;  %v18158_v47 = vpack.c.bf16 %v7503_v21, %v7501_v61  ;;  %v18165_v48 = vld [vmem:[#allocation2 + $0xd0] sm:$0x3]  ;;  %v18203_v26 = vpack.c.bf16 %v18070_v58, %v18068_v2 }
 0x93c   :  { %7041 = vst [vmem:[#allocation2 + $0x309] sm:$0xff] %v6977_v40  ;;  %7042 = vst [vmem:[#allocation2 + $0x319] sm:$0xff] %v6978_v44  ;;  %10897 = vmatprep.mubr.bf16.mxu0 %v18133_v28  ;;  %v7267_v3 = vsel %vm585_vm0, %v7265_v22, %v7266_v16  ;;  %v18146_v40 = vld [vmem:[#allocation2 + $0xa8] sm:$0xff]  ;;  %v18150_v44 = vld [vmem:[#allocation2 + $0xb8] sm:$0x3]  ;;  %v7269_v37 = vsel %vm585_vm0, %v7266_v16, %v7268_v46  ;;  %v7510_v34 = vrot.slane %v18148_v23, 2 }
 0x93d   :  { %7043 = vst [vmem:[#allocation2 + $0x321] sm:$0xff] %v6979_v17  ;;  %7044 = vst [vmem:[#allocation2 + $0x331] sm:$0xff] %v6980_v51  ;;  %v7506_v17 = vsel %vm810_vm1, %v7504_v39, %v7505_v15  ;;  %v18156_v51 = vpack.c.bf16 %v18058_v54, %v18056_v43  ;;  %v7508_v12 = vsel %vm810_vm1, %v7505_v15, %v7507_v7  ;;  %v7509_v55 = vrot.slane %v18146_v40, 2  ;;  %v18186_v56 = vld [vmem:[#allocation2 + $0xe0] sm:$0xff]  ;;  %v18188_v0 = vld [vmem:[#allocation2 + $0xe8] sm:$0x3] }
 0x93e   :  { %21725 = vst [vmem:[#allocation76_spill] sm:$0xff] %v18081_v33  ;;  %21726 = vst [vmem:[#allocation32_spill] sm:$0xff] %v18095_v8  ;;  %v18167_v25 = vpack.c.bf16 %v7269_v37, %v7267_v3  ;;  %v7512_v11 = vrot.slane %v18150_v44, 2  ;;  %v18173_v43 = vpack.c.bf16 %v7508_v12, %v7506_v17  ;;  %v7270_v54 = vrot.slane %v18085_v63, 1  ;;  %v18199_v27 = vld [vmem:[#allocation2 + $0xf0] sm:$0xff]  ;;  %v18208_v22 = vld [vmem:[#allocation2 + $0xf8] sm:$0xff] }
 0x93f   :  { %21727 = vst [vmem:[#allocation95_spill] sm:$0xff] %v18097_v13  ;;  %21728 = vst [vmem:[#allocation8_spill] sm:$0xff] %v18112_v50  ;;  %8499 = vmatmul.mubr.bf16.gmra.mrb[200].mxu1 %v18156_v51  ;;  %v7271_v5 = vrot.slane %v18091_v38, 1  ;;  %v7273_v52 = vrot.slane %v18093_v32, 1  ;;  %v7514_v24 = vrot.slane %v18161_v18, 2  ;;  %v7515_v10 = vrot.slane %v18163_v31, 2 }
 0x940   :  { %21729 = vst [vmem:[#allocation26_spill] sm:$0xff] %v18126_v57  ;;  %21730 = vst [vmem:[#allocation60_spill] sm:$0xff] %v18133_v28  ;;  %10898 = vmatmul.mubr.bf16.gmra.mrb[68].mxu0 %v18158_v47  ;;  %8506 = vmatprep.mubr.bf16.mxu1 %v18167_v25  ;;  %v7517_v49 = vrot.slane %v18165_v48, 2  ;;  %v7511_v32 = vsel %vm810_vm1, %v7509_v55, %v7510_v34  ;;  %v7513_v35 = vsel %vm810_vm1, %v7510_v34, %v7512_v11  ;;  %v18210_v16 = vld [vmem:[#allocation2 + $0x100] sm:$0x3]  ;;  %v18229_v17 = vld [vmem:[#allocation2 + $0x108] sm:$0xff] }
 0x941   :  { %21731 = vst [vmem:[#allocation75_spill] sm:$0xff] %v18156_v51  ;;  %21732 = vst [vmem:[#allocation101_spill] sm:$0xff] %v18158_v47  ;;  %10901 = vmatprep.mubr.bf16.mxu0 %v18173_v43  ;;  %v7272_v20 = vsel %vm585_vm0, %v7270_v54, %v7271_v5  ;;  %v7274_v29 = vsel %vm585_vm0, %v7271_v5, %v7273_v52  ;;  %v7519_v60 = vrot.slane %v18183_v41, 2  ;;  %v7520_v36 = vrot.slane %v18186_v56, 2  ;;  %v18231_v12 = vld [vmem:[#allocation2 + $0x110] sm:$0xff]  ;;  %v18241_v54 = vld [vmem:[#allocation2 + $0x120] sm:$0xff] }
 0x942   :  { %21733 = vst [vmem:[#allocation49_spill] sm:$0xff] %v18167_v25  ;;  %21734 = vst [vmem:[#allocation62_spill] sm:$0xff] %v18173_v43  ;;  %v7516_v4 = vsel %vm810_vm1, %v7514_v24, %v7515_v10  ;;  %v7518_v14 = vsel %vm810_vm1, %v7515_v10, %v7517_v49  ;;  %v7522_v1 = vrot.slane %v18188_v0, 2  ;;  %v7275_v6 = vrot.slane %v18101_v9, 1  ;;  %v18233_v55 = vld [vmem:[#allocation2 + $0x118] sm:$0x3] }
 0x943   :  { %21735 = vst [vmem:[#allocation23_spill] sm:$0xff] %v18203_v26  ;;  %v7276_v59 = vrot.slane %v18103_v62, 1  ;;  %v7278_v61 = vrot.slane %v18108_v30, 1  ;;  %v18212_v21 = vpack.c.bf16 %v7513_v35, %v7511_v32  ;;  %v18214_v46 = vpack.c.bf16 %v7274_v29, %v7272_v20  ;;  %v18243_v5 = vld [vmem:[#allocation2 + $0x128] sm:$0xff]  ;;  %v18245_v52 = vld [vmem:[#allocation2 + $0x130] sm:$0x3] }
 0x944   :  { %v18217_v39 = vpack.c.bf16 %v7518_v14, %v7516_v4  ;;  %v7524_v2 = vrot.slane %v18199_v27, 2  ;;  %v7521_v58 = vsel %vm810_vm1, %v7519_v60, %v7520_v36  ;;  %v7523_v30 = vsel %vm810_vm1, %v7520_v36, %v7522_v1  ;;  %v18263_v1 = vld [vmem:[#allocation2 + $0x138] sm:$0xff]  ;;  %v18310_v8 = vld [vmem:[#allocation2] sm:$0xff]  ;;  %v12257_v43 = vld [vmem:[%s20590_s7 + $0xd0] sm:$0xff]  }
 0x945   :  { %21736 = vst [vmem:[#allocation39_spill] sm:$0xff] %v18212_v21  ;;  %21737 = vst [vmem:[#allocation34_spill] sm:$0xff] %v18214_v46  ;;  %v7525_v15 = vrot.slane %v18208_v22, 2  ;;  %v7527_v3 = vrot.slane %v18210_v16, 2  ;;  %v7277_v7 = vsel %vm585_vm0, %v7275_v6, %v7276_v59  ;;  %v7279_v37 = vsel %vm585_vm0, %v7276_v59, %v7278_v61  ;;  %v12255_v6 = vld [vmem:[%s20590_s7 + $0xc0] sm:$0xff]   ;;  %v18274_v61 = vld [vmem:[#allocation2 + $0x150] sm:$0xff] }
 0x946   :  { %21738 = vst [vmem:[#allocation14_spill] sm:$0xff] %v18217_v39  ;;  %v18237_v34 = vpack.c.bf16 %v18091_v38, %v18085_v63  ;;  %v18239_v11 = vpack.c.bf16 %v7523_v30, %v7521_v58  ;;  %v18247_v24 = vpack.c.bf16 %v7279_v37, %v7277_v7  ;;  %v7529_v32 = vrot.slane %v18229_v17, 2  ;;  %v18272_v59 = vld [vmem:[#allocation2 + $0x148] sm:$0x3]  ;;  %8756 = vmatpush1.bf16.msra.mxu1 %v12255_v6 }
 0x947   :  { %8507 = vmatmul.mubr.bf16.gmra.mrb[204].mxu1 %v18203_v26  ;;  %v7526_v10 = vsel %vm810_vm1, %v7524_v2, %v7525_v15  ;;  %v7528_v49 = vsel %vm810_vm1, %v7525_v15, %v7527_v3  ;;  %v7530_v35 = vrot.slane %v18231_v12, 2  ;;  %v7532_v63 = vrot.slane %v18233_v55, 2  ;;  %v18280_v15 = vld [vmem:[#allocation2 + $0x158] sm:$0xff]  ;;  %v18282_v3 = vld [vmem:[#allocation2 + $0x160] sm:$0x3]  ;;  %v12256_v7 = vld [vmem:[%s20590_s7 + $0xc8] sm:$0xff]   ;;  %8757 = vmatprep.subr.bf16.mxu1 %v21414_v53 }
 0x948   :  { %10902 = vmatmul.mubr.bf16.gmra.mrb[72].mxu0 %v18212_v21  ;;  %8514 = vmatprep.mubr.bf16.mxu1 %v18214_v46  ;;  %21739 = vst [vmem:[#allocation48_spill] sm:$0xff] %v18237_v34  ;;  %21740 = vst [vmem:[#allocation55_spill] sm:$0xff] %v18239_v11  ;;  %v7280_v38 = vrot.slane %v18121_v42, 1  ;;  %v7281_v20 = vrot.slane %v18123_v45, 1  ;;  %v7283_v29 = vrot.slane %v18131_v19, 1  ;;  %v7534_v60 = vrot.slane %v18241_v54, 2 }
 0x949   :  { %10905 = vmatprep.mubr.bf16.mxu0 %v18217_v39  ;;  %21741 = vst [vmem:[#allocation53_spill] sm:$0xff] %v18247_v24  ;;  %v7535_v4 = vrot.slane %v18243_v5, 2  ;;  %v7537_v14 = vrot.slane %v18245_v52, 2  ;;  %v18261_v36 = vpack.c.bf16 %v7528_v49, %v7526_v10  ;;  %v18270_v19 = vld [vmem:[#allocation2 + $0x140] sm:$0xff]  ;;  %v7531_v2 = vsel %vm810_vm1, %v7529_v32, %v7530_v35  ;;  %21744 = vst [vmem:[#allocation57_spill] sm:$0xff] %v18310_v8 }
 0x94a   :  { %v7533_v58 = vsel %vm810_vm1, %v7530_v35, %v7532_v63  ;;  %v7282_v30 = vsel %vm585_vm0, %v7280_v38, %v7281_v20  ;;  %v7284_v37 = vsel %vm585_vm0, %v7281_v20, %v7283_v29  ;;  %v7539_v32 = vrot.slane %v18263_v1, 2  ;;  %v18291_v35 = vld [vmem:[#allocation2 + $0x168] sm:$0xff]  ;;  %v18293_v63 = vld [vmem:[#allocation2 + $0x170] sm:$0xff]  ;;  %v18295_v38 = vld [vmem:[#allocation2 + $0x178] sm:$0x3]  ;;  %8758 = vmatpush1.bf16.msra.mxu1 %v12256_v7 }
 0x94b   :  { %21742 = vst [vmem:[#allocation89_spill] sm:$0xff] %v18261_v36  ;;  %v7536_v10 = vsel %vm810_vm1, %v7534_v60, %v7535_v4  ;;  %v7538_v49 = vsel %vm810_vm1, %v7535_v4, %v7537_v14  ;;  %21743 = vst [vmem:[#allocation24_spill] sm:$0xff] %v18295_v38  ;;  %v7540_v6 = vrot.slane %v18270_v19, 2  ;;  %v7285_v20 = vrot.slane %v18146_v40, 1  ;;  %v18302_v60 = vld [vmem:[#allocation2 + $0x1e0] sm:$0xff]  ;;  %v18304_v4 = vld [vmem:[#allocation2 + $0x1e8] sm:$0xff]  ;;  %8759 = vmatprep.subr.bf16.mxu1 %v21414_v53 }
 0x94c   :  { %v7286_v29 = vrot.slane %v18148_v23, 1  ;;  %v7288_v14 = vrot.slane %v18150_v44, 1  ;;  %v7544_v46 = vrot.slane %v18274_v61, 2  ;;  %v7545_v25 = vrot.slane %v18280_v15, 2  ;;  %v7099_v44 = vld [vmem:[#allocation2 + $0x1a8] sm:$0x3] }
 0x94d   :  { %v7547_v57 = vrot.slane %v18282_v3, 2  ;;  %v18319_v39 = vpack.c.bf16 %v7533_v58, %v7531_v2  ;;  %v18321_v21 = vpack.c.bf16 %v7284_v37, %v7282_v30  ;;  %v7549_v47 = vrot.slane %v18291_v35, 2  ;;  %v7095_v7 = vld [vmem:[#allocation2 + $0x188] sm:$0xff]  ;;  %v7096_v37 = vld [vmem:[#allocation2 + $0x190] sm:$0x3] }
 0x94e   :  { %v7550_v28 = vrot.slane %v18293_v63, 2  ;;  %v7552_v50 = vrot.slane %v18295_v38, 2  ;;  %v7541_v2 = vsel %vm810_vm1, %v7539_v32, %v7540_v6  ;;  %v7287_v30 = vsel %vm585_vm0, %v7285_v20, %v7286_v29  ;;  %v18347_v32 = vld [vmem:[#allocation2 + $0x218] sm:$0xff]  ;;  %8760 = vmatpush1.bf16.msra.mxu1 %v12257_v43 }
 0x94f   :  { %8515 = vmatmul.mubr.bf16.gmra.mrb[208].mxu1 %v18237_v34  ;;  %21747 = vst [vmem:[#allocation38_spill] sm:$0xff] %v18319_v39  ;;  %21748 = vst [vmem:[#allocation31_spill] sm:$0xff] %v18321_v21  ;;  %v7094_v34 = vld [vmem:[#allocation2 + $0x180] sm:$0xff]  ;;  %v7289_v13 = vsel %vm585_vm0, %v7286_v29, %v7288_v14  ;;  %v7546_v26 = vsel %vm810_vm1, %v7544_v46, %v7545_v25  ;;  %v7293_v20 = vrot.slane %v18165_v48, 1  ;;  %8761 = vmatprep.subr.bf16.mxu1 %v21414_v53 }
 0x950   :  { %10906 = vmatmul.mubr.bf16.gmra.mrb[76].mxu0 %v18239_v11  ;;  %8522 = vmatprep.mubr.bf16.mxu1 %v18247_v24  ;;  %v7542_v24 = vrot.slane %v18272_v59, 2  ;;  %v18317_v11 = vpack.c.bf16 %v18103_v62, %v18101_v9  ;;  %v18331_v9 = vpack.c.bf16 %v18304_v4, %v18302_v60  ;;  %v18335_v62 = vpack.c.bf16 %v7538_v49, %v7536_v10  ;;  %v18345_v49 = vld [vmem:[#allocation2 + $0x210] sm:$0xff] }
 0x951   :  { %10909 = vmatprep.mubr.bf16.mxu0 %v18261_v36  ;;  %v18313_v36 = vrot.slane %v18310_v8, 2  ;;  %v7755_v10 = vrot.slane %v7099_v44, 2  ;;  %21751 = vst [vmem:[#allocation13_spill] sm:$0xff] %v18347_v32  ;;  %v7551_v29 = vsel %vm810_vm1, %v7549_v47, %v7550_v28  ;;  %v7553_v46 = vsel %vm810_vm1, %v7550_v28, %v7552_v50  ;;  %v18370_v47 = vld [vmem:[#allocation2 + $0x1f0] sm:$0x3] }
 0x952   :  { %21746 = vst [vmem:[#allocation37_spill] sm:$0xff] %v18317_v11  ;;  %21749 = vst [vmem:[#allocation46_spill] sm:$0xff] %v18331_v9  ;;  %v7543_v58 = vsel %vm810_vm1, %v7540_v6, %v7542_v24  ;;  %v7290_v24 = vrot.slane %v18161_v18, 1  ;;  %v7291_v6 = vrot.slane %v18163_v31, 1  ;;  %v18358_v14 = vpack.c.bf16 %v18347_v32, %v18345_v49 }
 0x953   :  { %21745 = vst [vmem:[#allocation29_spill] sm:$0xff] %v18313_v36  ;;  %21750 = vst [vmem:[#allocation66_spill] sm:$0xff] %v18335_v62  ;;  %v18362_v44 = vpack.c.bf16 %v18123_v45, %v18121_v42  ;;  %v18368_v48 = vsel %vm810_vm1, %v18313_v36, %v7755_v10  ;;  %v18372_v50 = vpack.c.bf16 %v7289_v13, %v7287_v30  ;;  %v18382_v42 = vld [vmem:[#allocation2 + $0x1f8] sm:$0xff]  ;;  %v18384_v45 = vld [vmem:[#allocation2 + $0x200] sm:$0xff]  ;;  %v7295_v30 = vrot.slane %v18183_v41, 1 }
 0x954   :  { %21752 = vst [vmem:[#allocation33_spill] sm:$0xff] %v18358_v14  ;;  %v18378_v43 = vpack.c.bf16 %v18148_v23, %v18146_v40  ;;  %21759 = vst [vmem:[#allocation51_spill] sm:$0xff] %v18384_v45  ;;  %v18394_v40 = vld [vmem:[#allocation2 + $0x240] sm:$0xff]  ;;  %v18396_v23 = vld [vmem:[#allocation2 + $0x248] sm:$0xff]  ;;  %v7298_v10 = vrot.slane %v18188_v0, 1  ;;  %v7303_v51 = vrot.slane %v18210_v16, 1 }
 0x955   :  { %21753 = vst [vmem:[#allocation86_spill] sm:$0xff] %v18362_v44  ;;  %21755 = vst [vmem:[#allocation28_spill] sm:$0xff] %v18372_v50  ;;  %v12258_v0 = vld [vmem:[%s20590_s7 + $0xd8] sm:$0xff]   ;;  %v7574_v33 = vrot.slane %v18345_v49, 2  ;;  %v7575_v14 = vrot.slane %v18347_v32, 2 }
 0x956   :  { %21757 = vst [vmem:[#allocation18_spill] sm:$0xff] %v18378_v43  ;;  %8762 = vmatpush1.bf16.msra.mxu1 %v12258_v0 }
 0x957   :  { %8523 = vmatmul.mubr.bf16.gmra.mrb[212].mxu1 %v18317_v11  ;;  %v7548_v11 = vsel %vm810_vm1, %v7545_v25, %v7547_v57  ;;  %v7719_v57 = vrot.slane %v7095_v7, 2  ;;  %v7721_v25 = vrot.slane %v7096_v37, 2  ;;  %v7294_v7 = vsel %vm585_vm0, %v7291_v6, %v7293_v20  ;;  %8763 = vmatprep.subr.bf16.mxu1 %v21414_v53 }
 0x958   :  { %10910 = vmatmul.mubr.bf16.gmra.mrb[80].mxu0 %v18319_v39  ;;  %8530 = vmatprep.mubr.bf16.mxu1 %v18321_v21  ;;  %v7718_v21 = vrot.slane %v7094_v34, 2  ;;  %v18374_v28 = vpack.c.bf16 %v7548_v11, %v7546_v26  ;;  %v18380_v34 = vpack.c.bf16 %v7553_v46, %v7551_v29  ;;  %v18392_v11 = vld [vmem:[#allocation2 + $0x220] sm:$0x3]  ;;  %v7296_v37 = vrot.slane %v18186_v56, 1  ;;  %v18420_v39 = vld [vmem:[#allocation2 + $0x238] sm:$0x3] }
 0x959   :  { %10913 = vmatprep.mubr.bf16.mxu0 %v18335_v62  ;;  %v18364_v62 = vpack.c.bf16 %v7543_v58, %v7541_v2  ;;  %v18386_v2 = vld [vmem:[#allocation2 + $0x208] sm:$0x3]  ;;  %v7292_v58 = vsel %vm585_vm0, %v7290_v24, %v7291_v6  ;;  %v7722_v26 = vsel %vm810_vm1, %v7719_v57, %v7721_v25  ;;  %21761 = vst [vmem:[#allocation71_spill] sm:$0xff] %v18392_v11  ;;  %v7564_v24 = vrot.slane %v18302_v60, 2 }
 0x95a   :  { %21756 = vst [vmem:[#allocation36_spill] sm:$0xff] %v18374_v28  ;;  %21758 = vst [vmem:[#allocation44_spill] sm:$0xff] %v18380_v34  ;;  %v7720_v13 = vsel %vm810_vm1, %v7718_v21, %v7719_v57  ;;  %v18403_v6 = vld [vmem:[#allocation2 + $0x228] sm:$0xff]  ;;  %v7565_v21 = vrot.slane %v18304_v4, 2  ;;  %v7567_v20 = vrot.slane %v18370_v47, 2  ;;  %v7569_v29 = vrot.slane %v18382_v42, 2 }
 0x95b   :  { %21754 = vst [vmem:[#allocation102_spill] sm:$0xff] %v18364_v62  ;;  %21760 = vst [vmem:[#allocation41_spill] sm:$0xff] %v18386_v2  ;;  %v7570_v46 = vrot.slane %v18384_v45, 2  ;;  %v18411_v57 = vld [vmem:[#allocation2 + $0x230] sm:$0xff]  ;;  %v7572_v25 = vrot.slane %v18386_v2, 2  ;;  %v18430_v9 = vpack.c.bf16 %v7294_v7, %v7292_v58  ;;  %v18432_v8 = vpack.c.bf16 %v7722_v26, %v7720_v13 }
 0x95c   :  { %21762 = vst [vmem:[#allocation42_spill] sm:$0xff] %v18403_v6  ;;  %21763 = vst [vmem:[#allocation90_spill] sm:$0xff] %v18411_v57  ;;  %v7579_v38 = vrot.slane %v18403_v6, 2  ;;  %v7580_v2 = vrot.slane %v18411_v57, 2  ;;  %v18436_v45 = vld [vmem:[#allocation2 + $0x270] sm:$0xff]  ;;  %v7297_v16 = vsel %vm585_vm0, %v7295_v30, %v7296_v37  ;;  %v7299_v32 = vsel %vm585_vm0, %v7296_v37, %v7298_v10 }
 0x95d   :  { %21765 = vst [vmem:[#allocation6_spill] sm:$0xff] %v18430_v9  ;;  %21766 = vst [vmem:[#allocation47_spill] sm:$0xff] %v18432_v8  ;;  %v7566_v0 = vsel %vm810_vm1, %v7564_v24, %v7565_v21  ;;  %v7582_v58 = vrot.slane %v18420_v39, 2  ;;  %v7568_v7 = vsel %vm810_vm1, %v7565_v21, %v7567_v20  ;;  %v7571_v13 = vsel %vm810_vm1, %v7569_v29, %v7570_v46  ;;  %v18449_v6 = vld [vmem:[#allocation2 + $0x250] sm:$0x3] }
 0x95e   :  { %21767 = vst [vmem:[#allocation17_spill] sm:$0xff] %v18436_v45  ;;  %v7573_v26 = vsel %vm810_vm1, %v7570_v46, %v7572_v25  ;;  %v7576_v30 = vsel %vm810_vm1, %v7574_v33, %v7575_v14  ;;  %v7581_v24 = vsel %vm810_vm1, %v7579_v38, %v7580_v2  ;;  %v7305_v21 = vrot.slane %v18229_v17, 1  ;;  %v18471_v38 = vld [vmem:[#allocation2 + $0x2a8] sm:$0xff] }
 0x95f   :  { %8531 = vmatmul.mubr.bf16.gmra.mrb[216].mxu1 %v18362_v44  ;;  %v18424_v44 = vpack.c.bf16 %v18396_v23, %v18394_v40  ;;  %v7308_v20 = vrot.slane %v18233_v55, 1  ;;  %v7583_v33 = vsel %vm810_vm1, %v7580_v2, %v7582_v58  ;;  %21771 = vst [vmem:[#allocation58_spill] sm:$0xff] %v18471_v38  ;;  %v18476_v55 = vpack.c.bf16 %v18163_v31, %v18161_v18  ;;  %v18496_v18 = vld [vmem:[#allocation2 + $0x260] sm:$0xff]  ;;  %v18498_v31 = vld [vmem:[#allocation2 + $0x268] sm:$0x3] }
 0x960   :  { %10914 = vmatmul.mubr.bf16.gmra.mrb[84].mxu0 %v18364_v62  ;;  %8538 = vmatprep.mubr.bf16.mxu1 %v18372_v50  ;;  %v7300_v50 = vrot.slane %v18199_v27, 1  ;;  %v7301_v62 = vrot.slane %v18208_v22, 1  ;;  %v7819_v29 = vpack.c.bf16 %v18368_v48, %v18313_v36  ;;  %v18482_v2 = vpack.c.bf16 %v18186_v56, %v18183_v41 }
 0x961   :  { %10917 = vmatprep.mubr.bf16.mxu0 %v18374_v28  ;;  %21764 = vst [vmem:[#allocation43_spill] sm:$0xff] %v18424_v44  ;;  %v7577_v28 = vrot.slane %v18392_v11, 2  ;;  %v18438_v44 = vld [vmem:[#allocation2 + $0x278] sm:$0xff]  ;;  %21772 = vst [vmem:[#allocation64_spill] sm:$0xff] %v18476_v55  ;;  %v18484_v46 = vpack.c.bf16 %v7299_v32, %v7297_v16  ;;  %v18486_v25 = vpack.c.bf16 %v7568_v7, %v7566_v0  ;;  %v18506_v32 = vld [vmem:[#allocation2 + $0x280] sm:$0x3] }
 0x962   :  { %21768 = vst [vmem:[#allocation19_spill] sm:$0xff] %v18438_v44  ;;  %v7302_v57 = vsel %vm585_vm0, %v7300_v50, %v7301_v62  ;;  %v7304_v11 = vsel %vm585_vm0, %v7301_v62, %v7303_v51  ;;  %v18456_v10 = vpack.c.bf16 %v18438_v44, %v18436_v45  ;;  %v7306_v50 = vrot.slane %v18231_v12, 1  ;;  %21773 = vst [vmem:[#allocation67_spill] sm:$0xff] %v18482_v2 }
 0x963   :  { %v7578_v37 = vsel %vm810_vm1, %v7575_v14, %v7577_v28  ;;  %v7584_v51 = vrot.slane %v18394_v40, 2  ;;  %v7585_v62 = vrot.slane %v18396_v23, 2  ;;  %v7587_v14 = vrot.slane %v18449_v6, 2  ;;  %v18469_v28 = vld [vmem:[#allocation2 + $0x2a0] sm:$0xff]  ;;  %21774 = vst [vmem:[#allocation68_spill] sm:$0xff] %v18484_v46  ;;  %21775 = vst [vmem:[#allocation69_spill] sm:$0xff] %v18486_v25 }
 0x964   :  { %21769 = vst [vmem:[#allocation80_spill] sm:$0xff] %v18456_v10  ;;  %21770 = vst [vmem:[#allocation59_spill] sm:$0xff] %v18469_v28  ;;  %v18488_v58 = vpack.c.bf16 %v7573_v26, %v7571_v13  ;;  %v18500_v48 = vpack.c.bf16 %v7304_v11, %v7302_v57  ;;  %v18502_v41 = vpack.c.bf16 %v7578_v37, %v7576_v30  ;;  %v18516_v11 = vld [vmem:[#allocation2 + $0x288] sm:$0xff]  ;;  %v18518_v57 = vld [vmem:[#allocation2 + $0x290] sm:$0xff]  ;;  %v7590_v30 = vrot.slane %v18496_v18, 2 }
 0x965   :  { %v18504_v56 = vpack.c.bf16 %v7583_v33, %v7581_v24  ;;  %21780 = vst [vmem:[#allocation78_spill] sm:$0xff] %v18506_v32  ;;  %v18510_v16 = vpack.c.bf16 %v18471_v38, %v18469_v28  ;;  %v7586_v0 = vsel %vm810_vm1, %v7584_v51, %v7585_v62  ;;  %v7588_v7 = vsel %vm810_vm1, %v7585_v62, %v7587_v14  ;;  %v18520_v13 = vld [vmem:[#allocation2 + $0x298] sm:$0x3] }
 0x966   :  { %21776 = vst [vmem:[#allocation72_spill] sm:$0xff] %v18488_v58  ;;  %21778 = vst [vmem:[#allocation74_spill] sm:$0xff] %v18500_v48  ;;  %v7592_v37 = vrot.slane %v18498_v31, 2  ;;  %v7310_v24 = vrot.slane %v18241_v54, 1  ;;  %v7313_v33 = vrot.slane %v18245_v52, 1  ;;  %v7594_v51 = vrot.slane %v18436_v45, 2 }
 0x967   :  { %8539 = vmatmul.mubr.bf16.gmra.mrb[220].mxu1 %v18378_v43  ;;  %21779 = vst [vmem:[#allocation77_spill] sm:$0xff] %v18502_v41  ;;  %21781 = vst [vmem:[#allocation84_spill] sm:$0xff] %v18510_v16  ;;  %v7595_v62 = vrot.slane %v18438_v44, 2  ;;  %v7597_v14 = vrot.slane %v18506_v32, 2  ;;  %v7600_v43 = vrot.slane %v18518_v57, 2  ;;  %v7602_v36 = vrot.slane %v18520_v13, 2 }
 0x968   :  { %10918 = vmatmul.mubr.bf16.gmra.mrb[88].mxu0 %v18380_v34  ;;  %8546 = vmatprep.mubr.bf16.mxu1 %v18430_v9  ;;  %v18494_v9 = vld [vmem:[#allocation2 + $0x258] sm:$0xff]  ;;  %21782 = vst [vmem:[#allocation87_spill] sm:$0xff] %v18516_v11  ;;  %21783 = vst [vmem:[#allocation88_spill] sm:$0xff] %v18518_v57  ;;  %v7599_v34 = vrot.slane %v18516_v11, 2  ;;  %v7315_v52 = vrot.slane %v18263_v1, 1  ;;  %v7316_v10 = vrot.slane %v18270_v19, 1  ;;  %v7593_v57 = vsel %vm810_vm1, %v7590_v30, %v7592_v37 }
 0x969   :  { %10921 = vmatprep.mubr.bf16.mxu0 %v18432_v8  ;;  %v18492_v8 = vpack.c.bf16 %v18208_v22, %v18199_v27  ;;  %v7307_v27 = vsel %vm585_vm0, %v7305_v21, %v7306_v50  ;;  %v7309_v22 = vsel %vm585_vm0, %v7306_v50, %v7308_v20  ;;  %21784 = vst [vmem:[#allocation91_spill] sm:$0xff] %v18520_v13  ;;  %v7589_v26 = vrot.slane %v18494_v9, 2  ;;  %v18526_v21 = vld [vmem:[#allocation2 + $0x2d0] sm:$0xff]  ;;  %v18528_v50 = vld [vmem:[#allocation2 + $0x2d8] sm:$0xff]  ;;  %v12259_v11 = vld [vmem:[%s20590_s7 + $0xe0] sm:$0xff]  }
 0x96a   :  { %v7311_v20 = vrot.slane %v18243_v5, 1  ;;  %v18540_v16 = vpack.c.bf16 %v7309_v22, %v7307_v27  ;;  %v18552_v13 = vpack.c.bf16 %v7588_v7, %v7586_v0  ;;  %v18559_v22 = vld [vmem:[#allocation2 + $0x2b0] sm:$0x3]  ;;  %v7596_v7 = vsel %vm810_vm1, %v7594_v51, %v7595_v62  ;;  %8764 = vmatpush1.bf16.msra.mxu1 %v12259_v11  ;;  %v18581_v37 = vld [vmem:[#allocation2 + $0x2c8] sm:$0x3] }
 0x96b   :  { %21777 = vst [vmem:[#allocation73_spill] sm:$0xff] %v18492_v8  ;;  %v7591_v27 = vsel %vm810_vm1, %v7589_v26, %v7590_v30  ;;  %21788 = vst [vmem:[#allocation97_spill] sm:$0xff] %v18559_v22  ;;  %v18575_v26 = vld [vmem:[#allocation2 + $0x308] sm:$0xff]  ;;  %v7598_v32 = vsel %vm810_vm1, %v7595_v62, %v7597_v14  ;;  %v7601_v44 = vsel %vm810_vm1, %v7599_v34, %v7600_v43  ;;  %v7318_v30 = vrot.slane %v18272_v59, 1  ;;  %v18590_v62 = vld [vmem:[#allocation2 + $0x330] sm:$0xff] }
 0x96c   :  { %21785 = vst [vmem:[#allocation92_spill] sm:$0xff] %v18540_v16  ;;  %v7314_v0 = vsel %vm585_vm0, %v7311_v20, %v7313_v33  ;;  %21793 = vst [vmem:[#allocation45_spill] sm:$0xff] %v18575_v26  ;;  %8765 = vmatprep.subr.bf16.mxu1 %v21414_v53  ;;  %v7604_v33 = vrot.slane %v18469_v28, 2  ;;  %v7605_v11 = vrot.slane %v18471_v38, 2  ;;  %v7607_v51 = vrot.slane %v18559_v22, 2  ;;  %v18592_v34 = vld [vmem:[#allocation2 + $0x338] sm:$0xff] }
 0x96d   :  { %21795 = vst [vmem:[#allocation11_spill] sm:$0xff] %v18590_v62  ;;  %21796 = vst [vmem:[#allocation21_spill] sm:$0xff] %v18592_v34  ;;  %v7612_v22 = vrot.slane %v18581_v37, 2  ;;  %v7320_v38 = vrot.slane %v18274_v61, 1  ;;  %v7321_v28 = vrot.slane %v18280_v15, 1  ;;  %v7709_v45 = vrot.slane %v18590_v62, 1 }
 0x96f   :  { %8547 = vmatmul.mubr.bf16.gmra.mrb[224].mxu1 %v18476_v55  ;;  %v18546_v55 = vpack.c.bf16 %v18528_v50, %v18526_v21 }
 0x970   :  { %10922 = vmatmul.mubr.bf16.gmra.mrb[92].mxu0 %v7819_v29  ;;  %8554 = vmatprep.mubr.bf16.mxu1 %v18484_v46  ;;  %v18556_v29 = vpack.c.bf16 %v18231_v12, %v18229_v17  ;;  %v18561_v46 = vld [vmem:[#allocation2 + $0x2b8] sm:$0xff]  ;;  %v18571_v17 = vld [vmem:[#allocation2 + $0x2c0] sm:$0xff] }
 0x971   :  { %21786 = vst [vmem:[#allocation93_spill] sm:$0xff] %v18546_v55  ;;  %10925 = vmatprep.mubr.bf16.mxu0 %v18486_v25  ;;  %21789 = vst [vmem:[#allocation4_spill] sm:$0xff] %v18561_v46  ;;  %v18565_v55 = vpack.c.bf16 %v18280_v15, %v18274_v61  ;;  %v7312_v25 = vsel %vm585_vm0, %v7310_v24, %v7311_v20  ;;  %v18573_v12 = vld [vmem:[#allocation2 + $0x300] sm:$0xff]  ;;  %v7317_v20 = vsel %vm585_vm0, %v7315_v52, %v7316_v10 }
 0x972   :  { %21787 = vst [vmem:[#allocation96_spill] sm:$0xff] %v18556_v29  ;;  %21791 = vst [vmem:[#allocation5_spill] sm:$0xff] %v18571_v17  ;;  %v18583_v24 = vld [vmem:[#allocation2 + $0x340] sm:$0x3]  ;;  %v7610_v59 = vrot.slane %v18571_v17, 2  ;;  %v18600_v14 = vpack.c.bf16 %v18575_v26, %v18573_v12  ;;  %v18604_v52 = vpack.c.bf16 %v18293_v63, %v18291_v35  ;;  %v7319_v17 = vsel %vm585_vm0, %v7316_v10, %v7318_v30 }
 0x973   :  { %21790 = vst [vmem:[#allocation98_spill] sm:$0xff] %v18565_v55  ;;  %21792 = vst [vmem:[#allocation9_spill] sm:$0xff] %v18573_v12  ;;  %v7603_v55 = vsel %vm810_vm1, %v7600_v43, %v7602_v36  ;;  %v7609_v36 = vrot.slane %v18561_v46, 2  ;;  %v18596_v43 = vld [vmem:[#allocation2 + $0x2e0] sm:$0x3]  ;;  %v7323_v46 = vrot.slane %v18282_v3, 1  ;;  %v7606_v61 = vsel %vm810_vm1, %v7604_v33, %v7605_v11 }
 0x974   :  { %21794 = vst [vmem:[#allocation7_spill] sm:$0xff] %v18583_v24  ;;  %21797 = vst [vmem:[#allocation10_spill] sm:$0xff] %v18600_v14  ;;  %v7710_v14 = vrot.slane %v18592_v34, 1  ;;  %v7712_v26 = vrot.slane %v18583_v24, 1  ;;  %v7614_v15 = vrot.slane %v18526_v21, 2  ;;  %v7615_v3 = vrot.slane %v18528_v50, 2 }
 0x975   :  { %21798 = vst [vmem:[#allocation27_spill] sm:$0xff] %v18604_v52  ;;  %v7608_v10 = vsel %vm810_vm1, %v7605_v11, %v7607_v51  ;;  %v7611_v30 = vsel %vm810_vm1, %v7609_v36, %v7610_v59  ;;  %v7322_v33 = vsel %vm585_vm0, %v7320_v38, %v7321_v28  ;;  %v7324_v24 = vsel %vm585_vm0, %v7321_v28, %v7323_v46  ;;  %v18629_v34 = vld [vmem:[#allocation2 + $0x2e8] sm:$0xff]  ;;  %v18647_v38 = vld [vmem:[#allocation2 + $0x1d0] sm:$0xff] }
 0x976   :  { %v7711_v52 = vsel %vm585_vm0, %v7709_v45, %v7710_v14  ;;  %v18633_v12 = vpack.c.bf16 %v7593_v57, %v7591_v27  ;;  %v18637_v11 = vpack.c.bf16 %v7598_v32, %v7596_v7  ;;  %v18641_v45 = vpack.c.bf16 %v18243_v5, %v18241_v54  ;;  %v18655_v32 = vld [vmem:[#allocation2 + $0x2f8] sm:$0x3] }
 0x977   :  { %8555 = vmatmul.mubr.bf16.gmra.mrb[228].mxu1 %v18482_v2  ;;  %v7617_v2 = vrot.slane %v18596_v43, 2  ;;  %v18649_v28 = vpack.c.bf16 %v7603_v55, %v7601_v44  ;;  %v18651_v46 = vpack.c.bf16 %v7319_v17, %v7317_v20  ;;  %v18657_v57 = vld [vmem:[#allocation2 + $0x1d8] sm:$0x3]  ;;  %v18659_v54 = vpack.c.bf16 %v7608_v10, %v7606_v61  ;;  %v21807_v10 = vld [vmem:[#allocation41_spill] sm:$0xff]  ;;  %v21827_v55 = vld [vmem:[#allocation24_spill] sm:$0xff] }
 0x978   :  { %10926 = vmatmul.mubr.bf16.gmra.mrb[96].mxu0 %v18488_v58  ;;  %8562 = vmatprep.mubr.bf16.mxu1 %v18500_v48  ;;  %v7713_v58 = vsel %vm585_vm0, %v7710_v14, %v7712_v26  ;;  %v7613_v48 = vsel %vm810_vm1, %v7610_v59, %v7612_v22  ;;  %21801 = vst [vmem:[#allocation40_spill] sm:$0xff] %v18641_v45  ;;  %v18643_v26 = vld [vmem:[#allocation2 + $0x2f0] sm:$0xff]  ;;  %v18645_v22 = vld [vmem:[#allocation2 + $0x1c8] sm:$0xff]  ;;  %v7560_v7 = vrot.slane %v18647_v38, 2  ;;  %v7341_v51 = vrot.slane %v18304_v4, 1  ;;  %v21806_v61 = vld [vmem:[#allocation51_spill] sm:$0xff] }
 0x979   :  { %10929 = vmatprep.mubr.bf16.mxu0 %v18502_v41  ;;  %v18631_v62 = vpack.c.bf16 %v7713_v58, %v7711_v52  ;;  %v18635_v41 = vpack.c.bf16 %v7314_v0, %v7312_v25  ;;  %21802 = vst [vmem:[#allocation50_spill] sm:$0xff] %v18651_v46  ;;  %v7616_v58 = vsel %vm810_vm1, %v7614_v15, %v7615_v3  ;;  %v7343_v36 = vrot.slane %v18370_v47, 1  ;;  %v12260_v59 = vld [vmem:[%s20590_s7 + $0xe8] sm:$0xff]  }
 0x97a   :  { %v7618_v25 = vsel %vm810_vm1, %v7615_v3, %v7617_v2  ;;  %v18663_v5 = vpack.c.bf16 %v18270_v19, %v18263_v1  ;;  %v18665_v27 = vpack.c.bf16 %v7613_v48, %v7611_v30  ;;  %v18667_v44 = vpack.c.bf16 %v7324_v24, %v7322_v33  ;;  %8766 = vmatpush1.bf16.msra.mxu1 %v12260_v59 }
 0x97b   :  { %21799 = vst [vmem:[#allocation85_spill] sm:$0xff] %v18631_v62  ;;  %21800 = vst [vmem:[#allocation94_spill] sm:$0xff] %v18635_v41  ;;  %v7559_v2 = vrot.slane %v18645_v22, 2  ;;  %v18674_v17 = vpack.c.bf16 %v7618_v25, %v7616_v58  ;;  %v7562_v1 = vrot.slane %v18657_v57, 2  ;;  %v7340_v19 = vrot.slane %v18302_v60, 1  ;;  %8767 = vmatprep.subr.bf16.mxu1 %v21414_v53  ;;  %v21821_v60 = vld [vmem:[#allocation4_spill] sm:$0xff] }
 0x97c   :  { %21803 = vst [vmem:[#allocation79_spill] sm:$0xff] %v18663_v5  ;;  %21804 = vst [vmem:[#allocation61_spill] sm:$0xff] %v18667_v44  ;;  %v7345_v52 = vrot.slane %v18382_v42, 1  ;;  %v7346_v15 = vrot.slane %v21806_v61, 1  ;;  %v7344_v47 = vsel %vm585_vm0, %v7341_v51, %v7343_v36  ;;  %v7348_v30 = vrot.slane %v21807_v10, 1  ;;  %v21810_v36 = vld [vmem:[#allocation42_spill] sm:$0xff] }
 0x97d   :  { %21805 = vst [vmem:[#allocation65_spill] sm:$0xff] %v18674_v17  ;;  %v7561_v24 = vsel %vm810_vm1, %v7559_v2, %v7560_v7  ;;  %v7563_v14 = vsel %vm810_vm1, %v7560_v7, %v7562_v1  ;;  %v7342_v4 = vsel %vm585_vm0, %v7340_v19, %v7341_v51  ;;  %v18703_v25 = vpack.c.bf16 %v21806_v61, %v18382_v42  ;;  %v21808_v1 = vld [vmem:[#allocation13_spill] sm:$0xff] }
 0x97e   :  { %v18693_v3 = vpack.c.bf16 %v7563_v14, %v7561_v24  ;;  %v18698_v33 = vpack.c.bf16 %v7344_v47, %v7342_v4  ;;  %v7347_v58 = vsel %vm585_vm0, %v7345_v52, %v7346_v15  ;;  %v7350_v2 = vrot.slane %v18345_v49, 1  ;;  %v21809_v24 = vld [vmem:[#allocation71_spill] sm:$0xff]  ;;  %v21811_v4 = vld [vmem:[#allocation90_spill] sm:$0xff] }
 0x97f   :  { %8563 = vmatmul.mubr.bf16.gmra.mrb[232].mxu1 %v18492_v8  ;;  %v7349_v7 = vsel %vm585_vm0, %v7346_v15, %v7348_v30  ;;  %v7351_v19 = vrot.slane %v21808_v1, 1  ;;  %v7353_v51 = vrot.slane %v21809_v24, 1  ;;  %v7355_v59 = vrot.slane %v21810_v36, 1 }
 0x980   :  { %10930 = vmatmul.mubr.bf16.gmra.mrb[100].mxu0 %v18504_v56  ;;  %8570 = vmatprep.mubr.bf16.mxu1 %v18540_v16  ;;  %v18711_v14 = vpack.c.bf16 %v7349_v7, %v7347_v58  ;;  %v7356_v52 = vrot.slane %v21811_v4, 1  ;;  %v7358_v47 = vrot.slane %v18420_v39, 1  ;;  %v18717_v42 = vpack.c.bf16 %v21811_v4, %v21810_v36 }
 0x981   :  { %10933 = vmatprep.mubr.bf16.mxu0 %v18552_v13  ;;  %v7352_v49 = vsel %vm585_vm0, %v7350_v2, %v7351_v19  ;;  %v7354_v61 = vsel %vm585_vm0, %v7351_v19, %v7353_v51  ;;  %v7360_v15 = vrot.slane %v18394_v40, 1  ;;  %v7361_v10 = vrot.slane %v18396_v23, 1  ;;  %v21812_v51 = vld [vmem:[#allocation17_spill] sm:$0xff] }
 0x982   :  { %v18724_v30 = vpack.c.bf16 %v7354_v61, %v7352_v49  ;;  %v7357_v58 = vsel %vm585_vm0, %v7355_v59, %v7356_v52  ;;  %v7359_v39 = vsel %vm585_vm0, %v7356_v52, %v7358_v47  ;;  %v7363_v7 = vrot.slane %v18449_v6, 1  ;;  %v21813_v52 = vld [vmem:[#allocation19_spill] sm:$0xff]  ;;  %v21814_v49 = vld [vmem:[#allocation78_spill] sm:$0xff] }
 0x983   :  { %v18731_v2 = vpack.c.bf16 %v7359_v39, %v7357_v58  ;;  %v7362_v40 = vsel %vm585_vm0, %v7360_v15, %v7361_v10  ;;  %v7365_v23 = vrot.slane %v18494_v9, 1  ;;  %v7366_v1 = vrot.slane %v18496_v18, 1  ;;  %v21815_v58 = vld [vmem:[#allocation87_spill] sm:$0xff]  ;;  %v21816_v39 = vld [vmem:[#allocation88_spill] sm:$0xff] }
 0x984   :  { %v7364_v19 = vsel %vm585_vm0, %v7361_v10, %v7363_v7  ;;  %v7368_v24 = vrot.slane %v18498_v31, 1  ;;  %v18741_v6 = vpack.c.bf16 %v18496_v18, %v18494_v9  ;;  %v7370_v36 = vrot.slane %v21812_v51, 1  ;;  %v21817_v7 = vld [vmem:[#allocation91_spill] sm:$0xff] }
 0x985   :  { %v18744_v59 = vpack.c.bf16 %v7364_v19, %v7362_v40  ;;  %v7367_v4 = vsel %vm585_vm0, %v7365_v23, %v7366_v1  ;;  %v7371_v47 = vrot.slane %v21813_v52, 1  ;;  %v7373_v61 = vrot.slane %v21814_v49, 1  ;;  %v21818_v51 = vld [vmem:[#allocation59_spill] sm:$0xff] }
 0x986   :  { %v7369_v15 = vsel %vm585_vm0, %v7366_v1, %v7368_v24  ;;  %v7375_v10 = vrot.slane %v21815_v58, 1  ;;  %v7376_v31 = vrot.slane %v21816_v39, 1  ;;  %v7378_v48 = vrot.slane %v21817_v7, 1  ;;  %v21820_v7 = vld [vmem:[#allocation97_spill] sm:$0xff] }
 0x987   :  { %8571 = vmatmul.mubr.bf16.gmra.mrb[236].mxu1 %v18556_v29  ;;  %v18753_v9 = vpack.c.bf16 %v7369_v15, %v7367_v4  ;;  %v7372_v18 = vsel %vm585_vm0, %v7370_v36, %v7371_v47  ;;  %v7374_v40 = vsel %vm585_vm0, %v7371_v47, %v7373_v61  ;;  %v18759_v23 = vpack.c.bf16 %v21816_v39, %v21815_v58  ;;  %v21819_v4 = vld [vmem:[#allocation58_spill] sm:$0xff]  ;;  %v21822_v61 = vld [vmem:[#allocation5_spill] sm:$0xff] }
 0x988   :  { %10934 = vmatmul.mubr.bf16.gmra.mrb[104].mxu0 %v18633_v12  ;;  %8578 = vmatprep.mubr.bf16.mxu1 %v18635_v41  ;;  %v18761_v19 = vpack.c.bf16 %v7374_v40, %v7372_v18  ;;  %v7377_v1 = vsel %vm585_vm0, %v7375_v10, %v7376_v31  ;;  %v7379_v24 = vsel %vm585_vm0, %v7376_v31, %v7378_v48  ;;  %v7380_v52 = vrot.slane %v21818_v51, 1 }
 0x989   :  { %10937 = vmatprep.mubr.bf16.mxu0 %v18637_v11  ;;  %v18766_v49 = vpack.c.bf16 %v7379_v24, %v7377_v1  ;;  %v7381_v15 = vrot.slane %v21819_v4, 1  ;;  %v7383_v36 = vrot.slane %v21820_v7, 1  ;;  %v7385_v47 = vrot.slane %v21821_v60, 1 }
 0x98a   :  { %v7386_v58 = vrot.slane %v21822_v61, 1  ;;  %v7388_v39 = vrot.slane %v18581_v37, 1  ;;  %v18776_v10 = vpack.c.bf16 %v21822_v61, %v21821_v60  ;;  %v7390_v48 = vrot.slane %v18526_v21, 1  ;;  %v12261_v37 = vld [vmem:[%s20590_s7 + $0xf0] sm:$0xff]   ;;  %v18789_v21 = vld [vmem:[#allocation2 + $0x318] sm:$0xff] }
 0x98b   :  { %v7382_v31 = vsel %vm585_vm0, %v7380_v52, %v7381_v15  ;;  %v7384_v18 = vsel %vm585_vm0, %v7381_v15, %v7383_v36  ;;  %v7391_v40 = vrot.slane %v18528_v50, 1  ;;  %v7393_v1 = vrot.slane %v18596_v43, 1  ;;  %v7144_v60 = vld [vmem:[#allocation2 + $0x310] sm:$0x3]  ;;  %v18796_v50 = vld [vmem:[#allocation2 + $0x320] sm:$0xff]  ;;  %8768 = vmatpush1.bf16.msra.mxu1 %v12261_v37 }
 0x98c   :  { %v18791_v24 = vpack.c.bf16 %v7384_v18, %v7382_v31  ;;  %v7387_v51 = vsel %vm585_vm0, %v7385_v47, %v7386_v58  ;;  %v7389_v52 = vsel %vm585_vm0, %v7386_v58, %v7388_v39  ;;  %v7395_v4 = vrot.slane %v18629_v34, 1  ;;  %v18798_v43 = vld [vmem:[#allocation2 + $0x328] sm:$0x3]  ;;  %8769 = vmatprep.subr.bf16.mxu1 %v21414_v53 }
 0x98d   :  { %v18800_v15 = vpack.c.bf16 %v7389_v52, %v7387_v51  ;;  %v7392_v7 = vsel %vm585_vm0, %v7390_v48, %v7391_v40  ;;  %v7394_v36 = vsel %vm585_vm0, %v7391_v40, %v7393_v1  ;;  %v7396_v61 = vrot.slane %v18643_v26, 1  ;;  %v21824_v39 = vld [vmem:[#allocation9_spill] sm:$0xff] }
 0x98e   :  { %v18805_v31 = vpack.c.bf16 %v7394_v36, %v7392_v7  ;;  %v7398_v47 = vrot.slane %v18655_v32, 1  ;;  %v18810_v58 = vpack.c.bf16 %v18643_v26, %v18629_v34  ;;  %v7400_v18 = vrot.slane %v21824_v39, 1  ;;  %v21825_v48 = vld [vmem:[#allocation45_spill] sm:$0xff] }
 0x98f   :  { %8579 = vmatmul.mubr.bf16.gmra.mrb[240].mxu1 %v18641_v45  ;;  %v7397_v51 = vsel %vm585_vm0, %v7395_v4, %v7396_v61  ;;  %v7401_v52 = vrot.slane %v21825_v48, 1  ;;  %v7403_v40 = vrot.slane %v7144_v60, 1  ;;  %v7405_v1 = vrot.slane %v18789_v21, 1 }
 0x990   :  { %10938 = vmatmul.mubr.bf16.gmra.mrb[108].mxu0 %v18649_v28  ;;  %8586 = vmatprep.mubr.bf16.mxu1 %v18651_v46  ;;  %21823 = vst [vmem:[#allocation81_spill] sm:$0xff] %v18810_v58  ;;  %v7399_v37 = vsel %vm585_vm0, %v7396_v61, %v7398_v47  ;;  %v7406_v7 = vrot.slane %v18796_v50, 1  ;;  %v7408_v36 = vrot.slane %v18798_v43, 1  ;;  %v18822_v20 = vpack.c.bf16 %v18796_v50, %v18789_v21 }
 0x991   :  { %10941 = vmatprep.mubr.bf16.mxu0 %v18659_v54  ;;  %v7328_v0 = vrot.slane %v21827_v55, 1  ;;  %v18825_v62 = vpack.c.bf16 %v7399_v37, %v7397_v51  ;;  %v7402_v4 = vsel %vm585_vm0, %v7400_v18, %v7401_v52  ;;  %v7404_v46 = vsel %vm585_vm0, %v7401_v52, %v7403_v40  ;;  %v21831_v52 = vld [vmem:[#allocation11_spill] sm:$0xff]  ;;  %v21832_v40 = vld [vmem:[#allocation21_spill] sm:$0xff] }
 0x992   :  { %21826 = vst [vmem:[#allocation70_spill] sm:$0xff] %v18822_v20  ;;  %v7624_v61 = vrot.slane %v21824_v39, 2  ;;  %v18831_v47 = vpack.c.bf16 %v7404_v46, %v7402_v4  ;;  %v7407_v41 = vsel %vm585_vm0, %v7405_v1, %v7406_v7  ;;  %v7409_v16 = vsel %vm585_vm0, %v7406_v7, %v7408_v36  ;;  %v18845_v46 = vld [vmem:[#allocation2 + $0x1c0] sm:$0x3] }
 0x993   :  { %21828 = vst [vmem:[#allocation82_spill] sm:$0xff] %v18825_v62  ;;  %v7625_v55 = vrot.slane %v21825_v48, 2  ;;  %v7627_v51 = vrot.slane %v7144_v60, 2  ;;  %v18838_v18 = vpack.c.bf16 %v7409_v16, %v7407_v41  ;;  %v18842_v37 = vpack.c.bf16 %v21832_v40, %v21831_v52 }
 0x994   :  { %21829 = vst [vmem:[#allocation100_spill] sm:$0xff] %v18831_v47  ;;  %v21834_v39 = vrot.slane %v18643_v26, 2  ;;  %v21835_v1 = vrot.slane %v18629_v34, 2  ;;  %v21836_v36 = vrot.slane %v18655_v32, 2  ;;  %v21838_v16 = vrot.slane %v18293_v63, 1 }
 0x995   :  { %21830 = vst [vmem:[#allocation99_spill] sm:$0xff] %v18838_v18  ;;  %21833 = vst [vmem:[#allocation20_spill] sm:$0xff] %v18842_v37  ;;  %v21839_v48 = vrot.slane %v18291_v35, 1  ;;  %v7626_v34 = vsel %vm810_vm1, %v7624_v61, %v7625_v55  ;;  %v7333_v26 = vrot.slane %v18845_v46, 1  ;;  %v7629_v63 = vrot.slane %v18789_v21, 2 }
 0x996   :  { %v7621_v7 = vsel %vm810_vm1, %v21835_v1, %v21834_v39  ;;  %v21837_v60 = vmov %v21834_v39  ;;  %v7628_v39 = vsel %vm810_vm1, %v7625_v55, %v7627_v51  ;;  %v21841_v1 = vld [vmem:[#allocation57_spill] sm:$0xff]  ;;  %v7723_v61 = vrot.slane %v21831_v52, 2  ;;  %v21843_v51 = vld [vmem:[#allocation7_spill] sm:$0xff] }
 0x997   :  { %8587 = vmatmul.mubr.bf16.gmra.mrb[244].mxu1 %v18663_v5  ;;  %v7623_v41 = vsel %vm810_vm1, %v21837_v60, %v21836_v36  ;;  %v7327_v4 = vsel %vm585_vm0, %v21839_v48, %v21838_v16  ;;  %v7330_v32 = vrot.slane %v21841_v1, 1  ;;  %v21842_v60 = vld [vmem:[#allocation98_spill] sm:$0xff]  ;;  %v18874_v35 = vpack.c.bf16 %v7628_v39, %v7626_v34  ;;  %v21844_v48 = vld [vmem:[#allocation27_spill] sm:$0xff] }
 0x998   :  { %10942 = vmatmul.mubr.bf16.gmra.mrb[112].mxu0 %v18665_v27  ;;  %8594 = vmatprep.mubr.bf16.mxu1 %v18667_v44  ;;  %v21840_v44 = vmov %v21838_v16  ;;  %v7724_v55 = vrot.slane %v21832_v40, 2  ;;  %v7335_v34 = vrot.slane %v18645_v22, 1  ;;  %v7336_v39 = vrot.slane %v18647_v38, 1 }
 0x999   :  { %10945 = vmatprep.mubr.bf16.mxu0 %v18674_v17  ;;  %v7329_v37 = vsel %vm585_vm0, %v21840_v44, %v7328_v0  ;;  %v18869_v17 = vpack.c.bf16 %v7623_v41, %v7621_v7  ;;  %v7630_v44 = vrot.slane %v18796_v50, 2  ;;  %v7632_v0 = vrot.slane %v18798_v43, 2  ;;  %v12262_v7 = vld [vmem:[%s20590_s7 + $0xf8] sm:$0xff]  }
 0x99a   :  { %v18871_v36 = vpack.c.bf16 %v7329_v37, %v7327_v4  ;;  %v7726_v37 = vrot.slane %v21843_v51, 2  ;;  %v7334_v21 = vsel %vm585_vm0, %v7330_v32, %v7333_v26  ;;  %8770 = vmatpush1.bf16.msra.mxu1 %v12262_v7  ;;  %v7725_v52 = vsel %vm810_vm1, %v7723_v61, %v7724_v55  ;;  %v21846_v61 = vld [vmem:[#allocation46_spill] sm:$0xff] }
 0x99b   :  { %v7631_v50 = vsel %vm810_vm1, %v7629_v63, %v7630_v44  ;;  %v7633_v43 = vsel %vm810_vm1, %v7630_v44, %v7632_v0  ;;  %9028 = vmatprep.subr.bf16.mxu1 %v21414_v53  ;;  %v7821_v41 = vpack.c.bf16 %v7334_v21, %v7330_v32  ;;  %v7338_v26 = vrot.slane %v18657_v57, 1 }
 0x99c   :  { %v7727_v40 = vsel %vm810_vm1, %v7724_v55, %v7726_v37  ;;  %v18894_v16 = vpack.c.bf16 %v7633_v43, %v7631_v50  ;;  %v7820_v32 = vpack.c.bf16 %v21841_v1, %v21841_v1  ;;  %v7337_v63 = vsel %vm585_vm0, %v7335_v34, %v7336_v39  ;;  %v21847_v1 = vld [vmem:[#allocation33_spill] sm:$0xff]  ;;  %v21850_v55 = vld [vmem:[#allocation84_spill] sm:$0xff] }
 0x99d   :  { %v18897_v4 = vpack.c.bf16 %v7727_v40, %v7725_v52  ;;  %v7339_v44 = vsel %vm585_vm0, %v7336_v39, %v7338_v26  ;;  %v18913_v57 = vpack.c.bf16 %v18647_v38, %v18645_v22  ;;  %v21848_v22 = vld [vmem:[#allocation43_spill] sm:$0xff]  ;;  %v21849_v38 = vld [vmem:[#allocation80_spill] sm:$0xff]  ;;  %v21855_v50 = vld [vmem:[#allocation93_spill] sm:$0xff] }
 0x99e   :  { %v18908_v0 = vpack.c.bf16 %v7339_v44, %v7337_v63  ;;  %v21864_v63 = vld [vmem:[#allocation10_spill] sm:$0xff] }
 0x99f   :  { %8595 = vmatmul.mubr.bf16.gmra.mrb[248].mxu1 %v21842_v60  ;;  %21845 = vst [vmem:[#allocation103_spill] sm:$0xff] %v18897_v4 }
 0x9a0   :  { %10946 = vmatmul.mubr.bf16.gmra.mrb[116].mxu0 %v18869_v17  ;;  %8602 = vmatprep.mubr.bf16.mxu1 %v18871_v36 }
 0x9a1   :  { %10949 = vmatprep.mubr.bf16.mxu0 %v18874_v35 }
 0x9a7   :  { %8603 = vmatmul.mubr.bf16.gmra.mrb[252].mxu1 %v21844_v48 }
 0x9a8   :  { %10950 = vmatmul.mubr.bf16.gmra.mrb[120].mxu0 %v18894_v16  ;;  %8610 = vmatprep.mubr.bf16.mxu1 %v7821_v41 }
 0x9a9   :  { %10953 = vmatprep.mubr.bf16.mxu0 %v18897_v4  ;;  %v12325_v4 = vld [vmem:[#allocation2 + $0x28] sm:$0x3] }
 0x9af   :  { %8611 = vmatmul.mubr.bf16.gmra.mrb[0].mxu1 %v7820_v32 }
 0x9b0   :  { %8618 = vmatprep.mubr.bf16.mxu1 %v18908_v0 }
 0x9b7   :  { %8619 = vmatmul.mubr.bf16.gmra.mrb[4].mxu1 %v18913_v57 }
 0x9b8   :  { %8626 = vmatprep.mubr.bf16.mxu1 %v18698_v33 }
 0x9bf   :  { %8627 = vmatmul.mubr.bf16.gmra.mrb[8].mxu1 %v21846_v61 }
 0x9c0   :  { %8634 = vmatprep.mubr.bf16.mxu1 %v18711_v14 }
 0x9c7   :  { %8635 = vmatmul.mubr.bf16.gmra.mrb[12].mxu1 %v18703_v25 }
 0x9c8   :  { %8642 = vmatprep.mubr.bf16.mxu1 %v18724_v30 }
 0x9cf   :  { %8643 = vmatmul.mubr.bf16.gmra.mrb[16].mxu1 %v21847_v1 }
 0x9d0   :  { %8650 = vmatprep.mubr.bf16.mxu1 %v18731_v2 }
 0x9d7   :  { %8651 = vmatmul.mubr.bf16.gmra.mrb[20].mxu1 %v18717_v42 }
 0x9d8   :  { %8658 = vmatprep.mubr.bf16.mxu1 %v18744_v59 }
 0x9df   :  { %8659 = vmatmul.mubr.bf16.gmra.mrb[24].mxu1 %v21848_v22 }
 0x9e0   :  { %8666 = vmatprep.mubr.bf16.mxu1 %v18753_v9 }
 0x9e7   :  { %8667 = vmatmul.mubr.bf16.gmra.mrb[28].mxu1 %v18741_v6 }
 0x9e8   :  { %8674 = vmatprep.mubr.bf16.mxu1 %v18761_v19 }
 0x9ef   :  { %8675 = vmatmul.mubr.bf16.gmra.mrb[32].mxu1 %v21849_v38 }
 0x9f0   :  { %8682 = vmatprep.mubr.bf16.mxu1 %v18766_v49 }
 0x9f7   :  { %8683 = vmatmul.mubr.bf16.gmra.mrb[36].mxu1 %v18759_v23 }
 0x9f8   :  { %8690 = vmatprep.mubr.bf16.mxu1 %v18791_v24 }
 0x9ff   :  { %8691 = vmatmul.mubr.bf16.gmra.mrb[40].mxu1 %v21850_v55 }
 0xa00   :  { %8698 = vmatprep.mubr.bf16.mxu1 %v18800_v15 }
 0xa07   :  { %8699 = vmatmul.mubr.bf16.gmra.mrb[44].mxu1 %v18776_v10 }
 0xa08   :  { %8706 = vmatprep.mubr.bf16.mxu1 %v18805_v31 }
 0xa0b   :  { %v18937_v51 = vpop.f32.mrb[64].mxu0 }
 0xa0c   :  { %21851 = vst [vmem:[#allocation22_spill] sm:$0xff] %v18937_v51  ;;  %v18939_v37 = vpop.f32.mrb[65].mxu0 }
 0xa0d   :  { %21852 = vst [vmem:[#allocation54_spill] sm:$0xff] %v18939_v37  ;;  %v18941_v7 = vpop.f32.mrb[66].mxu0 }
 0xa0e   :  { %21853 = vst [vmem:[#allocation52_spill] sm:$0xff] %v18941_v7  ;;  %v18943_v21 = vpop.f32.mrb[67].mxu0 }
 0xa0f   :  { %21854 = vst [vmem:[#allocation63_spill] sm:$0xff] %v18943_v21  ;;  %8707 = vmatmul.mubr.bf16.gmra.mrb[48].mxu1 %v21855_v50 }
 0xa10   :  { %8714 = vmatprep.mubr.bf16.mxu1 %v18825_v62 }
 0xa13   :  { %v18947_v43 = vpop.f32.mrb[68].mxu0 }
 0xa14   :  { %21856 = vst [vmem:[#allocation30_spill] sm:$0xff] %v18947_v43  ;;  %v18949_v52 = vpop.f32.mrb[69].mxu0 }
 0xa15   :  { %21857 = vst [vmem:[#allocation12_spill] sm:$0xff] %v18949_v52  ;;  %v18951_v40 = vpop.f32.mrb[70].mxu0 }
 0xa16   :  { %21858 = vst [vmem:[#allocation15_spill] sm:$0xff] %v18951_v40  ;;  %v18953_v41 = vpop.f32.mrb[71].mxu0  ;;  %v12322_v40 = vld [vmem:[#allocation2 + $0x10] sm:$0x3] }
 0xa17   :  { %21859 = vst [vmem:[#allocation35_spill] sm:$0xff] %v18953_v41  ;;  %8715 = vmatmul.mubr.bf16.gmra.mrb[52].mxu1 %v18810_v58  ;;  %v7477_v43 = vrot.slane %v12322_v40, 2  ;;  %v12263_v40 = vld [vmem:[%s20590_s7 + $0x100] sm:$0xff]  }
 0xa18   :  { %8722 = vmatprep.mubr.bf16.mxu1 %v18831_v47 }
 0xa1b   :  { %v18957_v34 = vpop.f32.mrb[72].mxu0 }
 0xa1c   :  { %21860 = vst [vmem:[#allocation16_spill] sm:$0xff] %v18957_v34  ;;  %v18959_v39 = vpop.f32.mrb[73].mxu0  ;;  %v21869_v34 = vld [vmem:[#allocation76_spill] sm:$0xff] }
 0xa1d   :  { %21861 = vst [vmem:[#allocation56_spill] sm:$0xff] %v18959_v39  ;;  %v18961_v26 = vpop.f32.mrb[74].mxu0 }
 0xa1e   :  { %21862 = vst [vmem:[#allocation25_spill] sm:$0xff] %v18961_v26  ;;  %v18963_v32 = vpop.f32.mrb[75].mxu0  ;;  %v21870_v26 = vld [vmem:[#allocation29_spill] sm:$0xff] }
 0xa1f   :  { %21863 = vst [vmem:[#allocation51_spill] sm:$0xff] %v18963_v32  ;;  %8723 = vmatmul.mubr.bf16.gmra.mrb[56].mxu1 %v21864_v63  ;;  %v7478_v32 = vsel %vm810_vm1, %v21870_v26, %v7477_v43  ;;  %v7482_v43 = vrot.slane %v12325_v4, 2  ;;  %v12265_v4 = vld [vmem:[%s20590_s7 + $0x110] sm:$0xff]  }
 0xa20   :  { %8730 = vmatprep.mubr.bf16.mxu1 %v18838_v18  ;;  %v7768_v51 = vpack.c.bf16 %v7478_v32, %v21870_v26  ;;  %v12264_v26 = vld [vmem:[%s20590_s7 + $0x108] sm:$0xff]  }
 0xa23   :  { %v18967_v44 = vpop.f32.mrb[76].mxu0 }
 0xa24   :  { %21865 = vst [vmem:[#allocation41_spill] sm:$0xff] %v18967_v44  ;;  %v18969_v41 = vpop.f32.mrb[77].mxu0 }
 0xa25   :  { %21866 = vst [vmem:[#allocation13_spill] sm:$0xff] %v18969_v41  ;;  %v18971_v52 = vpop.f32.mrb[78].mxu0  ;;  %v12323_v41 = vld [vmem:[#allocation2 + $0x18] sm:$0xff] }
 0xa26   :  { %21867 = vst [vmem:[#allocation71_spill] sm:$0xff] %v18971_v52  ;;  %v18973_v7 = vpop.f32.mrb[79].mxu0  ;;  %v7479_v21 = vrot.slane %v12323_v41, 2 }
 0xa27   :  { %21868 = vst [vmem:[#allocation42_spill] sm:$0xff] %v18973_v7  ;;  %8731 = vmatmul.mubr.bf16.gmra.mrb[60].mxu1 %v18822_v20 }
 0xa28   :  { %8771 = vmatprep.mubr.bf16.mxu1 %v21869_v34  ;;  %v12324_v34 = vld [vmem:[#allocation2 + $0x20] sm:$0xff] }
 0xa29   :  { %v7480_v37 = vrot.slane %v12324_v34, 2 }
 0xa2b   :  { %v18979_v39 = vpop.f32.mrb[80].mxu0  ;;  %v7481_v32 = vsel %vm810_vm1, %v7479_v21, %v7480_v37  ;;  %v12266_v21 = vld [vmem:[%s20590_s7 + $0x118] sm:$0xff]  }
 0xa2c   :  { %21871 = vst [vmem:[#allocation90_spill] sm:$0xff] %v18979_v39  ;;  %v18982_v44 = vpop.f32.mrb[81].mxu0  ;;  %v21875_v39 = vld [vmem:[#allocation75_spill] sm:$0xff] }
 0xa2d   :  { %21872 = vst [vmem:[#allocation17_spill] sm:$0xff] %v18982_v44  ;;  %v18987_v52 = vpop.f32.mrb[82].mxu0  ;;  %v21897_v44 = vld [vmem:[#allocation60_spill] sm:$0xff] }
 0xa2e   :  { %21873 = vst [vmem:[#allocation19_spill] sm:$0xff] %v18987_v52  ;;  %v18989_v7 = vpop.f32.mrb[83].mxu0  ;;  %v7483_v52 = vsel %vm810_vm1, %v7480_v37, %v7482_v43  ;;  %v21880_v37 = vld [vmem:[#allocation23_spill] sm:$0xff] }
 0xa2f   :  { %21874 = vst [vmem:[#allocation78_spill] sm:$0xff] %v18989_v7  ;;  %8772 = vmatmul.mubr.bf16.vlgmr.msra.gmra.mrb[192].mxu1 %v7768_v51 }
 0xa30   :  { %8779 = vmatprep.mubr.bf16.mxu1 %v21875_v39  ;;  %9029 = vmatpush1.bf16.msra.mxu1 %v12263_v40  ;;  %v19007_v40 = vpack.c.bf16 %v7483_v52, %v7481_v32  ;;  %v12267_v52 = vld [vmem:[%s20590_s7 + $0x120] sm:$0xff]  }
 0xa31   :  { %9030 = vmatprep.subr.bf16.mxu1 %v21414_v53  ;;  %v21910_v39 = vld [vmem:[#allocation64_spill] sm:$0xff] }
 0xa33   :  { %v18998_v7 = vpop.f32.mrb[84].mxu0 }
 0xa34   :  { %21876 = vst [vmem:[#allocation87_spill] sm:$0xff] %v18998_v7  ;;  %v19000_v41 = vpop.f32.mrb[85].mxu0  ;;  %9031 = vmatpush1.bf16.msra.mxu1 %v12264_v26  ;;  %v21886_v7 = vld [vmem:[#allocation48_spill] sm:$0xff] }
 0xa35   :  { %21877 = vst [vmem:[#allocation88_spill] sm:$0xff] %v19000_v41  ;;  %v19005_v51 = vpop.f32.mrb[86].mxu0  ;;  %9032 = vmatprep.subr.bf16.mxu1 %v21414_v53  ;;  %v21892_v41 = vld [vmem:[#allocation37_spill] sm:$0xff] }
 0xa36   :  { %21878 = vst [vmem:[#allocation91_spill] sm:$0xff] %v19005_v51  ;;  %v19010_v34 = vpop.f32.mrb[87].mxu0  ;;  %v21885_v51 = vld [vmem:[#allocation95_spill] sm:$0xff] }
 0xa37   :  { %21879 = vst [vmem:[#allocation59_spill] sm:$0xff] %v19010_v34  ;;  %8780 = vmatmul.mubr.bf16.gmra.mrb[196].mxu1 %v19007_v40  ;;  %v21891_v34 = vld [vmem:[#allocation8_spill] sm:$0xff] }
 0xa38   :  { %8787 = vmatprep.mubr.bf16.mxu1 %v21880_v37  ;;  %9033 = vmatpush1.bf16.msra.mxu1 %v12265_v4 }
 0xa39   :  { %9034 = vmatprep.subr.bf16.mxu1 %v21414_v53 }
 0xa3b   :  { %v19018_v43 = vpop.f32.mrb[88].mxu0 }
 0xa3c   :  { %21881 = vst [vmem:[#allocation58_spill] sm:$0xff] %v19018_v43  ;;  %v19020_v26 = vpop.f32.mrb[89].mxu0  ;;  %9035 = vmatpush1.bf16.msra.mxu1 %v12266_v21  ;;  %v12268_v43 = vld [vmem:[%s20590_s7 + $0x128] sm:$0xff]  }
 0xa3d   :  { %21882 = vst [vmem:[#allocation97_spill] sm:$0xff] %v19020_v26  ;;  %v19025_v32 = vpop.f32.mrb[90].mxu0  ;;  %9036 = vmatprep.subr.bf16.mxu1 %v21414_v53 }
 0xa3e   :  { %21883 = vst [vmem:[#allocation4_spill] sm:$0xff] %v19025_v32  ;;  %v19028_v4 = vpop.f32.mrb[91].mxu0  ;;  %v12269_v32 = vld [vmem:[%s20590_s7 + $0x130] sm:$0xff]  }
 0xa3f   :  { %21884 = vst [vmem:[#allocation5_spill] sm:$0xff] %v19028_v4  ;;  %8788 = vmatmul.mubr.bf16.gmra.mrb[200].mxu1 %v21885_v51 }
 0xa40   :  { %8795 = vmatprep.mubr.bf16.mxu1 %v21886_v7  ;;  %9037 = vmatpush1.bf16.msra.mxu1 %v12267_v52  ;;  %v21904_v7 = vld [vmem:[#allocation18_spill] sm:$0xff] }
 0xa41   :  { %9038 = vmatprep.subr.bf16.mxu1 %v21414_v53 }
 0xa43   :  { %v19036_v21 = vpop.f32.mrb[92].mxu0 }
 0xa44   :  { %21887 = vst [vmem:[#allocation9_spill] sm:$0xff] %v19036_v21  ;;  %v19038_v26 = vpop.f32.mrb[93].mxu0  ;;  %9039 = vmatpush1.bf16.msra.mxu1 %v12268_v43  ;;  %v12270_v21 = vld [vmem:[%s20590_s7 + $0x138] sm:$0xff]  }
 0xa45   :  { %21888 = vst [vmem:[#allocation45_spill] sm:$0xff] %v19038_v26  ;;  %v19043_v4 = vpop.f32.mrb[94].mxu0  ;;  %9040 = vmatprep.subr.bf16.mxu1 %v21414_v53 }
 0xa46   :  { %21889 = vst [vmem:[#allocation24_spill] sm:$0xff] %v19043_v4  ;;  %v19046_v52 = vpop.f32.mrb[95].mxu0  ;;  %v12271_v4 = vld [vmem:[%s20590_s7 + $0x140] sm:$0xff]  }
 0xa47   :  { %21890 = vst [vmem:[#allocation11_spill] sm:$0xff] %v19046_v52  ;;  %8796 = vmatmul.mubr.bf16.gmra.mrb[204].mxu1 %v21891_v34 }
 0xa48   :  { %8803 = vmatprep.mubr.bf16.mxu1 %v21892_v41  ;;  %9041 = vmatpush1.bf16.msra.mxu1 %v12269_v32  ;;  %v21898_v41 = vld [vmem:[#allocation86_spill] sm:$0xff] }
 0xa49   :  { %9042 = vmatprep.subr.bf16.mxu1 %v21414_v53 }
 0xa4b   :  { %v19054_v43 = vpop.f32.mrb[96].mxu0 }
 0xa4c   :  { %21893 = vst [vmem:[#allocation21_spill] sm:$0xff] %v19054_v43  ;;  %v19056_v26 = vpop.f32.mrb[97].mxu0  ;;  %9043 = vmatpush1.bf16.msra.mxu1 %v12270_v21  ;;  %v12272_v43 = vld [vmem:[%s20590_s7 + $0x148] sm:$0xff]  }
 0xa4d   :  { %21894 = vst [vmem:[#allocation57_spill] sm:$0xff] %v19056_v26  ;;  %v19061_v52 = vpop.f32.mrb[98].mxu0  ;;  %9044 = vmatprep.subr.bf16.mxu1 %v21414_v53 }
 0xa4e   :  { %21895 = vst [vmem:[#allocation7_spill] sm:$0xff] %v19061_v52  ;;  %v19064_v32 = vpop.f32.mrb[99].mxu0  ;;  %v12273_v52 = vld [vmem:[%s20590_s7 + $0x150] sm:$0xff]  }
 0xa4f   :  { %21896 = vst [vmem:[#allocation46_spill] sm:$0xff] %v19064_v32  ;;  %8804 = vmatmul.mubr.bf16.gmra.mrb[208].mxu1 %v21897_v44 }
 0xa50   :  { %8811 = vmatprep.mubr.bf16.mxu1 %v21898_v41  ;;  %9045 = vmatpush1.bf16.msra.mxu1 %v12271_v4  ;;  %v21903_v41 = vld [vmem:[#allocation101_spill] sm:$0xff] }
 0xa51   :  { %9046 = vmatprep.subr.bf16.mxu1 %v21414_v53 }
 0xa53   :  { %v19072_v21 = vpop.f32.mrb[100].mxu0 }
 0xa54   :  { %21899 = vst [vmem:[#allocation33_spill] sm:$0xff] %v19072_v21  ;;  %v19074_v26 = vpop.f32.mrb[101].mxu0  ;;  %9047 = vmatpush1.bf16.msra.mxu1 %v12272_v43 }
 0xa55   :  { %21900 = vst [vmem:[#allocation43_spill] sm:$0xff] %v19074_v26  ;;  %v19079_v32 = vpop.f32.mrb[102].mxu0  ;;  %9048 = vmatprep.subr.bf16.mxu1 %v21414_v53 }
 0xa56   :  { %21901 = vst [vmem:[#allocation80_spill] sm:$0xff] %v19079_v32  ;;  %v19082_v4 = vpop.f32.mrb[103].mxu0  ;;  %v21909_v32 = vld [vmem:[#allocation62_spill] sm:$0xff] }
 0xa57   :  { %21902 = vst [vmem:[#allocation84_spill] sm:$0xff] %v19082_v4  ;;  %8812 = vmatmul.mubr.bf16.gmra.mrb[212].mxu1 %v21903_v41  ;;  %v12274_v4 = vld [vmem:[%s20590_s7 + $0x158] sm:$0xff]  }
 0xa58   :  { %8819 = vmatprep.mubr.bf16.mxu1 %v21904_v7  ;;  %9049 = vmatpush1.bf16.msra.mxu1 %v12273_v52  ;;  %v21916_v7 = vld [vmem:[#allocation67_spill] sm:$0xff] }
 0xa59   :  { %9050 = vmatprep.subr.bf16.mxu1 %v21414_v53 }
 0xa5b   :  { %v19087_v21 = vpop.f32.mrb[104].mxu0 }
 0xa5c   :  { %21905 = vst [vmem:[#allocation76_spill] sm:$0xff] %v19087_v21  ;;  %v19089_v43 = vpop.f32.mrb[105].mxu0  ;;  %9051 = vmatpush1.bf16.msra.mxu1 %v12274_v4 }
 0xa5d   :  { %21906 = vst [vmem:[#allocation29_spill] sm:$0xff] %v19089_v43  ;;  %v19091_v26 = vpop.f32.mrb[106].mxu0  ;;  %9052 = vmatprep.subr.bf16.mxu1 %v21414_v53 }
 0xa5e   :  { %21907 = vst [vmem:[#allocation95_spill] sm:$0xff] %v19091_v26  ;;  %v19093_v37 = vpop.f32.mrb[107].mxu0 }
 0xa5f   :  { %21908 = vst [vmem:[#allocation8_spill] sm:$0xff] %v19093_v37  ;;  %8820 = vmatmul.mubr.bf16.gmra.mrb[216].mxu1 %v21909_v32  ;;  %v21915_v37 = vld [vmem:[#allocation39_spill] sm:$0xff] }
 0xa60   :  { %8827 = vmatprep.mubr.bf16.mxu1 %v21910_v39 }
 0xa63   :  { %v19100_v52 = vpop.f32.mrb[108].mxu0 }
 0xa64   :  { %21911 = vst [vmem:[#allocation60_spill] sm:$0xff] %v19100_v52  ;;  %v19103_v21 = vpop.f32.mrb[109].mxu0  ;;  %v21921_v52 = vld [vmem:[#allocation14_spill] sm:$0xff] }
 0xa65   :  { %21912 = vst [vmem:[#allocation101_spill] sm:$0xff] %v19103_v21  ;;  %v19105_v43 = vpop.f32.mrb[110].mxu0 }
 0xa66   :  { %21913 = vst [vmem:[#allocation62_spill] sm:$0xff] %v19105_v43  ;;  %v19107_v26 = vpop.f32.mrb[111].mxu0  ;;  %v12275_v43 = vld [vmem:[%s20590_s7 + $0x160] sm:$0xff]  }
 0xa67   :  { %21914 = vst [vmem:[#allocation104_spill] sm:$0xff] %v19107_v26  ;;  %8828 = vmatmul.mubr.bf16.gmra.mrb[220].mxu1 %v21915_v37 }
 0xa68   :  { %8835 = vmatprep.mubr.bf16.mxu1 %v21916_v7  ;;  %9053 = vmatpush1.bf16.msra.mxu1 %v12275_v43 }
 0xa69   :  { %9054 = vmatprep.subr.bf16.mxu1 %v21414_v53 }
 0xa6b   :  { %v19111_v39 = vpop.f32.mrb[112].mxu0 }
 0xa6c   :  { %21917 = vst [vmem:[#allocation39_spill] sm:$0xff] %v19111_v39  ;;  %v19113_v18 = vpop.f32.mrb[113].mxu0 }
 0xa6d   :  { %21918 = vst [vmem:[#allocation105_spill] sm:$0xff] %v19113_v18  ;;  %v19115_v47 = vpop.f32.mrb[114].mxu0 }
 0xa6e   :  { %21919 = vst [vmem:[#allocation106_spill] sm:$0xff] %v19115_v47  ;;  %v19117_v4 = vpop.f32.mrb[115].mxu0 }
 0xa6f   :  { %21920 = vst [vmem:[#allocation107_spill] sm:$0xff] %v19117_v4  ;;  %8836 = vmatmul.mubr.bf16.gmra.mrb[224].mxu1 %v21921_v52  ;;  %v21926_v4 = vld [vmem:[#allocation55_spill] sm:$0xff] }
 0xa70   :  { %8843 = vmatprep.mubr.bf16.mxu1 %v18492_v8 }
 0xa73   :  { %v19124_v26 = vpop.f32.mrb[116].mxu0 }
 0xa74   :  { %21922 = vst [vmem:[#allocation14_spill] sm:$0xff] %v19124_v26  ;;  %v19127_v39 = vpop.f32.mrb[117].mxu0  ;;  %v21931_v26 = vld [vmem:[#allocation89_spill] sm:$0xff] }
 0xa75   :  { %21923 = vst [vmem:[#allocation108_spill] sm:$0xff] %v19127_v39  ;;  %v19129_v18 = vpop.f32.mrb[118].mxu0 }
 0xa76   :  { %21924 = vst [vmem:[#allocation109_spill] sm:$0xff] %v19129_v18  ;;  %v19131_v47 = vpop.f32.mrb[119].mxu0  ;;  %v12276_v18 = vld [vmem:[%s20590_s7 + $0x168] sm:$0xff]  }
 0xa77   :  { %21925 = vst [vmem:[#allocation110_spill] sm:$0xff] %v19131_v47  ;;  %8844 = vmatmul.mubr.bf16.gmra.mrb[228].mxu1 %v21926_v4  ;;  %v21932_v47 = vld [vmem:[#allocation38_spill] sm:$0xff] }
 0xa78   :  { %8851 = vmatprep.mubr.bf16.mxu1 %v18556_v29  ;;  %9055 = vmatpush1.bf16.msra.mxu1 %v12276_v18  ;;  %v19159_v18 = vld [vmem:[#allocation2 + $0x180] sm:$0xff] }
 0xa79   :  { %9056 = vmatprep.subr.bf16.mxu1 %v21414_v53  ;;  %v21937_v29 = vld [vmem:[#allocation44_spill] sm:$0xff] }
 0xa7b   :  { %v19135_v21 = vpop.f32.mrb[120].mxu0 }
 0xa7c   :  { %21927 = vst [vmem:[#allocation55_spill] sm:$0xff] %v19135_v21  ;;  %v19137_v8 = vpop.f32.mrb[121].mxu0  ;;  %v21933_v21 = vld [vmem:[#allocation66_spill] sm:$0xff] }
 0xa7d   :  { %21928 = vst [vmem:[#allocation111_spill] sm:$0xff] %v19137_v8  ;;  %v19139_v7 = vpop.f32.mrb[122].mxu0  ;;  %v19161_v8 = vld [vmem:[#allocation2 + $0x188] sm:$0xff] }
 0xa7e   :  { %21929 = vst [vmem:[#allocation112_spill] sm:$0xff] %v19139_v7  ;;  %v19141_v43 = vpop.f32.mrb[123].mxu0  ;;  %v12277_v7 = vld [vmem:[%s20590_s7 + $0x170] sm:$0xff]   ;;  %v19165_v39 = vpack.c.bf16 %v19161_v8, %v19159_v18 }
 0xa7f   :  { %21930 = vst [vmem:[#allocation113_spill] sm:$0xff] %v19141_v43  ;;  %8852 = vmatmul.mubr.bf16.gmra.mrb[232].mxu1 %v21931_v26  ;;  %v21934_v43 = vld [vmem:[#allocation102_spill] sm:$0xff] }
 0xa80   :  { %8859 = vmatprep.mubr.bf16.mxu1 %v18641_v45  ;;  %9057 = vmatpush1.bf16.msra.mxu1 %v12277_v7  ;;  %21935 = vst [vmem:[#allocation89_spill] sm:$0xff] %v19165_v39  ;;  %v12278_v7 = vld [vmem:[%s20590_s7 + $0x178] sm:$0xff]   ;;  %v7557_v45 = vrot.slane %v18845_v46, 2  ;;  %v21939_v46 = vld [vmem:[#allocation72_spill] sm:$0xff] }
 0xa81   :  { %9058 = vmatprep.subr.bf16.mxu1 %v21414_v53 }
 0xa84   :  { %9059 = vmatpush1.bf16.msra.mxu1 %v12278_v7  ;;  %v21938_v7 = vld [vmem:[#allocation69_spill] sm:$0xff] }
 0xa85   :  { %9317 = vmatprep.subr.bf16.mxu1 %v21414_v53 }
 0xa87   :  { %8860 = vmatmul.mubr.bf16.gmra.mrb[236].mxu1 %v21932_v47 }
 0xa88   :  { %8867 = vmatprep.mubr.bf16.mxu1 %v18663_v5 }
 0xa8f   :  { %8868 = vmatmul.mubr.bf16.gmra.mrb[240].mxu1 %v21933_v21 }
 0xa90   :  { %8875 = vmatprep.mubr.bf16.mxu1 %v21842_v60  ;;  %v21936_v60 = vld [vmem:[#allocation36_spill] sm:$0xff] }
 0xa97   :  { %8876 = vmatmul.mubr.bf16.gmra.mrb[244].mxu1 %v21934_v43 }
 0xa98   :  { %8883 = vmatprep.mubr.bf16.mxu1 %v21844_v48  ;;  %v19173_v48 = vld [vmem:[#allocation2] sm:$0xff] }
 0xa99   :  { %v19176_v5 = vrot.slane %v19173_v48, 2 }
 0xa9b   :  { %v7558_v62 = vsel %vm810_vm1, %v19176_v5, %v7557_v45  ;;  %v21940_v45 = vld [vmem:[#allocation77_spill] sm:$0xff] }
 0xa9f   :  { %8884 = vmatmul.mubr.bf16.gmra.mrb[248].mxu1 %v21936_v60 }
 0xaa0   :  { %8891 = vmatprep.mubr.bf16.mxu1 %v19165_v39  ;;  %v7822_v39 = vpack.c.bf16 %v7558_v62, %v19176_v5  ;;  %v21941_v62 = vld [vmem:[#allocation65_spill] sm:$0xff] }
 0xaa7   :  { %8892 = vmatmul.mubr.bf16.gmra.mrb[252].mxu1 %v21937_v29 }
 0xaa8   :  { %8899 = vmatprep.mubr.bf16.mxu1 %v18913_v57  ;;  %v21942_v57 = vld [vmem:[#allocation20_spill] sm:$0xff] }
 0xaaf   :  { %8900 = vmatmul.mubr.bf16.gmra.mrb[0].mxu1 %v7822_v39  ;;  %v12279_v39 = vld [vmem:[%s20590_s7 + $0x180] sm:$0xff]  }
 0xab0   :  { %8907 = vmatprep.mubr.bf16.mxu1 %v21846_v61 }
 0xab7   :  { %8908 = vmatmul.mubr.bf16.gmra.mrb[4].mxu1 %v18693_v3 }
 0xab8   :  { %8915 = vmatprep.mubr.bf16.mxu1 %v18703_v25 }
 0xabf   :  { %8916 = vmatmul.mubr.bf16.gmra.mrb[8].mxu1 %v21938_v7 }
 0xac0   :  { %8923 = vmatprep.mubr.bf16.mxu1 %v21847_v1 }
 0xac7   :  { %8924 = vmatmul.mubr.bf16.gmra.mrb[12].mxu1 %v21939_v46 }
 0xac8   :  { %8931 = vmatprep.mubr.bf16.mxu1 %v18717_v42 }
 0xacf   :  { %8932 = vmatmul.mubr.bf16.gmra.mrb[16].mxu1 %v21940_v45 }
 0xad0   :  { %8939 = vmatprep.mubr.bf16.mxu1 %v21848_v22 }
 0xad7   :  { %8940 = vmatmul.mubr.bf16.gmra.mrb[20].mxu1 %v18504_v56 }
 0xad8   :  { %8947 = vmatprep.mubr.bf16.mxu1 %v18741_v6 }
 0xadf   :  { %8948 = vmatmul.mubr.bf16.gmra.mrb[24].mxu1 %v18552_v13 }
 0xae0   :  { %8955 = vmatprep.mubr.bf16.mxu1 %v21849_v38 }
 0xae7   :  { %8956 = vmatmul.mubr.bf16.gmra.mrb[28].mxu1 %v18633_v12 }
 0xae8   :  { %8963 = vmatprep.mubr.bf16.mxu1 %v18759_v23 }
 0xaef   :  { %8964 = vmatmul.mubr.bf16.gmra.mrb[32].mxu1 %v18637_v11 }
 0xaf0   :  { %8971 = vmatprep.mubr.bf16.mxu1 %v21850_v55 }
 0xaf7   :  { %8972 = vmatmul.mubr.bf16.gmra.mrb[36].mxu1 %v18649_v28 }
 0xaf8   :  { %8979 = vmatprep.mubr.bf16.mxu1 %v18776_v10 }
 0xaff   :  { %8980 = vmatmul.mubr.bf16.gmra.mrb[40].mxu1 %v18659_v54 }
 0xb00   :  { %8987 = vmatprep.mubr.bf16.mxu1 %v21855_v50 }
 0xb07   :  { %8988 = vmatmul.mubr.bf16.gmra.mrb[44].mxu1 %v18665_v27 }
 0xb08   :  { %8995 = vmatprep.mubr.bf16.mxu1 %v18810_v58  ;;  %v21943_v58 = vld [vmem:[#allocation32_spill] sm:$0xff] }
 0xb0f   :  { %8996 = vmatmul.mubr.bf16.gmra.mrb[48].mxu1 %v21941_v62 }
 0xb10   :  { %9003 = vmatprep.mubr.bf16.mxu1 %v21864_v63 }
 0xb17   :  { %9004 = vmatmul.mubr.bf16.gmra.mrb[52].mxu1 %v18869_v17 }
 0xb18   :  { %9011 = vmatprep.mubr.bf16.mxu1 %v18822_v20  ;;  %v12280_v20 = vld [vmem:[%s20590_s7 + $0x188] sm:$0xff]  }
 0xb1f   :  { %9012 = vmatmul.mubr.bf16.gmra.mrb[56].mxu1 %v18874_v35 }
 0xb20   :  { %9019 = vmatprep.mubr.bf16.mxu1 %v21942_v57  ;;  %v21944_v57 = vld [vmem:[#allocation26_spill] sm:$0xff] }
 0xb27   :  { %9020 = vmatmul.mubr.bf16.gmra.mrb[60].mxu1 %v18894_v16 }
 0xb28   :  { %9060 = vmatprep.mubr.bf16.mxu1 %v19007_v40  ;;  %v12281_v40 = vld [vmem:[%s20590_s7 + $0x190] sm:$0xff]  }
 0xb2f   :  { %9061 = vmatmul.mubr.bf16.vlgmr.msra.gmra.mrb[192].mxu1 %v21943_v58  ;;  %v12282_v58 = vld [vmem:[%s20590_s7 + $0x198] sm:$0xff]  }
 0xb30   :  { %9068 = vmatprep.mubr.bf16.mxu1 %v21885_v51  ;;  %9318 = vmatpush1.bf16.msra.mxu1 %v12279_v39  ;;  %v21945_v51 = vld [vmem:[#allocation49_spill] sm:$0xff]  ;;  %v12285_v39 = vld [vmem:[%s20590_s7 + $0x1b0] sm:$0xff]  }
 0xb31   :  { %9319 = vmatprep.subr.bf16.mxu1 %v21414_v53 }
 0xb34   :  { %9320 = vmatpush1.bf16.msra.mxu1 %v12280_v20  ;;  %v12283_v20 = vld [vmem:[%s20590_s7 + $0x1a0] sm:$0xff]  }
 0xb35   :  { %9321 = vmatprep.subr.bf16.mxu1 %v21414_v53 }
 0xb37   :  { %9069 = vmatmul.mubr.bf16.gmra.mrb[196].mxu1 %v21944_v57 }
 0xb38   :  { %9076 = vmatprep.mubr.bf16.mxu1 %v21891_v34  ;;  %9322 = vmatpush1.bf16.msra.mxu1 %v12281_v40  ;;  %v12284_v34 = vld [vmem:[%s20590_s7 + $0x1a8] sm:$0xff]   ;;  %v21946_v40 = vld [vmem:[#allocation34_spill] sm:$0xff] }
 0xb39   :  { %9323 = vmatprep.subr.bf16.mxu1 %v21414_v53 }
 0xb3c   :  { %9324 = vmatpush1.bf16.msra.mxu1 %v12282_v58  ;;  %v12287_v58 = vld [vmem:[%s20590_s7 + $0x1c0] sm:$0xff]  }
 0xb3d   :  { %9325 = vmatprep.subr.bf16.mxu1 %v21414_v53 }
 0xb3f   :  { %9077 = vmatmul.mubr.bf16.gmra.mrb[200].mxu1 %v21945_v51 }
 0xb40   :  { %9084 = vmatprep.mubr.bf16.mxu1 %v21897_v44  ;;  %9326 = vmatpush1.bf16.msra.mxu1 %v12283_v20  ;;  %v12286_v44 = vld [vmem:[%s20590_s7 + $0x1b8] sm:$0xff]   ;;  %v21947_v20 = vld [vmem:[#allocation53_spill] sm:$0xff] }
 0xb41   :  { %9327 = vmatprep.subr.bf16.mxu1 %v21414_v53 }
 0xb44   :  { %9328 = vmatpush1.bf16.msra.mxu1 %v12284_v34  ;;  %v12289_v34 = vld [vmem:[%s20590_s7 + $0x1d0] sm:$0xff]  }
 0xb45   :  { %9329 = vmatprep.subr.bf16.mxu1 %v21414_v53 }
 0xb47   :  { %9085 = vmatmul.mubr.bf16.gmra.mrb[204].mxu1 %v21946_v40 }
 0xb48   :  { %9092 = vmatprep.mubr.bf16.mxu1 %v21903_v41  ;;  %9330 = vmatpush1.bf16.msra.mxu1 %v12285_v39  ;;  %v12288_v41 = vld [vmem:[%s20590_s7 + $0x1c8] sm:$0xff]   ;;  %v21948_v39 = vld [vmem:[#allocation31_spill] sm:$0xff] }
 0xb49   :  { %9331 = vmatprep.subr.bf16.mxu1 %v21414_v53 }
 0xb4c   :  { %9332 = vmatpush1.bf16.msra.mxu1 %v12286_v44  ;;  %v12290_v44 = vld [vmem:[%s20590_s7 + $0x1d8] sm:$0xff]  }
 0xb4d   :  { %9333 = vmatprep.subr.bf16.mxu1 %v21414_v53 }
 0xb4f   :  { %9093 = vmatmul.mubr.bf16.gmra.mrb[208].mxu1 %v21947_v20 }
 0xb50   :  { %9100 = vmatprep.mubr.bf16.mxu1 %v21909_v32  ;;  %9334 = vmatpush1.bf16.msra.mxu1 %v12287_v58  ;;  %v21949_v32 = vld [vmem:[#allocation28_spill] sm:$0xff]  ;;  %v21950_v58 = vld [vmem:[#allocation6_spill] sm:$0xff] }
 0xb51   :  { %9335 = vmatprep.subr.bf16.mxu1 %v21414_v53 }
 0xb54   :  { %9336 = vmatpush1.bf16.msra.mxu1 %v12288_v41  ;;  %v21951_v41 = vld [vmem:[#allocation68_spill] sm:$0xff] }
 0xb55   :  { %9337 = vmatprep.subr.bf16.mxu1 %v21414_v53 }
 0xb57   :  { %9101 = vmatmul.mubr.bf16.gmra.mrb[212].mxu1 %v21948_v39 }
 0xb58   :  { %9108 = vmatprep.mubr.bf16.mxu1 %v21915_v37  ;;  %9338 = vmatpush1.bf16.msra.mxu1 %v12289_v34  ;;  %v12291_v37 = vld [vmem:[%s20590_s7 + $0x1e0] sm:$0xff]  }
 0xb59   :  { %9339 = vmatprep.subr.bf16.mxu1 %v21414_v53  ;;  %v21953_v34 = vld [vmem:[#allocation92_spill] sm:$0xff] }
 0xb5c   :  { %9340 = vmatpush1.bf16.msra.mxu1 %v12290_v44  ;;  %v21955_v44 = vld [vmem:[#allocation50_spill] sm:$0xff] }
 0xb5d   :  { %9341 = vmatprep.subr.bf16.mxu1 %v21414_v53 }
 0xb5f   :  { %9109 = vmatmul.mubr.bf16.gmra.mrb[216].mxu1 %v21949_v32 }
 0xb60   :  { %9116 = vmatprep.mubr.bf16.mxu1 %v21921_v52  ;;  %9342 = vmatpush1.bf16.msra.mxu1 %v12291_v37  ;;  %v21952_v52 = vld [vmem:[#allocation74_spill] sm:$0xff]  ;;  %v7704_v37 = vrot.slane %v19159_v18, 1  ;;  %v21973_v18 = vld [vmem:[#allocation40_spill] sm:$0xff] }
 0xb61   :  { %9343 = vmatprep.subr.bf16.mxu1 %v21414_v53 }
 0xb67   :  { %9117 = vmatmul.mubr.bf16.gmra.mrb[220].mxu1 %v21950_v58 }
 0xb68   :  { %9124 = vmatprep.mubr.bf16.mxu1 %v21926_v4  ;;  %v12292_v4 = vld [vmem:[%s20590_s7 + $0x1e8] sm:$0xff]  }
 0xb69   :  { %9344 = vmatpush1.bf16.msra.mxu1 %v12292_v4  ;;  %v7705_v4 = vrot.slane %v19161_v8, 1  ;;  %v21958_v8 = vld [vmem:[#allocation82_spill] sm:$0xff] }
 0xb6a   :  { %9345 = vmatprep.subr.bf16.mxu1 %v21414_v53 }
 0xb6f   :  { %9125 = vmatmul.mubr.bf16.gmra.mrb[224].mxu1 %v21951_v41 }
 0xb70   :  { %9132 = vmatprep.mubr.bf16.mxu1 %v21931_v26  ;;  %v21954_v26 = vld [vmem:[#allocation94_spill] sm:$0xff] }
 0xb77   :  { %9133 = vmatmul.mubr.bf16.gmra.mrb[228].mxu1 %v21952_v52 }
 0xb78   :  { %9140 = vmatprep.mubr.bf16.mxu1 %v21932_v47  ;;  %v12293_v47 = vld [vmem:[%s20590_s7 + $0x1f0] sm:$0xff]  }
 0xb79   :  { %9346 = vmatpush1.bf16.msra.mxu1 %v12293_v47  ;;  %v12294_v47 = vld [vmem:[%s20590_s7 + $0x1f8] sm:$0xff]  }
 0xb7a   :  { %9347 = vmatprep.subr.bf16.mxu1 %v21414_v53  ;;  %v7706_v53 = vsel %vm585_vm0, %v7704_v37, %v7705_v4 }
 0xb7d   :  { %9348 = vmatpush1.bf16.msra.mxu1 %v12294_v47  ;;  %v21988_v47 = vld [vmem:[#allocation30_spill] sm:$0xff] }
 0xb7f   :  { %9141 = vmatmul.mubr.bf16.gmra.mrb[232].mxu1 %v21953_v34 }
 0xb80   :  { %9148 = vmatprep.mubr.bf16.mxu1 %v21933_v21  ;;  %v21956_v21 = vld [vmem:[#allocation61_spill] sm:$0xff] }
 0xb87   :  { %9149 = vmatmul.mubr.bf16.gmra.mrb[236].mxu1 %v21954_v26 }
 0xb88   :  { %9156 = vmatprep.mubr.bf16.mxu1 %v21934_v43  ;;  %v12329_v43 = vld [vmem:[#allocation2 + $0x190] sm:$0x3] }
 0xb89   :  { %v7707_v63 = vrot.slane %v12329_v43, 1 }
 0xb8b   :  { %v7708_v50 = vsel %vm585_vm0, %v7705_v4, %v7707_v63  ;;  %v21972_v63 = vld [vmem:[#allocation96_spill] sm:$0xff]  ;;  %v21987_v4 = vld [vmem:[#allocation70_spill] sm:$0xff] }
 0xb8f   :  { %9157 = vmatmul.mubr.bf16.gmra.mrb[240].mxu1 %v21955_v44 }
 0xb90   :  { %9164 = vmatprep.mubr.bf16.mxu1 %v21936_v60  ;;  %v21957_v60 = vld [vmem:[#allocation47_spill] sm:$0xff] }
 0xb97   :  { %9165 = vmatmul.mubr.bf16.gmra.mrb[244].mxu1 %v21956_v21 }
 0xb98   :  { %9172 = vmatprep.mubr.bf16.mxu1 %v21937_v29  ;;  %v19312_v29 = vpack.c.bf16 %v7708_v50, %v7706_v53  ;;  %v21971_v50 = vld [vmem:[#allocation73_spill] sm:$0xff] }
 0xb9f   :  { %9173 = vmatmul.mubr.bf16.gmra.mrb[248].mxu1 %v18871_v36 }
 0xba0   :  { %9180 = vmatprep.mubr.bf16.mxu1 %v21957_v60 }
 0xba7   :  { %9181 = vmatmul.mubr.bf16.gmra.mrb[252].mxu1 %v19312_v29 }
 0xba8   :  { %9188 = vmatprep.mubr.bf16.mxu1 %v18693_v3  ;;  %v21967_v3 = vld [vmem:[#allocation86_spill] sm:$0xff] }
 0xbaf   :  { %9189 = vmatmul.mubr.bf16.gmra.mrb[0].mxu1 %v18908_v0  ;;  %v21970_v0 = vld [vmem:[#allocation67_spill] sm:$0xff] }
 0xbb0   :  { %9196 = vmatprep.mubr.bf16.mxu1 %v21938_v7  ;;  %v21974_v7 = vld [vmem:[#allocation79_spill] sm:$0xff] }
 0xbb7   :  { %9197 = vmatmul.mubr.bf16.gmra.mrb[4].mxu1 %v18698_v33 }
 0xbb8   :  { %9204 = vmatprep.mubr.bf16.mxu1 %v21939_v46  ;;  %v21975_v46 = vld [vmem:[#allocation98_spill] sm:$0xff] }
 0xbbf   :  { %9205 = vmatmul.mubr.bf16.gmra.mrb[8].mxu1 %v18711_v14 }
 0xbc0   :  { %9212 = vmatprep.mubr.bf16.mxu1 %v21940_v45  ;;  %v19375_v45 = vrot.slane %v19173_v48, 1 }
 0xbc7   :  { %9213 = vmatmul.mubr.bf16.gmra.mrb[12].mxu1 %v18724_v30 }
 0xbc8   :  { %9220 = vmatprep.mubr.bf16.mxu1 %v18504_v56  ;;  %v21959_v56 = vld [vmem:[#allocation100_spill] sm:$0xff] }
 0xbcf   :  { %9221 = vmatmul.mubr.bf16.gmra.mrb[16].mxu1 %v18731_v2 }
 0xbd0   :  { %9228 = vmatprep.mubr.bf16.mxu1 %v18552_v13  ;;  %v21960_v13 = vld [vmem:[#allocation99_spill] sm:$0xff] }
 0xbd7   :  { %9229 = vmatmul.mubr.bf16.gmra.mrb[20].mxu1 %v18744_v59 }
 0xbd8   :  { %9236 = vmatprep.mubr.bf16.mxu1 %v18633_v12  ;;  %v21961_v12 = vld [vmem:[#allocation103_spill] sm:$0xff] }
 0xbdf   :  { %9237 = vmatmul.mubr.bf16.gmra.mrb[24].mxu1 %v18753_v9 }
 0xbe0   :  { %9244 = vmatprep.mubr.bf16.mxu1 %v18637_v11  ;;  %v21962_v11 = vld [vmem:[#allocation85_spill] sm:$0xff] }
 0xbe7   :  { %9245 = vmatmul.mubr.bf16.gmra.mrb[28].mxu1 %v18761_v19 }
 0xbe8   :  { %9252 = vmatprep.mubr.bf16.mxu1 %v18649_v28  ;;  %v21963_v28 = vld [vmem:[#allocation75_spill] sm:$0xff] }
 0xbef   :  { %9253 = vmatmul.mubr.bf16.gmra.mrb[32].mxu1 %v18766_v49 }
 0xbf0   :  { %9260 = vmatprep.mubr.bf16.mxu1 %v18659_v54  ;;  %v21964_v54 = vld [vmem:[#allocation23_spill] sm:$0xff] }
 0xbf7   :  { %9261 = vmatmul.mubr.bf16.gmra.mrb[36].mxu1 %v18791_v24 }
 0xbf8   :  { %9268 = vmatprep.mubr.bf16.mxu1 %v18665_v27  ;;  %v21965_v27 = vld [vmem:[#allocation48_spill] sm:$0xff] }
 0xbff   :  { %9269 = vmatmul.mubr.bf16.gmra.mrb[40].mxu1 %v18800_v15 }
 0xc00   :  { %9276 = vmatprep.mubr.bf16.mxu1 %v21941_v62  ;;  %v12330_v62 = vld [vmem:[#allocation2 + $0x1a8] sm:$0x3] }
 0xc07   :  { %9277 = vmatmul.mubr.bf16.gmra.mrb[44].mxu1 %v18805_v31 }
 0xc08   :  { %9284 = vmatprep.mubr.bf16.mxu1 %v18869_v17  ;;  %v21966_v17 = vld [vmem:[#allocation37_spill] sm:$0xff] }
 0xc0f   :  { %9285 = vmatmul.mubr.bf16.gmra.mrb[48].mxu1 %v21958_v8 }
 0xc10   :  { %9292 = vmatprep.mubr.bf16.mxu1 %v18874_v35  ;;  %v21968_v35 = vld [vmem:[#allocation18_spill] sm:$0xff] }
 0xc17   :  { %9293 = vmatmul.mubr.bf16.gmra.mrb[52].mxu1 %v21959_v56 }
 0xc18   :  { %9300 = vmatprep.mubr.bf16.mxu1 %v18894_v16  ;;  %v21969_v16 = vld [vmem:[#allocation64_spill] sm:$0xff] }
 0xc1f   :  { %9301 = vmatmul.mubr.bf16.gmra.mrb[56].mxu1 %v21960_v13 }
 0xc20   :  { %9308 = vmatprep.mubr.bf16.mxu1 %v21961_v12 }
 0xc27   :  { %9309 = vmatmul.mubr.bf16.gmra.mrb[60].mxu1 %v21962_v11 }
 0xc28   :  { %9349 = vmatprep.mubr.bf16.mxu1 %v21944_v57  ;;  %v7741_v57 = vrot.slane %v12330_v62, 1  ;;  %v21994_v62 = vld [vmem:[#allocation25_spill] sm:$0xff] }
 0xc2f   :  { %9350 = vmatmul.mubr.bf16.vlgmr.msra.gmra.mrb[192].mxu1 %v21963_v28 }
 0xc30   :  { %9357 = vmatprep.mubr.bf16.mxu1 %v21945_v51  ;;  %v21976_v51 = vld [vmem:[#allocation27_spill] sm:$0xff] }
 0xc37   :  { %9358 = vmatmul.mubr.bf16.gmra.mrb[196].mxu1 %v21964_v54  ;;  %v21990_v54 = vld [vmem:[#allocation20_spill] sm:$0xff] }
 0xc38   :  { %9365 = vmatprep.mubr.bf16.mxu1 %v21946_v40  ;;  %v7742_v40 = vsel %vm585_vm0, %v19375_v45, %v7741_v57 }
 0xc3f   :  { %9366 = vmatmul.mubr.bf16.gmra.mrb[200].mxu1 %v21965_v27 }
 0xc40   :  { %9373 = vmatprep.mubr.bf16.mxu1 %v21947_v20  ;;  %v7818_v20 = vpack.c.bf16 %v7742_v40, %v19375_v45 }
 0xc47   :  { %9374 = vmatmul.mubr.bf16.gmra.mrb[204].mxu1 %v21966_v17 }
 0xc48   :  { %9381 = vmatprep.mubr.bf16.mxu1 %v21948_v39  ;;  %v21977_v39 = vld [vmem:[#allocation89_spill] sm:$0xff] }
 0xc4f   :  { %9382 = vmatmul.mubr.bf16.gmra.mrb[208].mxu1 %v21967_v3 }
 0xc50   :  { %9389 = vmatprep.mubr.bf16.mxu1 %v21949_v32  ;;  %v7153_v32 = vld [vmem:[#allocation2 + $0x358] sm:$0x3] }
 0xc51   :  { %v7746_v37 = vrot.slane %v7153_v32, 1 }
 0xc53   :  { %v7747_v43 = vsel %vm585_vm0, %v19375_v45, %v7746_v37 }
 0xc57   :  { %9390 = vmatmul.mubr.bf16.gmra.mrb[212].mxu1 %v21968_v35 }
 0xc58   :  { %9397 = vmatprep.mubr.bf16.mxu1 %v21950_v58  ;;  %v7760_v58 = vrot.slane %v7153_v32, 2 }
 0xc5f   :  { %9398 = vmatmul.mubr.bf16.gmra.mrb[216].mxu1 %v21969_v16  ;;  %v21992_v16 = vld [vmem:[#allocation51_spill] sm:$0xff] }
 0xc60   :  { %9405 = vmatprep.mubr.bf16.mxu1 %v21951_v41  ;;  %v7761_v41 = vsel %vm810_vm1, %v19176_v5, %v7760_v58 }
 0xc67   :  { %9406 = vmatmul.mubr.bf16.gmra.mrb[220].mxu1 %v21970_v0 }
 0xc68   :  { %9413 = vmatprep.mubr.bf16.mxu1 %v21952_v52  ;;  %v7873_v52 = vpack.c.bf16 %v7761_v41, %v19176_v5  ;;  %v21978_v5 = vld [vmem:[#allocation93_spill] sm:$0xff]  ;;  %v21996_v41 = vld [vmem:[#allocation42_spill] sm:$0xff] }
 0xc6a   :  { %10954 = vmatmul.mubr.bf16.gmra.mrb[124].mxu0 %v7873_v52 }
 0xc6f   :  { %9414 = vmatmul.mubr.bf16.gmra.mrb[224].mxu1 %v21971_v50 }
 0xc70   :  { %9421 = vmatprep.mubr.bf16.mxu1 %v21953_v34 }
 0xc77   :  { %9422 = vmatmul.mubr.bf16.gmra.mrb[228].mxu1 %v21972_v63 }
 0xc78   :  { %9429 = vmatprep.mubr.bf16.mxu1 %v21954_v26  ;;  %v21986_v26 = vld [vmem:[#allocation35_spill] sm:$0xff] }
 0xc7f   :  { %9430 = vmatmul.mubr.bf16.gmra.mrb[232].mxu1 %v21973_v18  ;;  %v21993_v18 = vld [vmem:[#allocation16_spill] sm:$0xff] }
 0xc80   :  { %9437 = vmatprep.mubr.bf16.mxu1 %v21955_v44 }
 0xc87   :  { %9438 = vmatmul.mubr.bf16.gmra.mrb[236].mxu1 %v21974_v7 }
 0xc88   :  { %9445 = vmatprep.mubr.bf16.mxu1 %v21956_v21 }
 0xc8f   :  { %9446 = vmatmul.mubr.bf16.gmra.mrb[240].mxu1 %v21975_v46 }
 0xc90   :  { %9453 = vmatprep.mubr.bf16.mxu1 %v18871_v36  ;;  %v19385_v36 = vpack.c.bf16 %v19173_v48, %v19173_v48 }
 0xc97   :  { %9454 = vmatmul.mubr.bf16.gmra.mrb[244].mxu1 %v21976_v51 }
 0xc98   :  { %9461 = vmatprep.mubr.bf16.mxu1 %v19312_v29 }
 0xc9f   :  { %9462 = vmatmul.mubr.bf16.gmra.mrb[248].mxu1 %v21977_v39 }
 0xca0   :  { %9469 = vmatprep.mubr.bf16.mxu1 %v7818_v20  ;;  %v21995_v20 = vld [vmem:[#allocation13_spill] sm:$0xff] }
 0xca7   :  { %9470 = vmatmul.mubr.bf16.gmra.mrb[252].mxu1 %v19385_v36 }
 0xca8   :  { %9477 = vmatprep.mubr.bf16.mxu1 %v18698_v33 }
 0xcaf   :  { %9478 = vmatmul.mubr.bf16.gmra.mrb[0].mxu1 %v21846_v61  ;;  %v21984_v61 = vld [vmem:[#allocation10_spill] sm:$0xff] }
 0xcb0   :  { %9485 = vmatprep.mubr.bf16.mxu1 %v18711_v14 }
 0xcb7   :  { %9486 = vmatmul.mubr.bf16.gmra.mrb[4].mxu1 %v18703_v25  ;;  %v21979_v25 = vld [vmem:[#allocation54_spill] sm:$0xff] }
 0xcb8   :  { %9493 = vmatprep.mubr.bf16.mxu1 %v18724_v30 }
 0xcbf   :  { %9494 = vmatmul.mubr.bf16.gmra.mrb[8].mxu1 %v21847_v1 }
 0xcc0   :  { %9501 = vmatprep.mubr.bf16.mxu1 %v18731_v2  ;;  %v21980_v2 = vld [vmem:[#allocation63_spill] sm:$0xff] }
 0xcc7   :  { %9502 = vmatmul.mubr.bf16.gmra.mrb[12].mxu1 %v18717_v42 }
 0xcc8   :  { %9509 = vmatprep.mubr.bf16.mxu1 %v18744_v59 }
 0xccf   :  { %9510 = vmatmul.mubr.bf16.gmra.mrb[16].mxu1 %v21848_v22  ;;  %v21985_v22 = vld [vmem:[#allocation12_spill] sm:$0xff] }
 0xcd0   :  { %9517 = vmatprep.mubr.bf16.mxu1 %v18753_v9  ;;  %v21981_v9 = vld [vmem:[#allocation81_spill] sm:$0xff] }
 0xcd7   :  { %9518 = vmatmul.mubr.bf16.gmra.mrb[20].mxu1 %v18741_v6 }
 0xcd8   :  { %9525 = vmatprep.mubr.bf16.mxu1 %v18761_v19  ;;  %v21982_v19 = vld [vmem:[#allocation22_spill] sm:$0xff] }
 0xcdf   :  { %9526 = vmatmul.mubr.bf16.gmra.mrb[24].mxu1 %v21849_v38 }
 0xce0   :  { %9533 = vmatprep.mubr.bf16.mxu1 %v18766_v49 }
 0xce7   :  { %9534 = vmatmul.mubr.bf16.gmra.mrb[28].mxu1 %v18759_v23 }
 0xce8   :  { %9541 = vmatprep.mubr.bf16.mxu1 %v18791_v24 }
 0xcef   :  { %9542 = vmatmul.mubr.bf16.gmra.mrb[32].mxu1 %v21850_v55 }
 0xcf0   :  { %9549 = vmatprep.mubr.bf16.mxu1 %v18800_v15  ;;  %v21983_v15 = vld [vmem:[#allocation52_spill] sm:$0xff] }
 0xcf7   :  { %9550 = vmatmul.mubr.bf16.gmra.mrb[36].mxu1 %v18776_v10 }
 0xcf8   :  { %9557 = vmatprep.mubr.bf16.mxu1 %v18805_v31 }
 0xcff   :  { %9558 = vmatmul.mubr.bf16.gmra.mrb[40].mxu1 %v21978_v5 }
 0xd00   :  { %9565 = vmatprep.mubr.bf16.mxu1 %v21958_v8 }
 0xd02   :  { %v9351_v33 = vpop.f32.mrb[192].mxu1 }
 0xd03   :  { %v19415_v14 = vadd.f32 %v21979_v25, %v9351_v33  ;;  %v9353_v42 = vpop.f32.mrb[193].mxu1  ;;  %v21997_v33 = vld [vmem:[#allocation41_spill] sm:$0xff] }
 0xd04   :  { %v9354_v30 = vpop.f32.mrb[194].mxu1 }
 0xd05   :  { %v19418_v6 = vadd.f32 %v21980_v2, %v9354_v30  ;;  %v9356_v59 = vpop.f32.mrb[195].mxu1  ;;  %v21998_v2 = vld [vmem:[#allocation71_spill] sm:$0xff] }
 0xd07   :  { %9566 = vmatmul.mubr.bf16.gmra.mrb[44].mxu1 %v21981_v9 }
 0xd08   :  { %9573 = vmatprep.mubr.bf16.mxu1 %v21959_v56  ;;  %v7872_v56 = vpack.c.bf16 %v7747_v43, %v19375_v45 }
 0xd0a   :  { %v9359_v23 = vpop.f32.mrb[196].mxu1 }
 0xd0b   :  { %v19423_v49 = vadd.f32 %v21982_v19, %v9359_v23  ;;  %v9361_v10 = vpop.f32.mrb[197].mxu1  ;;  %v9965_v19 = vmul.f32 %v19418_v6, %v19418_v6 }
 0xd0c   :  { %v9362_v24 = vpop.f32.mrb[198].mxu1  ;;  %v21999_v10 = vld [vmem:[#allocation17_spill] sm:$0xff] }
 0xd0d   :  { %v19426_v31 = vadd.f32 %v21983_v15, %v9362_v24  ;;  %v9364_v48 = vpop.f32.mrb[199].mxu1 }
 0xd0f   :  { %9574 = vmatmul.mubr.bf16.gmra.mrb[48].mxu1 %v21984_v61  ;;  %v9964_v61 = vmul.f32 %v19415_v14, %v19415_v14  ;;  %v9967_v43 = vmul.f32 %v19426_v31, %v19426_v31 }
 0xd10   :  { %9581 = vmatprep.mubr.bf16.mxu1 %v21960_v13  ;;  %v21989_v13 = vld [vmem:[#allocation15_spill] sm:$0xff] }
 0xd12   :  { %v9367_v1 = vpop.f32.mrb[200].mxu1 }
 0xd13   :  { %v19431_v38 = vadd.f32 %v21985_v22, %v9367_v1  ;;  %v9369_v55 = vpop.f32.mrb[201].mxu1  ;;  %v9895_v1 = vadd.f32 %v19418_v6, %v19415_v14  ;;  %v9966_v22 = vmul.f32 %v19423_v49, %v19423_v49 }
 0xd14   :  { %v9370_v34 = vpop.f32.mrb[202].mxu1  ;;  %v22000_v55 = vld [vmem:[#allocation78_spill] sm:$0xff] }
 0xd15   :  { %v19434_v44 = vadd.f32 %v21986_v26, %v9370_v34  ;;  %v9372_v21 = vpop.f32.mrb[203].mxu1  ;;  %v9896_v37 = vadd.f32 %v9895_v1, %v19423_v49 }
 0xd16   :  { %v10028_v21 = vadd.f32 %v9965_v19, %v9964_v61 }
 0xd17   :  { %9582 = vmatmul.mubr.bf16.gmra.mrb[52].mxu1 %v21987_v4 }
 0xd18   :  { %9589 = vmatprep.mubr.bf16.mxu1 %v21962_v11  ;;  %v21991_v11 = vld [vmem:[#allocation56_spill] sm:$0xff]  ;;  %v10029_v4 = vadd.f32 %v10028_v21, %v9966_v22 }
 0xd1a   :  { %v9375_v60 = vpop.f32.mrb[204].mxu1 }
 0xd1b   :  { %v19441_v53 = vadd.f32 %v21988_v47, %v9375_v60  ;;  %v9377_v29 = vpop.f32.mrb[205].mxu1  ;;  %v9897_v47 = vadd.f32 %v9896_v37, %v19426_v31 }
 0xd1c   :  { %v9378_v8 = vpop.f32.mrb[206].mxu1  ;;  %v9968_v29 = vmul.f32 %v19431_v38, %v19431_v38 }
 0xd1d   :  { %v19445_v12 = vadd.f32 %v21989_v13, %v9378_v8  ;;  %v9380_v28 = vpop.f32.mrb[207].mxu1  ;;  %v22001_v8 = vld [vmem:[#allocation90_spill] sm:$0xff] }
 0xd1f   :  { %9590 = vmatmul.mubr.bf16.gmra.mrb[56].mxu1 %v21990_v54  ;;  %v10030_v54 = vadd.f32 %v10029_v4, %v9967_v43 }
 0xd20   :  { %9597 = vmatprep.mubr.bf16.mxu1 %v7872_v56 }
 0xd22   :  { %v9383_v27 = vpop.f32.mrb[208].mxu1 }
 0xd23   :  { %v19449_v17 = vadd.f32 %v21991_v11, %v9383_v27  ;;  %v9385_v3 = vpop.f32.mrb[209].mxu1  ;;  %v9898_v27 = vadd.f32 %v9897_v47, %v19431_v38  ;;  %v22002_v11 = vld [vmem:[#allocation19_spill] sm:$0xff] }
 0xd24   :  { %v9386_v35 = vpop.f32.mrb[210].mxu1 }
 0xd25   :  { %v19452_v0 = vadd.f32 %v21992_v16, %v9386_v35  ;;  %v9388_v50 = vpop.f32.mrb[211].mxu1  ;;  %v10031_v16 = vadd.f32 %v10030_v54, %v9968_v29 }
 0xd26   :  { %v9969_v50 = vmul.f32 %v19434_v44, %v19434_v44 }
 0xd27   :  { %9598 = vmatmul.mubr.bf16.gmra.mrb[60].mxu1 %v19385_v36 }
 0xd2a   :  { %v9391_v63 = vpop.f32.mrb[212].mxu1 }
 0xd2b   :  { %v19456_v7 = vadd.f32 %v21993_v18, %v9391_v63  ;;  %v9393_v46 = vpop.f32.mrb[213].mxu1  ;;  %v9899_v63 = vadd.f32 %v9898_v27, %v19434_v44  ;;  %v9970_v18 = vmul.f32 %v19441_v53, %v19441_v53 }
 0xd2c   :  { %v9394_v45 = vpop.f32.mrb[214].mxu1 }
 0xd2d   :  { %v19459_v57 = vadd.f32 %v21994_v62, %v9394_v45  ;;  %v9396_v51 = vpop.f32.mrb[215].mxu1  ;;  %v10032_v45 = vadd.f32 %v10031_v16, %v9969_v50  ;;  %v9900_v62 = vadd.f32 %v9899_v63, %v19441_v53  ;;  %v22008_v50 = vld [vmem:[#allocation5_spill] sm:$0xff] }
 0xd2e   :  { %v22003_v51 = vld [vmem:[#allocation88_spill] sm:$0xff] }
 0xd2f   :  { %v9975_v47 = vmul.f32 %v19459_v57, %v19459_v57 }
 0xd32   :  { %v9399_v40 = vpop.f32.mrb[216].mxu1 }
 0xd33   :  { %v19462_v39 = vadd.f32 %v21995_v20, %v9399_v40  ;;  %v9401_v32 = vpop.f32.mrb[217].mxu1 }
 0xd34   :  { %v9402_v58 = vpop.f32.mrb[218].mxu1 }
 0xd35   :  { %v19465_v52 = vadd.f32 %v21996_v41, %v9402_v58  ;;  %v9404_v36 = vpop.f32.mrb[219].mxu1  ;;  %v10033_v58 = vadd.f32 %v10032_v45, %v9970_v18  ;;  %v9971_v41 = vmul.f32 %v19445_v12, %v19445_v12 }
 0xd36   :  { %v22004_v36 = vld [vmem:[#allocation59_spill] sm:$0xff] }
 0xd37   :  { %v9977_v45 = vmul.f32 %v19465_v52, %v19465_v52 }
 0xd3a   :  { %v9407_v5 = vpop.f32.mrb[220].mxu1 }
 0xd3b   :  { %v19468_v25 = vadd.f32 %v21997_v33, %v9407_v5  ;;  %v9409_v42 = vpop.f32.mrb[221].mxu1 }
 0xd3c   :  { %v9410_v30 = vpop.f32.mrb[222].mxu1  ;;  %v9901_v42 = vadd.f32 %v9900_v62, %v19445_v12 }
 0xd3d   :  { %v19471_v59 = vadd.f32 %v21998_v2, %v9410_v30  ;;  %v9412_v9 = vpop.f32.mrb[223].mxu1  ;;  %v9972_v30 = vmul.f32 %v19449_v17, %v19449_v17  ;;  %v10034_v2 = vadd.f32 %v10033_v58, %v9971_v41  ;;  %v22009_v41 = vld [vmem:[#allocation58_spill] sm:$0xff] }
 0xd3e   :  { %v9902_v9 = vadd.f32 %v9901_v42, %v19449_v17 }
 0xd3f   :  { %v10035_v19 = vadd.f32 %v10034_v2, %v9972_v30  ;;  %v9979_v2 = vmul.f32 %v19471_v59, %v19471_v59 }
 0xd40   :  { %v9903_v22 = vadd.f32 %v9902_v9, %v19452_v0  ;;  %v22010_v9 = vld [vmem:[#allocation4_spill] sm:$0xff] }
 0xd42   :  { %v9415_v23 = vpop.f32.mrb[224].mxu1  ;;  %v9904_v43 = vadd.f32 %v9903_v22, %v19456_v7 }
 0xd43   :  { %v19476_v24 = vadd.f32 %v21999_v10, %v9415_v23  ;;  %v9417_v15 = vpop.f32.mrb[225].mxu1  ;;  %v9973_v10 = vmul.f32 %v19452_v0, %v19452_v0 }
 0xd44   :  { %v9418_v48 = vpop.f32.mrb[226].mxu1  ;;  %v22005_v15 = vld [vmem:[#allocation87_spill] sm:$0xff] }
 0xd45   :  { %v19485_v34 = vadd.f32 %v22000_v55, %v9418_v48  ;;  %v9420_v26 = vpop.f32.mrb[227].mxu1  ;;  %v9974_v55 = vmul.f32 %v19456_v7, %v19456_v7  ;;  %v10036_v4 = vadd.f32 %v10035_v19, %v9973_v10 }
 0xd46   :  { %v22006_v26 = vld [vmem:[#allocation91_spill] sm:$0xff] }
 0xd4a   :  { %v9423_v60 = vpop.f32.mrb[228].mxu1 }
 0xd4b   :  { %v19494_v56 = vadd.f32 %v22001_v8, %v9423_v60  ;;  %v9425_v13 = vpop.f32.mrb[229].mxu1  ;;  %v10037_v60 = vadd.f32 %v10036_v4, %v9974_v55  ;;  %v9905_v8 = vadd.f32 %v9904_v43, %v19459_v57 }
 0xd4c   :  { %v9426_v28 = vpop.f32.mrb[230].mxu1  ;;  %v9976_v13 = vmul.f32 %v19462_v39, %v19462_v39 }
 0xd4d   :  { %v19498_v3 = vadd.f32 %v22002_v11, %v9426_v28  ;;  %v9428_v35 = vpop.f32.mrb[231].mxu1  ;;  %v22007_v28 = vld [vmem:[#allocation97_spill] sm:$0xff]  ;;  %v9906_v16 = vadd.f32 %v9905_v8, %v19462_v39  ;;  %v22012_v8 = vld [vmem:[#allocation11_spill] sm:$0xff] }
 0xd4e   :  { %v10038_v35 = vadd.f32 %v10037_v60, %v9975_v47 }
 0xd4f   :  { %v9907_v62 = vadd.f32 %v9906_v16, %v19465_v52  ;;  %v9983_v16 = vmul.f32 %v19498_v3, %v19498_v3 }
 0xd51   :  { %v9908_v58 = vadd.f32 %v9907_v62, %v19468_v25  ;;  %v22013_v62 = vld [vmem:[#allocation9_spill] sm:$0xff] }
 0xd52   :  { %v9431_v46 = vpop.f32.mrb[232].mxu1 }
 0xd53   :  { %v19507_v40 = vadd.f32 %v22003_v51, %v9431_v46  ;;  %v9433_v20 = vpop.f32.mrb[233].mxu1  ;;  %v10039_v46 = vadd.f32 %v10038_v35, %v9976_v13  ;;  %v9978_v51 = vmul.f32 %v19468_v25, %v19468_v25  ;;  %v9909_v10 = vadd.f32 %v9908_v58, %v19471_v59 }
 0xd54   :  { %v9434_v32 = vpop.f32.mrb[234].mxu1 }
 0xd55   :  { %v19512_v5 = vadd.f32 %v22004_v36, %v9434_v32  ;;  %v9436_v33 = vpop.f32.mrb[235].mxu1  ;;  %v10040_v32 = vadd.f32 %v10039_v46, %v9977_v45  ;;  %v9984_v45 = vmul.f32 %v19507_v40, %v19507_v40 }
 0xd57   :  { %v10041_v30 = vadd.f32 %v10040_v32, %v9978_v51 }
 0xd5a   :  { %v9439_v23 = vpop.f32.mrb[236].mxu1 }
 0xd5b   :  { %v19521_v48 = vadd.f32 %v22005_v15, %v9439_v23  ;;  %v9441_v61 = vpop.f32.mrb[237].mxu1  ;;  %v9980_v15 = vmul.f32 %v19476_v24, %v19476_v24 }
 0xd5c   :  { %v9442_v1 = vpop.f32.mrb[238].mxu1  ;;  %v10042_v61 = vadd.f32 %v10041_v30, %v9979_v2  ;;  %v22014_v30 = vld [vmem:[#allocation24_spill] sm:$0xff] }
 0xd5d   :  { %v19527_v21 = vadd.f32 %v22006_v26, %v9442_v1  ;;  %v9444_v37 = vpop.f32.mrb[239].mxu1  ;;  %v9910_v1 = vadd.f32 %v9909_v10, %v19476_v24  ;;  %v9981_v26 = vmul.f32 %v19485_v34, %v19485_v34 }
 0xd5e   :  { %v10043_v55 = vadd.f32 %v10042_v61, %v9980_v15  ;;  %v22011_v37 = vld [vmem:[#allocation45_spill] sm:$0xff]  ;;  %v9985_v15 = vmul.f32 %v19512_v5, %v19512_v5 }
 0xd5f   :  { %v9911_v47 = vadd.f32 %v9910_v1, %v19485_v34  ;;  %v9986_v1 = vmul.f32 %v19521_v48, %v19521_v48 }
 0xd62   :  { %v9447_v29 = vpop.f32.mrb[240].mxu1 }
 0xd63   :  { %v19536_v54 = vadd.f32 %v22007_v28, %v9447_v29  ;;  %v9449_v27 = vpop.f32.mrb[241].mxu1  ;;  %v9982_v29 = vmul.f32 %v19494_v56, %v19494_v56 }
 0xd64   :  { %v9450_v11 = vpop.f32.mrb[242].mxu1  ;;  %v10044_v27 = vadd.f32 %v10043_v55, %v9981_v26 }
 0xd65   :  { %v19540_v63 = vadd.f32 %v22008_v50, %v9450_v11  ;;  %v9452_v18 = vpop.f32.mrb[243].mxu1  ;;  %v9912_v11 = vadd.f32 %v9911_v47, %v19494_v56 }
 0xd66   :  { %v10045_v35 = vadd.f32 %v10044_v27, %v9982_v29  ;;  %v19574_v18 = vpop.f32.mrb[124].mxu0 }
 0xd67   :  { %v9913_v46 = vadd.f32 %v9912_v11, %v19498_v3  ;;  %v19582_v32 = vpop.f32.mrb[125].mxu0 }
 0xd6a   :  { %v9455_v20 = vpop.f32.mrb[244].mxu1 }
 0xd6b   :  { %v19549_v36 = vadd.f32 %v22009_v41, %v9455_v20  ;;  %v9457_v33 = vpop.f32.mrb[245].mxu1  ;;  %v19584_v41 = vpop.f32.mrb[126].mxu0 }
 0xd6c   :  { %v9458_v42 = vpop.f32.mrb[246].mxu1  ;;  %v10046_v33 = vadd.f32 %v10045_v35, %v9983_v16  ;;  %v9988_v16 = vmul.f32 %v19536_v54, %v19536_v54 }
 0xd6d   :  { %v19554_v23 = vadd.f32 %v22010_v9, %v9458_v42  ;;  %v9460_v19 = vpop.f32.mrb[247].mxu1  ;;  %v9914_v42 = vadd.f32 %v9913_v46, %v19507_v40 }
 0xd6e   :  { %v19590_v19 = vpop.f32.mrb[127].mxu0  ;;  %v10047_v10 = vadd.f32 %v10046_v33, %v9984_v45 }
 0xd6f   :  { %v9915_v61 = vadd.f32 %v9914_v42, %v19512_v5 }
 0xd70   :  { %v10048_v55 = vadd.f32 %v10047_v10, %v9985_v15  ;;  %v9990_v10 = vmul.f32 %v19549_v36, %v19549_v36  ;;  %v22018_v15 = vld [vmem:[#allocation7_spill] sm:$0xff] }
 0xd71   :  { %v9916_v26 = vadd.f32 %v9915_v61, %v19521_v48 }
 0xd72   :  { %v9463_v22 = vpop.f32.mrb[248].mxu1  ;;  %v10049_v29 = vadd.f32 %v10048_v55, %v9986_v1 }
 0xd73   :  { %v19563_v4 = vadd.f32 %v22011_v37, %v9463_v22  ;;  %v9465_v43 = vpop.f32.mrb[249].mxu1  ;;  %v22015_v37 = vld [vmem:[#allocation57_spill] sm:$0xff]  ;;  %v9917_v35 = vadd.f32 %v9916_v26, %v19527_v21 }
 0xd74   :  { %v9466_v60 = vpop.f32.mrb[250].mxu1 }
 0xd75   :  { %v19569_v13 = vadd.f32 %v22012_v8, %v9466_v60  ;;  %v9468_v28 = vpop.f32.mrb[251].mxu1  ;;  %v9987_v8 = vmul.f32 %v19527_v21, %v19527_v21  ;;  %v9918_v46 = vadd.f32 %v9917_v35, %v19536_v54 }
 0xd76   :  { %v22016_v28 = vld [vmem:[#allocation46_spill] sm:$0xff] }
 0xd7a   :  { %v9471_v50 = vpop.f32.mrb[252].mxu1 }
 0xd7b   :  { %v19580_v51 = vadd.f32 %v22013_v62, %v9471_v50  ;;  %v9473_v20 = vpop.f32.mrb[253].mxu1  ;;  %v10050_v50 = vadd.f32 %v10049_v29, %v9987_v8  ;;  %v9992_v29 = vmul.f32 %v19563_v4, %v19563_v4  ;;  %v22019_v8 = vld [vmem:[#allocation43_spill] sm:$0xff] }
 0xd7c   :  { %v9474_v58 = vpop.f32.mrb[254].mxu1  ;;  %v9989_v20 = vmul.f32 %v19540_v63, %v19540_v63 }
 0xd7d   :  { %v19588_v2 = vadd.f32 %v22014_v30, %v9474_v58  ;;  %v9476_v9 = vpop.f32.mrb[255].mxu1  ;;  %v10051_v62 = vadd.f32 %v10050_v50, %v9988_v16  ;;  %v22017_v58 = vld [vmem:[#allocation21_spill] sm:$0xff] }
 0xd7e   :  { %v9919_v9 = vadd.f32 %v9918_v46, %v19540_v63  ;;  %v22020_v46 = vld [vmem:[#allocation84_spill] sm:$0xff] }
 0xd80   :  { %v9920_v55 = vadd.f32 %v9919_v9, %v19549_v36 }
 0xd82   :  { %v9479_v22 = vpop.f32.mrb[0].mxu1 }
 0xd83   :  { %v19599_v43 = vadd.f32 %v22015_v37, %v9479_v22  ;;  %v9481_v60 = vpop.f32.mrb[1].mxu1  ;;  %v10052_v22 = vadd.f32 %v10051_v62, %v9989_v20  ;;  %v9991_v37 = vmul.f32 %v19554_v23, %v19554_v23 }
 0xd84   :  { %v9482_v47 = vpop.f32.mrb[2].mxu1 }
 0xd85   :  { %v19604_v27 = vadd.f32 %v22016_v28, %v9482_v47  ;;  %v9484_v11 = vpop.f32.mrb[3].mxu1  ;;  %v10053_v26 = vadd.f32 %v10052_v22, %v9990_v10  ;;  %v9921_v47 = vadd.f32 %v9920_v55, %v19554_v23 }
 0xd87   :  { %v10054_v16 = vadd.f32 %v10053_v26, %v9991_v37  ;;  %v9922_v50 = vadd.f32 %v9921_v47, %v19563_v4  ;;  %v22024_v47 = vld [vmem:[#allocation80_spill] sm:$0xff] }
 0xd89   :  { %v10055_v20 = vadd.f32 %v10054_v16, %v9992_v29 }
 0xd8a   :  { %v9487_v45 = vpop.f32.mrb[4].mxu1 }
 0xd8b   :  { %v19613_v33 = vadd.f32 %v22017_v58, %v9487_v45  ;;  %v9489_v42 = vpop.f32.mrb[5].mxu1  ;;  %v9993_v58 = vmul.f32 %v19569_v13, %v19569_v13 }
 0xd8c   :  { %v9490_v30 = vpop.f32.mrb[6].mxu1  ;;  %v9923_v42 = vadd.f32 %v9922_v50, %v19569_v13 }
 0xd8d   :  { %v19619_v61 = vadd.f32 %v22018_v15, %v9490_v30  ;;  %v9492_v1 = vpop.f32.mrb[7].mxu1  ;;  %v9994_v30 = vmul.f32 %v19580_v51, %v19580_v51  ;;  %v10056_v10 = vadd.f32 %v10055_v20, %v9993_v58  ;;  %v9997_v20 = vmul.f32 %v19604_v27, %v19604_v27  ;;  %v22026_v58 = vld [vmem:[#allocation29_spill] sm:$0xff] }
 0xd8e   :  { %v9924_v15 = vadd.f32 %v9923_v42, %v19580_v51  ;;  %v22022_v1 = vld [vmem:[#allocation33_spill] sm:$0xff] }
 0xd8f   :  { %v10057_v37 = vadd.f32 %v10056_v10, %v9994_v30 }
 0xd92   :  { %v9495_v60 = vpop.f32.mrb[8].mxu1 }
 0xd93   :  { %v19628_v28 = vadd.f32 %v22019_v8, %v9495_v60  ;;  %v9497_v11 = vpop.f32.mrb[9].mxu1  ;;  %v9995_v60 = vmul.f32 %v19588_v2, %v19588_v2 }
 0xd94   :  { %v9498_v35 = vpop.f32.mrb[10].mxu1  ;;  %v9925_v11 = vadd.f32 %v9924_v15, %v19588_v2  ;;  %v9998_v15 = vmul.f32 %v19613_v33, %v19613_v33 }
 0xd95   :  { %v19632_v45 = vadd.f32 %v22020_v46, %v9498_v35  ;;  %v9500_v62 = vpop.f32.mrb[11].mxu1  ;;  %v9996_v35 = vmul.f32 %v19599_v43, %v19599_v43  ;;  %v10058_v16 = vadd.f32 %v10057_v37, %v9995_v60 }
 0xd96   :  { %v9926_v50 = vadd.f32 %v9925_v11, %v19599_v43 }
 0xd97   :  { %22021 = vst [vmem:[#allocation38_spill] sm:$0xff] %v19632_v45  ;;  %v10059_v62 = vadd.f32 %v10058_v16, %v9996_v35  ;;  %v10000_v16 = vmul.f32 %v19628_v28, %v19628_v28 }
 0xd98   :  { %v9927_v10 = vadd.f32 %v9926_v50, %v19604_v27  ;;  %v22030_v50 = vld [vmem:[#allocation76_spill] sm:$0xff] }
 0xd99   :  { %v10060_v37 = vadd.f32 %v10059_v62, %v9997_v20  ;;  %v22031_v20 = vld [vmem:[#allocation95_spill] sm:$0xff] }
 0xd9a   :  { %v9503_v9 = vpop.f32.mrb[12].mxu1  ;;  %v9928_v60 = vadd.f32 %v9927_v10, %v19613_v33 }
 0xd9b   :  { %v19641_v22 = vadd.f32 %v22022_v1, %v9503_v9  ;;  %v9505_v55 = vpop.f32.mrb[13].mxu1  ;;  %v22028_v1 = vld [vmem:[#allocation8_spill] sm:$0xff] }
 0xd9c   :  { %v9506_v26 = vpop.f32.mrb[14].mxu1  ;;  %v9929_v35 = vadd.f32 %v9928_v60, %v19619_v61 }
 0xd9d   :  { %22023 = vst [vmem:[#allocation66_spill] sm:$0xff] %v19641_v22  ;;  %v19646_v29 = vadd.f32 %v22024_v47, %v9506_v26  ;;  %v9508_v8 = vpop.f32.mrb[15].mxu1  ;;  %v10061_v47 = vadd.f32 %v10060_v37, %v9998_v15  ;;  %v10002_v60 = vmul.f32 %v19641_v22, %v19641_v22 }
 0xd9e   :  { %v9999_v8 = vmul.f32 %v19619_v61, %v19619_v61  ;;  %v9930_v62 = vadd.f32 %v9929_v35, %v19628_v28 }
 0xd9f   :  { %22025 = vst [vmem:[#allocation102_spill] sm:$0xff] %v19646_v29 }
 0xda0   :  { %v9931_v37 = vadd.f32 %v9930_v62, %v19632_v45 }
 0xda2   :  { %v9511_v46 = vpop.f32.mrb[16].mxu1 }
 0xda3   :  { %v19655_v42 = vadd.f32 %v22026_v58, %v9511_v46  ;;  %v9513_v30 = vpop.f32.mrb[17].mxu1 }
 0xda4   :  { %v9514_v9 = vpop.f32.mrb[18].mxu1 }
 0xda5   :  { %22027 = vst [vmem:[#allocation36_spill] sm:$0xff] %v19655_v42  ;;  %v19661_v55 = vadd.f32 %v22028_v1, %v9514_v9  ;;  %v9516_v26 = vpop.f32.mrb[19].mxu1  ;;  %v10062_v9 = vadd.f32 %v10061_v47, %v9999_v8  ;;  %v22033_v47 = vld [vmem:[#allocation101_spill] sm:$0xff] }
 0xda6   :  { %v10001_v26 = vmul.f32 %v19632_v45, %v19632_v45 }
 0xda7   :  { %22029 = vst [vmem:[#allocation44_spill] sm:$0xff] %v19661_v55  ;;  %v10063_v1 = vadd.f32 %v10062_v9, %v10000_v16  ;;  %v10003_v16 = vmul.f32 %v19646_v29, %v19646_v29  ;;  %v22034_v9 = vld [vmem:[#allocation104_spill] sm:$0xff] }
 0xdaa   :  { %v9519_v11 = vpop.f32.mrb[20].mxu1 }
 0xdab   :  { %v19670_v46 = vadd.f32 %v22030_v50, %v9519_v11  ;;  %v9521_v58 = vpop.f32.mrb[21].mxu1  ;;  %v10064_v50 = vadd.f32 %v10063_v1, %v10001_v26  ;;  %v10004_v1 = vmul.f32 %v19655_v42, %v19655_v42 }
 0xdac   :  { %v9522_v30 = vpop.f32.mrb[22].mxu1  ;;  %v9932_v58 = vadd.f32 %v9931_v37, %v19641_v22 }
 0xdad   :  { %v19674_v10 = vadd.f32 %v22031_v20, %v9522_v30  ;;  %v9524_v15 = vpop.f32.mrb[23].mxu1  ;;  %v10065_v20 = vadd.f32 %v10064_v50, %v10002_v60  ;;  %v10005_v60 = vmul.f32 %v19661_v55, %v19661_v55  ;;  %v22036_v50 = vld [vmem:[#allocation60_spill] sm:$0xff] }
 0xdae   :  { %v9933_v45 = vadd.f32 %v9932_v58, %v19646_v29  ;;  %v10006_v58 = vmul.f32 %v19670_v46, %v19670_v46 }
 0xdaf   :  { %22032 = vst [vmem:[#allocation69_spill] sm:$0xff] %v19674_v10  ;;  %v10066_v26 = vadd.f32 %v10065_v20, %v10003_v16 }
 0xdb0   :  { %v9934_v37 = vadd.f32 %v9933_v45, %v19655_v42 }
 0xdb2   :  { %v9527_v11 = vpop.f32.mrb[24].mxu1 }
 0xdb3   :  { %v19683_v8 = vadd.f32 %v22033_v47, %v9527_v11  ;;  %v9529_v35 = vpop.f32.mrb[25].mxu1  ;;  %v10067_v47 = vadd.f32 %v10066_v26, %v10004_v1  ;;  %v10007_v26 = vmul.f32 %v19674_v10, %v19674_v10 }
 0xdb4   :  { %v9530_v30 = vpop.f32.mrb[26].mxu1 }
 0xdb5   :  { %v19688_v15 = vadd.f32 %v22034_v9, %v9530_v30  ;;  %v9532_v62 = vpop.f32.mrb[27].mxu1  ;;  %v9935_v9 = vadd.f32 %v9934_v37, %v19661_v55  ;;  %v10068_v45 = vadd.f32 %v10067_v47, %v10005_v60  ;;  %v10008_v37 = vmul.f32 %v19683_v8, %v19683_v8  ;;  %v22042_v60 = vld [vmem:[#allocation107_spill] sm:$0xff] }
 0xdb6   :  { %v22038_v62 = vld [vmem:[#allocation62_spill] sm:$0xff] }
 0xdb7   :  { %22035 = vst [vmem:[#allocation72_spill] sm:$0xff] %v19688_v15  ;;  %v9936_v16 = vadd.f32 %v9935_v9, %v19670_v46  ;;  %v10069_v1 = vadd.f32 %v10068_v45, %v10006_v58  ;;  %v10009_v45 = vmul.f32 %v19688_v15, %v19688_v15 }
 0xdba   :  { %v9535_v11 = vpop.f32.mrb[28].mxu1 }
 0xdbb   :  { %v19697_v35 = vadd.f32 %v22036_v50, %v9535_v11  ;;  %v9537_v22 = vpop.f32.mrb[29].mxu1  ;;  %v22040_v50 = vld [vmem:[#allocation105_spill] sm:$0xff] }
 0xdbc   :  { %v9538_v30 = vpop.f32.mrb[30].mxu1  ;;  %v9937_v22 = vadd.f32 %v9936_v16, %v19674_v10 }
 0xdbd   :  { %22037 = vst [vmem:[#allocation77_spill] sm:$0xff] %v19697_v35  ;;  %v19703_v29 = vadd.f32 %v22038_v62, %v9538_v30  ;;  %v9540_v20 = vpop.f32.mrb[31].mxu1  ;;  %v10070_v62 = vadd.f32 %v10069_v1, %v10007_v26  ;;  %v10010_v10 = vmul.f32 %v19697_v35, %v19697_v35  ;;  %v22044_v1 = vld [vmem:[#allocation39_spill] sm:$0xff] }
 0xdbe   :  { %v9938_v47 = vadd.f32 %v9937_v22, %v19683_v8 }
 0xdbf   :  { %22039 = vst [vmem:[#allocation65_spill] sm:$0xff] %v19703_v29  ;;  %v10071_v20 = vadd.f32 %v10070_v62, %v10008_v37  ;;  %v10011_v37 = vmul.f32 %v19703_v29, %v19703_v29  ;;  %v22045_v62 = vld [vmem:[#allocation106_spill] sm:$0xff] }
 0xdc0   :  { %v9939_v16 = vadd.f32 %v9938_v47, %v19688_v15 }
 0xdc2   :  { %v9543_v11 = vpop.f32.mrb[32].mxu1 }
 0xdc3   :  { %v19712_v55 = vadd.f32 %v22040_v50, %v9543_v11  ;;  %v9545_v42 = vpop.f32.mrb[33].mxu1  ;;  %v10072_v50 = vadd.f32 %v10071_v20, %v10009_v45 }
 0xdc4   :  { %v9546_v30 = vpop.f32.mrb[34].mxu1  ;;  %v9940_v42 = vadd.f32 %v9939_v16, %v19697_v35 }
 0xdc5   :  { %22041 = vst [vmem:[#allocation32_spill] sm:$0xff] %v19712_v55  ;;  %v19716_v9 = vadd.f32 %v22042_v60, %v9546_v30  ;;  %v9548_v58 = vpop.f32.mrb[35].mxu1  ;;  %v10073_v60 = vadd.f32 %v10072_v50, %v10010_v10  ;;  %v10012_v20 = vmul.f32 %v19712_v55, %v19712_v55  ;;  %v22047_v50 = vld [vmem:[#allocation108_spill] sm:$0xff] }
 0xdc6   :  { %v9941_v15 = vadd.f32 %v9940_v42, %v19703_v29 }
 0xdc7   :  { %22043 = vst [vmem:[#allocation26_spill] sm:$0xff] %v19716_v9  ;;  %v10074_v45 = vadd.f32 %v10073_v60, %v10011_v37  ;;  %v10013_v10 = vmul.f32 %v19716_v9, %v19716_v9 }
 0xdc8   :  { %v9942_v16 = vadd.f32 %v9941_v15, %v19712_v55 }
 0xdca   :  { %v9551_v11 = vpop.f32.mrb[36].mxu1 }
 0xdcb   :  { %v19725_v26 = vadd.f32 %v22044_v1, %v9551_v11  ;;  %v9553_v22 = vpop.f32.mrb[37].mxu1  ;;  %v10075_v1 = vadd.f32 %v10074_v45, %v10012_v20 }
 0xdcc   :  { %v9554_v30 = vpop.f32.mrb[38].mxu1 }
 0xdcd   :  { %v19730_v58 = vadd.f32 %v22045_v62, %v9554_v30  ;;  %v9556_v47 = vpop.f32.mrb[39].mxu1  ;;  %v9943_v62 = vadd.f32 %v9942_v16, %v19716_v9  ;;  %v10014_v42 = vmul.f32 %v19725_v26, %v19725_v26  ;;  %v10076_v15 = vadd.f32 %v10075_v1, %v10013_v10  ;;  %v22052_v10 = vld [vmem:[#allocation109_spill] sm:$0xff] }
 0xdce   :  { %v22048_v47 = vld [vmem:[#allocation110_spill] sm:$0xff] }
 0xdcf   :  { %22046 = vst [vmem:[#allocation49_spill] sm:$0xff] %v19730_v58  ;;  %v9944_v37 = vadd.f32 %v9943_v62, %v19725_v26  ;;  %v10077_v20 = vadd.f32 %v10076_v15, %v10014_v42  ;;  %v10015_v45 = vmul.f32 %v19730_v58, %v19730_v58 }
 0xdd2   :  { %v9559_v11 = vpop.f32.mrb[40].mxu1 }
 0xdd3   :  { %v19739_v22 = vadd.f32 %v22047_v50, %v9559_v11  ;;  %v9561_v35 = vpop.f32.mrb[41].mxu1  ;;  %v22050_v50 = vld [vmem:[#allocation14_spill] sm:$0xff] }
 0xdd4   :  { %v9562_v30 = vpop.f32.mrb[42].mxu1  ;;  %v9945_v35 = vadd.f32 %v9944_v37, %v19730_v58 }
 0xdd5   :  { %v19745_v29 = vadd.f32 %v22048_v47, %v9562_v30  ;;  %v9564_v60 = vpop.f32.mrb[43].mxu1  ;;  %v10016_v16 = vmul.f32 %v19739_v22, %v19739_v22  ;;  %v10078_v47 = vadd.f32 %v10077_v20, %v10015_v45  ;;  %v22054_v20 = vld [vmem:[#allocation111_spill] sm:$0xff] }
 0xdd6   :  { %v9946_v1 = vadd.f32 %v9945_v35, %v19739_v22 }
 0xdd7   :  { %22049 = vst [vmem:[#allocation34_spill] sm:$0xff] %v19745_v29  ;;  %v10079_v60 = vadd.f32 %v10078_v47, %v10016_v16  ;;  %v10017_v15 = vmul.f32 %v19745_v29, %v19745_v29  ;;  %v22056_v47 = vld [vmem:[#allocation113_spill] sm:$0xff] }
 0xdd8   :  { %v9947_v37 = vadd.f32 %v9946_v1, %v19745_v29 }
 0xdda   :  { %v9567_v11 = vpop.f32.mrb[44].mxu1 }
 0xddb   :  { %v19754_v9 = vadd.f32 %v22050_v50, %v9567_v11  ;;  %v9569_v55 = vpop.f32.mrb[45].mxu1  ;;  %v10080_v50 = vadd.f32 %v10079_v60, %v10017_v15 }
 0xddc   :  { %v9570_v30 = vpop.f32.mrb[46].mxu1 }
 0xddd   :  { %22051 = vst [vmem:[#allocation53_spill] sm:$0xff] %v19754_v9  ;;  %v19758_v62 = vadd.f32 %v22052_v10, %v9570_v30  ;;  %v9572_v42 = vpop.f32.mrb[47].mxu1  ;;  %v10018_v58 = vmul.f32 %v19754_v9, %v19754_v9  ;;  %v9948_v55 = vadd.f32 %v9947_v37, %v19754_v9 }
 0xddf   :  { %22053 = vst [vmem:[#allocation31_spill] sm:$0xff] %v19758_v62  ;;  %v10081_v10 = vadd.f32 %v10080_v50, %v10018_v58  ;;  %v10019_v16 = vmul.f32 %v19758_v62, %v19758_v62  ;;  %v9949_v29 = vadd.f32 %v9948_v55, %v19758_v62  ;;  %v22058_v50 = vld [vmem:[#allocation55_spill] sm:$0xff] }
 0xde1   :  { %v10082_v15 = vadd.f32 %v10081_v10, %v10019_v16 }
 0xde2   :  { %v9575_v11 = vpop.f32.mrb[48].mxu1 }
 0xde3   :  { %v19767_v45 = vadd.f32 %v22054_v20, %v9575_v11  ;;  %v9577_v35 = vpop.f32.mrb[49].mxu1 }
 0xde4   :  { %v9578_v30 = vpop.f32.mrb[50].mxu1 }
 0xde5   :  { %22055 = vst [vmem:[#allocation28_spill] sm:$0xff] %v19767_v45  ;;  %v19772_v42 = vadd.f32 %v22056_v47, %v9578_v30  ;;  %v9580_v1 = vpop.f32.mrb[51].mxu1  ;;  %v10020_v60 = vmul.f32 %v19767_v45, %v19767_v45  ;;  %v9950_v37 = vadd.f32 %v9949_v29, %v19767_v45 }
 0xde6   :  { %v22060_v1 = vld [vmem:[#allocation112_spill] sm:$0xff] }
 0xde7   :  { %22057 = vst [vmem:[#allocation6_spill] sm:$0xff] %v19772_v42  ;;  %v10083_v20 = vadd.f32 %v10082_v15, %v10020_v60  ;;  %v10021_v58 = vmul.f32 %v19772_v42, %v19772_v42  ;;  %v9951_v47 = vadd.f32 %v9950_v37, %v19772_v42 }
 0xde9   :  { %v10084_v29 = vadd.f32 %v10083_v20, %v10021_v58 }
 0xdea   :  { %v9583_v11 = vpop.f32.mrb[52].mxu1 }
 0xdeb   :  { %v19781_v35 = vadd.f32 %v22058_v50, %v9583_v11  ;;  %v9585_v9 = vpop.f32.mrb[53].mxu1 }
 0xdec   :  { %v9586_v30 = vpop.f32.mrb[54].mxu1 }
 0xded   :  { %22059 = vst [vmem:[#allocation68_spill] sm:$0xff] %v19781_v35  ;;  %v10022_v55 = vmul.f32 %v19781_v35, %v19781_v35  ;;  %v19787_v62 = vadd.f32 %v22060_v1, %v9586_v30  ;;  %v9588_v10 = vpop.f32.mrb[55].mxu1  ;;  %v9952_v16 = vadd.f32 %v9951_v47, %v19781_v35 }
 0xdef   :  { %22061 = vst [vmem:[#allocation74_spill] sm:$0xff] %v19787_v62  ;;  %v10085_v60 = vadd.f32 %v10084_v29, %v10022_v55  ;;  %v10023_v15 = vmul.f32 %v19787_v62, %v19787_v62  ;;  %v9953_v9 = vadd.f32 %v9952_v16, %v19787_v62 }
 0xdf1   :  { %v10086_v45 = vadd.f32 %v10085_v60, %v10023_v15 }
 0xdf2   :  { %v9591_v11 = vpop.f32.mrb[56].mxu1 }
 0xdf3   :  { %v19794_v50 = vadd.f32 %v19582_v32, %v9591_v11  ;;  %v9593_v37 = vpop.f32.mrb[57].mxu1 }
 0xdf4   :  { %v9594_v42 = vpop.f32.mrb[58].mxu1 }
 0xdf5   :  { %22062 = vst [vmem:[#allocation92_spill] sm:$0xff] %v19794_v50  ;;  %v9954_v30 = vadd.f32 %v9953_v9, %v19794_v50  ;;  %v10024_v20 = vmul.f32 %v19794_v50, %v19794_v50  ;;  %v19800_v58 = vadd.f32 %v19590_v19, %v9594_v42  ;;  %v9596_v47 = vpop.f32.mrb[59].mxu1 }
 0xdf7   :  { %22063 = vst [vmem:[#allocation94_spill] sm:$0xff] %v19800_v58  ;;  %v10087_v55 = vadd.f32 %v10086_v45, %v10024_v20  ;;  %v9955_v1 = vadd.f32 %v9954_v30, %v19800_v58  ;;  %v10025_v10 = vmul.f32 %v19800_v58, %v19800_v58 }
 0xdf9   :  { %v10088_v32 = vadd.f32 %v10087_v55, %v10025_v10 }
 0xdfa   :  { %v9599_v29 = vpop.f32.mrb[60].mxu1 }
 0xdfb   :  { %v19806_v16 = vadd.f32 %v19574_v18, %v9599_v29  ;;  %v9601_v60 = vpop.f32.mrb[61].mxu1 }
 0xdfc   :  { %v9602_v15 = vpop.f32.mrb[62].mxu1 }
 0xdfd   :  { %22064 = vst [vmem:[#allocation50_spill] sm:$0xff] %v19806_v16  ;;  %v9956_v11 = vadd.f32 %v9955_v1, %v19806_v16  ;;  %v10026_v19 = vmul.f32 %v19806_v16, %v19806_v16  ;;  %v19812_v42 = vadd.f32 %v19584_v41, %v9602_v15  ;;  %v9604_v45 = vpop.f32.mrb[63].mxu1 }
 0xdff   :  { %v10089_v9 = vadd.f32 %v10088_v32, %v10026_v19  ;;  %v9957_v37 = vadd.f32 %v9956_v11, %v19812_v42  ;;  %v10027_v30 = vmul.f32 %v19812_v42, %v19812_v42 }
 0xe01   :  { %v9958_v20 = vrot.slane %v9957_v37, 4  ;;  %v10090_v18 = vadd.f32 %v10089_v9, %v10027_v30  ;;  %v10102_v9 = vld [vmem:[%s20593_s8] sm:$0x1] }
 0xe03   :  { %v9959_v47 = vadd.f32 %v9958_v20, %v9957_v37  ;;  %v10091_v55 = vrot.slane %v10090_v18, 4  ;;  %v19823_v20 = vld [vmem:[%s20594_s9] sm:$0x1] }
 0xe05   :  { %v9960_v10 = vrot.slane %v9959_v47, 2  ;;  %v10092_v29 = vadd.f32 %v10091_v55, %v10090_v18 }
 0xe07   :  { %v9961_v1 = vadd.f32 %v9960_v10, %v9959_v47  ;;  %v10093_v60 = vrot.slane %v10092_v29, 2 }
 0xe09   :  { %v9962_v35 = vrot.slane %v9961_v1, 1  ;;  %v10094_v16 = vadd.f32 %v10093_v60, %v10092_v29  ;;  %v22066_v29 = vld [vmem:[#allocation38_spill] sm:$0xff] }
 0xe0a   :  { %v22068_v60 = vld [vmem:[#allocation102_spill] sm:$0xff] }
 0xe0b   :  { %v9963_v58 = vadd.f32 %v9962_v35, %v9961_v1  ;;  %v10095_v41 = vrot.slane %v10094_v16, 1  ;;  %v22067_v1 = vld [vmem:[#allocation66_spill] sm:$0xff] }
 0xe0d   :  { %v10096_v15 = vadd.f32 %v10095_v41, %v10094_v16  ;;  %v10097_v45 = vmul.f32 0.001953125, %v9963_v58  ;;  %v22065_v58 = vld [vmem:[#allocation83_spill] sm:$0xff]  ;;  %v22069_v41 = vld [vmem:[#allocation36_spill] sm:$0xff] }
 0xe0f   :  { %v10098_v32 = vmul.f32 0.001953125, %v10096_v15  ;;  %v10099_v19 = vmul.f32 %v10097_v45, %v10097_v45  ;;  %v22070_v15 = vld [vmem:[#allocation44_spill] sm:$0xff] }
 0xe11   :  { %v10100_v11 = vsub.f32 %v10098_v32, %v10099_v19  ;;  %v22071_v32 = vld [vmem:[#allocation69_spill] sm:$0xff] }
 0xe13   :  { %v10101_v50 = vmax.f32 %v10100_v11, 0.0 }
 0xe15   :  { %v10103_v62 = vadd.f32 1e-05, %v10101_v50 }
 0xe17   :  { %12299 = vrsqrt.f32 %v10103_v62 }
 0xe21   :  { %v12300_v37 = vpop.eup %12299 }
 0xe22   :  { %v10105_v30 = vmul.f32 %v12300_v37, %v10102_v9  ;;  %v22072_v9 = vld [vmem:[#allocation72_spill] sm:$0xff] }
 0xe24   :  { %v19825_v35 = vmul.f32 %v10105_v30, %v10097_v45  ;;  %v19828_v16 = vrot.slane %v10105_v30, %v22065_v58  ;;  %v22073_v30 = vld [vmem:[#allocation77_spill] sm:$0xff] }
 0xe26   :  { %v10108_v50 = vsub.f32 %v19823_v20, %v19825_v35  ;;  %v19834_v62 = vmul.f32 %v19828_v16, %v19415_v14  ;;  %v19838_v18 = vmul.f32 %v19828_v16, %v19418_v6  ;;  %v19842_v47 = vmul.f32 %v19828_v16, %v19423_v49  ;;  %v22074_v35 = vld [vmem:[#allocation65_spill] sm:$0xff] }
 0xe27   :  { %v19846_v55 = vmul.f32 %v19828_v16, %v19426_v31  ;;  %v19850_v10 = vmul.f32 %v19828_v16, %v19431_v38  ;;  %v19854_v14 = vmul.f32 %v19828_v16, %v19434_v44  ;;  %v19858_v6 = vmul.f32 %v19828_v16, %v19441_v53 }
 0xe28   :  { %v19862_v49 = vmul.f32 %v19828_v16, %v19445_v12  ;;  %v19866_v31 = vmul.f32 %v19828_v16, %v19449_v17  ;;  %v19870_v38 = vmul.f32 %v19828_v16, %v19452_v0  ;;  %v19874_v44 = vmul.f32 %v19828_v16, %v19456_v7 }
 0xe29   :  { %v19878_v53 = vmul.f32 %v19828_v16, %v19459_v57  ;;  %v19882_v12 = vmul.f32 %v19828_v16, %v19462_v39  ;;  %v19886_v17 = vmul.f32 %v19828_v16, %v19465_v52  ;;  %v19890_v0 = vmul.f32 %v19828_v16, %v19468_v25 }
 0xe2a   :  { %v19894_v7 = vmul.f32 %v19828_v16, %v19471_v59  ;;  %v19898_v57 = vmul.f32 %v19828_v16, %v19476_v24  ;;  %v19902_v39 = vmul.f32 %v19828_v16, %v19485_v34  ;;  %v19906_v52 = vmul.f32 %v19828_v16, %v19494_v56 }
 0xe2b   :  { %v19910_v25 = vmul.f32 %v19828_v16, %v19498_v3  ;;  %v19914_v59 = vmul.f32 %v19828_v16, %v19507_v40  ;;  %v19918_v24 = vmul.f32 %v19828_v16, %v19512_v5  ;;  %v19922_v34 = vmul.f32 %v19828_v16, %v19521_v48 }
 0xe2c   :  { %v19926_v56 = vmul.f32 %v19828_v16, %v19527_v21  ;;  %v19930_v3 = vmul.f32 %v19828_v16, %v19536_v54  ;;  %v19934_v40 = vmul.f32 %v19828_v16, %v19540_v63  ;;  %v19938_v5 = vmul.f32 %v19828_v16, %v19549_v36 }
 0xe2d   :  { %v19942_v48 = vmul.f32 %v19828_v16, %v19554_v23  ;;  %v19946_v21 = vmul.f32 %v19828_v16, %v19563_v4  ;;  %v19950_v54 = vmul.f32 %v19828_v16, %v19569_v13  ;;  %v19954_v63 = vmul.f32 %v19828_v16, %v19580_v51 }
 0xe2e   :  { %v19958_v36 = vmul.f32 %v19828_v16, %v19588_v2  ;;  %v19962_v23 = vmul.f32 %v19828_v16, %v19599_v43  ;;  %v19966_v4 = vmul.f32 %v19828_v16, %v19604_v27  ;;  %v19970_v13 = vmul.f32 %v19828_v16, %v19613_v33 }
 0xe2f   :  { %v19974_v51 = vmul.f32 %v19828_v16, %v19619_v61  ;;  %v19978_v2 = vmul.f32 %v19828_v16, %v19628_v28  ;;  %v19982_v43 = vmul.f32 %v19828_v16, %v22066_v29  ;;  %v19986_v27 = vmul.f32 %v19828_v16, %v22067_v1  ;;  %v22076_v29 = vld [vmem:[#allocation32_spill] sm:$0xff] }
 0xe30   :  { %v19990_v33 = vmul.f32 %v19828_v16, %v22068_v60  ;;  %v19994_v61 = vmul.f32 %v19828_v16, %v22069_v41  ;;  %v19998_v28 = vmul.f32 %v19828_v16, %v22070_v15  ;;  %v20002_v45 = vmul.f32 %v19828_v16, %v19670_v46  ;;  %v22078_v60 = vld [vmem:[#allocation26_spill] sm:$0xff]  ;;  %v22081_v15 = vld [vmem:[#allocation49_spill] sm:$0xff] }
 0xe31   :  { %v20006_v19 = vmul.f32 %v19828_v16, %v22071_v32  ;;  %v20010_v11 = vmul.f32 %v19828_v16, %v19683_v8  ;;  %v20014_v37 = vmul.f32 %v19828_v16, %v22072_v9  ;;  %v20018_v20 = vmul.f32 %v19828_v16, %v22073_v30  ;;  %v22084_v30 = vld [vmem:[#allocation74_spill] sm:$0xff] }
 0xe32   :  { %v20022_v46 = vmul.f32 %v19828_v16, %v22074_v35  ;;  %v20026_v1 = vmul.f32 %v19828_v16, %v22076_v29  ;;  %v20030_v8 = vmul.f32 %v19828_v16, %v22078_v60  ;;  %v20034_v41 = vmul.f32 %v19828_v16, %v19725_v26  ;;  %v22086_v29 = vld [vmem:[#allocation92_spill] sm:$0xff] }
 0xe33   :  { %v20038_v32 = vmul.f32 %v19828_v16, %v22081_v15  ;;  %v20042_v9 = vmul.f32 %v19828_v16, %v19739_v22  ;;  %v20046_v35 = vmul.f32 %v19828_v16, %v22084_v30  ;;  %v20050_v60 = vmul.f32 %v19828_v16, %v22086_v29 }
 0xe34   :  { %22075 = vst [vmem:[#allocation61_spill] sm:$0xff] %v20022_v46  ;;  %22077 = vst [vmem:[#allocation47_spill] sm:$0xff] %v20026_v1  ;;  %v20066_v30 = vmul.f32 %v19828_v16, %v19812_v42  ;;  %v20069_v29 = vrot.slane %v10108_v50, %v22065_v58 }
 0xe35   :  { %22079 = vst [vmem:[#allocation82_spill] sm:$0xff] %v20030_v8  ;;  %22080 = vst [vmem:[#allocation100_spill] sm:$0xff] %v20034_v41  ;;  %v22088_v8 = vld [vmem:[#allocation94_spill] sm:$0xff] }
 0xe36   :  { %22082 = vst [vmem:[#allocation99_spill] sm:$0xff] %v20038_v32  ;;  %22083 = vst [vmem:[#allocation103_spill] sm:$0xff] %v20042_v9  ;;  %v20054_v26 = vmul.f32 %v19828_v16, %v22088_v8  ;;  %v22090_v41 = vld [vmem:[#allocation50_spill] sm:$0xff]  ;;  %v22093_v9 = vld [vmem:[#allocation53_spill] sm:$0xff]  ;;  %v20085_v42 = vadd.f32 %v20069_v29, %v19838_v18  ;;  %v20089_v58 = vadd.f32 %v20069_v29, %v19842_v47 }
 0xe37   :  { %22085 = vst [vmem:[#allocation85_spill] sm:$0xff] %v20046_v35  ;;  %22087 = vst [vmem:[#allocation75_spill] sm:$0xff] %v20050_v60  ;;  %v20058_v15 = vmul.f32 %v19828_v16, %v22090_v41  ;;  %v22092_v32 = vld [vmem:[#allocation34_spill] sm:$0xff]  ;;  %v10169_v1 = vmul.f32 %v19828_v16, %v22093_v9  ;;  %v22094_v60 = vld [vmem:[#allocation31_spill] sm:$0xff]  ;;  %v20081_v9 = vadd.f32 %v20069_v29, %v19834_v62 }
 0xe38   :  { %22089 = vst [vmem:[#allocation23_spill] sm:$0xff] %v20054_v26  ;;  %v10168_v22 = vmul.f32 %v19828_v16, %v22092_v32  ;;  %v10170_v8 = vmul.f32 %v19828_v16, %v22094_v60  ;;  %v22095_v26 = vld [vmem:[#allocation28_spill] sm:$0xff]  ;;  %v20093_v50 = vadd.f32 %v20069_v29, %v19846_v55  ;;  %v20097_v60 = vadd.f32 %v20069_v29, %v19850_v10 }
 0xe39   :  { %22091 = vst [vmem:[#allocation48_spill] sm:$0xff] %v20058_v15  ;;  %v10171_v41 = vmul.f32 %v19828_v16, %v22095_v26  ;;  %v22096_v15 = vld [vmem:[#allocation6_spill] sm:$0xff]  ;;  %v22097_v32 = vld [vmem:[#allocation68_spill] sm:$0xff]  ;;  %v20105_v62 = vadd.f32 %v20069_v29, %v19858_v6  ;;  %v20109_v18 = vadd.f32 %v20069_v29, %v19862_v49  ;;  %v20113_v47 = vadd.f32 %v20069_v29, %v19866_v31 }
 0xe3a   :  { %v10172_v35 = vmul.f32 %v19828_v16, %v22096_v15  ;;  %v10173_v46 = vmul.f32 %v19828_v16, %v22097_v32  ;;  %v20101_v16 = vadd.f32 %v20069_v29, %v19854_v14  ;;  %v20117_v55 = vadd.f32 %v20069_v29, %v19870_v38 }
 0xe3b   :  { %v20121_v10 = vadd.f32 %v20069_v29, %v19874_v44  ;;  %v20125_v14 = vadd.f32 %v20069_v29, %v19878_v53  ;;  %v20129_v6 = vadd.f32 %v20069_v29, %v19882_v12  ;;  %v20133_v49 = vadd.f32 %v20069_v29, %v19886_v17  ;;  %v22102_v26 = vld [vmem:[#allocation47_spill] sm:$0xff] }
 0xe3c   :  { %v20137_v31 = vadd.f32 %v20069_v29, %v19890_v0  ;;  %v20141_v38 = vadd.f32 %v20069_v29, %v19894_v7  ;;  %v20145_v44 = vadd.f32 %v20069_v29, %v19898_v57  ;;  %v20149_v53 = vadd.f32 %v20069_v29, %v19902_v39  ;;  %v22103_v15 = vld [vmem:[#allocation82_spill] sm:$0xff]  ;;  %v22104_v32 = vld [vmem:[#allocation100_spill] sm:$0xff] }
 0xe3d   :  { %v20153_v12 = vadd.f32 %v20069_v29, %v19906_v52  ;;  %v20157_v17 = vadd.f32 %v20069_v29, %v19910_v25  ;;  %v20161_v0 = vadd.f32 %v20069_v29, %v19914_v59  ;;  %v20165_v7 = vadd.f32 %v20069_v29, %v19918_v24 }
 0xe3e   :  { %v20169_v57 = vadd.f32 %v20069_v29, %v19922_v34  ;;  %v20173_v39 = vadd.f32 %v20069_v29, %v19926_v56  ;;  %v20177_v52 = vadd.f32 %v20069_v29, %v19930_v3  ;;  %v20181_v25 = vadd.f32 %v20069_v29, %v19934_v40 }
 0xe3f   :  { %v20185_v59 = vadd.f32 %v20069_v29, %v19938_v5  ;;  %v20189_v24 = vadd.f32 %v20069_v29, %v19942_v48  ;;  %v20193_v34 = vadd.f32 %v20069_v29, %v19946_v21  ;;  %v20197_v56 = vadd.f32 %v20069_v29, %v19950_v54 }
 0xe40   :  { %v20201_v3 = vadd.f32 %v20069_v29, %v19954_v63  ;;  %v20205_v40 = vadd.f32 %v20069_v29, %v19958_v36  ;;  %v20209_v5 = vadd.f32 %v20069_v29, %v19962_v23  ;;  %v20213_v48 = vadd.f32 %v20069_v29, %v19966_v4 }
 0xe41   :  { %v20217_v21 = vadd.f32 %v20069_v29, %v19970_v13  ;;  %v20221_v54 = vadd.f32 %v20069_v29, %v19974_v51  ;;  %v20225_v63 = vadd.f32 %v20069_v29, %v19978_v2  ;;  %v20229_v36 = vadd.f32 %v20069_v29, %v19982_v43 }
 0xe42   :  { %v20233_v23 = vadd.f32 %v20069_v29, %v19986_v27  ;;  %v20237_v4 = vadd.f32 %v20069_v29, %v19990_v33  ;;  %v20241_v13 = vadd.f32 %v20069_v29, %v19994_v61  ;;  %v20245_v51 = vadd.f32 %v20069_v29, %v19998_v28  ;;  %v22100_v28 = vld [vmem:[#allocation61_spill] sm:$0xff] }
 0xe43   :  { %v20249_v2 = vadd.f32 %v20069_v29, %v20002_v45  ;;  %v20253_v43 = vadd.f32 %v20069_v29, %v20006_v19  ;;  %v20257_v27 = vadd.f32 %v20069_v29, %v20010_v11  ;;  %v20261_v33 = vadd.f32 %v20069_v29, %v20014_v37 }
 0xe44   :  { %v20265_v61 = vadd.f32 %v20069_v29, %v20018_v20  ;;  %v20269_v45 = vadd.f32 %v20069_v29, %v22100_v28  ;;  %v20273_v19 = vadd.f32 %v20069_v29, %v22102_v26  ;;  %v20277_v11 = vadd.f32 %v20069_v29, %v22103_v15 }
 0xe45   :  { %22098 = vst [vmem:[#allocation37_spill] sm:$0xff] %v20261_v33  ;;  %v20281_v37 = vadd.f32 %v20069_v29, %v22104_v32  ;;  %v22106_v33 = vld [vmem:[#allocation99_spill] sm:$0xff]  ;;  %v20295_v26 = vadd.f32 %v20069_v29, %v10169_v1  ;;  %v20298_v15 = vadd.f32 %v20069_v29, %v10170_v8  ;;  %v20301_v32 = vadd.f32 %v20069_v29, %v10171_v41  ;;  %v22117_v41 = vld [vmem:[#allocation48_spill] sm:$0xff] }
 0xe46   :  { %22099 = vst [vmem:[#allocation86_spill] sm:$0xff] %v20265_v61  ;;  %22101 = vst [vmem:[#allocation18_spill] sm:$0xff] %v20269_v45  ;;  %v20285_v20 = vadd.f32 %v20069_v29, %v22106_v33  ;;  %v22107_v61 = vld [vmem:[#allocation103_spill] sm:$0xff]  ;;  %v20292_v45 = vadd.f32 %v20069_v29, %v10168_v22  ;;  %v20307_v33 = vadd.f32 %v20069_v29, %v10173_v46 }
 0xe47   :  { %22105 = vst [vmem:[#allocation64_spill] sm:$0xff] %v20281_v37  ;;  %v20289_v28 = vadd.f32 %v20069_v29, %v22107_v61  ;;  %22109 = vst [vmem:[#allocation73_spill] sm:$0xff] %v20295_v26  ;;  %v20304_v37 = vadd.f32 %v20069_v29, %v10172_v35  ;;  %v22111_v61 = vld [vmem:[#allocation85_spill] sm:$0xff]  ;;  %v22113_v22 = vld [vmem:[#allocation75_spill] sm:$0xff]  ;;  %v20327_v46 = vadd.f32 %v20069_v29, %v20066_v30  ;;  %v10249_v35 = vmax.f32 %v20081_v9, 0.0 }
 0xe48   :  { %22110 = vst [vmem:[#allocation96_spill] sm:$0xff] %v20301_v32  ;;  %v20315_v1 = vadd.f32 %v20069_v29, %v22113_v22  ;;  %v22115_v26 = vld [vmem:[#allocation23_spill] sm:$0xff]  ;;  %v20323_v32 = vadd.f32 %v20069_v29, %v22117_v41  ;;  %v10252_v22 = vmax.f32 %v20093_v50, 0.0  ;;  %v10256_v41 = vmax.f32 %v20109_v18, 0.0 }
 0xe49   :  { %22108 = vst [vmem:[#allocation67_spill] sm:$0xff] %v20289_v28  ;;  %v20311_v28 = vadd.f32 %v20069_v29, %v22111_v61  ;;  %v20319_v8 = vadd.f32 %v20069_v29, %v22115_v26  ;;  %v10250_v61 = vmax.f32 %v20085_v42, 0.0  ;;  %v10254_v26 = vmax.f32 %v20101_v16, 0.0  ;;  %10313 = vst [vmem:[%s20595_s10] sm:$0xff] %v10249_v35 }
 0xe4a   :  { %22114 = vst [vmem:[#allocation79_spill] sm:$0xff] %v20315_v1  ;;  %22118 = vst [vmem:[#allocation27_spill] sm:$0xff] %v20323_v32  ;;  %v10253_v1 = vmax.f32 %v20097_v60, 0.0  ;;  %v10257_v32 = vmax.f32 %v20113_v47, 0.0  ;;  %v10258_v30 = vmax.f32 %v20117_v55, 0.0  ;;  %v10259_v29 = vmax.f32 %v20121_v10, 0.0 }
 0xe4b   :  { %22112 = vst [vmem:[#allocation40_spill] sm:$0xff] %v20311_v28  ;;  %22116 = vst [vmem:[#allocation98_spill] sm:$0xff] %v20319_v8  ;;  %v10251_v28 = vmax.f32 %v20089_v58, 0.0  ;;  %v10255_v8 = vmax.f32 %v20105_v62, 0.0  ;;  %v10260_v9 = vmax.f32 %v20125_v14, 0.0  ;;  %v10261_v42 = vmax.f32 %v20129_v6, 0.0 }
 0xe4c   :  { %10314 = vst [vmem:[%s20595_s10 + $0x8] sm:$0xff] %v10250_v61  ;;  %10316 = vst [vmem:[%s20595_s10 + $0x18] sm:$0xff] %v10252_v22  ;;  %v10262_v58 = vmax.f32 %v20133_v49, 0.0  ;;  %v10263_v50 = vmax.f32 %v20137_v31, 0.0  ;;  %v10264_v60 = vmax.f32 %v20141_v38, 0.0  ;;  %v10265_v16 = vmax.f32 %v20145_v44, 0.0 }
 0xe4d   :  { %10315 = vst [vmem:[%s20595_s10 + $0x10] sm:$0xff] %v10251_v28  ;;  %10317 = vst [vmem:[%s20595_s10 + $0x20] sm:$0xff] %v10253_v1  ;;  %v10266_v62 = vmax.f32 %v20149_v53, 0.0  ;;  %v10267_v18 = vmax.f32 %v20153_v12, 0.0  ;;  %v10268_v47 = vmax.f32 %v20157_v17, 0.0  ;;  %v10269_v55 = vmax.f32 %v20161_v0, 0.0 }
 0xe4e   :  { %10318 = vst [vmem:[%s20595_s10 + $0x28] sm:$0xff] %v10254_v26  ;;  %10319 = vst [vmem:[%s20595_s10 + $0x30] sm:$0xff] %v10255_v8  ;;  %v10270_v10 = vmax.f32 %v20165_v7, 0.0  ;;  %v10271_v14 = vmax.f32 %v20169_v57, 0.0  ;;  %v10272_v6 = vmax.f32 %v20173_v39, 0.0  ;;  %v10273_v49 = vmax.f32 %v20177_v52, 0.0 }
 0xe4f   :  { %10320 = vst [vmem:[%s20595_s10 + $0x38] sm:$0xff] %v10256_v41  ;;  %10321 = vst [vmem:[%s20595_s10 + $0x40] sm:$0xff] %v10257_v32  ;;  %v10274_v31 = vmax.f32 %v20181_v25, 0.0  ;;  %v10275_v38 = vmax.f32 %v20185_v59, 0.0  ;;  %v10276_v44 = vmax.f32 %v20189_v24, 0.0  ;;  %v10277_v53 = vmax.f32 %v20193_v34, 0.0 }
 0xe50   :  { %10322 = vst [vmem:[%s20595_s10 + $0x48] sm:$0xff] %v10258_v30  ;;  %10323 = vst [vmem:[%s20595_s10 + $0x50] sm:$0xff] %v10259_v29  ;;  %v10278_v12 = vmax.f32 %v20197_v56, 0.0  ;;  %v10279_v17 = vmax.f32 %v20201_v3, 0.0  ;;  %v10280_v0 = vmax.f32 %v20205_v40, 0.0  ;;  %v10281_v7 = vmax.f32 %v20209_v5, 0.0 }
 0xe51   :  { %10324 = vst [vmem:[%s20595_s10 + $0x58] sm:$0xff] %v10260_v9  ;;  %10325 = vst [vmem:[%s20595_s10 + $0x60] sm:$0xff] %v10261_v42  ;;  %v10282_v57 = vmax.f32 %v20213_v48, 0.0  ;;  %v10283_v39 = vmax.f32 %v20217_v21, 0.0  ;;  %v10284_v52 = vmax.f32 %v20221_v54, 0.0  ;;  %v10285_v25 = vmax.f32 %v20225_v63, 0.0 }
 0xe52   :  { %10326 = vst [vmem:[%s20595_s10 + $0x68] sm:$0xff] %v10262_v58  ;;  %10327 = vst [vmem:[%s20595_s10 + $0x70] sm:$0xff] %v10263_v50  ;;  %v10286_v59 = vmax.f32 %v20229_v36, 0.0  ;;  %v10287_v24 = vmax.f32 %v20233_v23, 0.0  ;;  %v10288_v34 = vmax.f32 %v20237_v4, 0.0  ;;  %v10289_v56 = vmax.f32 %v20241_v13, 0.0 }
 0xe53   :  { %10328 = vst [vmem:[%s20595_s10 + $0x78] sm:$0xff] %v10264_v60  ;;  %10329 = vst [vmem:[%s20595_s10 + $0x80] sm:$0xff] %v10265_v16  ;;  %v10290_v3 = vmax.f32 %v20245_v51, 0.0  ;;  %v10291_v40 = vmax.f32 %v20249_v2, 0.0  ;;  %v10292_v5 = vmax.f32 %v20253_v43, 0.0  ;;  %v10293_v48 = vmax.f32 %v20257_v27, 0.0 }
 0xe54   :  { %10330 = vst [vmem:[%s20595_s10 + $0x88] sm:$0xff] %v10266_v62  ;;  %10331 = vst [vmem:[%s20595_s10 + $0x90] sm:$0xff] %v10267_v18  ;;  %v22119_v21 = vld [vmem:[#allocation37_spill] sm:$0xff]  ;;  %v22120_v63 = vld [vmem:[#allocation86_spill] sm:$0xff]  ;;  %v10297_v13 = vmax.f32 %v20273_v19, 0.0  ;;  %v10298_v51 = vmax.f32 %v20277_v11, 0.0 }
 0xe55   :  { %10332 = vst [vmem:[%s20595_s10 + $0x98] sm:$0xff] %v10268_v47  ;;  %10333 = vst [vmem:[%s20595_s10 + $0xa0] sm:$0xff] %v10269_v55  ;;  %v10294_v54 = vmax.f32 %v22119_v21, 0.0  ;;  %v10295_v36 = vmax.f32 %v22120_v63, 0.0  ;;  %v22121_v23 = vld [vmem:[#allocation18_spill] sm:$0xff]  ;;  %v22122_v2 = vld [vmem:[#allocation64_spill] sm:$0xff] }
 0xe56   :  { %10334 = vst [vmem:[%s20595_s10 + $0xa8] sm:$0xff] %v10270_v10  ;;  %10335 = vst [vmem:[%s20595_s10 + $0xb0] sm:$0xff] %v10271_v14  ;;  %v10296_v4 = vmax.f32 %v22121_v23, 0.0  ;;  %v10299_v43 = vmax.f32 %v22122_v2, 0.0  ;;  %v10300_v27 = vmax.f32 %v20285_v20, 0.0  ;;  %v22123_v19 = vld [vmem:[#allocation67_spill] sm:$0xff] }
 0xe57   :  { %10336 = vst [vmem:[%s20595_s10 + $0xb8] sm:$0xff] %v10272_v6  ;;  %10337 = vst [vmem:[%s20595_s10 + $0xc0] sm:$0xff] %v10273_v49  ;;  %v10301_v11 = vmax.f32 %v22123_v19, 0.0  ;;  %v10302_v20 = vmax.f32 %v20292_v45, 0.0  ;;  %v22124_v28 = vld [vmem:[#allocation73_spill] sm:$0xff]  ;;  %v10304_v1 = vmax.f32 %v20298_v15, 0.0 }
 0xe58   :  { %10338 = vst [vmem:[%s20595_s10 + $0xc8] sm:$0xff] %v10274_v31  ;;  %10339 = vst [vmem:[%s20595_s10 + $0xd0] sm:$0xff] %v10275_v38  ;;  %v10303_v32 = vmax.f32 %v22124_v28, 0.0  ;;  %v22125_v45 = vld [vmem:[#allocation96_spill] sm:$0xff]  ;;  %v10306_v15 = vmax.f32 %v20304_v37, 0.0  ;;  %v10307_v35 = vmax.f32 %v20307_v33, 0.0 }
 0xe59   :  { %10340 = vst [vmem:[%s20595_s10 + $0xd8] sm:$0xff] %v10276_v44  ;;  %10341 = vst [vmem:[%s20595_s10 + $0xe0] sm:$0xff] %v10277_v53  ;;  %v10305_v8 = vmax.f32 %v22125_v45, 0.0  ;;  %v22126_v61 = vld [vmem:[#allocation40_spill] sm:$0xff]  ;;  %v22127_v37 = vld [vmem:[#allocation79_spill] sm:$0xff]  ;;  %v10312_v9 = vmax.f32 %v20327_v46, 0.0 }
 0xe5a   :  { %10342 = vst [vmem:[%s20595_s10 + $0xe8] sm:$0xff] %v10278_v12  ;;  %10343 = vst [vmem:[%s20595_s10 + $0xf0] sm:$0xff] %v10279_v17  ;;  %v10308_v22 = vmax.f32 %v22126_v61, 0.0  ;;  %v10309_v33 = vmax.f32 %v22127_v37, 0.0  ;;  %v22128_v26 = vld [vmem:[#allocation98_spill] sm:$0xff]  ;;  %v22129_v30 = vld [vmem:[#allocation27_spill] sm:$0xff] }
 0xe5b   :  { %10344 = vst [vmem:[%s20595_s10 + $0xf8] sm:$0xff] %v10280_v0  ;;  %10345 = vst [vmem:[%s20595_s10 + $0x100] sm:$0xff] %v10281_v7  ;;  %v10310_v41 = vmax.f32 %v22128_v26, 0.0  ;;  %v10311_v29 = vmax.f32 %v22129_v30, 0.0 }
 0xe5c   :  { %10346 = vst [vmem:[%s20595_s10 + $0x108] sm:$0xff] %v10282_v57  ;;  %10347 = vst [vmem:[%s20595_s10 + $0x110] sm:$0xff] %v10283_v39 }
 0xe5d   :  { %10348 = vst [vmem:[%s20595_s10 + $0x118] sm:$0xff] %v10284_v52  ;;  %10349 = vst [vmem:[%s20595_s10 + $0x120] sm:$0xff] %v10285_v25 }
 0xe5e   :  { %10350 = vst [vmem:[%s20595_s10 + $0x128] sm:$0xff] %v10286_v59  ;;  %10351 = vst [vmem:[%s20595_s10 + $0x130] sm:$0xff] %v10287_v24 }
 0xe5f   :  { %10352 = vst [vmem:[%s20595_s10 + $0x138] sm:$0xff] %v10288_v34  ;;  %10353 = vst [vmem:[%s20595_s10 + $0x140] sm:$0xff] %v10289_v56 }
 0xe60   :  { %10354 = vst [vmem:[%s20595_s10 + $0x148] sm:$0xff] %v10290_v3  ;;  %10355 = vst [vmem:[%s20595_s10 + $0x150] sm:$0xff] %v10291_v40 }
 0xe61   :  { %10356 = vst [vmem:[%s20595_s10 + $0x158] sm:$0xff] %v10292_v5  ;;  %10357 = vst [vmem:[%s20595_s10 + $0x160] sm:$0xff] %v10293_v48 }
 0xe62   :  { %10358 = vst [vmem:[%s20595_s10 + $0x168] sm:$0xff] %v10294_v54  ;;  %10359 = vst [vmem:[%s20595_s10 + $0x170] sm:$0xff] %v10295_v36 }
 0xe63   :  { %10360 = vst [vmem:[%s20595_s10 + $0x178] sm:$0xff] %v10296_v4  ;;  %10361 = vst [vmem:[%s20595_s10 + $0x180] sm:$0xff] %v10297_v13 }
 0xe64   :  { %10362 = vst [vmem:[%s20595_s10 + $0x188] sm:$0xff] %v10298_v51  ;;  %10363 = vst [vmem:[%s20595_s10 + $0x190] sm:$0xff] %v10299_v43 }
 0xe65   :  { %10364 = vst [vmem:[%s20595_s10 + $0x198] sm:$0xff] %v10300_v27  ;;  %10365 = vst [vmem:[%s20595_s10 + $0x1a0] sm:$0xff] %v10301_v11 }
 0xe66   :  { %10366 = vst [vmem:[%s20595_s10 + $0x1a8] sm:$0xff] %v10302_v20  ;;  %10367 = vst [vmem:[%s20595_s10 + $0x1b0] sm:$0xff] %v10303_v32 }
 0xe67   :  { %10368 = vst [vmem:[%s20595_s10 + $0x1b8] sm:$0xff] %v10304_v1  ;;  %10369 = vst [vmem:[%s20595_s10 + $0x1c0] sm:$0xff] %v10305_v8 }
 0xe68   :  { %10370 = vst [vmem:[%s20595_s10 + $0x1c8] sm:$0xff] %v10306_v15  ;;  %10371 = vst [vmem:[%s20595_s10 + $0x1d0] sm:$0xff] %v10307_v35 }
 0xe69   :  { %10372 = vst [vmem:[%s20595_s10 + $0x1d8] sm:$0xff] %v10308_v22  ;;  %10373 = vst [vmem:[%s20595_s10 + $0x1e0] sm:$0xff] %v10309_v33 }
 0xe6a   :  { %10374 = vst [vmem:[%s20595_s10 + $0x1e8] sm:$0xff] %v10310_v41  ;;  %10375 = vst [vmem:[%s20595_s10 + $0x1f0] sm:$0xff] %v10311_v29 }
 0xe6b   :  { %10376 = vst [vmem:[%s20595_s10 + $0x1f8] sm:$0xff] %v10312_v9 }

</bundles_post_ra>
